<compile_context>
chip_gen: v7x
topology: tpu7x:2x2x1
jax: 0.10.0
libtpu: 0.0.40
codegen_flags: <defaults>
</compile_context>

<pallas_src>
import jax
import jax.numpy as jnp
from jax import lax
from jax.experimental import pallas as pl
from jax.experimental.pallas import tpu as pltpu

HIDDEN = 32    # LSTM hidden size fixed by the module
CONV_CH = 16   # Conv1d output channels fixed by the module


def _round_up(v, m):
    return (v + m - 1) // m * m


def make_lstmcae_kernel(T, Bt, F, H):
    """Kernel body for static (T, Bt, F, H); Bt is the per-grid-step batch tile
    and lives on the lane dimension of every tile."""
    Th = T // 2
    f32 = jnp.float32

    def kernel(x_ref,                               # (T, F, Bt)   lane-dense input
               wihe_ref, whhe_ref, be_ref,          # (4H,F), (4H,H), (4H,1)  enc LSTM
               wce0_ref, wce1_ref, bce_ref,         # (16,H), (16,H), (16,1)  Conv1d taps
               wdcat_ref, bdcat_ref,                # (8H,16), (8H,1)  ConvT folded into dec W_ih
               whhd_ref,                            # (4H,H)                  dec LSTM hidden
               wfc_ref, bfc_ref,                    # (F,H), (F,1)            final Linear
               out_ref,                             # (2, T/2, F, Bt)         even/odd outputs
               genc_scr,                            # (T, 4H, Bt)  enc gates, reused for dec gates
               heven_scr, hodd_scr,                 # (T/2, H, Bt) encoder hidden (even/odd t)
               hdeven_scr, hdodd_scr):              # (T/2, H, Bt) decoder hidden (even/odd t)

        def gate_nonlin(gates, c):
            # PyTorch gate order (i, f, g, o) stacked on sublanes; the H=32 row
            # blocks are whole-vreg groups, so per-gate sigmoid/tanh is free to
            # split and roughly halves the EUP pushes on the serial path.
            i = jax.nn.sigmoid(gates[0 * H:1 * H])
            f = jax.nn.sigmoid(gates[1 * H:2 * H])
            g = jnp.tanh(gates[2 * H:3 * H])
            o = jax.nn.sigmoid(gates[3 * H:4 * H])
            c_new = f * c + i * g
            h_new = o * jnp.tanh(c_new)
            return h_new, c_new

        # ---- stage 1: encoder input projection, batched over time (MXU) ----
        # genc[t] = W_ihe @ x[t] + (b_ihe + b_hhe), already feature-major.
        wihe_b = jnp.broadcast_to(wihe_ref[...][None], (T, 4 * H, F))
        genc_scr[...] = (jnp.einsum('thf,tfb->thb', wihe_b, x_ref[...],
                                    preferred_element_type=f32)
                         + be_ref[...][None])

        whhe = whhe_ref[...]
        whhd = whhd_ref[...]
        zeros = jnp.zeros((H, Bt), f32)
        unroll = True if Th <= 16 else 2

        # ---- stage 2: encoder recurrence (only W_hh @ h on the serial path) ----
        def enc_body(to, carry):
            h, c = carry
            g0 = genc_scr[2 * to] + jnp.dot(whhe, h, preferred_element_type=f32)
            h, c = gate_nonlin(g0, c)
            heven_scr[to] = h
            g1 = genc_scr[2 * to + 1] + jnp.dot(whhe, h, preferred_element_type=f32)
            h, c = gate_nonlin(g1, c)
            hodd_scr[to] = h
            return (h, c)

        lax.fori_loop(0, Th, enc_body, (zeros, zeros), unroll=unroll)

        # ---- stage 3: Conv1d + (ConvTranspose1d folded into decoder W_ih) ----
        # z[to]         = Wce0 @ henc[2to] + Wce1 @ henc[2to+1] + bce
        # gdec[2to + k] = (W_ihd Wcd_k^T) @ z[to] + (W_ihd bcd + b_ihd + b_hhd)
        # The decoder gates are written into the now-dead encoder gate scratch:
        # even-t gates at rows [0:Th), odd-t gates at rows [Th:T).
        wce0_b = jnp.broadcast_to(wce0_ref[...][None], (Th, CONV_CH, H))
        wce1_b = jnp.broadcast_to(wce1_ref[...][None], (Th, CONV_CH, H))
        z = (jnp.einsum('tch,thb->tcb', wce0_b, heven_scr[...],
                        preferred_element_type=f32)
             + jnp.einsum('tch,thb->tcb', wce1_b, hodd_scr[...],
                          preferred_element_type=f32)
             + bce_ref[...][None])                                  # (Th, 16, Bt)
        wdcat_b = jnp.broadcast_to(wdcat_ref[...][None], (Th, 8 * H, CONV_CH))
        gcat = (jnp.einsum('tgc,tcb->tgb', wdcat_b, z,
                           preferred_element_type=f32)
                + bdcat_ref[...][None])                             # (Th, 8H, Bt)
        genc_scr[pl.ds(0, Th)] = gcat[:, :4 * H, :]                 # decoder even-t gates
        genc_scr[pl.ds(Th, Th)] = gcat[:, 4 * H:, :]                # decoder odd-t gates

        # ---- stage 4: decoder recurrence ----
        def dec_body(to, carry):
            h, c = carry
            g0 = genc_scr[to] + jnp.dot(whhd, h, preferred_element_type=f32)
            h, c = gate_nonlin(g0, c)
            hdeven_scr[to] = h
            g1 = genc_scr[Th + to] + jnp.dot(whhd, h, preferred_element_type=f32)
            h, c = gate_nonlin(g1, c)
            hdodd_scr[to] = h
            return (h, c)

        lax.fori_loop(0, Th, dec_body, (zeros, zeros), unroll=unroll)

        # ---- stage 5: residual add + batched final Linear, lane-dense stores ----
        wfc_b = jnp.broadcast_to(wfc_ref[...][None], (Th, F, H))
        xres_e = heven_scr[...] + hdeven_scr[...]
        xres_o = hodd_scr[...] + hdodd_scr[...]
        out_ref[0] = (jnp.einsum('tfh,thb->tfb', wfc_b, xres_e,
                                 preferred_element_type=f32)
                      + bfc_ref[...][None])
        out_ref[1] = (jnp.einsum('tfh,thb->tfb', wfc_b, xres_o,
                                 preferred_element_type=f32)
                      + bfc_ref[...][None])

    return kernel


def lstmcae_forward(x, params, *, b_tile=128):
    """x: (B, T, n_inputs) batch-first, like the PyTorch module."""
    B, T, F = x.shape
    H = HIDDEN
    assert T % 2 == 0, "stride-2 conv/deconv requires even sequence length"
    Th = T // 2

    # Batch lives on lanes: a tile wider than 128 buys nothing per vreg op, a
    # tile narrower than B just splits into more grid steps (good for v7x when
    # B > 128).  Padded batch rows ride in otherwise-empty lanes (free).
    Bt = min(_round_up(b_tile, 8), _round_up(B, 8))
    nb = -(-B // Bt)
    Bp = nb * Bt

    # (B, T, F) -> (nb, T, F, Bt): batch on lanes, batch-tile index leading.
    xt = jnp.transpose(x.astype(jnp.float32), (1, 2, 0))             # (T, F, B)
    if Bp != B:
        xt = jnp.pad(xt, ((0, 0), (0, 0), (0, Bp - B)))
    xt = jnp.transpose(xt.reshape(T, F, nb, Bt), (2, 0, 1, 3))        # (nb,T,F,Bt)

    hp = lambda a, b: jnp.dot(a, b, precision='highest')
    p32 = {k: jnp.asarray(v, jnp.float32) for k, v in params.items()}

    # Host-side constant folding (ConvTranspose folded into decoder W_ih).
    # Feature-major orientation uses PyTorch's (out, in) weights as-is.
    wihd = p32['wihd']                                               # (4H, H)
    wd0 = hp(wihd, p32['wcd'][:, :, 0].T)                            # (4H, 16)
    wd1 = hp(wihd, p32['wcd'][:, :, 1].T)                            # (4H, 16)
    bd = hp(wihd, p32['bcd']) + p32['bihd'] + p32['bhhd']            # (4H,)
    wdcat = jnp.concatenate([wd0, wd1], axis=0)                      # (8H, 16)
    bdcat = jnp.concatenate([bd, bd]).reshape(8 * H, 1)

    args = (
        xt,
        p32['wihe'],                                                 # (4H, F)
        p32['whhe'],                                                 # (4H, H)
        (p32['bihe'] + p32['bhhe']).reshape(4 * H, 1),
        p32['wce'][:, :, 0],                                         # (16, H)
        p32['wce'][:, :, 1],                                         # (16, H)
        p32['bce'].reshape(CONV_CH, 1),
        wdcat, bdcat,
        p32['whhd'],                                                 # (4H, H)
        p32['wfc'],                                                  # (F, H)
        p32['bfc'].reshape(F, 1),
    )

    def _const_spec(a):
        zeros = (0,) * a.ndim
        return pl.BlockSpec(a.shape, lambda b, _z=zeros: _z)

    in_specs = [pl.BlockSpec((None, T, F, Bt), lambda b: (b, 0, 0, 0))]
    in_specs += [_const_spec(a) for a in args[1:]]
    out_spec = pl.BlockSpec((None, 2, Th, F, Bt), lambda b: (b, 0, 0, 0, 0))

    # VMEM budget from the actual footprint (lane dim padded to 128 in VMEM):
    # scratches + double-buffered x/out blocks + batched-matmul temporaries.
    Bl = _round_up(Bt, 128)
    est = 4 * Bl * (T * 4 * H          # gate scratch (enc, reused for dec)
                    + 4 * Th * H       # hidden-state scratches
                    + 2 * T * F        # x block, double buffered
                    + 2 * 2 * Th * F   # out block, double buffered
                    + T * 4 * H        # stage-1 einsum temporary
                    + Th * 8 * H)      # decoder-gate temporary
    vmem_limit = int(min(100 * 2**20, max(32 * 2**20, 1.5 * est)))

    kernel = make_lstmcae_kernel(T, Bt, F, H)
    out_k = pl.pallas_call(
        kernel,
        out_shape=jax.ShapeDtypeStruct((nb, 2, Th, F, Bt), jnp.float32),
        grid=(nb,),
        in_specs=in_specs,
        out_specs=out_spec,
        scratch_shapes=[
            pltpu.VMEM((T, 4 * H, Bt), jnp.float32),    # enc gates, reused as dec gates
            pltpu.VMEM((Th, H, Bt), jnp.float32),       # enc h (even t)
            pltpu.VMEM((Th, H, Bt), jnp.float32),       # enc h (odd t)
            pltpu.VMEM((Th, H, Bt), jnp.float32),       # dec h (even t)
            pltpu.VMEM((Th, H, Bt), jnp.float32),       # dec h (odd t)
        ],
        compiler_params=pltpu.CompilerParams(
            dimension_semantics=("parallel",),
            vmem_limit_bytes=vmem_limit),
    )(*args)

    # (nb, 2, Th, F, Bt) -> (Bp, T, F) -> (B, T, F)
    out = jnp.transpose(out_k, (0, 4, 2, 1, 3)).reshape(Bp, T, F)
    return out[:B]


# ------------------------- pure-JAX reference (sanity check) -------------------------
def _lstm_ref(x, wih, whh, bih, bhh):
    B, T, F = x.shape
    H = whh.shape[1]
    hp = lambda a, b: jnp.dot(a, b, precision='highest')

    def step(carry, x_t):
        h, c = carry
        gates = hp(x_t, wih.T) + hp(h, whh.T) + bih + bhh
        i, f, g, o = jnp.split(gates, 4, axis=-1)
        c = jax.nn.sigmoid(f) * c + jax.nn.sigmoid(i) * jnp.tanh(g)
        h = jax.nn.sigmoid(o) * jnp.tanh(c)
        return (h, c), h

    zeros = jnp.zeros((B, H), x.dtype)
    _, hs = lax.scan(step, (zeros, zeros), jnp.transpose(x, (1, 0, 2)))
    return jnp.transpose(hs, (1, 0, 2))


def lstmcae_ref(x, p):
    hp = lambda a, b: jnp.dot(a, b, precision='highest')
    B, T, F = x.shape
    henc = _lstm_ref(x, p['wihe'], p['whhe'], p['bihe'], p['bhhe'])      # (B,T,32)
    # Conv1d(32->16, k=2, s=2), channel-last formulation
    xe, xo = henc[:, 0::2, :], henc[:, 1::2, :]
    conv = hp(xe, p['wce'][:, :, 0].T) + hp(xo, p['wce'][:, :, 1].T) + p['bce']
    # ConvTranspose1d(16->32, k=2, s=2)
    y0 = hp(conv, p['wcd'][:, :, 0]) + p['bcd']
    y1 = hp(conv, p['wcd'][:, :, 1]) + p['bcd']
    xdec = jnp.stack([y0, y1], axis=2).reshape(B, T, HIDDEN)
    hdec = _lstm_ref(xdec, p['wihd'], p['whhd'], p['bihd'], p['bhhd'])
    return hp(henc + hdec, p['wfc'].T) + p['bfc']


if __name__ == "__main__":
    B, T, F, H = 2, 8, 4, HIDDEN   # batch=2, seq length=8, n_inputs=4

    key = jax.random.PRNGKey(0)
    keys = jax.random.split(key, 16)

    def u(k, shape, scale):
        return jax.random.uniform(k, shape, jnp.float32, -scale, scale)

    s_lstm = 1.0 / (H ** 0.5)
    s_ce = 1.0 / ((H * 2) ** 0.5)
    s_cd = 1.0 / ((CONV_CH * 2) ** 0.5)
    s_fc = 1.0 / (H ** 0.5)

    params = dict(
        # lstm_enc
        wihe=u(keys[0], (4 * H, F), s_lstm), whhe=u(keys[1], (4 * H, H), s_lstm),
        bihe=u(keys[2], (4 * H,), s_lstm), bhhe=u(keys[3], (4 * H,), s_lstm),
        # cnn1d_enc: Conv1d(32, 16, k=2, s=2) -> weight (16, 32, 2)
        wce=u(keys[4], (CONV_CH, H, 2), s_ce), bce=u(keys[5], (CONV_CH,), s_ce),
        # cnn1d_dec: ConvTranspose1d(16, 32, k=2, s=2) -> weight (16, 32, 2)
        wcd=u(keys[6], (CONV_CH, H, 2), s_cd), bcd=u(keys[7], (H,), s_cd),
        # lstm_dec
        wihd=u(keys[8], (4 * H, H), s_lstm), whhd=u(keys[9], (4 * H, H), s_lstm),
        bihd=u(keys[10], (4 * H,), s_lstm), bhhd=u(keys[11], (4 * H,), s_lstm),
        # fc: Linear(32, n_inputs) -> weight (n_inputs, 32)
        wfc=u(keys[12], (F, H), s_fc), bfc=u(keys[13], (F,), s_fc),
    )

    x = jax.random.normal(keys[14], (B, T, F), jnp.float32)

    out = lstmcae_forward(x, params)
    out = jax.block_until_ready(out)

    ref = lstmcae_ref(x, params)
    assert out.shape == (B, T, F)
    err = float(jnp.max(jnp.abs(out - ref)))
    assert err < 2e-2, f"mismatch vs reference, max abs err = {err}"

    print("KERNEL_OK")
</pallas_src>

<mosaic_0001>
module attributes {stable_mosaic.version = 11 : i64} {
  func.func @kernel(%arg0: i32, %arg1: memref<1x8x4x8xf32, #tpu.memory_space<vmem>>, %arg2: memref<128x4xf32, #tpu.memory_space<vmem>>, %arg3: memref<128x32xf32, #tpu.memory_space<vmem>>, %arg4: memref<128x1xf32, #tpu.memory_space<vmem>>, %arg5: memref<16x32xf32, #tpu.memory_space<vmem>>, %arg6: memref<16x32xf32, #tpu.memory_space<vmem>>, %arg7: memref<16x1xf32, #tpu.memory_space<vmem>>, %arg8: memref<256x16xf32, #tpu.memory_space<vmem>>, %arg9: memref<256x1xf32, #tpu.memory_space<vmem>>, %arg10: memref<128x32xf32, #tpu.memory_space<vmem>>, %arg11: memref<4x32xf32, #tpu.memory_space<vmem>>, %arg12: memref<4x1xf32, #tpu.memory_space<vmem>>, %arg13: memref<1x2x4x4x8xf32, #tpu.memory_space<vmem>>, %arg14: memref<8x128x8xf32, #tpu.memory_space<vmem>>, %arg15: memref<4x32x8xf32, #tpu.memory_space<vmem>>, %arg16: memref<4x32x8xf32, #tpu.memory_space<vmem>>, %arg17: memref<4x32x8xf32, #tpu.memory_space<vmem>>, %arg18: memref<4x32x8xf32, #tpu.memory_space<vmem>>) attributes {dimension_semantics = [#tpu.dimension_semantics<parallel>], iteration_bounds = array<i64: 1>, scalar_prefetch = 0 : i64, scratch_operands = 5 : i64, tpu.core_type = #tpu.core_type<tc>, window_params = [{transform_indices = @transform_0, window_bounds = array<i64: 1, 8, 4, 8>}, {pipeline_mode = #tpu.pipeline_mode<synchronous>, transform_indices = @transform_1, window_bounds = array<i64: 128, 4>}, {pipeline_mode = #tpu.pipeline_mode<synchronous>, transform_indices = @transform_2, window_bounds = array<i64: 128, 32>}, {pipeline_mode = #tpu.pipeline_mode<synchronous>, transform_indices = @transform_3, window_bounds = array<i64: 128, 1>}, {pipeline_mode = #tpu.pipeline_mode<synchronous>, transform_indices = @transform_4, window_bounds = array<i64: 16, 32>}, {pipeline_mode = #tpu.pipeline_mode<synchronous>, transform_indices = @transform_5, window_bounds = array<i64: 16, 32>}, {pipeline_mode = #tpu.pipeline_mode<synchronous>, transform_indices = @transform_6, window_bounds = array<i64: 16, 1>}, {pipeline_mode = #tpu.pipeline_mode<synchronous>, transform_indices = @transform_7, window_bounds = array<i64: 256, 16>}, {pipeline_mode = #tpu.pipeline_mode<synchronous>, transform_indices = @transform_8, window_bounds = array<i64: 256, 1>}, {pipeline_mode = #tpu.pipeline_mode<synchronous>, transform_indices = @transform_9, window_bounds = array<i64: 128, 32>}, {pipeline_mode = #tpu.pipeline_mode<synchronous>, transform_indices = @transform_10, window_bounds = array<i64: 4, 32>}, {pipeline_mode = #tpu.pipeline_mode<synchronous>, transform_indices = @transform_11, window_bounds = array<i64: 4, 1>}, {transform_indices = @transform_12, window_bounds = array<i64: 1, 2, 4, 4, 8>}]} {
    %c0 = arith.constant 0 : index
    %c0_0 = arith.constant 0 : index
    %0 = vector.load %arg2[%c0, %c0_0] : memref<128x4xf32, #tpu.memory_space<vmem>>, vector<128x4xf32>
    %1 = vector.shape_cast %0 : vector<128x4xf32> to vector<1x128x4xf32>
    %2 = vector.shape_cast %1 : vector<1x128x4xf32> to vector<1x128x4xf32>
    %3 = vector.broadcast %2 : vector<1x128x4xf32> to vector<8x128x4xf32>
    %c0_1 = arith.constant 0 : index
    %c0_2 = arith.constant 0 : index
    %c0_3 = arith.constant 0 : index
    %c0_4 = arith.constant 0 : index
    %4 = vector.load %arg1[%c0_1, %c0_2, %c0_3, %c0_4] : memref<1x8x4x8xf32, #tpu.memory_space<vmem>>, vector<1x8x4x8xf32>
    %5 = vector.shape_cast %4 : vector<1x8x4x8xf32> to vector<8x4x8xf32>
    "tpu.trace_start"() <{level = 10 : i32, message = "thf,tfb->thb"}> : () -> ()
    %cst = arith.constant dense<0.000000e+00> : vector<8x128x8xf32>
    %6 = tpu.matmul %3, %5, %cst {dimension_numbers = #tpu.dot_dimension_numbers<[2], [1], [1], [2], [0, 0, 0, 1, 1, 2], [0], [0]>} : vector<8x128x4xf32>, vector<8x4x8xf32>, vector<8x128x8xf32> -> vector<8x128x8xf32>
    "tpu.trace_stop"() : () -> ()
    %c0_5 = arith.constant 0 : index
    %c0_6 = arith.constant 0 : index
    %7 = vector.load %arg4[%c0_5, %c0_6] : memref<128x1xf32, #tpu.memory_space<vmem>>, vector<128x1xf32>
    %8 = vector.shape_cast %7 : vector<128x1xf32> to vector<1x128x1xf32>
    %9 = vector.broadcast %8 : vector<1x128x1xf32> to vector<8x128x8xf32>
    %10 = arith.addf %6, %9 : vector<8x128x8xf32>
    %c0_7 = arith.constant 0 : index
    %c0_8 = arith.constant 0 : index
    %c0_9 = arith.constant 0 : index
    %11 = vector.load %arg14[%c0_7, %c0_8, %c0_9] : memref<8x128x8xf32, #tpu.memory_space<vmem>>, vector<8x128x8xf32>
    tpu.vector_store %arg14[%c0_7, %c0_8, %c0_9], %10 {strides = array<i32>} : memref<8x128x8xf32, #tpu.memory_space<vmem>>, vector<8x128x8xf32>,
    %c0_10 = arith.constant 0 : index
    %c0_11 = arith.constant 0 : index
    %12 = vector.load %arg3[%c0_10, %c0_11] : memref<128x32xf32, #tpu.memory_space<vmem>>, vector<128x32xf32>
    %c0_12 = arith.constant 0 : index
    %c0_13 = arith.constant 0 : index
    %13 = vector.load %arg10[%c0_12, %c0_13] : memref<128x32xf32, #tpu.memory_space<vmem>>, vector<128x32xf32>
    %cst_14 = arith.constant 0.000000e+00 : f32
    %14 = vector.broadcast %cst_14 : f32 to vector<32x8xf32>
    %c0_i32 = arith.constant 0 : i32
    %c2_i32 = arith.constant 2 : i32
    %15 = arith.muli %c2_i32, %c0_i32 : i32
    %16 = arith.index_cast %15 : i32 to index
    %c0_15 = arith.constant 0 : index
    %c0_16 = arith.constant 0 : index
    %17 = vector.load %arg14[%16, %c0_15, %c0_16] : memref<8x128x8xf32, #tpu.memory_space<vmem>>, vector<1x128x8xf32>
    %18 = vector.shape_cast %17 : vector<1x128x8xf32> to vector<128x8xf32>
    %cst_17 = arith.constant dense<0.000000e+00> : vector<128x8xf32>
    %19 = tpu.matmul %12, %14, %cst_17 {dimension_numbers = #tpu.dot_dimension_numbers<[1], [0], [0], [1], [0, 0, 1, 1], [], []>} : vector<128x32xf32>, vector<32x8xf32>, vector<128x8xf32> -> vector<128x8xf32>
    %20 = arith.addf %18, %19 : vector<128x8xf32>
    %21 = vector.extract_strided_slice %20 {offsets = [0, 0], sizes = [32, 8], strides = [1, 1]} : vector<128x8xf32> to vector<32x8xf32>
    %22 = arith.negf %21 : vector<32x8xf32>
    %23 = math.exp %22 : vector<32x8xf32>
    %cst_18 = arith.constant 1.000000e+00 : f32
    %24 = vector.broadcast %cst_18 : f32 to vector<32x8xf32>
    %25 = arith.addf %24, %23 : vector<32x8xf32>
    %26 = arith.divf %24, %25 : vector<32x8xf32>
    %27 = vector.extract_strided_slice %20 {offsets = [32, 0], sizes = [32, 8], strides = [1, 1]} : vector<128x8xf32> to vector<32x8xf32>
    %28 = arith.negf %27 : vector<32x8xf32>
    %29 = math.exp %28 : vector<32x8xf32>
    %cst_19 = arith.constant 1.000000e+00 : f32
    %30 = vector.broadcast %cst_19 : f32 to vector<32x8xf32>
    %31 = arith.addf %30, %29 : vector<32x8xf32>
    %32 = arith.divf %30, %31 : vector<32x8xf32>
    %33 = vector.extract_strided_slice %20 {offsets = [64, 0], sizes = [32, 8], strides = [1, 1]} : vector<128x8xf32> to vector<32x8xf32>
    %34 = math.tanh %33 : vector<32x8xf32>
    %35 = vector.extract_strided_slice %20 {offsets = [96, 0], sizes = [32, 8], strides = [1, 1]} : vector<128x8xf32> to vector<32x8xf32>
    %36 = arith.negf %35 : vector<32x8xf32>
    %37 = math.exp %36 : vector<32x8xf32>
    %cst_20 = arith.constant 1.000000e+00 : f32
    %38 = vector.broadcast %cst_20 : f32 to vector<32x8xf32>
    %39 = arith.addf %38, %37 : vector<32x8xf32>
    %40 = arith.divf %38, %39 : vector<32x8xf32>
    %41 = arith.mulf %32, %14 : vector<32x8xf32>
    %42 = arith.mulf %26, %34 : vector<32x8xf32>
    %43 = arith.addf %41, %42 : vector<32x8xf32>
    %44 = math.tanh %43 : vector<32x8xf32>
    %45 = arith.mulf %40, %44 : vector<32x8xf32>
    %46 = arith.index_cast %c0_i32 : i32 to index
    %c0_21 = arith.constant 0 : index
    %c0_22 = arith.constant 0 : index
    %47 = vector.load %arg15[%46, %c0_21, %c0_22] : memref<4x32x8xf32, #tpu.memory_space<vmem>>, vector<1x32x8xf32>
    %48 = vector.shape_cast %47 : vector<1x32x8xf32> to vector<32x8xf32>
    %49 = vector.shape_cast %45 : vector<32x8xf32> to vector<1x32x8xf32>
    tpu.vector_store %arg15[%46, %c0_21, %c0_22], %49 {strides = array<i32>} : memref<4x32x8xf32, #tpu.memory_space<vmem>>, vector<1x32x8xf32>,
    %c2_i32_23 = arith.constant 2 : i32
    %50 = arith.muli %c2_i32_23, %c0_i32 : i32
    %c1_i32 = arith.constant 1 : i32
    %51 = arith.addi %50, %c1_i32 : i32
    %52 = arith.index_cast %51 : i32 to index
    %c0_24 = arith.constant 0 : index
    %c0_25 = arith.constant 0 : index
    %53 = vector.load %arg14[%52, %c0_24, %c0_25] : memref<8x128x8xf32, #tpu.memory_space<vmem>>, vector<1x128x8xf32>
    %54 = vector.shape_cast %53 : vector<1x128x8xf32> to vector<128x8xf32>
    %cst_26 = arith.constant dense<0.000000e+00> : vector<128x8xf32>
    %55 = tpu.matmul %12, %45, %cst_26 {dimension_numbers = #tpu.dot_dimension_numbers<[1], [0], [0], [1], [0, 0, 1, 1], [], []>} : vector<128x32xf32>, vector<32x8xf32>, vector<128x8xf32> -> vector<128x8xf32>
    %56 = arith.addf %54, %55 : vector<128x8xf32>
    %57 = vector.extract_strided_slice %56 {offsets = [0, 0], sizes = [32, 8], strides = [1, 1]} : vector<128x8xf32> to vector<32x8xf32>
    %58 = arith.negf %57 : vector<32x8xf32>
    %59 = math.exp %58 : vector<32x8xf32>
    %cst_27 = arith.constant 1.000000e+00 : f32
    %60 = vector.broadcast %cst_27 : f32 to vector<32x8xf32>
    %61 = arith.addf %60, %59 : vector<32x8xf32>
    %62 = arith.divf %60, %61 : vector<32x8xf32>
    %63 = vector.extract_strided_slice %56 {offsets = [32, 0], sizes = [32, 8], strides = [1, 1]} : vector<128x8xf32> to vector<32x8xf32>
    %64 = arith.negf %63 : vector<32x8xf32>
    %65 = math.exp %64 : vector<32x8xf32>
    %cst_28 = arith.constant 1.000000e+00 : f32
    %66 = vector.broadcast %cst_28 : f32 to vector<32x8xf32>
    %67 = arith.addf %66, %65 : vector<32x8xf32>
    %68 = arith.divf %66, %67 : vector<32x8xf32>
    %69 = vector.extract_strided_slice %56 {offsets = [64, 0], sizes = [32, 8], strides = [1, 1]} : vector<128x8xf32> to vector<32x8xf32>
    %70 = math.tanh %69 : vector<32x8xf32>
    %71 = vector.extract_strided_slice %56 {offsets = [96, 0], sizes = [32, 8], strides = [1, 1]} : vector<128x8xf32> to vector<32x8xf32>
    %72 = arith.negf %71 : vector<32x8xf32>
    %73 = math.exp %72 : vector<32x8xf32>
    %cst_29 = arith.constant 1.000000e+00 : f32
    %74 = vector.broadcast %cst_29 : f32 to vector<32x8xf32>
    %75 = arith.addf %74, %73 : vector<32x8xf32>
    %76 = arith.divf %74, %75 : vector<32x8xf32>
    %77 = arith.mulf %68, %43 : vector<32x8xf32>
    %78 = arith.mulf %62, %70 : vector<32x8xf32>
    %79 = arith.addf %77, %78 : vector<32x8xf32>
    %80 = math.tanh %79 : vector<32x8xf32>
    %81 = arith.mulf %76, %80 : vector<32x8xf32>
    %82 = arith.index_cast %c0_i32 : i32 to index
    %c0_30 = arith.constant 0 : index
    %c0_31 = arith.constant 0 : index
    %83 = vector.load %arg16[%82, %c0_30, %c0_31] : memref<4x32x8xf32, #tpu.memory_space<vmem>>, vector<1x32x8xf32>
    %84 = vector.shape_cast %83 : vector<1x32x8xf32> to vector<32x8xf32>
    %85 = vector.shape_cast %81 : vector<32x8xf32> to vector<1x32x8xf32>
    tpu.vector_store %arg16[%82, %c0_30, %c0_31], %85 {strides = array<i32>} : memref<4x32x8xf32, #tpu.memory_space<vmem>>, vector<1x32x8xf32>,
    %c1_i32_32 = arith.constant 1 : i32
    %c2_i32_33 = arith.constant 2 : i32
    %86 = arith.muli %c2_i32_33, %c1_i32_32 : i32
    %87 = arith.index_cast %86 : i32 to index
    %c0_34 = arith.constant 0 : index
    %c0_35 = arith.constant 0 : index
    %88 = vector.load %arg14[%87, %c0_34, %c0_35] : memref<8x128x8xf32, #tpu.memory_space<vmem>>, vector<1x128x8xf32>
    %89 = vector.shape_cast %88 : vector<1x128x8xf32> to vector<128x8xf32>
    %cst_36 = arith.constant dense<0.000000e+00> : vector<128x8xf32>
    %90 = tpu.matmul %12, %81, %cst_36 {dimension_numbers = #tpu.dot_dimension_numbers<[1], [0], [0], [1], [0, 0, 1, 1], [], []>} : vector<128x32xf32>, vector<32x8xf32>, vector<128x8xf32> -> vector<128x8xf32>
    %91 = arith.addf %89, %90 : vector<128x8xf32>
    %92 = vector.extract_strided_slice %91 {offsets = [0, 0], sizes = [32, 8], strides = [1, 1]} : vector<128x8xf32> to vector<32x8xf32>
    %93 = arith.negf %92 : vector<32x8xf32>
    %94 = math.exp %93 : vector<32x8xf32>
    %cst_37 = arith.constant 1.000000e+00 : f32
    %95 = vector.broadcast %cst_37 : f32 to vector<32x8xf32>
    %96 = arith.addf %95, %94 : vector<32x8xf32>
    %97 = arith.divf %95, %96 : vector<32x8xf32>
    %98 = vector.extract_strided_slice %91 {offsets = [32, 0], sizes = [32, 8], strides = [1, 1]} : vector<128x8xf32> to vector<32x8xf32>
    %99 = arith.negf %98 : vector<32x8xf32>
    %100 = math.exp %99 : vector<32x8xf32>
    %cst_38 = arith.constant 1.000000e+00 : f32
    %101 = vector.broadcast %cst_38 : f32 to vector<32x8xf32>
    %102 = arith.addf %101, %100 : vector<32x8xf32>
    %103 = arith.divf %101, %102 : vector<32x8xf32>
    %104 = vector.extract_strided_slice %91 {offsets = [64, 0], sizes = [32, 8], strides = [1, 1]} : vector<128x8xf32> to vector<32x8xf32>
    %105 = math.tanh %104 : vector<32x8xf32>
    %106 = vector.extract_strided_slice %91 {offsets = [96, 0], sizes = [32, 8], strides = [1, 1]} : vector<128x8xf32> to vector<32x8xf32>
    %107 = arith.negf %106 : vector<32x8xf32>
    %108 = math.exp %107 : vector<32x8xf32>
    %cst_39 = arith.constant 1.000000e+00 : f32
    %109 = vector.broadcast %cst_39 : f32 to vector<32x8xf32>
    %110 = arith.addf %109, %108 : vector<32x8xf32>
    %111 = arith.divf %109, %110 : vector<32x8xf32>
    %112 = arith.mulf %103, %79 : vector<32x8xf32>
    %113 = arith.mulf %97, %105 : vector<32x8xf32>
    %114 = arith.addf %112, %113 : vector<32x8xf32>
    %115 = math.tanh %114 : vector<32x8xf32>
    %116 = arith.mulf %111, %115 : vector<32x8xf32>
    %117 = arith.index_cast %c1_i32_32 : i32 to index
    %c0_40 = arith.constant 0 : index
    %c0_41 = arith.constant 0 : index
    %118 = vector.load %arg15[%117, %c0_40, %c0_41] : memref<4x32x8xf32, #tpu.memory_space<vmem>>, vector<1x32x8xf32>
    %119 = vector.shape_cast %118 : vector<1x32x8xf32> to vector<32x8xf32>
    %120 = vector.shape_cast %116 : vector<32x8xf32> to vector<1x32x8xf32>
    tpu.vector_store %arg15[%117, %c0_40, %c0_41], %120 {strides = array<i32>} : memref<4x32x8xf32, #tpu.memory_space<vmem>>, vector<1x32x8xf32>,
    %c2_i32_42 = arith.constant 2 : i32
    %121 = arith.muli %c2_i32_42, %c1_i32_32 : i32
    %c1_i32_43 = arith.constant 1 : i32
    %122 = arith.addi %121, %c1_i32_43 : i32
    %123 = arith.index_cast %122 : i32 to index
    %c0_44 = arith.constant 0 : index
    %c0_45 = arith.constant 0 : index
    %124 = vector.load %arg14[%123, %c0_44, %c0_45] : memref<8x128x8xf32, #tpu.memory_space<vmem>>, vector<1x128x8xf32>
    %125 = vector.shape_cast %124 : vector<1x128x8xf32> to vector<128x8xf32>
    %cst_46 = arith.constant dense<0.000000e+00> : vector<128x8xf32>
    %126 = tpu.matmul %12, %116, %cst_46 {dimension_numbers = #tpu.dot_dimension_numbers<[1], [0], [0], [1], [0, 0, 1, 1], [], []>} : vector<128x32xf32>, vector<32x8xf32>, vector<128x8xf32> -> vector<128x8xf32>
    %127 = arith.addf %125, %126 : vector<128x8xf32>
    %128 = vector.extract_strided_slice %127 {offsets = [0, 0], sizes = [32, 8], strides = [1, 1]} : vector<128x8xf32> to vector<32x8xf32>
    %129 = arith.negf %128 : vector<32x8xf32>
    %130 = math.exp %129 : vector<32x8xf32>
    %cst_47 = arith.constant 1.000000e+00 : f32
    %131 = vector.broadcast %cst_47 : f32 to vector<32x8xf32>
    %132 = arith.addf %131, %130 : vector<32x8xf32>
    %133 = arith.divf %131, %132 : vector<32x8xf32>
    %134 = vector.extract_strided_slice %127 {offsets = [32, 0], sizes = [32, 8], strides = [1, 1]} : vector<128x8xf32> to vector<32x8xf32>
    %135 = arith.negf %134 : vector<32x8xf32>
    %136 = math.exp %135 : vector<32x8xf32>
    %cst_48 = arith.constant 1.000000e+00 : f32
    %137 = vector.broadcast %cst_48 : f32 to vector<32x8xf32>
    %138 = arith.addf %137, %136 : vector<32x8xf32>
    %139 = arith.divf %137, %138 : vector<32x8xf32>
    %140 = vector.extract_strided_slice %127 {offsets = [64, 0], sizes = [32, 8], strides = [1, 1]} : vector<128x8xf32> to vector<32x8xf32>
    %141 = math.tanh %140 : vector<32x8xf32>
    %142 = vector.extract_strided_slice %127 {offsets = [96, 0], sizes = [32, 8], strides = [1, 1]} : vector<128x8xf32> to vector<32x8xf32>
    %143 = arith.negf %142 : vector<32x8xf32>
    %144 = math.exp %143 : vector<32x8xf32>
    %cst_49 = arith.constant 1.000000e+00 : f32
    %145 = vector.broadcast %cst_49 : f32 to vector<32x8xf32>
    %146 = arith.addf %145, %144 : vector<32x8xf32>
    %147 = arith.divf %145, %146 : vector<32x8xf32>
    %148 = arith.mulf %139, %114 : vector<32x8xf32>
    %149 = arith.mulf %133, %141 : vector<32x8xf32>
    %150 = arith.addf %148, %149 : vector<32x8xf32>
    %151 = math.tanh %150 : vector<32x8xf32>
    %152 = arith.mulf %147, %151 : vector<32x8xf32>
    %153 = arith.index_cast %c1_i32_32 : i32 to index
    %c0_50 = arith.constant 0 : index
    %c0_51 = arith.constant 0 : index
    %154 = vector.load %arg16[%153, %c0_50, %c0_51] : memref<4x32x8xf32, #tpu.memory_space<vmem>>, vector<1x32x8xf32>
    %155 = vector.shape_cast %154 : vector<1x32x8xf32> to vector<32x8xf32>
    %156 = vector.shape_cast %152 : vector<32x8xf32> to vector<1x32x8xf32>
    tpu.vector_store %arg16[%153, %c0_50, %c0_51], %156 {strides = array<i32>} : memref<4x32x8xf32, #tpu.memory_space<vmem>>, vector<1x32x8xf32>,
    %c2_i32_52 = arith.constant 2 : i32
    %c2_i32_53 = arith.constant 2 : i32
    %157 = arith.muli %c2_i32_53, %c2_i32_52 : i32
    %158 = arith.index_cast %157 : i32 to index
    %c0_54 = arith.constant 0 : index
    %c0_55 = arith.constant 0 : index
    %159 = vector.load %arg14[%158, %c0_54, %c0_55] : memref<8x128x8xf32, #tpu.memory_space<vmem>>, vector<1x128x8xf32>
    %160 = vector.shape_cast %159 : vector<1x128x8xf32> to vector<128x8xf32>
    %cst_56 = arith.constant dense<0.000000e+00> : vector<128x8xf32>
    %161 = tpu.matmul %12, %152, %cst_56 {dimension_numbers = #tpu.dot_dimension_numbers<[1], [0], [0], [1], [0, 0, 1, 1], [], []>} : vector<128x32xf32>, vector<32x8xf32>, vector<128x8xf32> -> vector<128x8xf32>
    %162 = arith.addf %160, %161 : vector<128x8xf32>
    %163 = vector.extract_strided_slice %162 {offsets = [0, 0], sizes = [32, 8], strides = [1, 1]} : vector<128x8xf32> to vector<32x8xf32>
    %164 = arith.negf %163 : vector<32x8xf32>
    %165 = math.exp %164 : vector<32x8xf32>
    %cst_57 = arith.constant 1.000000e+00 : f32
    %166 = vector.broadcast %cst_57 : f32 to vector<32x8xf32>
    %167 = arith.addf %166, %165 : vector<32x8xf32>
    %168 = arith.divf %166, %167 : vector<32x8xf32>
    %169 = vector.extract_strided_slice %162 {offsets = [32, 0], sizes = [32, 8], strides = [1, 1]} : vector<128x8xf32> to vector<32x8xf32>
    %170 = arith.negf %169 : vector<32x8xf32>
    %171 = math.exp %170 : vector<32x8xf32>
    %cst_58 = arith.constant 1.000000e+00 : f32
    %172 = vector.broadcast %cst_58 : f32 to vector<32x8xf32>
    %173 = arith.addf %172, %171 : vector<32x8xf32>
    %174 = arith.divf %172, %173 : vector<32x8xf32>
    %175 = vector.extract_strided_slice %162 {offsets = [64, 0], sizes = [32, 8], strides = [1, 1]} : vector<128x8xf32> to vector<32x8xf32>
    %176 = math.tanh %175 : vector<32x8xf32>
    %177 = vector.extract_strided_slice %162 {offsets = [96, 0], sizes = [32, 8], strides = [1, 1]} : vector<128x8xf32> to vector<32x8xf32>
    %178 = arith.negf %177 : vector<32x8xf32>
    %179 = math.exp %178 : vector<32x8xf32>
    %cst_59 = arith.constant 1.000000e+00 : f32
    %180 = vector.broadcast %cst_59 : f32 to vector<32x8xf32>
    %181 = arith.addf %180, %179 : vector<32x8xf32>
    %182 = arith.divf %180, %181 : vector<32x8xf32>
    %183 = arith.mulf %174, %150 : vector<32x8xf32>
    %184 = arith.mulf %168, %176 : vector<32x8xf32>
    %185 = arith.addf %183, %184 : vector<32x8xf32>
    %186 = math.tanh %185 : vector<32x8xf32>
    %187 = arith.mulf %182, %186 : vector<32x8xf32>
    %188 = arith.index_cast %c2_i32_52 : i32 to index
    %c0_60 = arith.constant 0 : index
    %c0_61 = arith.constant 0 : index
    %189 = vector.load %arg15[%188, %c0_60, %c0_61] : memref<4x32x8xf32, #tpu.memory_space<vmem>>, vector<1x32x8xf32>
    %190 = vector.shape_cast %189 : vector<1x32x8xf32> to vector<32x8xf32>
    %191 = vector.shape_cast %187 : vector<32x8xf32> to vector<1x32x8xf32>
    tpu.vector_store %arg15[%188, %c0_60, %c0_61], %191 {strides = array<i32>} : memref<4x32x8xf32, #tpu.memory_space<vmem>>, vector<1x32x8xf32>,
    %c2_i32_62 = arith.constant 2 : i32
    %192 = arith.muli %c2_i32_62, %c2_i32_52 : i32
    %c1_i32_63 = arith.constant 1 : i32
    %193 = arith.addi %192, %c1_i32_63 : i32
    %194 = arith.index_cast %193 : i32 to index
    %c0_64 = arith.constant 0 : index
    %c0_65 = arith.constant 0 : index
    %195 = vector.load %arg14[%194, %c0_64, %c0_65] : memref<8x128x8xf32, #tpu.memory_space<vmem>>, vector<1x128x8xf32>
    %196 = vector.shape_cast %195 : vector<1x128x8xf32> to vector<128x8xf32>
    %cst_66 = arith.constant dense<0.000000e+00> : vector<128x8xf32>
    %197 = tpu.matmul %12, %187, %cst_66 {dimension_numbers = #tpu.dot_dimension_numbers<[1], [0], [0], [1], [0, 0, 1, 1], [], []>} : vector<128x32xf32>, vector<32x8xf32>, vector<128x8xf32> -> vector<128x8xf32>
    %198 = arith.addf %196, %197 : vector<128x8xf32>
    %199 = vector.extract_strided_slice %198 {offsets = [0, 0], sizes = [32, 8], strides = [1, 1]} : vector<128x8xf32> to vector<32x8xf32>
    %200 = arith.negf %199 : vector<32x8xf32>
    %201 = math.exp %200 : vector<32x8xf32>
    %cst_67 = arith.constant 1.000000e+00 : f32
    %202 = vector.broadcast %cst_67 : f32 to vector<32x8xf32>
    %203 = arith.addf %202, %201 : vector<32x8xf32>
    %204 = arith.divf %202, %203 : vector<32x8xf32>
    %205 = vector.extract_strided_slice %198 {offsets = [32, 0], sizes = [32, 8], strides = [1, 1]} : vector<128x8xf32> to vector<32x8xf32>
    %206 = arith.negf %205 : vector<32x8xf32>
    %207 = math.exp %206 : vector<32x8xf32>
    %cst_68 = arith.constant 1.000000e+00 : f32
    %208 = vector.broadcast %cst_68 : f32 to vector<32x8xf32>
    %209 = arith.addf %208, %207 : vector<32x8xf32>
    %210 = arith.divf %208, %209 : vector<32x8xf32>
    %211 = vector.extract_strided_slice %198 {offsets = [64, 0], sizes = [32, 8], strides = [1, 1]} : vector<128x8xf32> to vector<32x8xf32>
    %212 = math.tanh %211 : vector<32x8xf32>
    %213 = vector.extract_strided_slice %198 {offsets = [96, 0], sizes = [32, 8], strides = [1, 1]} : vector<128x8xf32> to vector<32x8xf32>
    %214 = arith.negf %213 : vector<32x8xf32>
    %215 = math.exp %214 : vector<32x8xf32>
    %cst_69 = arith.constant 1.000000e+00 : f32
    %216 = vector.broadcast %cst_69 : f32 to vector<32x8xf32>
    %217 = arith.addf %216, %215 : vector<32x8xf32>
    %218 = arith.divf %216, %217 : vector<32x8xf32>
    %219 = arith.mulf %210, %185 : vector<32x8xf32>
    %220 = arith.mulf %204, %212 : vector<32x8xf32>
    %221 = arith.addf %219, %220 : vector<32x8xf32>
    %222 = math.tanh %221 : vector<32x8xf32>
    %223 = arith.mulf %218, %222 : vector<32x8xf32>
    %224 = arith.index_cast %c2_i32_52 : i32 to index
    %c0_70 = arith.constant 0 : index
    %c0_71 = arith.constant 0 : index
    %225 = vector.load %arg16[%224, %c0_70, %c0_71] : memref<4x32x8xf32, #tpu.memory_space<vmem>>, vector<1x32x8xf32>
    %226 = vector.shape_cast %225 : vector<1x32x8xf32> to vector<32x8xf32>
    %227 = vector.shape_cast %223 : vector<32x8xf32> to vector<1x32x8xf32>
    tpu.vector_store %arg16[%224, %c0_70, %c0_71], %227 {strides = array<i32>} : memref<4x32x8xf32, #tpu.memory_space<vmem>>, vector<1x32x8xf32>,
    %c3_i32 = arith.constant 3 : i32
    %c2_i32_72 = arith.constant 2 : i32
    %228 = arith.muli %c2_i32_72, %c3_i32 : i32
    %229 = arith.index_cast %228 : i32 to index
    %c0_73 = arith.constant 0 : index
    %c0_74 = arith.constant 0 : index
    %230 = vector.load %arg14[%229, %c0_73, %c0_74] : memref<8x128x8xf32, #tpu.memory_space<vmem>>, vector<1x128x8xf32>
    %231 = vector.shape_cast %230 : vector<1x128x8xf32> to vector<128x8xf32>
    %cst_75 = arith.constant dense<0.000000e+00> : vector<128x8xf32>
    %232 = tpu.matmul %12, %223, %cst_75 {dimension_numbers = #tpu.dot_dimension_numbers<[1], [0], [0], [1], [0, 0, 1, 1], [], []>} : vector<128x32xf32>, vector<32x8xf32>, vector<128x8xf32> -> vector<128x8xf32>
    %233 = arith.addf %231, %232 : vector<128x8xf32>
    %234 = vector.extract_strided_slice %233 {offsets = [0, 0], sizes = [32, 8], strides = [1, 1]} : vector<128x8xf32> to vector<32x8xf32>
    %235 = arith.negf %234 : vector<32x8xf32>
    %236 = math.exp %235 : vector<32x8xf32>
    %cst_76 = arith.constant 1.000000e+00 : f32
    %237 = vector.broadcast %cst_76 : f32 to vector<32x8xf32>
    %238 = arith.addf %237, %236 : vector<32x8xf32>
    %239 = arith.divf %237, %238 : vector<32x8xf32>
    %240 = vector.extract_strided_slice %233 {offsets = [32, 0], sizes = [32, 8], strides = [1, 1]} : vector<128x8xf32> to vector<32x8xf32>
    %241 = arith.negf %240 : vector<32x8xf32>
    %242 = math.exp %241 : vector<32x8xf32>
    %cst_77 = arith.constant 1.000000e+00 : f32
    %243 = vector.broadcast %cst_77 : f32 to vector<32x8xf32>
    %244 = arith.addf %243, %242 : vector<32x8xf32>
    %245 = arith.divf %243, %244 : vector<32x8xf32>
    %246 = vector.extract_strided_slice %233 {offsets = [64, 0], sizes = [32, 8], strides = [1, 1]} : vector<128x8xf32> to vector<32x8xf32>
    %247 = math.tanh %246 : vector<32x8xf32>
    %248 = vector.extract_strided_slice %233 {offsets = [96, 0], sizes = [32, 8], strides = [1, 1]} : vector<128x8xf32> to vector<32x8xf32>
    %249 = arith.negf %248 : vector<32x8xf32>
    %250 = math.exp %249 : vector<32x8xf32>
    %cst_78 = arith.constant 1.000000e+00 : f32
    %251 = vector.broadcast %cst_78 : f32 to vector<32x8xf32>
    %252 = arith.addf %251, %250 : vector<32x8xf32>
    %253 = arith.divf %251, %252 : vector<32x8xf32>
    %254 = arith.mulf %245, %221 : vector<32x8xf32>
    %255 = arith.mulf %239, %247 : vector<32x8xf32>
    %256 = arith.addf %254, %255 : vector<32x8xf32>
    %257 = math.tanh %256 : vector<32x8xf32>
    %258 = arith.mulf %253, %257 : vector<32x8xf32>
    %259 = arith.index_cast %c3_i32 : i32 to index
    %c0_79 = arith.constant 0 : index
    %c0_80 = arith.constant 0 : index
    %260 = vector.load %arg15[%259, %c0_79, %c0_80] : memref<4x32x8xf32, #tpu.memory_space<vmem>>, vector<1x32x8xf32>
    %261 = vector.shape_cast %260 : vector<1x32x8xf32> to vector<32x8xf32>
    %262 = vector.shape_cast %258 : vector<32x8xf32> to vector<1x32x8xf32>
    tpu.vector_store %arg15[%259, %c0_79, %c0_80], %262 {strides = array<i32>} : memref<4x32x8xf32, #tpu.memory_space<vmem>>, vector<1x32x8xf32>,
    %c2_i32_81 = arith.constant 2 : i32
    %263 = arith.muli %c2_i32_81, %c3_i32 : i32
    %c1_i32_82 = arith.constant 1 : i32
    %264 = arith.addi %263, %c1_i32_82 : i32
    %265 = arith.index_cast %264 : i32 to index
    %c0_83 = arith.constant 0 : index
    %c0_84 = arith.constant 0 : index
    %266 = vector.load %arg14[%265, %c0_83, %c0_84] : memref<8x128x8xf32, #tpu.memory_space<vmem>>, vector<1x128x8xf32>
    %267 = vector.shape_cast %266 : vector<1x128x8xf32> to vector<128x8xf32>
    %cst_85 = arith.constant dense<0.000000e+00> : vector<128x8xf32>
    %268 = tpu.matmul %12, %258, %cst_85 {dimension_numbers = #tpu.dot_dimension_numbers<[1], [0], [0], [1], [0, 0, 1, 1], [], []>} : vector<128x32xf32>, vector<32x8xf32>, vector<128x8xf32> -> vector<128x8xf32>
    %269 = arith.addf %267, %268 : vector<128x8xf32>
    %270 = vector.extract_strided_slice %269 {offsets = [0, 0], sizes = [32, 8], strides = [1, 1]} : vector<128x8xf32> to vector<32x8xf32>
    %271 = arith.negf %270 : vector<32x8xf32>
    %272 = math.exp %271 : vector<32x8xf32>
    %cst_86 = arith.constant 1.000000e+00 : f32
    %273 = vector.broadcast %cst_86 : f32 to vector<32x8xf32>
    %274 = arith.addf %273, %272 : vector<32x8xf32>
    %275 = arith.divf %273, %274 : vector<32x8xf32>
    %276 = vector.extract_strided_slice %269 {offsets = [32, 0], sizes = [32, 8], strides = [1, 1]} : vector<128x8xf32> to vector<32x8xf32>
    %277 = arith.negf %276 : vector<32x8xf32>
    %278 = math.exp %277 : vector<32x8xf32>
    %cst_87 = arith.constant 1.000000e+00 : f32
    %279 = vector.broadcast %cst_87 : f32 to vector<32x8xf32>
    %280 = arith.addf %279, %278 : vector<32x8xf32>
    %281 = arith.divf %279, %280 : vector<32x8xf32>
    %282 = vector.extract_strided_slice %269 {offsets = [64, 0], sizes = [32, 8], strides = [1, 1]} : vector<128x8xf32> to vector<32x8xf32>
    %283 = math.tanh %282 : vector<32x8xf32>
    %284 = vector.extract_strided_slice %269 {offsets = [96, 0], sizes = [32, 8], strides = [1, 1]} : vector<128x8xf32> to vector<32x8xf32>
    %285 = arith.negf %284 : vector<32x8xf32>
    %286 = math.exp %285 : vector<32x8xf32>
    %cst_88 = arith.constant 1.000000e+00 : f32
    %287 = vector.broadcast %cst_88 : f32 to vector<32x8xf32>
    %288 = arith.addf %287, %286 : vector<32x8xf32>
    %289 = arith.divf %287, %288 : vector<32x8xf32>
    %290 = arith.mulf %281, %256 : vector<32x8xf32>
    %291 = arith.mulf %275, %283 : vector<32x8xf32>
    %292 = arith.addf %290, %291 : vector<32x8xf32>
    %293 = math.tanh %292 : vector<32x8xf32>
    %294 = arith.mulf %289, %293 : vector<32x8xf32>
    %295 = arith.index_cast %c3_i32 : i32 to index
    %c0_89 = arith.constant 0 : index
    %c0_90 = arith.constant 0 : index
    %296 = vector.load %arg16[%295, %c0_89, %c0_90] : memref<4x32x8xf32, #tpu.memory_space<vmem>>, vector<1x32x8xf32>
    %297 = vector.shape_cast %296 : vector<1x32x8xf32> to vector<32x8xf32>
    %298 = vector.shape_cast %294 : vector<32x8xf32> to vector<1x32x8xf32>
    tpu.vector_store %arg16[%295, %c0_89, %c0_90], %298 {strides = array<i32>} : memref<4x32x8xf32, #tpu.memory_space<vmem>>, vector<1x32x8xf32>,
    %c4_i32 = arith.constant 4 : i32
    %c0_91 = arith.constant 0 : index
    %c0_92 = arith.constant 0 : index
    %299 = vector.load %arg5[%c0_91, %c0_92] : memref<16x32xf32, #tpu.memory_space<vmem>>, vector<16x32xf32>
    %300 = vector.shape_cast %299 : vector<16x32xf32> to vector<1x16x32xf32>
    %301 = vector.shape_cast %300 : vector<1x16x32xf32> to vector<1x16x32xf32>
    %302 = vector.broadcast %301 : vector<1x16x32xf32> to vector<4x16x32xf32>
    %c0_93 = arith.constant 0 : index
    %c0_94 = arith.constant 0 : index
    %303 = vector.load %arg6[%c0_93, %c0_94] : memref<16x32xf32, #tpu.memory_space<vmem>>, vector<16x32xf32>
    %304 = vector.shape_cast %303 : vector<16x32xf32> to vector<1x16x32xf32>
    %305 = vector.shape_cast %304 : vector<1x16x32xf32> to vector<1x16x32xf32>
    %306 = vector.broadcast %305 : vector<1x16x32xf32> to vector<4x16x32xf32>
    %c0_95 = arith.constant 0 : index
    %c0_96 = arith.constant 0 : index
    %c0_97 = arith.constant 0 : index
    %307 = vector.load %arg15[%c0_95, %c0_96, %c0_97] : memref<4x32x8xf32, #tpu.memory_space<vmem>>, vector<4x32x8xf32>
    "tpu.trace_start"() <{level = 10 : i32, message = "tch,thb->tcb"}> : () -> ()
    %cst_98 = arith.constant dense<0.000000e+00> : vector<4x16x8xf32>
    %308 = tpu.matmul %302, %307, %cst_98 {dimension_numbers = #tpu.dot_dimension_numbers<[2], [1], [1], [2], [0, 0, 0, 1, 1, 2], [0], [0]>} : vector<4x16x32xf32>, vector<4x32x8xf32>, vector<4x16x8xf32> -> vector<4x16x8xf32>
    "tpu.trace_stop"() : () -> ()
    %c0_99 = arith.constant 0 : index
    %c0_100 = arith.constant 0 : index
    %c0_101 = arith.constant 0 : index
    %309 = vector.load %arg16[%c0_99, %c0_100, %c0_101] : memref<4x32x8xf32, #tpu.memory_space<vmem>>, vector<4x32x8xf32>
    "tpu.trace_start"() <{level = 10 : i32, message = "tch,thb->tcb"}> : () -> ()
    %cst_102 = arith.constant dense<0.000000e+00> : vector<4x16x8xf32>
    %310 = tpu.matmul %306, %309, %cst_102 {dimension_numbers = #tpu.dot_dimension_numbers<[2], [1], [1], [2], [0, 0, 0, 1, 1, 2], [0], [0]>} : vector<4x16x32xf32>, vector<4x32x8xf32>, vector<4x16x8xf32> -> vector<4x16x8xf32>
    "tpu.trace_stop"() : () -> ()
    %311 = arith.addf %308, %310 : vector<4x16x8xf32>
    %c0_103 = arith.constant 0 : index
    %c0_104 = arith.constant 0 : index
    %312 = vector.load %arg7[%c0_103, %c0_104] : memref<16x1xf32, #tpu.memory_space<vmem>>, vector<16x1xf32>
    %313 = vector.shape_cast %312 : vector<16x1xf32> to vector<1x16x1xf32>
    %314 = vector.broadcast %313 : vector<1x16x1xf32> to vector<4x16x8xf32>
    %315 = arith.addf %311, %314 : vector<4x16x8xf32>
    %c0_105 = arith.constant 0 : index
    %c0_106 = arith.constant 0 : index
    %316 = vector.load %arg8[%c0_105, %c0_106] : memref<256x16xf32, #tpu.memory_space<vmem>>, vector<256x16xf32>
    %317 = vector.shape_cast %316 : vector<256x16xf32> to vector<1x256x16xf32>
    %318 = vector.shape_cast %317 : vector<1x256x16xf32> to vector<1x256x16xf32>
    %319 = vector.broadcast %318 : vector<1x256x16xf32> to vector<4x256x16xf32>
    "tpu.trace_start"() <{level = 10 : i32, message = "tgc,tcb->tgb"}> : () -> ()
    %cst_107 = arith.constant dense<0.000000e+00> : vector<4x256x8xf32>
    %320 = tpu.matmul %319, %315, %cst_107 {dimension_numbers = #tpu.dot_dimension_numbers<[2], [1], [1], [2], [0, 0, 0, 1, 1, 2], [0], [0]>} : vector<4x256x16xf32>, vector<4x16x8xf32>, vector<4x256x8xf32> -> vector<4x256x8xf32>
    "tpu.trace_stop"() : () -> ()
    %c0_108 = arith.constant 0 : index
    %c0_109 = arith.constant 0 : index
    %321 = vector.load %arg9[%c0_108, %c0_109] : memref<256x1xf32, #tpu.memory_space<vmem>>, vector<256x1xf32>
    %322 = vector.shape_cast %321 : vector<256x1xf32> to vector<1x256x1xf32>
    %323 = vector.broadcast %322 : vector<1x256x1xf32> to vector<4x256x8xf32>
    %324 = arith.addf %320, %323 : vector<4x256x8xf32>
    %325 = vector.extract_strided_slice %324 {offsets = [0, 0, 0], sizes = [4, 128, 8], strides = [1, 1, 1]} : vector<4x256x8xf32> to vector<4x128x8xf32>
    %c0_110 = arith.constant 0 : index
    %c0_111 = arith.constant 0 : index
    %c0_112 = arith.constant 0 : index
    %326 = vector.load %arg14[%c0_110, %c0_111, %c0_112] : memref<8x128x8xf32, #tpu.memory_space<vmem>>, vector<4x128x8xf32>
    tpu.vector_store %arg14[%c0_110, %c0_111, %c0_112], %325 {strides = array<i32>} : memref<8x128x8xf32, #tpu.memory_space<vmem>>, vector<4x128x8xf32>,
    %327 = vector.extract_strided_slice %324 {offsets = [0, 128, 0], sizes = [4, 128, 8], strides = [1, 1, 1]} : vector<4x256x8xf32> to vector<4x128x8xf32>
    %c4 = arith.constant 4 : index
    %c0_113 = arith.constant 0 : index
    %c0_114 = arith.constant 0 : index
    %328 = vector.load %arg14[%c4, %c0_113, %c0_114] : memref<8x128x8xf32, #tpu.memory_space<vmem>>, vector<4x128x8xf32>
    tpu.vector_store %arg14[%c4, %c0_113, %c0_114], %327 {strides = array<i32>} : memref<8x128x8xf32, #tpu.memory_space<vmem>>, vector<4x128x8xf32>,
    %c0_i32_115 = arith.constant 0 : i32
    %329 = arith.index_cast %c0_i32_115 : i32 to index
    %c0_116 = arith.constant 0 : index
    %c0_117 = arith.constant 0 : index
    %330 = vector.load %arg14[%329, %c0_116, %c0_117] : memref<8x128x8xf32, #tpu.memory_space<vmem>>, vector<1x128x8xf32>
    %331 = vector.shape_cast %330 : vector<1x128x8xf32> to vector<128x8xf32>
    %cst_118 = arith.constant dense<0.000000e+00> : vector<128x8xf32>
    %332 = tpu.matmul %13, %14, %cst_118 {dimension_numbers = #tpu.dot_dimension_numbers<[1], [0], [0], [1], [0, 0, 1, 1], [], []>} : vector<128x32xf32>, vector<32x8xf32>, vector<128x8xf32> -> vector<128x8xf32>
    %333 = arith.addf %331, %332 : vector<128x8xf32>
    %334 = vector.extract_strided_slice %333 {offsets = [0, 0], sizes = [32, 8], strides = [1, 1]} : vector<128x8xf32> to vector<32x8xf32>
    %335 = arith.negf %334 : vector<32x8xf32>
    %336 = math.exp %335 : vector<32x8xf32>
    %cst_119 = arith.constant 1.000000e+00 : f32
    %337 = vector.broadcast %cst_119 : f32 to vector<32x8xf32>
    %338 = arith.addf %337, %336 : vector<32x8xf32>
    %339 = arith.divf %337, %338 : vector<32x8xf32>
    %340 = vector.extract_strided_slice %333 {offsets = [32, 0], sizes = [32, 8], strides = [1, 1]} : vector<128x8xf32> to vector<32x8xf32>
    %341 = arith.negf %340 : vector<32x8xf32>
    %342 = math.exp %341 : vector<32x8xf32>
    %cst_120 = arith.constant 1.000000e+00 : f32
    %343 = vector.broadcast %cst_120 : f32 to vector<32x8xf32>
    %344 = arith.addf %343, %342 : vector<32x8xf32>
    %345 = arith.divf %343, %344 : vector<32x8xf32>
    %346 = vector.extract_strided_slice %333 {offsets = [64, 0], sizes = [32, 8], strides = [1, 1]} : vector<128x8xf32> to vector<32x8xf32>
    %347 = math.tanh %346 : vector<32x8xf32>
    %348 = vector.extract_strided_slice %333 {offsets = [96, 0], sizes = [32, 8], strides = [1, 1]} : vector<128x8xf32> to vector<32x8xf32>
    %349 = arith.negf %348 : vector<32x8xf32>
    %350 = math.exp %349 : vector<32x8xf32>
    %cst_121 = arith.constant 1.000000e+00 : f32
    %351 = vector.broadcast %cst_121 : f32 to vector<32x8xf32>
    %352 = arith.addf %351, %350 : vector<32x8xf32>
    %353 = arith.divf %351, %352 : vector<32x8xf32>
    %354 = arith.mulf %345, %14 : vector<32x8xf32>
    %355 = arith.mulf %339, %347 : vector<32x8xf32>
    %356 = arith.addf %354, %355 : vector<32x8xf32>
    %357 = math.tanh %356 : vector<32x8xf32>
    %358 = arith.mulf %353, %357 : vector<32x8xf32>
    %359 = arith.index_cast %c0_i32_115 : i32 to index
    %c0_122 = arith.constant 0 : index
    %c0_123 = arith.constant 0 : index
    %360 = vector.load %arg17[%359, %c0_122, %c0_123] : memref<4x32x8xf32, #tpu.memory_space<vmem>>, vector<1x32x8xf32>
    %361 = vector.shape_cast %360 : vector<1x32x8xf32> to vector<32x8xf32>
    %362 = vector.shape_cast %358 : vector<32x8xf32> to vector<1x32x8xf32>
    tpu.vector_store %arg17[%359, %c0_122, %c0_123], %362 {strides = array<i32>} : memref<4x32x8xf32, #tpu.memory_space<vmem>>, vector<1x32x8xf32>,
    %c4_i32_124 = arith.constant 4 : i32
    %363 = arith.addi %c4_i32_124, %c0_i32_115 : i32
    %364 = arith.index_cast %363 : i32 to index
    %c0_125 = arith.constant 0 : index
    %c0_126 = arith.constant 0 : index
    %365 = vector.load %arg14[%364, %c0_125, %c0_126] : memref<8x128x8xf32, #tpu.memory_space<vmem>>, vector<1x128x8xf32>
    %366 = vector.shape_cast %365 : vector<1x128x8xf32> to vector<128x8xf32>
    %cst_127 = arith.constant dense<0.000000e+00> : vector<128x8xf32>
    %367 = tpu.matmul %13, %358, %cst_127 {dimension_numbers = #tpu.dot_dimension_numbers<[1], [0], [0], [1], [0, 0, 1, 1], [], []>} : vector<128x32xf32>, vector<32x8xf32>, vector<128x8xf32> -> vector<128x8xf32>
    %368 = arith.addf %366, %367 : vector<128x8xf32>
    %369 = vector.extract_strided_slice %368 {offsets = [0, 0], sizes = [32, 8], strides = [1, 1]} : vector<128x8xf32> to vector<32x8xf32>
    %370 = arith.negf %369 : vector<32x8xf32>
    %371 = math.exp %370 : vector<32x8xf32>
    %cst_128 = arith.constant 1.000000e+00 : f32
    %372 = vector.broadcast %cst_128 : f32 to vector<32x8xf32>
    %373 = arith.addf %372, %371 : vector<32x8xf32>
    %374 = arith.divf %372, %373 : vector<32x8xf32>
    %375 = vector.extract_strided_slice %368 {offsets = [32, 0], sizes = [32, 8], strides = [1, 1]} : vector<128x8xf32> to vector<32x8xf32>
    %376 = arith.negf %375 : vector<32x8xf32>
    %377 = math.exp %376 : vector<32x8xf32>
    %cst_129 = arith.constant 1.000000e+00 : f32
    %378 = vector.broadcast %cst_129 : f32 to vector<32x8xf32>
    %379 = arith.addf %378, %377 : vector<32x8xf32>
    %380 = arith.divf %378, %379 : vector<32x8xf32>
    %381 = vector.extract_strided_slice %368 {offsets = [64, 0], sizes = [32, 8], strides = [1, 1]} : vector<128x8xf32> to vector<32x8xf32>
    %382 = math.tanh %381 : vector<32x8xf32>
    %383 = vector.extract_strided_slice %368 {offsets = [96, 0], sizes = [32, 8], strides = [1, 1]} : vector<128x8xf32> to vector<32x8xf32>
    %384 = arith.negf %383 : vector<32x8xf32>
    %385 = math.exp %384 : vector<32x8xf32>
    %cst_130 = arith.constant 1.000000e+00 : f32
    %386 = vector.broadcast %cst_130 : f32 to vector<32x8xf32>
    %387 = arith.addf %386, %385 : vector<32x8xf32>
    %388 = arith.divf %386, %387 : vector<32x8xf32>
    %389 = arith.mulf %380, %356 : vector<32x8xf32>
    %390 = arith.mulf %374, %382 : vector<32x8xf32>
    %391 = arith.addf %389, %390 : vector<32x8xf32>
    %392 = math.tanh %391 : vector<32x8xf32>
    %393 = arith.mulf %388, %392 : vector<32x8xf32>
    %394 = arith.index_cast %c0_i32_115 : i32 to index
    %c0_131 = arith.constant 0 : index
    %c0_132 = arith.constant 0 : index
    %395 = vector.load %arg18[%394, %c0_131, %c0_132] : memref<4x32x8xf32, #tpu.memory_space<vmem>>, vector<1x32x8xf32>
    %396 = vector.shape_cast %395 : vector<1x32x8xf32> to vector<32x8xf32>
    %397 = vector.shape_cast %393 : vector<32x8xf32> to vector<1x32x8xf32>
    tpu.vector_store %arg18[%394, %c0_131, %c0_132], %397 {strides = array<i32>} : memref<4x32x8xf32, #tpu.memory_space<vmem>>, vector<1x32x8xf32>,
    %c1_i32_133 = arith.constant 1 : i32
    %398 = arith.index_cast %c1_i32_133 : i32 to index
    %c0_134 = arith.constant 0 : index
    %c0_135 = arith.constant 0 : index
    %399 = vector.load %arg14[%398, %c0_134, %c0_135] : memref<8x128x8xf32, #tpu.memory_space<vmem>>, vector<1x128x8xf32>
    %400 = vector.shape_cast %399 : vector<1x128x8xf32> to vector<128x8xf32>
    %cst_136 = arith.constant dense<0.000000e+00> : vector<128x8xf32>
    %401 = tpu.matmul %13, %393, %cst_136 {dimension_numbers = #tpu.dot_dimension_numbers<[1], [0], [0], [1], [0, 0, 1, 1], [], []>} : vector<128x32xf32>, vector<32x8xf32>, vector<128x8xf32> -> vector<128x8xf32>
    %402 = arith.addf %400, %401 : vector<128x8xf32>
    %403 = vector.extract_strided_slice %402 {offsets = [0, 0], sizes = [32, 8], strides = [1, 1]} : vector<128x8xf32> to vector<32x8xf32>
    %404 = arith.negf %403 : vector<32x8xf32>
    %405 = math.exp %404 : vector<32x8xf32>
    %cst_137 = arith.constant 1.000000e+00 : f32
    %406 = vector.broadcast %cst_137 : f32 to vector<32x8xf32>
    %407 = arith.addf %406, %405 : vector<32x8xf32>
    %408 = arith.divf %406, %407 : vector<32x8xf32>
    %409 = vector.extract_strided_slice %402 {offsets = [32, 0], sizes = [32, 8], strides = [1, 1]} : vector<128x8xf32> to vector<32x8xf32>
    %410 = arith.negf %409 : vector<32x8xf32>
    %411 = math.exp %410 : vector<32x8xf32>
    %cst_138 = arith.constant 1.000000e+00 : f32
    %412 = vector.broadcast %cst_138 : f32 to vector<32x8xf32>
    %413 = arith.addf %412, %411 : vector<32x8xf32>
    %414 = arith.divf %412, %413 : vector<32x8xf32>
    %415 = vector.extract_strided_slice %402 {offsets = [64, 0], sizes = [32, 8], strides = [1, 1]} : vector<128x8xf32> to vector<32x8xf32>
    %416 = math.tanh %415 : vector<32x8xf32>
    %417 = vector.extract_strided_slice %402 {offsets = [96, 0], sizes = [32, 8], strides = [1, 1]} : vector<128x8xf32> to vector<32x8xf32>
    %418 = arith.negf %417 : vector<32x8xf32>
    %419 = math.exp %418 : vector<32x8xf32>
    %cst_139 = arith.constant 1.000000e+00 : f32
    %420 = vector.broadcast %cst_139 : f32 to vector<32x8xf32>
    %421 = arith.addf %420, %419 : vector<32x8xf32>
    %422 = arith.divf %420, %421 : vector<32x8xf32>
    %423 = arith.mulf %414, %391 : vector<32x8xf32>
    %424 = arith.mulf %408, %416 : vector<32x8xf32>
    %425 = arith.addf %423, %424 : vector<32x8xf32>
    %426 = math.tanh %425 : vector<32x8xf32>
    %427 = arith.mulf %422, %426 : vector<32x8xf32>
    %428 = arith.index_cast %c1_i32_133 : i32 to index
    %c0_140 = arith.constant 0 : index
    %c0_141 = arith.constant 0 : index
    %429 = vector.load %arg17[%428, %c0_140, %c0_141] : memref<4x32x8xf32, #tpu.memory_space<vmem>>, vector<1x32x8xf32>
    %430 = vector.shape_cast %429 : vector<1x32x8xf32> to vector<32x8xf32>
    %431 = vector.shape_cast %427 : vector<32x8xf32> to vector<1x32x8xf32>
    tpu.vector_store %arg17[%428, %c0_140, %c0_141], %431 {strides = array<i32>} : memref<4x32x8xf32, #tpu.memory_space<vmem>>, vector<1x32x8xf32>,
    %c4_i32_142 = arith.constant 4 : i32
    %432 = arith.addi %c4_i32_142, %c1_i32_133 : i32
    %433 = arith.index_cast %432 : i32 to index
    %c0_143 = arith.constant 0 : index
    %c0_144 = arith.constant 0 : index
    %434 = vector.load %arg14[%433, %c0_143, %c0_144] : memref<8x128x8xf32, #tpu.memory_space<vmem>>, vector<1x128x8xf32>
    %435 = vector.shape_cast %434 : vector<1x128x8xf32> to vector<128x8xf32>
    %cst_145 = arith.constant dense<0.000000e+00> : vector<128x8xf32>
    %436 = tpu.matmul %13, %427, %cst_145 {dimension_numbers = #tpu.dot_dimension_numbers<[1], [0], [0], [1], [0, 0, 1, 1], [], []>} : vector<128x32xf32>, vector<32x8xf32>, vector<128x8xf32> -> vector<128x8xf32>
    %437 = arith.addf %435, %436 : vector<128x8xf32>
    %438 = vector.extract_strided_slice %437 {offsets = [0, 0], sizes = [32, 8], strides = [1, 1]} : vector<128x8xf32> to vector<32x8xf32>
    %439 = arith.negf %438 : vector<32x8xf32>
    %440 = math.exp %439 : vector<32x8xf32>
    %cst_146 = arith.constant 1.000000e+00 : f32
    %441 = vector.broadcast %cst_146 : f32 to vector<32x8xf32>
    %442 = arith.addf %441, %440 : vector<32x8xf32>
    %443 = arith.divf %441, %442 : vector<32x8xf32>
    %444 = vector.extract_strided_slice %437 {offsets = [32, 0], sizes = [32, 8], strides = [1, 1]} : vector<128x8xf32> to vector<32x8xf32>
    %445 = arith.negf %444 : vector<32x8xf32>
    %446 = math.exp %445 : vector<32x8xf32>
    %cst_147 = arith.constant 1.000000e+00 : f32
    %447 = vector.broadcast %cst_147 : f32 to vector<32x8xf32>
    %448 = arith.addf %447, %446 : vector<32x8xf32>
    %449 = arith.divf %447, %448 : vector<32x8xf32>
    %450 = vector.extract_strided_slice %437 {offsets = [64, 0], sizes = [32, 8], strides = [1, 1]} : vector<128x8xf32> to vector<32x8xf32>
    %451 = math.tanh %450 : vector<32x8xf32>
    %452 = vector.extract_strided_slice %437 {offsets = [96, 0], sizes = [32, 8], strides = [1, 1]} : vector<128x8xf32> to vector<32x8xf32>
    %453 = arith.negf %452 : vector<32x8xf32>
    %454 = math.exp %453 : vector<32x8xf32>
    %cst_148 = arith.constant 1.000000e+00 : f32
    %455 = vector.broadcast %cst_148 : f32 to vector<32x8xf32>
    %456 = arith.addf %455, %454 : vector<32x8xf32>
    %457 = arith.divf %455, %456 : vector<32x8xf32>
    %458 = arith.mulf %449, %425 : vector<32x8xf32>
    %459 = arith.mulf %443, %451 : vector<32x8xf32>
    %460 = arith.addf %458, %459 : vector<32x8xf32>
    %461 = math.tanh %460 : vector<32x8xf32>
    %462 = arith.mulf %457, %461 : vector<32x8xf32>
    %463 = arith.index_cast %c1_i32_133 : i32 to index
    %c0_149 = arith.constant 0 : index
    %c0_150 = arith.constant 0 : index
    %464 = vector.load %arg18[%463, %c0_149, %c0_150] : memref<4x32x8xf32, #tpu.memory_space<vmem>>, vector<1x32x8xf32>
    %465 = vector.shape_cast %464 : vector<1x32x8xf32> to vector<32x8xf32>
    %466 = vector.shape_cast %462 : vector<32x8xf32> to vector<1x32x8xf32>
    tpu.vector_store %arg18[%463, %c0_149, %c0_150], %466 {strides = array<i32>} : memref<4x32x8xf32, #tpu.memory_space<vmem>>, vector<1x32x8xf32>,
    %c2_i32_151 = arith.constant 2 : i32
    %467 = arith.index_cast %c2_i32_151 : i32 to index
    %c0_152 = arith.constant 0 : index
    %c0_153 = arith.constant 0 : index
    %468 = vector.load %arg14[%467, %c0_152, %c0_153] : memref<8x128x8xf32, #tpu.memory_space<vmem>>, vector<1x128x8xf32>
    %469 = vector.shape_cast %468 : vector<1x128x8xf32> to vector<128x8xf32>
    %cst_154 = arith.constant dense<0.000000e+00> : vector<128x8xf32>
    %470 = tpu.matmul %13, %462, %cst_154 {dimension_numbers = #tpu.dot_dimension_numbers<[1], [0], [0], [1], [0, 0, 1, 1], [], []>} : vector<128x32xf32>, vector<32x8xf32>, vector<128x8xf32> -> vector<128x8xf32>
    %471 = arith.addf %469, %470 : vector<128x8xf32>
    %472 = vector.extract_strided_slice %471 {offsets = [0, 0], sizes = [32, 8], strides = [1, 1]} : vector<128x8xf32> to vector<32x8xf32>
    %473 = arith.negf %472 : vector<32x8xf32>
    %474 = math.exp %473 : vector<32x8xf32>
    %cst_155 = arith.constant 1.000000e+00 : f32
    %475 = vector.broadcast %cst_155 : f32 to vector<32x8xf32>
    %476 = arith.addf %475, %474 : vector<32x8xf32>
    %477 = arith.divf %475, %476 : vector<32x8xf32>
    %478 = vector.extract_strided_slice %471 {offsets = [32, 0], sizes = [32, 8], strides = [1, 1]} : vector<128x8xf32> to vector<32x8xf32>
    %479 = arith.negf %478 : vector<32x8xf32>
    %480 = math.exp %479 : vector<32x8xf32>
    %cst_156 = arith.constant 1.000000e+00 : f32
    %481 = vector.broadcast %cst_156 : f32 to vector<32x8xf32>
    %482 = arith.addf %481, %480 : vector<32x8xf32>
    %483 = arith.divf %481, %482 : vector<32x8xf32>
    %484 = vector.extract_strided_slice %471 {offsets = [64, 0], sizes = [32, 8], strides = [1, 1]} : vector<128x8xf32> to vector<32x8xf32>
    %485 = math.tanh %484 : vector<32x8xf32>
    %486 = vector.extract_strided_slice %471 {offsets = [96, 0], sizes = [32, 8], strides = [1, 1]} : vector<128x8xf32> to vector<32x8xf32>
    %487 = arith.negf %486 : vector<32x8xf32>
    %488 = math.exp %487 : vector<32x8xf32>
    %cst_157 = arith.constant 1.000000e+00 : f32
    %489 = vector.broadcast %cst_157 : f32 to vector<32x8xf32>
    %490 = arith.addf %489, %488 : vector<32x8xf32>
    %491 = arith.divf %489, %490 : vector<32x8xf32>
    %492 = arith.mulf %483, %460 : vector<32x8xf32>
    %493 = arith.mulf %477, %485 : vector<32x8xf32>
    %494 = arith.addf %492, %493 : vector<32x8xf32>
    %495 = math.tanh %494 : vector<32x8xf32>
    %496 = arith.mulf %491, %495 : vector<32x8xf32>
    %497 = arith.index_cast %c2_i32_151 : i32 to index
    %c0_158 = arith.constant 0 : index
    %c0_159 = arith.constant 0 : index
    %498 = vector.load %arg17[%497, %c0_158, %c0_159] : memref<4x32x8xf32, #tpu.memory_space<vmem>>, vector<1x32x8xf32>
    %499 = vector.shape_cast %498 : vector<1x32x8xf32> to vector<32x8xf32>
    %500 = vector.shape_cast %496 : vector<32x8xf32> to vector<1x32x8xf32>
    tpu.vector_store %arg17[%497, %c0_158, %c0_159], %500 {strides = array<i32>} : memref<4x32x8xf32, #tpu.memory_space<vmem>>, vector<1x32x8xf32>,
    %c4_i32_160 = arith.constant 4 : i32
    %501 = arith.addi %c4_i32_160, %c2_i32_151 : i32
    %502 = arith.index_cast %501 : i32 to index
    %c0_161 = arith.constant 0 : index
    %c0_162 = arith.constant 0 : index
    %503 = vector.load %arg14[%502, %c0_161, %c0_162] : memref<8x128x8xf32, #tpu.memory_space<vmem>>, vector<1x128x8xf32>
    %504 = vector.shape_cast %503 : vector<1x128x8xf32> to vector<128x8xf32>
    %cst_163 = arith.constant dense<0.000000e+00> : vector<128x8xf32>
    %505 = tpu.matmul %13, %496, %cst_163 {dimension_numbers = #tpu.dot_dimension_numbers<[1], [0], [0], [1], [0, 0, 1, 1], [], []>} : vector<128x32xf32>, vector<32x8xf32>, vector<128x8xf32> -> vector<128x8xf32>
    %506 = arith.addf %504, %505 : vector<128x8xf32>
    %507 = vector.extract_strided_slice %506 {offsets = [0, 0], sizes = [32, 8], strides = [1, 1]} : vector<128x8xf32> to vector<32x8xf32>
    %508 = arith.negf %507 : vector<32x8xf32>
    %509 = math.exp %508 : vector<32x8xf32>
    %cst_164 = arith.constant 1.000000e+00 : f32
    %510 = vector.broadcast %cst_164 : f32 to vector<32x8xf32>
    %511 = arith.addf %510, %509 : vector<32x8xf32>
    %512 = arith.divf %510, %511 : vector<32x8xf32>
    %513 = vector.extract_strided_slice %506 {offsets = [32, 0], sizes = [32, 8], strides = [1, 1]} : vector<128x8xf32> to vector<32x8xf32>
    %514 = arith.negf %513 : vector<32x8xf32>
    %515 = math.exp %514 : vector<32x8xf32>
    %cst_165 = arith.constant 1.000000e+00 : f32
    %516 = vector.broadcast %cst_165 : f32 to vector<32x8xf32>
    %517 = arith.addf %516, %515 : vector<32x8xf32>
    %518 = arith.divf %516, %517 : vector<32x8xf32>
    %519 = vector.extract_strided_slice %506 {offsets = [64, 0], sizes = [32, 8], strides = [1, 1]} : vector<128x8xf32> to vector<32x8xf32>
    %520 = math.tanh %519 : vector<32x8xf32>
    %521 = vector.extract_strided_slice %506 {offsets = [96, 0], sizes = [32, 8], strides = [1, 1]} : vector<128x8xf32> to vector<32x8xf32>
    %522 = arith.negf %521 : vector<32x8xf32>
    %523 = math.exp %522 : vector<32x8xf32>
    %cst_166 = arith.constant 1.000000e+00 : f32
    %524 = vector.broadcast %cst_166 : f32 to vector<32x8xf32>
    %525 = arith.addf %524, %523 : vector<32x8xf32>
    %526 = arith.divf %524, %525 : vector<32x8xf32>
    %527 = arith.mulf %518, %494 : vector<32x8xf32>
    %528 = arith.mulf %512, %520 : vector<32x8xf32>
    %529 = arith.addf %527, %528 : vector<32x8xf32>
    %530 = math.tanh %529 : vector<32x8xf32>
    %531 = arith.mulf %526, %530 : vector<32x8xf32>
    %532 = arith.index_cast %c2_i32_151 : i32 to index
    %c0_167 = arith.constant 0 : index
    %c0_168 = arith.constant 0 : index
    %533 = vector.load %arg18[%532, %c0_167, %c0_168] : memref<4x32x8xf32, #tpu.memory_space<vmem>>, vector<1x32x8xf32>
    %534 = vector.shape_cast %533 : vector<1x32x8xf32> to vector<32x8xf32>
    %535 = vector.shape_cast %531 : vector<32x8xf32> to vector<1x32x8xf32>
    tpu.vector_store %arg18[%532, %c0_167, %c0_168], %535 {strides = array<i32>} : memref<4x32x8xf32, #tpu.memory_space<vmem>>, vector<1x32x8xf32>,
    %c3_i32_169 = arith.constant 3 : i32
    %536 = arith.index_cast %c3_i32_169 : i32 to index
    %c0_170 = arith.constant 0 : index
    %c0_171 = arith.constant 0 : index
    %537 = vector.load %arg14[%536, %c0_170, %c0_171] : memref<8x128x8xf32, #tpu.memory_space<vmem>>, vector<1x128x8xf32>
    %538 = vector.shape_cast %537 : vector<1x128x8xf32> to vector<128x8xf32>
    %cst_172 = arith.constant dense<0.000000e+00> : vector<128x8xf32>
    %539 = tpu.matmul %13, %531, %cst_172 {dimension_numbers = #tpu.dot_dimension_numbers<[1], [0], [0], [1], [0, 0, 1, 1], [], []>} : vector<128x32xf32>, vector<32x8xf32>, vector<128x8xf32> -> vector<128x8xf32>
    %540 = arith.addf %538, %539 : vector<128x8xf32>
    %541 = vector.extract_strided_slice %540 {offsets = [0, 0], sizes = [32, 8], strides = [1, 1]} : vector<128x8xf32> to vector<32x8xf32>
    %542 = arith.negf %541 : vector<32x8xf32>
    %543 = math.exp %542 : vector<32x8xf32>
    %cst_173 = arith.constant 1.000000e+00 : f32
    %544 = vector.broadcast %cst_173 : f32 to vector<32x8xf32>
    %545 = arith.addf %544, %543 : vector<32x8xf32>
    %546 = arith.divf %544, %545 : vector<32x8xf32>
    %547 = vector.extract_strided_slice %540 {offsets = [32, 0], sizes = [32, 8], strides = [1, 1]} : vector<128x8xf32> to vector<32x8xf32>
    %548 = arith.negf %547 : vector<32x8xf32>
    %549 = math.exp %548 : vector<32x8xf32>
    %cst_174 = arith.constant 1.000000e+00 : f32
    %550 = vector.broadcast %cst_174 : f32 to vector<32x8xf32>
    %551 = arith.addf %550, %549 : vector<32x8xf32>
    %552 = arith.divf %550, %551 : vector<32x8xf32>
    %553 = vector.extract_strided_slice %540 {offsets = [64, 0], sizes = [32, 8], strides = [1, 1]} : vector<128x8xf32> to vector<32x8xf32>
    %554 = math.tanh %553 : vector<32x8xf32>
    %555 = vector.extract_strided_slice %540 {offsets = [96, 0], sizes = [32, 8], strides = [1, 1]} : vector<128x8xf32> to vector<32x8xf32>
    %556 = arith.negf %555 : vector<32x8xf32>
    %557 = math.exp %556 : vector<32x8xf32>
    %cst_175 = arith.constant 1.000000e+00 : f32
    %558 = vector.broadcast %cst_175 : f32 to vector<32x8xf32>
    %559 = arith.addf %558, %557 : vector<32x8xf32>
    %560 = arith.divf %558, %559 : vector<32x8xf32>
    %561 = arith.mulf %552, %529 : vector<32x8xf32>
    %562 = arith.mulf %546, %554 : vector<32x8xf32>
    %563 = arith.addf %561, %562 : vector<32x8xf32>
    %564 = math.tanh %563 : vector<32x8xf32>
    %565 = arith.mulf %560, %564 : vector<32x8xf32>
    %566 = arith.index_cast %c3_i32_169 : i32 to index
    %c0_176 = arith.constant 0 : index
    %c0_177 = arith.constant 0 : index
    %567 = vector.load %arg17[%566, %c0_176, %c0_177] : memref<4x32x8xf32, #tpu.memory_space<vmem>>, vector<1x32x8xf32>
    %568 = vector.shape_cast %567 : vector<1x32x8xf32> to vector<32x8xf32>
    %569 = vector.shape_cast %565 : vector<32x8xf32> to vector<1x32x8xf32>
    tpu.vector_store %arg17[%566, %c0_176, %c0_177], %569 {strides = array<i32>} : memref<4x32x8xf32, #tpu.memory_space<vmem>>, vector<1x32x8xf32>,
    %c4_i32_178 = arith.constant 4 : i32
    %570 = arith.addi %c4_i32_178, %c3_i32_169 : i32
    %571 = arith.index_cast %570 : i32 to index
    %c0_179 = arith.constant 0 : index
    %c0_180 = arith.constant 0 : index
    %572 = vector.load %arg14[%571, %c0_179, %c0_180] : memref<8x128x8xf32, #tpu.memory_space<vmem>>, vector<1x128x8xf32>
    %573 = vector.shape_cast %572 : vector<1x128x8xf32> to vector<128x8xf32>
    %cst_181 = arith.constant dense<0.000000e+00> : vector<128x8xf32>
    %574 = tpu.matmul %13, %565, %cst_181 {dimension_numbers = #tpu.dot_dimension_numbers<[1], [0], [0], [1], [0, 0, 1, 1], [], []>} : vector<128x32xf32>, vector<32x8xf32>, vector<128x8xf32> -> vector<128x8xf32>
    %575 = arith.addf %573, %574 : vector<128x8xf32>
    %576 = vector.extract_strided_slice %575 {offsets = [0, 0], sizes = [32, 8], strides = [1, 1]} : vector<128x8xf32> to vector<32x8xf32>
    %577 = arith.negf %576 : vector<32x8xf32>
    %578 = math.exp %577 : vector<32x8xf32>
    %cst_182 = arith.constant 1.000000e+00 : f32
    %579 = vector.broadcast %cst_182 : f32 to vector<32x8xf32>
    %580 = arith.addf %579, %578 : vector<32x8xf32>
    %581 = arith.divf %579, %580 : vector<32x8xf32>
    %582 = vector.extract_strided_slice %575 {offsets = [32, 0], sizes = [32, 8], strides = [1, 1]} : vector<128x8xf32> to vector<32x8xf32>
    %583 = arith.negf %582 : vector<32x8xf32>
    %584 = math.exp %583 : vector<32x8xf32>
    %cst_183 = arith.constant 1.000000e+00 : f32
    %585 = vector.broadcast %cst_183 : f32 to vector<32x8xf32>
    %586 = arith.addf %585, %584 : vector<32x8xf32>
    %587 = arith.divf %585, %586 : vector<32x8xf32>
    %588 = vector.extract_strided_slice %575 {offsets = [64, 0], sizes = [32, 8], strides = [1, 1]} : vector<128x8xf32> to vector<32x8xf32>
    %589 = math.tanh %588 : vector<32x8xf32>
    %590 = vector.extract_strided_slice %575 {offsets = [96, 0], sizes = [32, 8], strides = [1, 1]} : vector<128x8xf32> to vector<32x8xf32>
    %591 = arith.negf %590 : vector<32x8xf32>
    %592 = math.exp %591 : vector<32x8xf32>
    %cst_184 = arith.constant 1.000000e+00 : f32
    %593 = vector.broadcast %cst_184 : f32 to vector<32x8xf32>
    %594 = arith.addf %593, %592 : vector<32x8xf32>
    %595 = arith.divf %593, %594 : vector<32x8xf32>
    %596 = arith.mulf %587, %563 : vector<32x8xf32>
    %597 = arith.mulf %581, %589 : vector<32x8xf32>
    %598 = arith.addf %596, %597 : vector<32x8xf32>
    %599 = math.tanh %598 : vector<32x8xf32>
    %600 = arith.mulf %595, %599 : vector<32x8xf32>
    %601 = arith.index_cast %c3_i32_169 : i32 to index
    %c0_185 = arith.constant 0 : index
    %c0_186 = arith.constant 0 : index
    %602 = vector.load %arg18[%601, %c0_185, %c0_186] : memref<4x32x8xf32, #tpu.memory_space<vmem>>, vector<1x32x8xf32>
    %603 = vector.shape_cast %602 : vector<1x32x8xf32> to vector<32x8xf32>
    %604 = vector.shape_cast %600 : vector<32x8xf32> to vector<1x32x8xf32>
    tpu.vector_store %arg18[%601, %c0_185, %c0_186], %604 {strides = array<i32>} : memref<4x32x8xf32, #tpu.memory_space<vmem>>, vector<1x32x8xf32>,
    %c4_i32_187 = arith.constant 4 : i32
    %c0_188 = arith.constant 0 : index
    %c0_189 = arith.constant 0 : index
    %605 = vector.load %arg11[%c0_188, %c0_189] : memref<4x32xf32, #tpu.memory_space<vmem>>, vector<4x32xf32>
    %606 = vector.shape_cast %605 : vector<4x32xf32> to vector<1x4x32xf32>
    %607 = vector.shape_cast %606 : vector<1x4x32xf32> to vector<1x4x32xf32>
    %608 = vector.broadcast %607 : vector<1x4x32xf32> to vector<4x4x32xf32>
    %c0_190 = arith.constant 0 : index
    %c0_191 = arith.constant 0 : index
    %c0_192 = arith.constant 0 : index
    %609 = vector.load %arg15[%c0_190, %c0_191, %c0_192] : memref<4x32x8xf32, #tpu.memory_space<vmem>>, vector<4x32x8xf32>
    %c0_193 = arith.constant 0 : index
    %c0_194 = arith.constant 0 : index
    %c0_195 = arith.constant 0 : index
    %610 = vector.load %arg17[%c0_193, %c0_194, %c0_195] : memref<4x32x8xf32, #tpu.memory_space<vmem>>, vector<4x32x8xf32>
    %611 = arith.addf %609, %610 : vector<4x32x8xf32>
    %c0_196 = arith.constant 0 : index
    %c0_197 = arith.constant 0 : index
    %c0_198 = arith.constant 0 : index
    %612 = vector.load %arg16[%c0_196, %c0_197, %c0_198] : memref<4x32x8xf32, #tpu.memory_space<vmem>>, vector<4x32x8xf32>
    %c0_199 = arith.constant 0 : index
    %c0_200 = arith.constant 0 : index
    %c0_201 = arith.constant 0 : index
    %613 = vector.load %arg18[%c0_199, %c0_200, %c0_201] : memref<4x32x8xf32, #tpu.memory_space<vmem>>, vector<4x32x8xf32>
    %614 = arith.addf %612, %613 : vector<4x32x8xf32>
    "tpu.trace_start"() <{level = 10 : i32, message = "tfh,thb->tfb"}> : () -> ()
    %cst_202 = arith.constant dense<0.000000e+00> : vector<4x4x8xf32>
    %615 = tpu.matmul %608, %611, %cst_202 {dimension_numbers = #tpu.dot_dimension_numbers<[2], [1], [1], [2], [0, 0, 0, 1, 1, 2], [0], [0]>} : vector<4x4x32xf32>, vector<4x32x8xf32>, vector<4x4x8xf32> -> vector<4x4x8xf32>
    "tpu.trace_stop"() : () -> ()
    %c0_203 = arith.constant 0 : index
    %c0_204 = arith.constant 0 : index
    %616 = vector.load %arg12[%c0_203, %c0_204] : memref<4x1xf32, #tpu.memory_space<vmem>>, vector<4x1xf32>
    %617 = vector.shape_cast %616 : vector<4x1xf32> to vector<1x4x1xf32>
    %618 = vector.broadcast %617 : vector<1x4x1xf32> to vector<4x4x8xf32>
    %619 = arith.addf %615, %618 : vector<4x4x8xf32>
    %c0_205 = arith.constant 0 : index
    %c0_206 = arith.constant 0 : index
    %c0_207 = arith.constant 0 : index
    %c0_208 = arith.constant 0 : index
    %c0_209 = arith.constant 0 : index
    %620 = vector.load %arg13[%c0_205, %c0_206, %c0_207, %c0_208, %c0_209] : memref<1x2x4x4x8xf32, #tpu.memory_space<vmem>>, vector<1x1x4x4x8xf32>
    %621 = vector.shape_cast %620 : vector<1x1x4x4x8xf32> to vector<4x4x8xf32>
    %622 = vector.shape_cast %619 : vector<4x4x8xf32> to vector<1x1x4x4x8xf32>
    tpu.vector_store %arg13[%c0_205, %c0_206, %c0_207, %c0_208, %c0_209], %622 {strides = array<i32>} : memref<1x2x4x4x8xf32, #tpu.memory_space<vmem>>, vector<1x1x4x4x8xf32>,
    "tpu.trace_start"() <{level = 10 : i32, message = "tfh,thb->tfb"}> : () -> ()
    %cst_210 = arith.constant dense<0.000000e+00> : vector<4x4x8xf32>
    %623 = tpu.matmul %608, %614, %cst_210 {dimension_numbers = #tpu.dot_dimension_numbers<[2], [1], [1], [2], [0, 0, 0, 1, 1, 2], [0], [0]>} : vector<4x4x32xf32>, vector<4x32x8xf32>, vector<4x4x8xf32> -> vector<4x4x8xf32>
    "tpu.trace_stop"() : () -> ()
    %c0_211 = arith.constant 0 : index
    %c0_212 = arith.constant 0 : index
    %624 = vector.load %arg12[%c0_211, %c0_212] : memref<4x1xf32, #tpu.memory_space<vmem>>, vector<4x1xf32>
    %625 = vector.shape_cast %624 : vector<4x1xf32> to vector<1x4x1xf32>
    %626 = vector.broadcast %625 : vector<1x4x1xf32> to vector<4x4x8xf32>
    %627 = arith.addf %623, %626 : vector<4x4x8xf32>
    %c0_213 = arith.constant 0 : index
    %c1 = arith.constant 1 : index
    %c0_214 = arith.constant 0 : index
    %c0_215 = arith.constant 0 : index
    %c0_216 = arith.constant 0 : index
    %628 = vector.load %arg13[%c0_213, %c1, %c0_214, %c0_215, %c0_216] : memref<1x2x4x4x8xf32, #tpu.memory_space<vmem>>, vector<1x1x4x4x8xf32>
    %629 = vector.shape_cast %628 : vector<1x1x4x4x8xf32> to vector<4x4x8xf32>
    %630 = vector.shape_cast %627 : vector<4x4x8xf32> to vector<1x1x4x4x8xf32>
    tpu.vector_store %arg13[%c0_213, %c1, %c0_214, %c0_215, %c0_216], %630 {strides = array<i32>} : memref<1x2x4x4x8xf32, #tpu.memory_space<vmem>>, vector<1x1x4x4x8xf32>,
    return
  }
  func.func @transform_0(%arg0: i32) -> (i32, i32, i32, i32) {
    %c0_i32 = arith.constant 0 : i32
    %c0_i32_0 = arith.constant 0 : i32
    %c0_i32_1 = arith.constant 0 : i32
    %c0_i32_2 = arith.constant 0 : i32
    return %arg0, %c0_i32, %c0_i32_0, %c0_i32_1 : i32, i32, i32, i32
  }
  func.func @transform_1(%arg0: i32) -> (i32, i32) {
    %c0_i32 = arith.constant 0 : i32
    %c0_i32_0 = arith.constant 0 : i32
    %c0_i32_1 = arith.constant 0 : i32
    return %c0_i32, %c0_i32_0 : i32, i32
  }
  func.func @transform_2(%arg0: i32) -> (i32, i32) {
    %c0_i32 = arith.constant 0 : i32
    %c0_i32_0 = arith.constant 0 : i32
    %c0_i32_1 = arith.constant 0 : i32
    return %c0_i32, %c0_i32_0 : i32, i32
  }
  func.func @transform_3(%arg0: i32) -> (i32, i32) {
    %c0_i32 = arith.constant 0 : i32
    %c0_i32_0 = arith.constant 0 : i32
    %c0_i32_1 = arith.constant 0 : i32
    return %c0_i32, %c0_i32_0 : i32, i32
  }
  func.func @transform_4(%arg0: i32) -> (i32, i32) {
    %c0_i32 = arith.constant 0 : i32
    %c0_i32_0 = arith.constant 0 : i32
    %c0_i32_1 = arith.constant 0 : i32
    return %c0_i32, %c0_i32_0 : i32, i32
  }
  func.func @transform_5(%arg0: i32) -> (i32, i32) {
    %c0_i32 = arith.constant 0 : i32
    %c0_i32_0 = arith.constant 0 : i32
    %c0_i32_1 = arith.constant 0 : i32
    return %c0_i32, %c0_i32_0 : i32, i32
  }
  func.func @transform_6(%arg0: i32) -> (i32, i32) {
    %c0_i32 = arith.constant 0 : i32
    %c0_i32_0 = arith.constant 0 : i32
    %c0_i32_1 = arith.constant 0 : i32
    return %c0_i32, %c0_i32_0 : i32, i32
  }
  func.func @transform_7(%arg0: i32) -> (i32, i32) {
    %c0_i32 = arith.constant 0 : i32
    %c0_i32_0 = arith.constant 0 : i32
    %c0_i32_1 = arith.constant 0 : i32
    return %c0_i32, %c0_i32_0 : i32, i32
  }
  func.func @transform_8(%arg0: i32) -> (i32, i32) {
    %c0_i32 = arith.constant 0 : i32
    %c0_i32_0 = arith.constant 0 : i32
    %c0_i32_1 = arith.constant 0 : i32
    return %c0_i32, %c0_i32_0 : i32, i32
  }
  func.func @transform_9(%arg0: i32) -> (i32, i32) {
    %c0_i32 = arith.constant 0 : i32
    %c0_i32_0 = arith.constant 0 : i32
    %c0_i32_1 = arith.constant 0 : i32
    return %c0_i32, %c0_i32_0 : i32, i32
  }
  func.func @transform_10(%arg0: i32) -> (i32, i32) {
    %c0_i32 = arith.constant 0 : i32
    %c0_i32_0 = arith.constant 0 : i32
    %c0_i32_1 = arith.constant 0 : i32
    return %c0_i32, %c0_i32_0 : i32, i32
  }
  func.func @transform_11(%arg0: i32) -> (i32, i32) {
    %c0_i32 = arith.constant 0 : i32
    %c0_i32_0 = arith.constant 0 : i32
    %c0_i32_1 = arith.constant 0 : i32
    return %c0_i32, %c0_i32_0 : i32, i32
  }
  func.func @transform_12(%arg0: i32) -> (i32, i32, i32, i32, i32) {
    %c0_i32 = arith.constant 0 : i32
    %c0_i32_0 = arith.constant 0 : i32
    %c0_i32_1 = arith.constant 0 : i32
    %c0_i32_2 = arith.constant 0 : i32
    %c0_i32_3 = arith.constant 0 : i32
    return %arg0, %c0_i32, %c0_i32_0, %c0_i32_1, %c0_i32_2 : i32, i32, i32, i32, i32
  }
}

</mosaic_0001>

<bundles_post_ra>
// kernel: tpu_custom_call.1
= control target key start
LH: loop header
LB: loop body
LE: loop exit
PB: predicated region body
PF: predicated region fallthrough
CT: control target
= control target key end

     0   :  { %vm211_vm0 = vcmask 1043456   ;;  %vm162_vm1 = vcmask 31744   ;;  %v12756_v9 = vmov 0   ;;  %s15835_s0 = inlined_call_operand.vmem [shape: f32[1,8,4,8], index: 0, kind: input, shape index: {}]   ;;  %s15836_s1 = inlined_call_operand.vmem [shape: f32[128,4], index: 1, kind: input, shape index: {}]   ;;  %s15837_s2 = inlined_call_operand.vmem [shape: f32[128,32], index: 2, kind: input, shape index: {}]   ;;  %s15838_s3 = inlined_call_operand.vmem [shape: f32[128,1], index: 3, kind: input, shape index: {}]   ;;  %s15839_s4 = inlined_call_operand.vmem [shape: f32[16,32], index: 4, kind: input, shape index: {}]   ;;  %s15840_s5 = inlined_call_operand.vmem [shape: f32[16,32], index: 5, kind: input, shape index: {}]   ;;  %s15841_s6 = inlined_call_operand.vmem [shape: f32[16,1], index: 6, kind: input, shape index: {}]   ;;  %s15842_s7 = inlined_call_operand.vmem [shape: f32[256,16], index: 7, kind: input, shape index: {}]   ;;  %s15843_s8 = inlined_call_operand.vmem [shape: f32[256,1], index: 8, kind: input, shape index: {}]   ;;  %s15844_s9 = inlined_call_operand.vmem [shape: f32[128,32], index: 9, kind: input, shape index: {}]   ;;  %s15845_s10 = inlined_call_operand.vmem [shape: f32[4,32], index: 10, kind: input, shape index: {}]   ;;  %s15846_s11 = inlined_call_operand.vmem [shape: f32[4,1], index: 11, kind: input, shape index: {}]   ;;  %s15847_s12 = inlined_call_operand.hbm [shape: f32[1,2,4,4,8], index: 12, kind: output, shape index: {}]  }
   0x1   :  { %v58_v0 = vld [vmem:[%s15835_s0] sm:$0xf]  ;;  %v59_v1 = vld [vmem:[%s15835_s0 + $0x4] sm:$0xf]  ;;  %v12844_v3 = vld [vmem:[%s15836_s1 + $0x8] sm:$0xff]  ;;  %11578 = vset.pattern.permute.xlu1 %v12756_v9  ;;  %11577 = vset.pattern.permute.xlu0 %v12756_v9 }
   0x2   :  { %v12837_v2 = vld [vmem:[%s15836_s1] sm:$0xff]  ;;  %10230 = vmatprep.subr.msk.mxu0 %vm211_vm0, %v58_v0  ;;  %10256 = vmatprep.subr.msk.mxu1 %vm211_vm0, %v59_v1  ;;  %v12852_v4 = vld [vmem:[%s15836_s1 + $0x10] sm:$0xff]  ;;  %v12868_v5 = vld [vmem:[%s15836_s1 + $0x18] sm:$0xff] }
   0x3   :  { %10231 = vmatpush3.msk.msra.mxu0 %vm211_vm0, %v58_v0  ;;  %10232 = vmatprep.mubr.msk.f32.mxu0 %vm162_vm1, %v12837_v2  ;;  %v60_v6 = vld [vmem:[%s15835_s0 + $0x8] sm:$0xf]  ;;  %v12876_v7 = vld [vmem:[%s15836_s1 + $0x20] sm:$0xff]  ;;  %v61_v8 = vld [vmem:[%s15835_s0 + $0xc] sm:$0xf] }
   0x4   :  { %10257 = vmatpush3.msk.msra.mxu1 %vm211_vm0, %v59_v1  ;;  %10258 = vmatprep.mubr.msk.f32.mxu1 %vm162_vm1, %v12837_v2  ;;  %v12887_v10 = vld [vmem:[%s15835_s0 + $0x10] sm:$0xf]  ;;  %v12896_v11 = vld [vmem:[%s15835_s0 + $0x14] sm:$0xf]  ;;  %v12905_v12 = vld [vmem:[%s15836_s1 + $0x28] sm:$0xff] }
   0x5   :  { %10233 = vmatmul.mubr.msk.f32.vlgmr.msra.gmra.mrb[0].mxu0 %vm162_vm1, %v12844_v3  ;;  %10259 = vmatmul.mubr.msk.f32.vlgmr.msra.gmra.mrb[0].mxu1 %vm162_vm1, %v12844_v3  ;;  %v12910_v13 = vld [vmem:[%s15836_s1 + $0x30] sm:$0xff]  ;;  %v70_v14 = vld [vmem:[%s15838_s3 + $0x20] sm:$0xff]  ;;  %v12934_v16 = vld [vmem:[%s15836_s1 + $0x38] sm:$0xff] }
   0x6   :  { %10235 = vmatprep.mubr.msk.f32.mxu0 %vm162_vm1, %v12852_v4  ;;  %10261 = vmatprep.mubr.msk.f32.mxu1 %vm162_vm1, %v12852_v4  ;;  %v66_v15 = vld [vmem:[%s15838_s3] sm:$0xff]  ;;  %v71_v18 = vld [vmem:[%s15838_s3 + $0x28] sm:$0xff]  ;;  %v12963_v21 = vld [vmem:[%s15836_s1 + $0x50] sm:$0xff] }
   0x7   :  { %10282 = vmatprep.subr.msk.mxu0 %vm211_vm0, %v60_v6  ;;  %10308 = vmatprep.subr.msk.mxu1 %vm211_vm0, %v61_v8  ;;  %v12939_v17 = vld [vmem:[%s15836_s1 + $0x40] sm:$0xff]  ;;  %v67_v19 = vld [vmem:[%s15838_s3 + $0x8] sm:$0xff] }
   0x8   :  { %10283 = vmatpush3.msk.msra.mxu0 %vm211_vm0, %v60_v6  ;;  %10309 = vmatpush3.msk.msra.mxu1 %vm211_vm0, %v61_v8  ;;  %v12958_v20 = vld [vmem:[%s15836_s1 + $0x48] sm:$0xff] }
   0x9   :  { %10236 = vmatmul.mubr.msk.f32.gmra.mrb[2].mxu0 %vm162_vm1, %v12868_v5  ;;  %10262 = vmatmul.mubr.msk.f32.gmra.mrb[2].mxu1 %vm162_vm1, %v12868_v5 }
   0xa   :  { %10238 = vmatprep.mubr.msk.f32.mxu0 %vm162_vm1, %v12876_v7  ;;  %10264 = vmatprep.mubr.msk.f32.mxu1 %vm162_vm1, %v12876_v7 }
   0xb   :  { %10334 = vmatprep.subr.msk.mxu0 %vm211_vm0, %v12887_v10  ;;  %10360 = vmatprep.subr.msk.mxu1 %vm211_vm0, %v12896_v11 }
   0xc   :  { %104 = vperm.xlu1 %11578, %v70_v14   ;;  %84 = vperm.xlu0 %11577, %v66_v15  }
   0xd   :  { %10239 = vmatmul.mubr.msk.f32.gmra.mrb[4].mxu0 %vm162_vm1, %v12905_v12  ;;  %10265 = vmatmul.mubr.msk.f32.gmra.mrb[4].mxu1 %vm162_vm1, %v12905_v12 }
   0xe   :  { %10241 = vmatprep.mubr.msk.f32.mxu0 %vm162_vm1, %v12910_v13  ;;  %10267 = vmatprep.mubr.msk.f32.mxu1 %vm162_vm1, %v12910_v13 }
  0x10   :  { %109 = vperm.xlu1 %11578, %v71_v18   ;;  %89 = vperm.xlu0 %11577, %v67_v19  }
  0x11   :  { %10242 = vmatmul.mubr.msk.f32.gmra.mrb[6].mxu0 %vm162_vm1, %v12934_v16  ;;  %10268 = vmatmul.mubr.msk.f32.gmra.mrb[6].mxu1 %vm162_vm1, %v12934_v16 }
  0x12   :  { %10244 = vmatprep.mubr.msk.f32.mxu0 %vm162_vm1, %v12939_v17  ;;  %10270 = vmatprep.mubr.msk.f32.mxu1 %vm162_vm1, %v12939_v17 }
  0x13   :  { %17 = vsyncpa [#allocation8], 0  ;;  %v69_v22 = vld [vmem:[%s15838_s3 + $0x18] sm:$0xff]  ;;  %v68_v23 = vld [vmem:[%s15838_s3 + $0x10] sm:$0xff]  ;;  %v15848_v52 = vmov 0.0   ;;  %vm1573_vm2 = vcmask 261120  }
  0x14   :  { %v12982_v24 = vld [vmem:[%s15836_s1 + $0x58] sm:$0xff]  ;;  %v12987_v25 = vld [vmem:[%s15836_s1 + $0x60] sm:$0xff]  ;;  %99 = vperm.xlu1 %11578, %v69_v22   ;;  %94 = vperm.xlu0 %11577, %v68_v23   ;;  %v72_v27 = vld [vmem:[%s15838_s3 + $0x30] sm:$0xff]  ;;  %vm1396_vm3 = vcmask 64512   ;;  %vm4727_vm4 = vcmask 130048   ;;  %vm12759_vm5 = vmmov 0  }
  0x15   :  { %10245 = vmatmul.mubr.msk.f32.gmra.mrb[8].mxu0 %vm162_vm1, %v12958_v20  ;;  %10271 = vmatmul.mubr.msk.f32.gmra.mrb[8].mxu1 %vm162_vm1, %v12958_v20  ;;  %v73_v26 = vld [vmem:[%s15838_s3 + $0x38] sm:$0xff]  ;;  %v13006_v28 = vld [vmem:[%s15836_s1 + $0x68] sm:$0xff]  ;;  %v13011_v29 = vld [vmem:[%s15836_s1 + $0x70] sm:$0xff]  ;;  %vm8508_vm6 = vcmask 60416  }
  0x16   :  { %10247 = vmatprep.mubr.msk.f32.mxu0 %vm162_vm1, %v12963_v21  ;;  %10273 = vmatprep.mubr.msk.f32.mxu1 %vm162_vm1, %v12963_v21  ;;  %v75_v30 = vld [vmem:[%s15838_s3 + $0x48] sm:$0xff]  ;;  %v74_v31 = vld [vmem:[%s15838_s3 + $0x40] sm:$0xff]  ;;  %v13030_v32 = vld [vmem:[%s15836_s1 + $0x78] sm:$0xff] }
  0x17   :  { %v79_v33 = vld [vmem:[%s15838_s3 + $0x68] sm:$0xff]  ;;  %v78_v34 = vld [vmem:[%s15838_s3 + $0x60] sm:$0xff]  ;;  %v13053_v35 = vld [vmem:[%s15835_s0 + $0x18] sm:$0xf] }
  0x18   :  { %119 = vperm.xlu1 %11578, %v73_v26   ;;  %114 = vperm.xlu0 %11577, %v72_v27   ;;  %v13058_v36 = vld [vmem:[%s15835_s0 + $0x1c] sm:$0xf]  ;;  %v76_v38 = vld [vmem:[%s15838_s3 + $0x50] sm:$0xff]  ;;  %v4484_v41 = vld [vmem:[%s15841_s6 + $0x8] sm:$0xff] }
  0x19   :  { %10248 = vmatmul.mubr.msk.f32.gmra.mrb[10].mxu0 %vm162_vm1, %v12982_v24  ;;  %10274 = vmatmul.mubr.msk.f32.gmra.mrb[10].mxu1 %vm162_vm1, %v12982_v24  ;;  %v77_v37 = vld [vmem:[%s15838_s3 + $0x58] sm:$0xff]  ;;  %v80_v40 = vld [vmem:[%s15838_s3 + $0x70] sm:$0xff]  ;;  %v4483_v42 = vld [vmem:[%s15841_s6] sm:$0xff] }
  0x1a   :  { %10250 = vmatprep.mubr.msk.f32.mxu0 %vm162_vm1, %v12987_v25  ;;  %10276 = vmatprep.mubr.msk.f32.mxu1 %vm162_vm1, %v12987_v25  ;;  %v81_v39 = vld [vmem:[%s15838_s3 + $0x78] sm:$0xff]  ;;  %v4536_v43 = vld [vmem:[%s15843_s8 + $0x8] sm:$0xff]  ;;  %v4535_v44 = vld [vmem:[%s15843_s8] sm:$0xff] }
  0x1b   :  { %v4540_v45 = vld [vmem:[%s15843_s8 + $0x28] sm:$0xff]  ;;  %v4539_v46 = vld [vmem:[%s15843_s8 + $0x20] sm:$0xff]  ;;  %v4538_v47 = vld [vmem:[%s15843_s8 + $0x18] sm:$0xff] }
  0x1c   :  { %129 = vperm.xlu1 %11578, %v75_v30   ;;  %124 = vperm.xlu0 %11577, %v74_v31   ;;  %v4537_v48 = vld [vmem:[%s15843_s8 + $0x10] sm:$0xff]  ;;  %v4542_v49 = vld [vmem:[%s15843_s8 + $0x38] sm:$0xff]  ;;  %v4544_v51 = vld [vmem:[%s15843_s8 + $0x48] sm:$0xff] }
  0x1d   :  { %10251 = vmatmul.mubr.msk.f32.gmra.mrb[12].mxu0 %vm162_vm1, %v13006_v28  ;;  %10277 = vmatmul.mubr.msk.f32.gmra.mrb[12].mxu1 %vm162_vm1, %v13006_v28  ;;  %v4541_v50 = vld [vmem:[%s15843_s8 + $0x30] sm:$0xff]  ;;  %v4543_v53 = vld [vmem:[%s15843_s8 + $0x40] sm:$0xff]  ;;  %v4548_v54 = vld [vmem:[%s15843_s8 + $0x68] sm:$0xff] }
  0x1e   :  { %10253 = vmatprep.mubr.msk.f32.mxu0 %vm162_vm1, %v13011_v29  ;;  %10279 = vmatprep.mubr.msk.f32.mxu1 %vm162_vm1, %v13011_v29  ;;  %v4547_v55 = vld [vmem:[%s15843_s8 + $0x60] sm:$0xff]  ;;  %v4546_v56 = vld [vmem:[%s15843_s8 + $0x58] sm:$0xff]  ;;  %v4545_v57 = vld [vmem:[%s15843_s8 + $0x50] sm:$0xff] }
  0x1f   :  { %v4550_v58 = vld [vmem:[%s15843_s8 + $0x78] sm:$0xff]  ;;  %v4549_v59 = vld [vmem:[%s15843_s8 + $0x70] sm:$0xff]  ;;  %v4552_v60 = vld [vmem:[%s15843_s8 + $0x88] sm:$0xff] }
  0x20   :  { %149 = vperm.xlu1 %11578, %v79_v33   ;;  %144 = vperm.xlu0 %11577, %v78_v34   ;;  %v4551_v61 = vld [vmem:[%s15843_s8 + $0x80] sm:$0xff]  ;;  %v4556_v62 = vld [vmem:[%s15843_s8 + $0xa8] sm:$0xff]  ;;  %v4554_v0 = vld [vmem:[%s15843_s8 + $0x98] sm:$0xff] }
  0x21   :  { %10254 = vmatmul.mubr.msk.f32.gmra.mrb[14].mxu0 %vm162_vm1, %v13030_v32  ;;  %10280 = vmatmul.mubr.msk.f32.gmra.mrb[14].mxu1 %vm162_vm1, %v13030_v32  ;;  %v4555_v63 = vld [vmem:[%s15843_s8 + $0xa0] sm:$0xff]  ;;  %v4553_v1 = vld [vmem:[%s15843_s8 + $0x90] sm:$0xff]  ;;  %v4558_v6 = vld [vmem:[%s15843_s8 + $0xb8] sm:$0xff] }
  0x22   :  { %10284 = vmatprep.mubr.msk.f32.mxu0 %vm162_vm1, %v12837_v2  ;;  %10310 = vmatprep.mubr.msk.f32.mxu1 %vm162_vm1, %v12837_v2  ;;  %v4557_v8 = vld [vmem:[%s15843_s8 + $0xb0] sm:$0xff]  ;;  %v4560_v9 = vld [vmem:[%s15843_s8 + $0xc8] sm:$0xff]  ;;  %v1525_v14 = vld [vmem:[%s15837_s2] sm:$0xff] }
  0x23   :  { %v1526_v15 = vld [vmem:[%s15837_s2 + $0x8] sm:$0xff]  ;;  %v1529_v18 = vld [vmem:[%s15837_s2 + $0x20] sm:$0xff] }
  0x24   :  { %139 = vperm.xlu1 %11578, %v77_v37   ;;  %134 = vperm.xlu0 %11577, %v76_v38   ;;  %v1530_v19 = vld [vmem:[%s15837_s2 + $0x28] sm:$0xff]  ;;  %v1533_v22 = vld [vmem:[%s15837_s2 + $0x40] sm:$0xff] }
  0x25   :  { %10285 = vmatmul.mubr.msk.f32.vlgmr.msra.gmra.mrb[16].mxu0 %vm162_vm1, %v12844_v3  ;;  %10311 = vmatmul.mubr.msk.f32.vlgmr.msra.gmra.mrb[16].mxu1 %vm162_vm1, %v12844_v3  ;;  %v1534_v23 = vld [vmem:[%s15837_s2 + $0x48] sm:$0xff]  ;;  %v1537_v26 = vld [vmem:[%s15837_s2 + $0x60] sm:$0xff] }
  0x26   :  { %10287 = vmatprep.mubr.msk.f32.mxu0 %vm162_vm1, %v12852_v4  ;;  %10313 = vmatprep.mubr.msk.f32.mxu1 %vm162_vm1, %v12852_v4  ;;  %v1538_v27 = vld [vmem:[%s15837_s2 + $0x68] sm:$0xff] }
  0x27   :  { %10335 = vmatpush3.msk.msra.mxu0 %vm211_vm0, %v12887_v10  ;;  %10361 = vmatpush3.msk.msra.mxu1 %vm211_vm0, %v12896_v11  ;;  %v4566_v10 = vld [vmem:[%s15843_s8 + $0xf8] sm:$0xff]  ;;  %v4565_v11 = vld [vmem:[%s15843_s8 + $0xf0] sm:$0xff] }
  0x28   :  { %10386 = vmatprep.subr.msk.mxu0 %vm211_vm0, %v13053_v35  ;;  %10412 = vmatprep.subr.msk.mxu1 %vm211_vm0, %v13058_v36 }
  0x29   :  { %10288 = vmatmul.mubr.msk.f32.gmra.mrb[18].mxu0 %vm162_vm1, %v12868_v5  ;;  %10314 = vmatmul.mubr.msk.f32.gmra.mrb[18].mxu1 %vm162_vm1, %v12868_v5 }
  0x2a   :  { %10290 = vmatprep.mubr.msk.f32.mxu0 %vm162_vm1, %v12876_v7  ;;  %10316 = vmatprep.mubr.msk.f32.mxu1 %vm162_vm1, %v12876_v7 }
  0x2b   :  { %159 = vperm.xlu1 %11578, %v81_v39   ;;  %154 = vperm.xlu0 %11577, %v80_v40  }
  0x2d   :  { %10291 = vmatmul.mubr.msk.f32.gmra.mrb[20].mxu0 %vm162_vm1, %v12905_v12  ;;  %10317 = vmatmul.mubr.msk.f32.gmra.mrb[20].mxu1 %vm162_vm1, %v12905_v12 }
  0x2e   :  { %10293 = vmatprep.mubr.msk.f32.mxu0 %vm162_vm1, %v12910_v13  ;;  %10319 = vmatprep.mubr.msk.f32.mxu1 %vm162_vm1, %v12910_v13 }
  0x2f   :  { %4492 = vperm.xlu1 %11578, %v4484_v41   ;;  %4487 = vperm.xlu0 %11577, %v4483_v42  }
  0x31   :  { %10294 = vmatmul.mubr.msk.f32.gmra.mrb[22].mxu0 %vm162_vm1, %v12934_v16  ;;  %10320 = vmatmul.mubr.msk.f32.gmra.mrb[22].mxu1 %vm162_vm1, %v12934_v16 }
  0x32   :  { %10296 = vmatprep.mubr.msk.f32.mxu0 %vm162_vm1, %v12939_v17  ;;  %10322 = vmatprep.mubr.msk.f32.mxu1 %vm162_vm1, %v12939_v17 }
  0x33   :  { %4574 = vperm.xlu1 %11578, %v4536_v43   ;;  %4569 = vperm.xlu0 %11577, %v4535_v44  }
  0x35   :  { %10297 = vmatmul.mubr.msk.f32.gmra.mrb[24].mxu0 %vm162_vm1, %v12958_v20  ;;  %10323 = vmatmul.mubr.msk.f32.gmra.mrb[24].mxu1 %vm162_vm1, %v12958_v20 }
  0x36   :  { %10299 = vmatprep.mubr.msk.f32.mxu0 %vm162_vm1, %v12963_v21  ;;  %10325 = vmatprep.mubr.msk.f32.mxu1 %vm162_vm1, %v12963_v21 }
  0x37   :  { %4594 = vperm.xlu1 %11578, %v4540_v45   ;;  %4589 = vperm.xlu0 %11577, %v4539_v46  }
  0x39   :  { %10300 = vmatmul.mubr.msk.f32.gmra.mrb[26].mxu0 %vm162_vm1, %v12982_v24  ;;  %10326 = vmatmul.mubr.msk.f32.gmra.mrb[26].mxu1 %vm162_vm1, %v12982_v24 }
  0x3a   :  { %10302 = vmatprep.mubr.msk.f32.mxu0 %vm162_vm1, %v12987_v25  ;;  %10328 = vmatprep.mubr.msk.f32.mxu1 %vm162_vm1, %v12987_v25 }
  0x3b   :  { %4584 = vperm.xlu1 %11578, %v4538_v47   ;;  %4579 = vperm.xlu0 %11577, %v4537_v48  }
  0x3d   :  { %10303 = vmatmul.mubr.msk.f32.gmra.mrb[28].mxu0 %vm162_vm1, %v13006_v28  ;;  %10329 = vmatmul.mubr.msk.f32.gmra.mrb[28].mxu1 %vm162_vm1, %v13006_v28 }
  0x3e   :  { %10305 = vmatprep.mubr.msk.f32.mxu0 %vm162_vm1, %v13011_v29  ;;  %10331 = vmatprep.mubr.msk.f32.mxu1 %vm162_vm1, %v13011_v29 }
  0x3f   :  { %4604 = vperm.xlu1 %11578, %v4542_v49   ;;  %4599 = vperm.xlu0 %11577, %v4541_v50  }
  0x41   :  { %10306 = vmatmul.mubr.msk.f32.gmra.mrb[30].mxu0 %vm162_vm1, %v13030_v32  ;;  %10332 = vmatmul.mubr.msk.f32.gmra.mrb[30].mxu1 %vm162_vm1, %v13030_v32 }
  0x42   :  { %10336 = vmatprep.mubr.msk.f32.mxu0 %vm162_vm1, %v12837_v2  ;;  %10362 = vmatprep.mubr.msk.f32.mxu1 %vm162_vm1, %v12837_v2 }
  0x43   :  { %4614 = vperm.xlu1 %11578, %v4544_v51   ;;  %4609 = vperm.xlu0 %11577, %v4543_v53  }
  0x45   :  { %10337 = vmatmul.mubr.msk.f32.vlgmr.msra.gmra.mrb[32].mxu0 %vm162_vm1, %v12844_v3  ;;  %10363 = vmatmul.mubr.msk.f32.vlgmr.msra.gmra.mrb[32].mxu1 %vm162_vm1, %v12844_v3 }
  0x46   :  { %10339 = vmatprep.mubr.msk.f32.mxu0 %vm162_vm1, %v12852_v4  ;;  %10365 = vmatprep.mubr.msk.f32.mxu1 %vm162_vm1, %v12852_v4 }
  0x47   :  { %10387 = vmatpush3.msk.msra.mxu0 %vm211_vm0, %v13053_v35  ;;  %10413 = vmatpush3.msk.msra.mxu1 %vm211_vm0, %v13058_v36 }
  0x48   :  { %10438 = vmatprep.subr.mxu0 %v15848_v52  ;;  %4634 = vperm.xlu1 %11578, %v4548_v54  }
  0x49   :  { %10340 = vmatmul.mubr.msk.f32.gmra.mrb[34].mxu0 %vm162_vm1, %v12868_v5  ;;  %10366 = vmatmul.mubr.msk.f32.gmra.mrb[34].mxu1 %vm162_vm1, %v12868_v5 }
  0x4a   :  { %10342 = vmatprep.mubr.msk.f32.mxu0 %vm162_vm1, %v12876_v7  ;;  %10368 = vmatprep.mubr.msk.f32.mxu1 %vm162_vm1, %v12876_v7 }
  0x4b   :  { %4629 = vperm.xlu0 %11577, %v4547_v55  }
  0x4c   :  { %4624 = vperm.xlu1 %11578, %v4546_v56  }
  0x4d   :  { %10343 = vmatmul.mubr.msk.f32.gmra.mrb[36].mxu0 %vm162_vm1, %v12905_v12  ;;  %10369 = vmatmul.mubr.msk.f32.gmra.mrb[36].mxu1 %vm162_vm1, %v12905_v12 }
  0x4e   :  { %10345 = vmatprep.mubr.msk.f32.mxu0 %vm162_vm1, %v12910_v13  ;;  %10371 = vmatprep.mubr.msk.f32.mxu1 %vm162_vm1, %v12910_v13 }
  0x4f   :  { %4619 = vperm.xlu0 %11577, %v4545_v57  }
  0x50   :  { %4644 = vperm.xlu1 %11578, %v4550_v58  }
  0x51   :  { %10346 = vmatmul.mubr.msk.f32.gmra.mrb[38].mxu0 %vm162_vm1, %v12934_v16  ;;  %10372 = vmatmul.mubr.msk.f32.gmra.mrb[38].mxu1 %vm162_vm1, %v12934_v16 }
  0x52   :  { %10348 = vmatprep.mubr.msk.f32.mxu0 %vm162_vm1, %v12939_v17  ;;  %10374 = vmatprep.mubr.msk.f32.mxu1 %vm162_vm1, %v12939_v17 }
  0x53   :  { %4639 = vperm.xlu0 %11577, %v4549_v59  }
  0x54   :  { %4654 = vperm.xlu1 %11578, %v4552_v60  }
  0x55   :  { %10349 = vmatmul.mubr.msk.f32.gmra.mrb[40].mxu0 %vm162_vm1, %v12958_v20  ;;  %10375 = vmatmul.mubr.msk.f32.gmra.mrb[40].mxu1 %vm162_vm1, %v12958_v20 }
  0x56   :  { %10351 = vmatprep.mubr.msk.f32.mxu0 %vm162_vm1, %v12963_v21  ;;  %10377 = vmatprep.mubr.msk.f32.mxu1 %vm162_vm1, %v12963_v21 }
  0x57   :  { %4649 = vperm.xlu0 %11577, %v4551_v61  }
  0x58   :  { %4674 = vperm.xlu1 %11578, %v4556_v62  }
  0x59   :  { %10352 = vmatmul.mubr.msk.f32.gmra.mrb[42].mxu0 %vm162_vm1, %v12982_v24  ;;  %10378 = vmatmul.mubr.msk.f32.gmra.mrb[42].mxu1 %vm162_vm1, %v12982_v24 }
  0x5a   :  { %10354 = vmatprep.mubr.msk.f32.mxu0 %vm162_vm1, %v12987_v25  ;;  %10380 = vmatprep.mubr.msk.f32.mxu1 %vm162_vm1, %v12987_v25 }
  0x5b   :  { %4669 = vperm.xlu0 %11577, %v4555_v63  }
  0x5c   :  { %4664 = vperm.xlu1 %11578, %v4554_v0  }
  0x5d   :  { %10355 = vmatmul.mubr.msk.f32.gmra.mrb[44].mxu0 %vm162_vm1, %v13006_v28  ;;  %10381 = vmatmul.mubr.msk.f32.gmra.mrb[44].mxu1 %vm162_vm1, %v13006_v28 }
  0x5e   :  { %10357 = vmatprep.mubr.msk.f32.mxu0 %vm162_vm1, %v13011_v29  ;;  %10383 = vmatprep.mubr.msk.f32.mxu1 %vm162_vm1, %v13011_v29 }
  0x5f   :  { %4659 = vperm.xlu0 %11577, %v4553_v1  }
  0x60   :  { %4684 = vperm.xlu1 %11578, %v4558_v6  }
  0x61   :  { %10358 = vmatmul.mubr.msk.f32.gmra.mrb[46].mxu0 %vm162_vm1, %v13030_v32  ;;  %10384 = vmatmul.mubr.msk.f32.gmra.mrb[46].mxu1 %vm162_vm1, %v13030_v32 }
  0x62   :  { %10388 = vmatprep.mubr.msk.f32.mxu0 %vm162_vm1, %v12837_v2  ;;  %10414 = vmatprep.mubr.msk.f32.mxu1 %vm162_vm1, %v12837_v2  ;;  %v4559_v2 = vld [vmem:[%s15843_s8 + $0xc0] sm:$0xff] }
  0x63   :  { %4679 = vperm.xlu0 %11577, %v4557_v8  }
  0x64   :  { %4694 = vperm.xlu1 %11578, %v4560_v9  }
  0x65   :  { %10389 = vmatmul.mubr.msk.f32.vlgmr.msra.gmra.mrb[48].mxu0 %vm162_vm1, %v12844_v3  ;;  %10415 = vmatmul.mubr.msk.f32.vlgmr.msra.gmra.mrb[48].mxu1 %vm162_vm1, %v12844_v3  ;;  %v4564_v3 = vld [vmem:[%s15843_s8 + $0xe8] sm:$0xff] }
  0x66   :  { %10391 = vmatprep.mubr.msk.f32.mxu0 %vm162_vm1, %v12852_v4  ;;  %10417 = vmatprep.mubr.msk.f32.mxu1 %vm162_vm1, %v12852_v4  ;;  %v4563_v4 = vld [vmem:[%s15843_s8 + $0xe0] sm:$0xff] }
  0x67   :  { %10439 = vmatpush3.msra.mxu0 %v15848_v52  ;;  %4689 = vperm.xlu0 %11577, %v4559_v2  }
  0x68   :  { %4714 = vperm.xlu1 %11578, %v4564_v3  }
  0x69   :  { %10392 = vmatmul.mubr.msk.f32.gmra.mrb[50].mxu0 %vm162_vm1, %v12868_v5  ;;  %10418 = vmatmul.mubr.msk.f32.gmra.mrb[50].mxu1 %vm162_vm1, %v12868_v5  ;;  %v4562_v5 = vld [vmem:[%s15843_s8 + $0xd8] sm:$0xff] }
  0x6a   :  { %10394 = vmatprep.mubr.msk.f32.mxu0 %vm162_vm1, %v12876_v7  ;;  %10420 = vmatprep.mubr.msk.f32.mxu1 %vm162_vm1, %v12876_v7  ;;  %v4561_v7 = vld [vmem:[%s15843_s8 + $0xd0] sm:$0xff] }
  0x6b   :  { %4709 = vperm.xlu0 %11577, %v4563_v4  }
  0x6c   :  { %4704 = vperm.xlu1 %11578, %v4562_v5  }
  0x6d   :  { %10395 = vmatmul.mubr.msk.f32.gmra.mrb[52].mxu0 %vm162_vm1, %v12905_v12  ;;  %10421 = vmatmul.mubr.msk.f32.gmra.mrb[52].mxu1 %vm162_vm1, %v12905_v12  ;;  %v8513_v12 = vld [vmem:[%s15846_s11] sm:$0xf] }
  0x6e   :  { %10397 = vmatprep.mubr.msk.f32.mxu0 %vm162_vm1, %v12910_v13  ;;  %10423 = vmatprep.mubr.msk.f32.mxu1 %vm162_vm1, %v12910_v13  ;;  %v8219_v13 = vld [vmem:[%s15846_s11] sm:$0xf] }
  0x6f   :  { %4699 = vperm.xlu0 %11577, %v4561_v7  }
  0x70   :  { %4724 = vperm.xlu1 %11578, %v4566_v10  }
  0x71   :  { %10398 = vmatmul.mubr.msk.f32.gmra.mrb[54].mxu0 %vm162_vm1, %v12934_v16  ;;  %10424 = vmatmul.mubr.msk.f32.gmra.mrb[54].mxu1 %vm162_vm1, %v12934_v16  ;;  %v1527_v16 = vld [vmem:[%s15837_s2 + $0x10] sm:$0xff] }
  0x72   :  { %10400 = vmatprep.mubr.msk.f32.mxu0 %vm162_vm1, %v12939_v17  ;;  %10426 = vmatprep.mubr.msk.f32.mxu1 %vm162_vm1, %v12939_v17  ;;  %v1528_v17 = vld [vmem:[%s15837_s2 + $0x18] sm:$0xff] }
  0x73   :  { %4719 = vperm.xlu0 %11577, %v4565_v11  }
  0x74   :  { %8516 = vperm.xlu1 %11578, %v8513_v12  }
  0x75   :  { %10401 = vmatmul.mubr.msk.f32.gmra.mrb[56].mxu0 %vm162_vm1, %v12958_v20  ;;  %10427 = vmatmul.mubr.msk.f32.gmra.mrb[56].mxu1 %vm162_vm1, %v12958_v20  ;;  %v1531_v20 = vld [vmem:[%s15837_s2 + $0x30] sm:$0xff] }
  0x76   :  { %10403 = vmatprep.mubr.msk.f32.mxu0 %vm162_vm1, %v12963_v21  ;;  %10429 = vmatprep.mubr.msk.f32.mxu1 %vm162_vm1, %v12963_v21  ;;  %v1532_v21 = vld [vmem:[%s15837_s2 + $0x38] sm:$0xff] }
  0x77   :  { %8222 = vperm.xlu0 %11577, %v8219_v13  }
  0x79   :  { %10404 = vmatmul.mubr.msk.f32.gmra.mrb[58].mxu0 %vm162_vm1, %v12982_v24  ;;  %10430 = vmatmul.mubr.msk.f32.gmra.mrb[58].mxu1 %vm162_vm1, %v12982_v24  ;;  %v1535_v24 = vld [vmem:[%s15837_s2 + $0x50] sm:$0xff] }
  0x7a   :  { %10406 = vmatprep.mubr.msk.f32.mxu0 %vm162_vm1, %v12987_v25  ;;  %10432 = vmatprep.mubr.msk.f32.mxu1 %vm162_vm1, %v12987_v25  ;;  %v1536_v25 = vld [vmem:[%s15837_s2 + $0x58] sm:$0xff] }
  0x7d   :  { %10407 = vmatmul.mubr.msk.f32.gmra.mrb[60].mxu0 %vm162_vm1, %v13006_v28  ;;  %10433 = vmatmul.mubr.msk.f32.gmra.mrb[60].mxu1 %vm162_vm1, %v13006_v28  ;;  %v1539_v28 = vld [vmem:[%s15837_s2 + $0x70] sm:$0xff] }
  0x7e   :  { %10409 = vmatprep.mubr.msk.f32.mxu0 %vm162_vm1, %v13011_v29  ;;  %10435 = vmatprep.mubr.msk.f32.mxu1 %vm162_vm1, %v13011_v29  ;;  %v1540_v29 = vld [vmem:[%s15837_s2 + $0x78] sm:$0xff] }
  0x81   :  { %10410 = vmatmul.mubr.msk.f32.gmra.mrb[62].mxu0 %vm162_vm1, %v13030_v32  ;;  %10436 = vmatmul.mubr.msk.f32.gmra.mrb[62].mxu1 %vm162_vm1, %v13030_v32 }
  0x82   :  { %10440 = vmatprep.mubr.msk.f32.mxu0 %vm1573_vm2, %v1525_v14  ;;  %10472 = vmatprep.mubr.msk.f32.mxu1 %vm1573_vm2, %v1525_v14 }
  0x85   :  { %10441 = vmatmul.mubr.msk.f32.vlgmr.msra.gmra.mrb[64].mxu0 %vm1573_vm2, %v1526_v15 }
  0x86   :  { %10443 = vmatprep.mubr.msk.f32.mxu0 %vm1573_vm2, %v1527_v16 }
  0x89   :  { %10444 = vmatmul.mubr.msk.f32.gmra.mrb[66].mxu0 %vm1573_vm2, %v1528_v17 }
  0x8a   :  { %10446 = vmatprep.mubr.msk.f32.mxu0 %vm1573_vm2, %v1529_v18 }
  0x8b   :  { %v13444_v30 = vpop.permute.xlu1 %104  ;;  %v13446_v31 = vpop.permute.xlu0 %84 }
  0x8d   :  { %10447 = vmatmul.mubr.msk.f32.gmra.mrb[68].mxu0 %vm1573_vm2, %v1530_v19 }
  0x8e   :  { %10449 = vmatprep.mubr.msk.f32.mxu0 %vm1573_vm2, %v1531_v20 }
  0x8f   :  { %v13448_v32 = vpop.permute.xlu1 %109  ;;  %v13450_v33 = vpop.permute.xlu0 %89 }
  0x91   :  { %10450 = vmatmul.mubr.msk.f32.gmra.mrb[70].mxu0 %vm1573_vm2, %v1532_v21 }
  0x92   :  { %10452 = vmatprep.mubr.msk.f32.mxu0 %vm1573_vm2, %v1533_v22 }
  0x93   :  { %v13452_v34 = vpop.permute.xlu1 %99  ;;  %v13454_v35 = vpop.permute.xlu0 %94 }
  0x95   :  { %10453 = vmatmul.mubr.msk.f32.gmra.mrb[72].mxu0 %vm1573_vm2, %v1534_v23 }
  0x96   :  { %10455 = vmatprep.mubr.msk.f32.mxu0 %vm1573_vm2, %v1535_v24 }
  0x97   :  { %v13456_v36 = vpop.permute.xlu1 %119  ;;  %v13458_v37 = vpop.permute.xlu0 %114 }
  0x99   :  { %10456 = vmatmul.mubr.msk.f32.gmra.mrb[74].mxu0 %vm1573_vm2, %v1536_v25 }
  0x9a   :  { %10458 = vmatprep.mubr.msk.f32.mxu0 %vm1573_vm2, %v1537_v26 }
  0x9b   :  { %v13465_v46 = vpop.permute.xlu1 %129  ;;  %v13467_v47 = vpop.permute.xlu0 %124 }
  0x9d   :  { %10459 = vmatmul.mubr.msk.f32.gmra.mrb[76].mxu0 %vm1573_vm2, %v1538_v27 }
  0x9e   :  { %10461 = vmatprep.mubr.msk.f32.mxu0 %vm1573_vm2, %v1539_v28 }
  0x9f   :  { %v13485_v1 = vpop.permute.xlu1 %149  ;;  %v13487_v6 = vpop.permute.xlu0 %144 }
  0xa1   :  { %10462 = vmatmul.mubr.msk.f32.gmra.mrb[78].mxu0 %vm1573_vm2, %v1540_v29 }
  0xa2   :  { %10504 = vmatprep.mubr.msk.f32.mxu0 %vm1573_vm2, %v1525_v14 }
  0xa3   :  { %v13503_v18 = vpop.permute.xlu1 %139  ;;  %v13507_v20 = vpop.permute.xlu0 %134 }
  0xd8   :  { %v10234_v38 = vpop.f32.mrb[0].mxu0  ;;  %v10260_v39 = vpop.f32.mrb[0].mxu1 }
  0xd9   :  { %v287_v40 = vadd.f32 %v10234_v38, %v13450_v33  ;;  %v281_v41 = vpop.f32.mrb[1].mxu0  ;;  %v435_v42 = vadd.f32 %v10260_v39, %v13450_v33  ;;  %v429_v43 = vpop.f32.mrb[1].mxu1 }
  0xda   :  { %v282_v44 = vadd.f32 %v281_v41, %v13446_v31  ;;  %v430_v45 = vadd.f32 %v429_v43, %v13446_v31 }
  0xdb   :  { %1398 = vst.msk [vmem:[#allocation2 + $0x8] sm:$0xff] %vm1396_vm3, %v287_v40  ;;  %1414 = vst.msk [vmem:[#allocation2 + $0x88] sm:$0xff] %vm1396_vm3, %v435_v42 }
  0xdc   :  { %1397 = vst.msk [vmem:[#allocation2] sm:$0xff] %vm1396_vm3, %v282_v44  ;;  %v10237_v48 = vpop.f32.mrb[2].mxu0  ;;  %1413 = vst.msk [vmem:[#allocation2 + $0x80] sm:$0xff] %vm1396_vm3, %v430_v45  ;;  %v10263_v49 = vpop.f32.mrb[2].mxu1 }
  0xdd   :  { %v297_v50 = vadd.f32 %v10237_v48, %v13452_v34  ;;  %v291_v51 = vpop.f32.mrb[3].mxu0  ;;  %v445_v53 = vadd.f32 %v10263_v49, %v13452_v34  ;;  %v439_v54 = vpop.f32.mrb[3].mxu1 }
  0xde   :  { %v292_v55 = vadd.f32 %v291_v51, %v13454_v35  ;;  %v440_v56 = vadd.f32 %v439_v54, %v13454_v35  ;;  %v13523_v44 = vpop.permute.xlu1 %159  ;;  %v13527_v48 = vpop.permute.xlu0 %154 }
  0xdf   :  { %1400 = vst.msk [vmem:[#allocation2 + $0x18] sm:$0xff] %vm1396_vm3, %v297_v50  ;;  %1416 = vst.msk [vmem:[#allocation2 + $0x98] sm:$0xff] %vm1396_vm3, %v445_v53 }
  0xe0   :  { %1399 = vst.msk [vmem:[#allocation2 + $0x10] sm:$0xff] %vm1396_vm3, %v292_v55  ;;  %v10240_v57 = vpop.f32.mrb[4].mxu0  ;;  %1415 = vst.msk [vmem:[#allocation2 + $0x90] sm:$0xff] %vm1396_vm3, %v440_v56  ;;  %v10266_v58 = vpop.f32.mrb[4].mxu1 }
  0xe1   :  { %v307_v59 = vadd.f32 %v10240_v57, %v13448_v32  ;;  %v301_v60 = vpop.f32.mrb[5].mxu0  ;;  %v455_v61 = vadd.f32 %v10266_v58, %v13448_v32  ;;  %v449_v62 = vpop.f32.mrb[5].mxu1 }
  0xe2   :  { %v302_v63 = vadd.f32 %v301_v60, %v13444_v30  ;;  %v450_v0 = vadd.f32 %v449_v62, %v13444_v30 }
  0xe3   :  { %1402 = vst.msk [vmem:[#allocation2 + $0x28] sm:$0xff] %vm1396_vm3, %v307_v59  ;;  %1418 = vst.msk [vmem:[#allocation2 + $0xa8] sm:$0xff] %vm1396_vm3, %v455_v61 }
  0xe4   :  { %1401 = vst.msk [vmem:[#allocation2 + $0x20] sm:$0xff] %vm1396_vm3, %v302_v63  ;;  %v10243_v8 = vpop.f32.mrb[6].mxu0  ;;  %1417 = vst.msk [vmem:[#allocation2 + $0xa0] sm:$0xff] %vm1396_vm3, %v450_v0  ;;  %v10269_v9 = vpop.f32.mrb[6].mxu1 }
  0xe5   :  { %v317_v2 = vadd.f32 %v10243_v8, %v13456_v36  ;;  %v311_v3 = vpop.f32.mrb[7].mxu0  ;;  %v465_v4 = vadd.f32 %v10269_v9, %v13456_v36  ;;  %v459_v5 = vpop.f32.mrb[7].mxu1 }
  0xe6   :  { %v312_v7 = vadd.f32 %v311_v3, %v13458_v37  ;;  %v460_v10 = vadd.f32 %v459_v5, %v13458_v37 }
  0xe7   :  { %1404 = vst.msk [vmem:[#allocation2 + $0x38] sm:$0xff] %vm1396_vm3, %v317_v2  ;;  %1420 = vst.msk [vmem:[#allocation2 + $0xb8] sm:$0xff] %vm1396_vm3, %v465_v4 }
  0xe8   :  { %1403 = vst.msk [vmem:[#allocation2 + $0x30] sm:$0xff] %vm1396_vm3, %v312_v7  ;;  %v10246_v11 = vpop.f32.mrb[8].mxu0  ;;  %1419 = vst.msk [vmem:[#allocation2 + $0xb0] sm:$0xff] %vm1396_vm3, %v460_v10  ;;  %v10272_v12 = vpop.f32.mrb[8].mxu1 }
  0xe9   :  { %v327_v13 = vadd.f32 %v10246_v11, %v13465_v46  ;;  %v321_v14 = vpop.f32.mrb[9].mxu0  ;;  %v475_v15 = vadd.f32 %v10272_v12, %v13465_v46  ;;  %v469_v16 = vpop.f32.mrb[9].mxu1 }
  0xea   :  { %v322_v17 = vadd.f32 %v321_v14, %v13467_v47  ;;  %v470_v19 = vadd.f32 %v469_v16, %v13467_v47 }
  0xeb   :  { %1406 = vst.msk [vmem:[#allocation2 + $0x48] sm:$0xff] %vm1396_vm3, %v327_v13  ;;  %1422 = vst.msk [vmem:[#allocation2 + $0xc8] sm:$0xff] %vm1396_vm3, %v475_v15 }
  0xec   :  { %1405 = vst.msk [vmem:[#allocation2 + $0x40] sm:$0xff] %vm1396_vm3, %v322_v17  ;;  %v10249_v21 = vpop.f32.mrb[10].mxu0  ;;  %1421 = vst.msk [vmem:[#allocation2 + $0xc0] sm:$0xff] %vm1396_vm3, %v470_v19  ;;  %v10275_v22 = vpop.f32.mrb[10].mxu1 }
  0xed   :  { %v337_v23 = vadd.f32 %v10249_v21, %v13503_v18  ;;  %v331_v24 = vpop.f32.mrb[11].mxu0  ;;  %v485_v25 = vadd.f32 %v10275_v22, %v13503_v18  ;;  %v479_v26 = vpop.f32.mrb[11].mxu1 }
  0xee   :  { %v332_v27 = vadd.f32 %v331_v24, %v13507_v20  ;;  %v480_v28 = vadd.f32 %v479_v26, %v13507_v20 }
  0xef   :  { %1408 = vst.msk [vmem:[#allocation2 + $0x58] sm:$0xff] %vm1396_vm3, %v337_v23  ;;  %1424 = vst.msk [vmem:[#allocation2 + $0xd8] sm:$0xff] %vm1396_vm3, %v485_v25 }
  0xf0   :  { %1407 = vst.msk [vmem:[#allocation2 + $0x50] sm:$0xff] %vm1396_vm3, %v332_v27  ;;  %v10252_v29 = vpop.f32.mrb[12].mxu0  ;;  %1423 = vst.msk [vmem:[#allocation2 + $0xd0] sm:$0xff] %vm1396_vm3, %v480_v28  ;;  %v10278_v38 = vpop.f32.mrb[12].mxu1 }
  0xf1   :  { %v347_v39 = vadd.f32 %v10252_v29, %v13485_v1  ;;  %v341_v40 = vpop.f32.mrb[13].mxu0  ;;  %v495_v41 = vadd.f32 %v10278_v38, %v13485_v1  ;;  %v489_v42 = vpop.f32.mrb[13].mxu1 }
  0xf2   :  { %v342_v43 = vadd.f32 %v341_v40, %v13487_v6  ;;  %v490_v45 = vadd.f32 %v489_v42, %v13487_v6 }
  0xf3   :  { %1410 = vst.msk [vmem:[#allocation2 + $0x68] sm:$0xff] %vm1396_vm3, %v347_v39  ;;  %1426 = vst.msk [vmem:[#allocation2 + $0xe8] sm:$0xff] %vm1396_vm3, %v495_v41 }
  0xf4   :  { %1409 = vst.msk [vmem:[#allocation2 + $0x60] sm:$0xff] %vm1396_vm3, %v342_v43  ;;  %v10255_v49 = vpop.f32.mrb[14].mxu0  ;;  %1425 = vst.msk [vmem:[#allocation2 + $0xe0] sm:$0xff] %vm1396_vm3, %v490_v45  ;;  %v10281_v50 = vpop.f32.mrb[14].mxu1 }
  0xf5   :  { %v357_v51 = vadd.f32 %v10255_v49, %v13523_v44  ;;  %v351_v53 = vpop.f32.mrb[15].mxu0  ;;  %v505_v54 = vadd.f32 %v10281_v50, %v13523_v44  ;;  %v499_v55 = vpop.f32.mrb[15].mxu1 }
  0xf6   :  { %v352_v56 = vadd.f32 %v351_v53, %v13527_v48  ;;  %v500_v57 = vadd.f32 %v499_v55, %v13527_v48 }
  0xf7   :  { %1412 = vst.msk [vmem:[#allocation2 + $0x78] sm:$0xff] %vm1396_vm3, %v357_v51  ;;  %1428 = vst.msk [vmem:[#allocation2 + $0xf8] sm:$0xff] %vm1396_vm3, %v505_v54 }
  0xf8   :  { %1411 = vst.msk [vmem:[#allocation2 + $0x70] sm:$0xff] %vm1396_vm3, %v352_v56  ;;  %v10286_v58 = vpop.f32.mrb[16].mxu0  ;;  %1427 = vst.msk [vmem:[#allocation2 + $0xf0] sm:$0xff] %vm1396_vm3, %v500_v57  ;;  %v10312_v59 = vpop.f32.mrb[16].mxu1 }
  0xf9   :  { %v583_v60 = vadd.f32 %v10286_v58, %v13450_v33  ;;  %v577_v61 = vpop.f32.mrb[17].mxu0  ;;  %v731_v62 = vadd.f32 %v10312_v59, %v13450_v33  ;;  %v725_v63 = vpop.f32.mrb[17].mxu1 }
  0xfa   :  { %v578_v0 = vadd.f32 %v577_v61, %v13446_v31  ;;  %v726_v8 = vadd.f32 %v725_v63, %v13446_v31 }
  0xfb   :  { %1430 = vst.msk [vmem:[#allocation2 + $0x108] sm:$0xff] %vm1396_vm3, %v583_v60  ;;  %1446 = vst.msk [vmem:[#allocation2 + $0x188] sm:$0xff] %vm1396_vm3, %v731_v62 }
  0xfc   :  { %1429 = vst.msk [vmem:[#allocation2 + $0x100] sm:$0xff] %vm1396_vm3, %v578_v0  ;;  %v10289_v9 = vpop.f32.mrb[18].mxu0  ;;  %1445 = vst.msk [vmem:[#allocation2 + $0x180] sm:$0xff] %vm1396_vm3, %v726_v8  ;;  %v10315_v2 = vpop.f32.mrb[18].mxu1 }
  0xfd   :  { %v593_v3 = vadd.f32 %v10289_v9, %v13452_v34  ;;  %v587_v4 = vpop.f32.mrb[19].mxu0  ;;  %v741_v5 = vadd.f32 %v10315_v2, %v13452_v34  ;;  %v735_v7 = vpop.f32.mrb[19].mxu1 }
  0xfe   :  { %v588_v10 = vadd.f32 %v587_v4, %v13454_v35  ;;  %v736_v11 = vadd.f32 %v735_v7, %v13454_v35 }
  0xff   :  { %1432 = vst.msk [vmem:[#allocation2 + $0x118] sm:$0xff] %vm1396_vm3, %v593_v3  ;;  %1448 = vst.msk [vmem:[#allocation2 + $0x198] sm:$0xff] %vm1396_vm3, %v741_v5 }
 0x100   :  { %1431 = vst.msk [vmem:[#allocation2 + $0x110] sm:$0xff] %vm1396_vm3, %v588_v10  ;;  %v10292_v12 = vpop.f32.mrb[20].mxu0  ;;  %1447 = vst.msk [vmem:[#allocation2 + $0x190] sm:$0xff] %vm1396_vm3, %v736_v11  ;;  %v10318_v13 = vpop.f32.mrb[20].mxu1 }
 0x101   :  { %v603_v14 = vadd.f32 %v10292_v12, %v13448_v32  ;;  %v597_v15 = vpop.f32.mrb[21].mxu0  ;;  %v751_v16 = vadd.f32 %v10318_v13, %v13448_v32  ;;  %v745_v17 = vpop.f32.mrb[21].mxu1 }
 0x102   :  { %v598_v19 = vadd.f32 %v597_v15, %v13444_v30  ;;  %v746_v21 = vadd.f32 %v745_v17, %v13444_v30 }
 0x103   :  { %1434 = vst.msk [vmem:[#allocation2 + $0x128] sm:$0xff] %vm1396_vm3, %v603_v14  ;;  %1450 = vst.msk [vmem:[#allocation2 + $0x1a8] sm:$0xff] %vm1396_vm3, %v751_v16 }
 0x104   :  { %1433 = vst.msk [vmem:[#allocation2 + $0x120] sm:$0xff] %vm1396_vm3, %v598_v19  ;;  %v10295_v22 = vpop.f32.mrb[22].mxu0  ;;  %1449 = vst.msk [vmem:[#allocation2 + $0x1a0] sm:$0xff] %vm1396_vm3, %v746_v21  ;;  %v10321_v23 = vpop.f32.mrb[22].mxu1 }
 0x105   :  { %v613_v24 = vadd.f32 %v10295_v22, %v13456_v36  ;;  %v607_v25 = vpop.f32.mrb[23].mxu0  ;;  %v761_v26 = vadd.f32 %v10321_v23, %v13456_v36  ;;  %v755_v27 = vpop.f32.mrb[23].mxu1 }
 0x106   :  { %v608_v28 = vadd.f32 %v607_v25, %v13458_v37  ;;  %v756_v29 = vadd.f32 %v755_v27, %v13458_v37 }
 0x107   :  { %1436 = vst.msk [vmem:[#allocation2 + $0x138] sm:$0xff] %vm1396_vm3, %v613_v24  ;;  %1452 = vst.msk [vmem:[#allocation2 + $0x1b8] sm:$0xff] %vm1396_vm3, %v761_v26 }
 0x108   :  { %1435 = vst.msk [vmem:[#allocation2 + $0x130] sm:$0xff] %vm1396_vm3, %v608_v28  ;;  %v10298_v38 = vpop.f32.mrb[24].mxu0  ;;  %1451 = vst.msk [vmem:[#allocation2 + $0x1b0] sm:$0xff] %vm1396_vm3, %v756_v29  ;;  %v10324_v39 = vpop.f32.mrb[24].mxu1 }
 0x109   :  { %v623_v40 = vadd.f32 %v10298_v38, %v13465_v46  ;;  %v617_v41 = vpop.f32.mrb[25].mxu0  ;;  %v771_v42 = vadd.f32 %v10324_v39, %v13465_v46  ;;  %v765_v43 = vpop.f32.mrb[25].mxu1 }
 0x10a   :  { %v618_v45 = vadd.f32 %v617_v41, %v13467_v47  ;;  %v766_v49 = vadd.f32 %v765_v43, %v13467_v47 }
 0x10b   :  { %1438 = vst.msk [vmem:[#allocation2 + $0x148] sm:$0xff] %vm1396_vm3, %v623_v40  ;;  %1454 = vst.msk [vmem:[#allocation2 + $0x1c8] sm:$0xff] %vm1396_vm3, %v771_v42 }
 0x10c   :  { %1437 = vst.msk [vmem:[#allocation2 + $0x140] sm:$0xff] %vm1396_vm3, %v618_v45  ;;  %v10301_v50 = vpop.f32.mrb[26].mxu0  ;;  %1453 = vst.msk [vmem:[#allocation2 + $0x1c0] sm:$0xff] %vm1396_vm3, %v766_v49  ;;  %v10327_v51 = vpop.f32.mrb[26].mxu1 }
 0x10d   :  { %v633_v53 = vadd.f32 %v10301_v50, %v13503_v18  ;;  %v627_v54 = vpop.f32.mrb[27].mxu0  ;;  %v781_v55 = vadd.f32 %v10327_v51, %v13503_v18  ;;  %v775_v56 = vpop.f32.mrb[27].mxu1 }
 0x10e   :  { %v628_v57 = vadd.f32 %v627_v54, %v13507_v20  ;;  %v776_v58 = vadd.f32 %v775_v56, %v13507_v20 }
 0x10f   :  { %1440 = vst.msk [vmem:[#allocation2 + $0x158] sm:$0xff] %vm1396_vm3, %v633_v53  ;;  %1456 = vst.msk [vmem:[#allocation2 + $0x1d8] sm:$0xff] %vm1396_vm3, %v781_v55 }
 0x110   :  { %1439 = vst.msk [vmem:[#allocation2 + $0x150] sm:$0xff] %vm1396_vm3, %v628_v57  ;;  %v10304_v59 = vpop.f32.mrb[28].mxu0  ;;  %1455 = vst.msk [vmem:[#allocation2 + $0x1d0] sm:$0xff] %vm1396_vm3, %v776_v58  ;;  %v10330_v60 = vpop.f32.mrb[28].mxu1 }
 0x111   :  { %v643_v61 = vadd.f32 %v10304_v59, %v13485_v1  ;;  %v637_v62 = vpop.f32.mrb[29].mxu0  ;;  %v791_v63 = vadd.f32 %v10330_v60, %v13485_v1  ;;  %v785_v0 = vpop.f32.mrb[29].mxu1 }
 0x112   :  { %v638_v8 = vadd.f32 %v637_v62, %v13487_v6  ;;  %v786_v9 = vadd.f32 %v785_v0, %v13487_v6 }
 0x113   :  { %1442 = vst.msk [vmem:[#allocation2 + $0x168] sm:$0xff] %vm1396_vm3, %v643_v61  ;;  %1458 = vst.msk [vmem:[#allocation2 + $0x1e8] sm:$0xff] %vm1396_vm3, %v791_v63 }
 0x114   :  { %1441 = vst.msk [vmem:[#allocation2 + $0x160] sm:$0xff] %vm1396_vm3, %v638_v8  ;;  %v10307_v2 = vpop.f32.mrb[30].mxu0  ;;  %1457 = vst.msk [vmem:[#allocation2 + $0x1e0] sm:$0xff] %vm1396_vm3, %v786_v9  ;;  %v10333_v3 = vpop.f32.mrb[30].mxu1 }
 0x115   :  { %v653_v4 = vadd.f32 %v10307_v2, %v13523_v44  ;;  %v647_v5 = vpop.f32.mrb[31].mxu0  ;;  %v801_v7 = vadd.f32 %v10333_v3, %v13523_v44  ;;  %v795_v10 = vpop.f32.mrb[31].mxu1 }
 0x116   :  { %v648_v11 = vadd.f32 %v647_v5, %v13527_v48  ;;  %v796_v12 = vadd.f32 %v795_v10, %v13527_v48 }
 0x117   :  { %1444 = vst.msk [vmem:[#allocation2 + $0x178] sm:$0xff] %vm1396_vm3, %v653_v4  ;;  %1460 = vst.msk [vmem:[#allocation2 + $0x1f8] sm:$0xff] %vm1396_vm3, %v801_v7 }
 0x118   :  { %1443 = vst.msk [vmem:[#allocation2 + $0x170] sm:$0xff] %vm1396_vm3, %v648_v11  ;;  %v10338_v13 = vpop.f32.mrb[32].mxu0  ;;  %1459 = vst.msk [vmem:[#allocation2 + $0x1f0] sm:$0xff] %vm1396_vm3, %v796_v12  ;;  %v10364_v14 = vpop.f32.mrb[32].mxu1 }
 0x119   :  { %v879_v15 = vadd.f32 %v10338_v13, %v13450_v33  ;;  %v873_v16 = vpop.f32.mrb[33].mxu0  ;;  %v1027_v17 = vadd.f32 %v10364_v14, %v13450_v33  ;;  %v1021_v19 = vpop.f32.mrb[33].mxu1 }
 0x11a   :  { %v874_v21 = vadd.f32 %v873_v16, %v13446_v31  ;;  %v1022_v22 = vadd.f32 %v1021_v19, %v13446_v31 }
 0x11b   :  { %1462 = vst.msk [vmem:[#allocation2 + $0x208] sm:$0xff] %vm1396_vm3, %v879_v15  ;;  %1478 = vst.msk [vmem:[#allocation2 + $0x288] sm:$0xff] %vm1396_vm3, %v1027_v17 }
 0x11c   :  { %1461 = vst.msk [vmem:[#allocation2 + $0x200] sm:$0xff] %vm1396_vm3, %v874_v21  ;;  %v10341_v23 = vpop.f32.mrb[34].mxu0  ;;  %1477 = vst.msk [vmem:[#allocation2 + $0x280] sm:$0xff] %vm1396_vm3, %v1022_v22  ;;  %v10367_v24 = vpop.f32.mrb[34].mxu1 }
 0x11d   :  { %v889_v25 = vadd.f32 %v10341_v23, %v13452_v34  ;;  %v883_v26 = vpop.f32.mrb[35].mxu0  ;;  %v1037_v27 = vadd.f32 %v10367_v24, %v13452_v34  ;;  %v1031_v28 = vpop.f32.mrb[35].mxu1 }
 0x11e   :  { %v884_v29 = vadd.f32 %v883_v26, %v13454_v35  ;;  %v1032_v38 = vadd.f32 %v1031_v28, %v13454_v35 }
 0x11f   :  { %1464 = vst.msk [vmem:[#allocation2 + $0x218] sm:$0xff] %vm1396_vm3, %v889_v25  ;;  %1480 = vst.msk [vmem:[#allocation2 + $0x298] sm:$0xff] %vm1396_vm3, %v1037_v27 }
 0x120   :  { %1463 = vst.msk [vmem:[#allocation2 + $0x210] sm:$0xff] %vm1396_vm3, %v884_v29  ;;  %v10344_v39 = vpop.f32.mrb[36].mxu0  ;;  %1479 = vst.msk [vmem:[#allocation2 + $0x290] sm:$0xff] %vm1396_vm3, %v1032_v38  ;;  %v10370_v40 = vpop.f32.mrb[36].mxu1 }
 0x121   :  { %v899_v41 = vadd.f32 %v10344_v39, %v13448_v32  ;;  %v893_v42 = vpop.f32.mrb[37].mxu0  ;;  %v1047_v43 = vadd.f32 %v10370_v40, %v13448_v32  ;;  %v1041_v45 = vpop.f32.mrb[37].mxu1 }
 0x122   :  { %v894_v49 = vadd.f32 %v893_v42, %v13444_v30  ;;  %v1042_v50 = vadd.f32 %v1041_v45, %v13444_v30 }
 0x123   :  { %1466 = vst.msk [vmem:[#allocation2 + $0x228] sm:$0xff] %vm1396_vm3, %v899_v41  ;;  %1482 = vst.msk [vmem:[#allocation2 + $0x2a8] sm:$0xff] %vm1396_vm3, %v1047_v43 }
 0x124   :  { %1465 = vst.msk [vmem:[#allocation2 + $0x220] sm:$0xff] %vm1396_vm3, %v894_v49  ;;  %v10347_v51 = vpop.f32.mrb[38].mxu0  ;;  %1481 = vst.msk [vmem:[#allocation2 + $0x2a0] sm:$0xff] %vm1396_vm3, %v1042_v50  ;;  %v10373_v53 = vpop.f32.mrb[38].mxu1 }
 0x125   :  { %v909_v54 = vadd.f32 %v10347_v51, %v13456_v36  ;;  %v903_v55 = vpop.f32.mrb[39].mxu0  ;;  %v1057_v56 = vadd.f32 %v10373_v53, %v13456_v36  ;;  %v1051_v57 = vpop.f32.mrb[39].mxu1 }
 0x126   :  { %v904_v58 = vadd.f32 %v903_v55, %v13458_v37  ;;  %v1052_v59 = vadd.f32 %v1051_v57, %v13458_v37 }
 0x127   :  { %1468 = vst.msk [vmem:[#allocation2 + $0x238] sm:$0xff] %vm1396_vm3, %v909_v54  ;;  %1484 = vst.msk [vmem:[#allocation2 + $0x2b8] sm:$0xff] %vm1396_vm3, %v1057_v56 }
 0x128   :  { %1467 = vst.msk [vmem:[#allocation2 + $0x230] sm:$0xff] %vm1396_vm3, %v904_v58  ;;  %v10350_v60 = vpop.f32.mrb[40].mxu0  ;;  %1483 = vst.msk [vmem:[#allocation2 + $0x2b0] sm:$0xff] %vm1396_vm3, %v1052_v59  ;;  %v10376_v61 = vpop.f32.mrb[40].mxu1 }
 0x129   :  { %v919_v62 = vadd.f32 %v10350_v60, %v13465_v46  ;;  %v913_v63 = vpop.f32.mrb[41].mxu0  ;;  %v1067_v0 = vadd.f32 %v10376_v61, %v13465_v46  ;;  %v1061_v8 = vpop.f32.mrb[41].mxu1 }
 0x12a   :  { %v914_v9 = vadd.f32 %v913_v63, %v13467_v47  ;;  %v1062_v2 = vadd.f32 %v1061_v8, %v13467_v47 }
 0x12b   :  { %1470 = vst.msk [vmem:[#allocation2 + $0x248] sm:$0xff] %vm1396_vm3, %v919_v62  ;;  %1486 = vst.msk [vmem:[#allocation2 + $0x2c8] sm:$0xff] %vm1396_vm3, %v1067_v0 }
 0x12c   :  { %1469 = vst.msk [vmem:[#allocation2 + $0x240] sm:$0xff] %vm1396_vm3, %v914_v9  ;;  %v10353_v3 = vpop.f32.mrb[42].mxu0  ;;  %1485 = vst.msk [vmem:[#allocation2 + $0x2c0] sm:$0xff] %vm1396_vm3, %v1062_v2  ;;  %v10379_v4 = vpop.f32.mrb[42].mxu1 }
 0x12d   :  { %v929_v5 = vadd.f32 %v10353_v3, %v13503_v18  ;;  %v923_v7 = vpop.f32.mrb[43].mxu0  ;;  %v1077_v10 = vadd.f32 %v10379_v4, %v13503_v18  ;;  %v1071_v11 = vpop.f32.mrb[43].mxu1 }
 0x12e   :  { %v924_v12 = vadd.f32 %v923_v7, %v13507_v20  ;;  %v1072_v13 = vadd.f32 %v1071_v11, %v13507_v20 }
 0x12f   :  { %1472 = vst.msk [vmem:[#allocation2 + $0x258] sm:$0xff] %vm1396_vm3, %v929_v5  ;;  %1488 = vst.msk [vmem:[#allocation2 + $0x2d8] sm:$0xff] %vm1396_vm3, %v1077_v10 }
 0x130   :  { %1471 = vst.msk [vmem:[#allocation2 + $0x250] sm:$0xff] %vm1396_vm3, %v924_v12  ;;  %v10356_v14 = vpop.f32.mrb[44].mxu0  ;;  %1487 = vst.msk [vmem:[#allocation2 + $0x2d0] sm:$0xff] %vm1396_vm3, %v1072_v13  ;;  %v10382_v15 = vpop.f32.mrb[44].mxu1 }
 0x131   :  { %v939_v16 = vadd.f32 %v10356_v14, %v13485_v1  ;;  %v933_v17 = vpop.f32.mrb[45].mxu0  ;;  %v1087_v19 = vadd.f32 %v10382_v15, %v13485_v1  ;;  %v1081_v21 = vpop.f32.mrb[45].mxu1 }
 0x132   :  { %v934_v22 = vadd.f32 %v933_v17, %v13487_v6  ;;  %v1082_v23 = vadd.f32 %v1081_v21, %v13487_v6 }
 0x133   :  { %1474 = vst.msk [vmem:[#allocation2 + $0x268] sm:$0xff] %vm1396_vm3, %v939_v16  ;;  %1490 = vst.msk [vmem:[#allocation2 + $0x2e8] sm:$0xff] %vm1396_vm3, %v1087_v19 }
 0x134   :  { %1473 = vst.msk [vmem:[#allocation2 + $0x260] sm:$0xff] %vm1396_vm3, %v934_v22  ;;  %v10359_v24 = vpop.f32.mrb[46].mxu0  ;;  %1489 = vst.msk [vmem:[#allocation2 + $0x2e0] sm:$0xff] %vm1396_vm3, %v1082_v23  ;;  %v10385_v25 = vpop.f32.mrb[46].mxu1 }
 0x135   :  { %v949_v26 = vadd.f32 %v10359_v24, %v13523_v44  ;;  %v943_v27 = vpop.f32.mrb[47].mxu0  ;;  %v1097_v28 = vadd.f32 %v10385_v25, %v13523_v44  ;;  %v1091_v29 = vpop.f32.mrb[47].mxu1 }
 0x136   :  { %v944_v38 = vadd.f32 %v943_v27, %v13527_v48  ;;  %v1092_v39 = vadd.f32 %v1091_v29, %v13527_v48 }
 0x137   :  { %1476 = vst.msk [vmem:[#allocation2 + $0x278] sm:$0xff] %vm1396_vm3, %v949_v26  ;;  %1492 = vst.msk [vmem:[#allocation2 + $0x2f8] sm:$0xff] %vm1396_vm3, %v1097_v28 }
 0x138   :  { %1475 = vst.msk [vmem:[#allocation2 + $0x270] sm:$0xff] %vm1396_vm3, %v944_v38  ;;  %v10390_v40 = vpop.f32.mrb[48].mxu0  ;;  %1491 = vst.msk [vmem:[#allocation2 + $0x2f0] sm:$0xff] %vm1396_vm3, %v1092_v39  ;;  %v10416_v41 = vpop.f32.mrb[48].mxu1 }
 0x139   :  { %v1175_v42 = vadd.f32 %v10390_v40, %v13450_v33  ;;  %v1169_v43 = vpop.f32.mrb[49].mxu0  ;;  %v1323_v45 = vadd.f32 %v10416_v41, %v13450_v33  ;;  %v1317_v49 = vpop.f32.mrb[49].mxu1 }
 0x13a   :  { %v1170_v50 = vadd.f32 %v1169_v43, %v13446_v31  ;;  %v1318_v51 = vadd.f32 %v1317_v49, %v13446_v31  ;;  %v1558_v43 = vld [vmem:[#allocation2 + $0x8] sm:$0xff] }
 0x13b   :  { %1494 = vst.msk [vmem:[#allocation2 + $0x308] sm:$0xff] %vm1396_vm3, %v1175_v42  ;;  %1510 = vst.msk [vmem:[#allocation2 + $0x388] sm:$0xff] %vm1396_vm3, %v1323_v45 }
 0x13c   :  { %1493 = vst.msk [vmem:[#allocation2 + $0x300] sm:$0xff] %vm1396_vm3, %v1170_v50  ;;  %v10393_v53 = vpop.f32.mrb[50].mxu0  ;;  %1509 = vst.msk [vmem:[#allocation2 + $0x380] sm:$0xff] %vm1396_vm3, %v1318_v51  ;;  %v10419_v54 = vpop.f32.mrb[50].mxu1  ;;  %v1557_v50 = vld [vmem:[#allocation2] sm:$0xff] }
 0x13d   :  { %v1185_v55 = vadd.f32 %v10393_v53, %v13452_v34  ;;  %v1179_v56 = vpop.f32.mrb[51].mxu0  ;;  %v1333_v33 = vadd.f32 %v10419_v54, %v13452_v34  ;;  %v1327_v57 = vpop.f32.mrb[51].mxu1 }
 0x13e   :  { %v1180_v58 = vadd.f32 %v1179_v56, %v13454_v35  ;;  %v1328_v31 = vadd.f32 %v1327_v57, %v13454_v35 }
 0x13f   :  { %1496 = vst.msk [vmem:[#allocation2 + $0x318] sm:$0xff] %vm1396_vm3, %v1185_v55  ;;  %1512 = vst.msk [vmem:[#allocation2 + $0x398] sm:$0xff] %vm1396_vm3, %v1333_v33  ;;  %v1560_v55 = vld [vmem:[#allocation2 + $0x18] sm:$0xff]  ;;  %v1559_v33 = vld [vmem:[#allocation2 + $0x10] sm:$0xff] }
 0x140   :  { %1495 = vst.msk [vmem:[#allocation2 + $0x310] sm:$0xff] %vm1396_vm3, %v1180_v58  ;;  %v10396_v59 = vpop.f32.mrb[52].mxu0  ;;  %1511 = vst.msk [vmem:[#allocation2 + $0x390] sm:$0xff] %vm1396_vm3, %v1328_v31  ;;  %v10422_v60 = vpop.f32.mrb[52].mxu1 }
 0x141   :  { %v1195_v61 = vadd.f32 %v10396_v59, %v13448_v32  ;;  %v1189_v62 = vpop.f32.mrb[53].mxu0  ;;  %v1343_v34 = vadd.f32 %v10422_v60, %v13448_v32  ;;  %v1337_v63 = vpop.f32.mrb[53].mxu1  ;;  %v1562_v60 = vld [vmem:[#allocation2 + $0x28] sm:$0xff] }
 0x142   :  { %v1190_v0 = vadd.f32 %v1189_v62, %v13444_v30  ;;  %v1338_v35 = vadd.f32 %v1337_v63, %v13444_v30 }
 0x143   :  { %1498 = vst.msk [vmem:[#allocation2 + $0x328] sm:$0xff] %vm1396_vm3, %v1195_v61  ;;  %1514 = vst.msk [vmem:[#allocation2 + $0x3a8] sm:$0xff] %vm1396_vm3, %v1343_v34  ;;  %v1561_v34 = vld [vmem:[#allocation2 + $0x20] sm:$0xff] }
 0x144   :  { %1497 = vst.msk [vmem:[#allocation2 + $0x320] sm:$0xff] %vm1396_vm3, %v1190_v0  ;;  %v10399_v8 = vpop.f32.mrb[54].mxu0  ;;  %1513 = vst.msk [vmem:[#allocation2 + $0x3a0] sm:$0xff] %vm1396_vm3, %v1338_v35  ;;  %v10425_v9 = vpop.f32.mrb[54].mxu1 }
 0x145   :  { %v1205_v2 = vadd.f32 %v10399_v8, %v13456_v36  ;;  %v1199_v3 = vpop.f32.mrb[55].mxu0  ;;  %v1353_v32 = vadd.f32 %v10425_v9, %v13456_v36  ;;  %v1347_v4 = vpop.f32.mrb[55].mxu1  ;;  %v1564_v9 = vld [vmem:[#allocation2 + $0x38] sm:$0xff] }
 0x146   :  { %v1200_v5 = vadd.f32 %v1199_v3, %v13458_v37  ;;  %v1348_v30 = vadd.f32 %v1347_v4, %v13458_v37 }
 0x147   :  { %1500 = vst.msk [vmem:[#allocation2 + $0x338] sm:$0xff] %vm1396_vm3, %v1205_v2  ;;  %1516 = vst.msk [vmem:[#allocation2 + $0x3b8] sm:$0xff] %vm1396_vm3, %v1353_v32  ;;  %v1563_v32 = vld [vmem:[#allocation2 + $0x30] sm:$0xff] }
 0x148   :  { %1499 = vst.msk [vmem:[#allocation2 + $0x330] sm:$0xff] %vm1396_vm3, %v1200_v5  ;;  %v10402_v7 = vpop.f32.mrb[56].mxu0  ;;  %1515 = vst.msk [vmem:[#allocation2 + $0x3b0] sm:$0xff] %vm1396_vm3, %v1348_v30  ;;  %v10428_v10 = vpop.f32.mrb[56].mxu1 }
 0x149   :  { %v1215_v11 = vadd.f32 %v10402_v7, %v13465_v46  ;;  %v1209_v12 = vpop.f32.mrb[57].mxu0  ;;  %v1363_v36 = vadd.f32 %v10428_v10, %v13465_v46  ;;  %v1357_v13 = vpop.f32.mrb[57].mxu1 }
 0x14a   :  { %v1210_v14 = vadd.f32 %v1209_v12, %v13467_v47  ;;  %v1358_v37 = vadd.f32 %v1357_v13, %v13467_v47 }
 0x14b   :  { %1502 = vst.msk [vmem:[#allocation2 + $0x348] sm:$0xff] %vm1396_vm3, %v1215_v11  ;;  %1518 = vst.msk [vmem:[#allocation2 + $0x3c8] sm:$0xff] %vm1396_vm3, %v1363_v36  ;;  %v1566_v36 = vld [vmem:[#allocation2 + $0x48] sm:$0xff] }
 0x14c   :  { %1501 = vst.msk [vmem:[#allocation2 + $0x340] sm:$0xff] %vm1396_vm3, %v1210_v14  ;;  %v10405_v15 = vpop.f32.mrb[58].mxu0  ;;  %1517 = vst.msk [vmem:[#allocation2 + $0x3c0] sm:$0xff] %vm1396_vm3, %v1358_v37  ;;  %v10431_v16 = vpop.f32.mrb[58].mxu1 }
 0x14d   :  { %v1225_v17 = vadd.f32 %v10405_v15, %v13503_v18  ;;  %v1219_v19 = vpop.f32.mrb[59].mxu0  ;;  %v1373_v46 = vadd.f32 %v10431_v16, %v13503_v18  ;;  %v1367_v21 = vpop.f32.mrb[59].mxu1 }
 0x14e   :  { %v1220_v22 = vadd.f32 %v1219_v19, %v13507_v20  ;;  %v1368_v47 = vadd.f32 %v1367_v21, %v13507_v20 }
 0x14f   :  { %1504 = vst.msk [vmem:[#allocation2 + $0x358] sm:$0xff] %vm1396_vm3, %v1225_v17  ;;  %1520 = vst.msk [vmem:[#allocation2 + $0x3d8] sm:$0xff] %vm1396_vm3, %v1373_v46  ;;  %v1565_v17 = vld [vmem:[#allocation2 + $0x40] sm:$0xff] }
 0x150   :  { %1503 = vst.msk [vmem:[#allocation2 + $0x350] sm:$0xff] %vm1396_vm3, %v1220_v22  ;;  %1519 = vst.msk [vmem:[#allocation2 + $0x3d0] sm:$0xff] %vm1396_vm3, %v1368_v47  ;;  %v10408_v23 = vpop.f32.mrb[60].mxu0  ;;  %v10434_v24 = vpop.f32.mrb[60].mxu1  ;;  %v1568_v22 = vld [vmem:[#allocation2 + $0x58] sm:$0xff] }
 0x151   :  { %v1235_v25 = vadd.f32 %v10408_v23, %v13485_v1  ;;  %v1383_v26 = vadd.f32 %v10434_v24, %v13485_v1  ;;  %v1229_v18 = vpop.f32.mrb[61].mxu0  ;;  %v1377_v27 = vpop.f32.mrb[61].mxu1 }
 0x152   :  { %v1230_v28 = vadd.f32 %v1229_v18, %v13487_v6  ;;  %v1378_v20 = vadd.f32 %v1377_v27, %v13487_v6  ;;  %v1567_v18 = vld [vmem:[#allocation2 + $0x50] sm:$0xff] }
 0x153   :  { %1506 = vst.msk [vmem:[#allocation2 + $0x368] sm:$0xff] %vm1396_vm3, %v1235_v25  ;;  %1522 = vst.msk [vmem:[#allocation2 + $0x3e8] sm:$0xff] %vm1396_vm3, %v1383_v26 }
 0x154   :  { %1505 = vst.msk [vmem:[#allocation2 + $0x360] sm:$0xff] %vm1396_vm3, %v1230_v28  ;;  %1521 = vst.msk [vmem:[#allocation2 + $0x3e0] sm:$0xff] %vm1396_vm3, %v1378_v20  ;;  %v10411_v29 = vpop.f32.mrb[62].mxu0  ;;  %v10437_v38 = vpop.f32.mrb[62].mxu1 }
 0x155   :  { %v1245_v39 = vadd.f32 %v10411_v29, %v13523_v44  ;;  %v1393_v1 = vadd.f32 %v10437_v38, %v13523_v44  ;;  %v1239_v40 = vpop.f32.mrb[63].mxu0  ;;  %v1387_v41 = vpop.f32.mrb[63].mxu1  ;;  %v1570_v29 = vld [vmem:[#allocation2 + $0x68] sm:$0xff] }
 0x156   :  { %v1240_v42 = vadd.f32 %v1239_v40, %v13527_v48  ;;  %v1388_v6 = vadd.f32 %v1387_v41, %v13527_v48  ;;  %v1569_v40 = vld [vmem:[#allocation2 + $0x60] sm:$0xff] }
 0x157   :  { %1508 = vst.msk [vmem:[#allocation2 + $0x378] sm:$0xff] %vm1396_vm3, %v1245_v39  ;;  %1524 = vst.msk [vmem:[#allocation2 + $0x3f8] sm:$0xff] %vm1396_vm3, %v1393_v1 }
 0x158   :  { %1507 = vst.msk [vmem:[#allocation2 + $0x370] sm:$0xff] %vm1396_vm3, %v1240_v42  ;;  %1523 = vst.msk [vmem:[#allocation2 + $0x3f0] sm:$0xff] %vm1396_vm3, %v1388_v6  ;;  %v10442_v45 = vpop.f32.mrb[64].mxu0 }
 0x159   :  { %v1768_v49 = vadd.f32 %v10442_v45, %v1558_v43  ;;  %v1688_v51 = vpop.f32.mrb[65].mxu0 }
 0x15a   :  { %v1767_v44 = vadd.f32 %v1688_v51, %v1557_v50  ;;  %v1572_v51 = vld [vmem:[#allocation2 + $0x78] sm:$0xff] }
 0x15b   :  { %v8973_v53 = vmul.f32 -1.442695, %v1768_v49 }
 0x15c   :  { %v8972_v54 = vmul.f32 -1.442695, %v1767_v44  ;;  %v10445_v56 = vpop.f32.mrb[66].mxu0 }
 0x15d   :  { %11579 = vpow2.f32 %v8973_v53  ;;  %v1770_v48 = vadd.f32 %v10445_v56, %v1560_v55  ;;  %v1698_v57 = vpop.f32.mrb[67].mxu0  ;;  %v1571_v55 = vld [vmem:[#allocation2 + $0x70] sm:$0xff] }
 0x15e   :  { %11581 = vpow2.f32 %v8972_v54  ;;  %v1769_v58 = vadd.f32 %v1698_v57, %v1559_v33 }
 0x15f   :  { %v8975_v31 = vmul.f32 -1.442695, %v1770_v48 }
 0x160   :  { %v8974_v59 = vmul.f32 -1.442695, %v1769_v58  ;;  %v10448_v61 = vpop.f32.mrb[68].mxu0 }
 0x161   :  { %11583 = vpow2.f32 %v8975_v31  ;;  %v1772_v62 = vadd.f32 %v10448_v61, %v1562_v60  ;;  %v1708_v63 = vpop.f32.mrb[69].mxu0 }
 0x162   :  { %11585 = vpow2.f32 %v8974_v59  ;;  %v1771_v0 = vadd.f32 %v1708_v63, %v1561_v34 }
 0x163   :  { %v8977_v35 = vmul.f32 -1.442695, %v1772_v62 }
 0x164   :  { %v8976_v8 = vmul.f32 -1.442695, %v1771_v0  ;;  %v10451_v2 = vpop.f32.mrb[70].mxu0 }
 0x165   :  { %11587 = vpow2.f32 %v8977_v35  ;;  %v1774_v3 = vadd.f32 %v10451_v2, %v1564_v9  ;;  %v1718_v4 = vpop.f32.mrb[71].mxu0 }
 0x166   :  { %11589 = vpow2.f32 %v8976_v8  ;;  %v1773_v5 = vadd.f32 %v1718_v4, %v1563_v32 }
 0x167   :  { %v11580_v30 = vpop.eup %11579  ;;  %v8979_v7 = vmul.f32 -1.442695, %v1774_v3 }
 0x168   :  { %v11582_v10 = vpop.eup %11581  ;;  %v1796_v11 = vadd.f32 1.0, %v11580_v30  ;;  %v8978_v12 = vmul.f32 -1.442695, %v1773_v5  ;;  %v10454_v13 = vpop.f32.mrb[72].mxu0 }
 0x169   :  { %v1795_v14 = vadd.f32 1.0, %v11582_v10  ;;  %11591 = vpow2.f32 %v8979_v7  ;;  %v1776_v37 = vadd.f32 %v10454_v13, %v1566_v36  ;;  %v1728_v15 = vpop.f32.mrb[73].mxu0 }
 0x16a   :  { %11593 = vrcp.f32 %v1796_v11  ;;  %v1775_v21 = vadd.f32 %v1728_v15, %v1565_v17 }
 0x16b   :  { %v11584_v16 = vpop.eup %11583  ;;  %11595 = vrcp.f32 %v1795_v14 }
 0x16c   :  { %v11586_v19 = vpop.eup %11585  ;;  %v1798_v46 = vadd.f32 1.0, %v11584_v16  ;;  %11597 = vpow2.f32 %v8978_v12  ;;  %v10457_v47 = vpop.f32.mrb[74].mxu0 }
 0x16d   :  { %v1797_v23 = vadd.f32 1.0, %v11586_v19  ;;  %11599 = vtanh.f32 %v1776_v37  ;;  %v1778_v24 = vadd.f32 %v10457_v47, %v1568_v22  ;;  %v1738_v25 = vpop.f32.mrb[75].mxu0 }
 0x16e   :  { %11601 = vrcp.f32 %v1798_v46  ;;  %v1777_v20 = vadd.f32 %v1738_v25, %v1567_v18 }
 0x16f   :  { %v11588_v26 = vpop.eup %11587  ;;  %11603 = vrcp.f32 %v1797_v23 }
 0x170   :  { %v11590_v27 = vpop.eup %11589  ;;  %v1820_v28 = vadd.f32 1.0, %v11588_v26  ;;  %11605 = vtanh.f32 %v1775_v21  ;;  %v10460_v38 = vpop.f32.mrb[76].mxu0 }
 0x171   :  { %v1819_v39 = vadd.f32 1.0, %v11590_v27  ;;  %11607 = vtanh.f32 %v1778_v24  ;;  %v1780_v1 = vadd.f32 %v10460_v38, %v1570_v29  ;;  %v1748_v41 = vpop.f32.mrb[77].mxu0 }
 0x172   :  { %11609 = vrcp.f32 %v1820_v28  ;;  %v1779_v42 = vadd.f32 %v1748_v41, %v1569_v40  ;;  %v13751_v40 = vld [vmem:[%s15837_s2 + $0x8] sm:$0xff]  ;;  %v13758_v41 = vld [vmem:[%s15837_s2 + $0x10] sm:$0xff] }
 0x173   :  { %v11592_v6 = vpop.eup %11591  ;;  %11611 = vrcp.f32 %v1819_v39  ;;  %v8981_v43 = vmul.f32 -1.442695, %v1780_v1 }
 0x174   :  { %v11594_v45 = vpop.eup %11593  ;;  %v1822_v49 = vadd.f32 1.0, %v11592_v6  ;;  %11613 = vtanh.f32 %v1777_v20  ;;  %v8980_v50 = vmul.f32 -1.442695, %v1779_v42  ;;  %v10463_v44 = vpop.f32.mrb[78].mxu0  ;;  %v13765_v42 = vld [vmem:[%s15837_s2 + $0x18] sm:$0xff]  ;;  %v13772_v6 = vld [vmem:[%s15837_s2 + $0x20] sm:$0xff] }
 0x175   :  { %v11596_v53 = vpop.eup %11595  ;;  %11615 = vpow2.f32 %v8981_v43  ;;  %v1782_v54 = vadd.f32 %v10463_v44, %v1572_v51  ;;  %v1758_v56 = vpop.f32.mrb[79].mxu0  ;;  %v13779_v43 = vld [vmem:[%s15837_s2 + $0x28] sm:$0xff]  ;;  %v13814_v44 = vld [vmem:[%s15837_s2 + $0x50] sm:$0xff] }
 0x176   :  { %v11598_v48 = vpop.eup %11597  ;;  %11617 = vrcp.f32 %v1822_v49  ;;  %v1781_v33 = vadd.f32 %v1758_v56, %v1571_v55  ;;  %v13793_v49 = vld [vmem:[%s15837_s2 + $0x38] sm:$0xff]  ;;  %v13807_v51 = vld [vmem:[%s15837_s2 + $0x48] sm:$0xff]  ;;  %v13842_v56 = vld [vmem:[%s15837_s2 + $0x70] sm:$0xff] }
 0x177   :  { %v11600_v57 = vpop.eup %11599  ;;  %v1821_v58 = vadd.f32 1.0, %v11598_v48  ;;  %11619 = vpow2.f32 %v8980_v50  ;;  %v8983_v31 = vmul.f32 -1.442695, %v1782_v54  ;;  %v13800_v50 = vld [vmem:[%s15837_s2 + $0x40] sm:$0xff]  ;;  %v13835_v55 = vld [vmem:[%s15837_s2 + $0x68] sm:$0xff]  ;;  %v13849_v48 = vld [vmem:[%s15837_s2 + $0x78] sm:$0xff] }
 0x178   :  { %v11602_v59 = vpop.eup %11601  ;;  %v1864_v60 = vmul.f32 %v11600_v57, %v11594_v45  ;;  %v8982_v61 = vmul.f32 -1.442695, %v1781_v33  ;;  %v13786_v45 = vld [vmem:[%s15837_s2 + $0x30] sm:$0xff]  ;;  %v13828_v54 = vld [vmem:[%s15837_s2 + $0x60] sm:$0xff]  ;;  %v1885_v57 = vld [vmem:[#allocation2 + $0x88] sm:$0xff] }
 0x179   :  { %v11604_v62 = vpop.eup %11603  ;;  %11621 = vrcp.f32 %v1821_v58  ;;  %v13856_v33 = vld [vmem:[%s15837_s2] sm:$0xff] }
 0x17a   :  { %v11606_v34 = vpop.eup %11605  ;;  %11623 = vpow2.f32 %v8983_v31 }
 0x17b   :  { %v11608_v63 = vpop.eup %11607  ;;  %v1863_v0 = vmul.f32 %v11606_v34, %v11596_v53  ;;  %11625 = vpow2.f32 %v8982_v61  ;;  %v13821_v53 = vld [vmem:[%s15837_s2 + $0x58] sm:$0xff] }
 0x17c   :  { %v11610_v35 = vpop.eup %11609  ;;  %v1866_v8 = vmul.f32 %v11608_v63, %v11602_v59  ;;  %v1884_v59 = vld [vmem:[#allocation2 + $0x80] sm:$0xff]  ;;  %v1887_v63 = vld [vmem:[#allocation2 + $0x98] sm:$0xff] }
 0x17d   :  { %v11612_v9 = vpop.eup %11611  ;;  %v1860_v2 = vmul.f32 0.0, %v11610_v35 }
 0x17e   :  { %v11614_v3 = vpop.eup %11613  ;;  %v1859_v32 = vmul.f32 0.0, %v11612_v9 }
 0x17f   :  { %v11616_v4 = vpop.eup %11615  ;;  %v13732_v5 = vadd.f32 %v1864_v60, %v1860_v2  ;;  %v1865_v30 = vmul.f32 %v11614_v3, %v11604_v62 }
 0x180   :  { %v11618_v7 = vpop.eup %11617  ;;  %v13734_v10 = vadd.f32 %v1863_v0, %v1859_v32  ;;  %v1848_v11 = vadd.f32 1.0, %v11616_v4  ;;  %v1889_v4 = vld [vmem:[#allocation2 + $0xa8] sm:$0xff] }
 0x181   :  { %v11620_v12 = vpop.eup %11619  ;;  %v1862_v36 = vmul.f32 0.0, %v11618_v7  ;;  %11627 = vtanh.f32 %v13732_v5 }
 0x182   :  { %11629 = vtanh.f32 %v13734_v10  ;;  %v1847_v13 = vadd.f32 1.0, %v11620_v12 }
 0x183   :  { %v11622_v14 = vpop.eup %11621  ;;  %v13738_v37 = vadd.f32 %v1866_v8, %v1862_v36  ;;  %11631 = vrcp.f32 %v1848_v11  ;;  %v1886_v8 = vld [vmem:[#allocation2 + $0x90] sm:$0xff]  ;;  %v1888_v11 = vld [vmem:[#allocation2 + $0xa0] sm:$0xff] }
 0x184   :  { %v11624_v15 = vpop.eup %11623  ;;  %v1861_v16 = vmul.f32 0.0, %v11622_v14  ;;  %11633 = vrcp.f32 %v1847_v13 }
 0x185   :  { %v11626_v17 = vpop.eup %11625  ;;  %11635 = vtanh.f32 %v13738_v37  ;;  %v1850_v19 = vadd.f32 1.0, %v11624_v15  ;;  %v1891_v15 = vld [vmem:[#allocation2 + $0xb8] sm:$0xff] }
 0x186   :  { %v13741_v46 = vadd.f32 %v1865_v30, %v1861_v16  ;;  %v1849_v21 = vadd.f32 1.0, %v11626_v17 }
 0x187   :  { %11637 = vrcp.f32 %v1850_v19  ;;  %v1890_v19 = vld [vmem:[#allocation2 + $0xb0] sm:$0xff] }
 0x188   :  { %11639 = vtanh.f32 %v13741_v46 }
 0x189   :  { %11641 = vrcp.f32 %v1849_v21 }
 0x18b   :  { %v11628_v22 = vpop.eup %11627 }
 0x18c   :  { %v11630_v47 = vpop.eup %11629 }
 0x18d   :  { %v11632_v23 = vpop.eup %11631 }
 0x18e   :  { %v11634_v24 = vpop.eup %11633  ;;  %v1876_v25 = vmul.f32 %v11632_v23, %v11628_v22 }
 0x18f   :  { %v11636_v26 = vpop.eup %11635  ;;  %v1875_v18 = vmul.f32 %v11634_v24, %v11630_v47 }
 0x190   :  { %1880 = vst.msk [vmem:[#allocation3 + $0x8] sm:$0xff] %vm1396_vm3, %v1876_v25 }
 0x191   :  { %v11638_v27 = vpop.eup %11637  ;;  %1879 = vst.msk [vmem:[#allocation3] sm:$0xff] %vm1396_vm3, %v1875_v18  ;;  %v11322_v28 = vpack.c.bf16 %v1876_v25, %v1875_v18  ;;  %v1893_v18 = vld [vmem:[#allocation2 + $0xc8] sm:$0xff] }
 0x192   :  { %v11640_v20 = vpop.eup %11639  ;;  %v1878_v29 = vmul.f32 %v11638_v27, %v11636_v26 }
 0x193   :  { %v11642_v38 = vpop.eup %11641  ;;  %11323 = vmatprep.subr.bf16.mxu1 %v11322_v28 }
 0x194   :  { %11325 = vmatpush3.bf16.msra.mxu1 %v11322_v28  ;;  %v1877_v39 = vmul.f32 %v11642_v38, %v11640_v20  ;;  %1882 = vst.msk [vmem:[#allocation3 + $0x18] sm:$0xff] %vm1396_vm3, %v1878_v29 }
 0x196   :  { %1881 = vst.msk [vmem:[#allocation3 + $0x10] sm:$0xff] %vm1396_vm3, %v1877_v39  ;;  %v11326_v1 = vpack.c.bf16 %v1878_v29, %v1877_v39  ;;  %v1892_v39 = vld [vmem:[#allocation2 + $0xc0] sm:$0xff] }
 0x198   :  { %11327 = vmatprep.subr.bf16.mxu1 %v11326_v1 }
 0x199   :  { %11329 = vmatpush3.bf16.msra.mxu1 %v11326_v1 }
 0x19c   :  { %10473 = vmatmul.mubr.msk.f32.vlgmr.msra.gmra.mrb[64].mxu1 %vm1573_vm2, %v13751_v40 }
 0x19d   :  { %10475 = vmatprep.mubr.msk.f32.mxu1 %vm1573_vm2, %v13758_v41 }
 0x1a0   :  { %10476 = vmatmul.mubr.msk.f32.gmra.mrb[66].mxu1 %vm1573_vm2, %v13765_v42 }
 0x1a1   :  { %10478 = vmatprep.mubr.msk.f32.mxu1 %vm1573_vm2, %v13772_v6 }
 0x1a4   :  { %10479 = vmatmul.mubr.msk.f32.gmra.mrb[68].mxu1 %vm1573_vm2, %v13779_v43 }
 0x1a5   :  { %10481 = vmatprep.mubr.msk.f32.mxu1 %vm1573_vm2, %v13786_v45 }
 0x1a8   :  { %10482 = vmatmul.mubr.msk.f32.gmra.mrb[70].mxu1 %vm1573_vm2, %v13793_v49 }
 0x1a9   :  { %10484 = vmatprep.mubr.msk.f32.mxu1 %vm1573_vm2, %v13800_v50 }
 0x1ac   :  { %10485 = vmatmul.mubr.msk.f32.gmra.mrb[72].mxu1 %vm1573_vm2, %v13807_v51 }
 0x1ad   :  { %10487 = vmatprep.mubr.msk.f32.mxu1 %vm1573_vm2, %v13814_v44 }
 0x1b0   :  { %10488 = vmatmul.mubr.msk.f32.gmra.mrb[74].mxu1 %vm1573_vm2, %v13821_v53 }
 0x1b1   :  { %10490 = vmatprep.mubr.msk.f32.mxu1 %vm1573_vm2, %v13828_v54 }
 0x1b4   :  { %10491 = vmatmul.mubr.msk.f32.gmra.mrb[76].mxu1 %vm1573_vm2, %v13835_v55 }
 0x1b5   :  { %10493 = vmatprep.mubr.msk.f32.mxu1 %vm1573_vm2, %v13842_v56 }
 0x1b8   :  { %10494 = vmatmul.mubr.msk.f32.gmra.mrb[78].mxu1 %vm1573_vm2, %v13849_v48 }
 0x1b9   :  { %10536 = vmatprep.mubr.msk.f32.mxu1 %vm1573_vm2, %v13856_v33 }
 0x26f   :  { %v10474_v58 = vpop.f32.mrb[64].mxu1 }
 0x270   :  { %v2046_v31 = vadd.f32 %v10474_v58, %v1885_v57  ;;  %v1966_v60 = vpop.f32.mrb[65].mxu1 }
 0x271   :  { %v2045_v61 = vadd.f32 %v1966_v60, %v1884_v59 }
 0x272   :  { %v9001_v62 = vmul.f32 -1.442695, %v2046_v31  ;;  %v1895_v31 = vld [vmem:[#allocation2 + $0xd8] sm:$0xff] }
 0x273   :  { %v9000_v34 = vmul.f32 -1.442695, %v2045_v61  ;;  %v10477_v0 = vpop.f32.mrb[66].mxu1 }
 0x274   :  { %11643 = vpow2.f32 %v9001_v62  ;;  %v2048_v35 = vadd.f32 %v10477_v0, %v1887_v63  ;;  %v1976_v9 = vpop.f32.mrb[67].mxu1  ;;  %v1894_v63 = vld [vmem:[#allocation2 + $0xd0] sm:$0xff] }
 0x275   :  { %11645 = vpow2.f32 %v9000_v34  ;;  %v2047_v2 = vadd.f32 %v1976_v9, %v1886_v8  ;;  %v1897_v9 = vld [vmem:[#allocation2 + $0xe8] sm:$0xff] }
 0x276   :  { %v9003_v3 = vmul.f32 -1.442695, %v2048_v35 }
 0x277   :  { %v9002_v32 = vmul.f32 -1.442695, %v2047_v2  ;;  %v10480_v30 = vpop.f32.mrb[68].mxu1 }
 0x278   :  { %11647 = vpow2.f32 %v9003_v3  ;;  %v2050_v7 = vadd.f32 %v10480_v30, %v1889_v4  ;;  %v1986_v12 = vpop.f32.mrb[69].mxu1  ;;  %v1896_v4 = vld [vmem:[#allocation2 + $0xe0] sm:$0xff] }
 0x279   :  { %11649 = vpow2.f32 %v9002_v32  ;;  %v2049_v36 = vadd.f32 %v1986_v12, %v1888_v11 }
 0x27a   :  { %v9005_v13 = vmul.f32 -1.442695, %v2050_v7 }
 0x27b   :  { %v9004_v14 = vmul.f32 -1.442695, %v2049_v36  ;;  %v10483_v16 = vpop.f32.mrb[70].mxu1 }
 0x27c   :  { %11651 = vpow2.f32 %v9005_v13  ;;  %v2052_v17 = vadd.f32 %v10483_v16, %v1891_v15  ;;  %v1996_v21 = vpop.f32.mrb[71].mxu1  ;;  %v1899_v15 = vld [vmem:[#allocation2 + $0xf8] sm:$0xff] }
 0x27d   :  { %11653 = vpow2.f32 %v9004_v14  ;;  %v2051_v22 = vadd.f32 %v1996_v21, %v1890_v19  ;;  %v1898_v21 = vld [vmem:[#allocation2 + $0xf0] sm:$0xff] }
 0x27e   :  { %v11644_v47 = vpop.eup %11643  ;;  %v9007_v23 = vmul.f32 -1.442695, %v2052_v17 }
 0x27f   :  { %v11646_v24 = vpop.eup %11645  ;;  %v2074_v25 = vadd.f32 1.0, %v11644_v47  ;;  %v9006_v26 = vmul.f32 -1.442695, %v2051_v22  ;;  %v10486_v27 = vpop.f32.mrb[72].mxu1 }
 0x280   :  { %v2073_v28 = vadd.f32 1.0, %v11646_v24  ;;  %11655 = vpow2.f32 %v9007_v23  ;;  %v2054_v20 = vadd.f32 %v10486_v27, %v1893_v18  ;;  %v2006_v29 = vpop.f32.mrb[73].mxu1 }
 0x281   :  { %11657 = vrcp.f32 %v2074_v25  ;;  %v2053_v58 = vadd.f32 %v2006_v29, %v1892_v39 }
 0x282   :  { %v11648_v38 = vpop.eup %11647  ;;  %11659 = vrcp.f32 %v2073_v28 }
 0x283   :  { %v11650_v1 = vpop.eup %11649  ;;  %v2076_v57 = vadd.f32 1.0, %v11648_v38  ;;  %11661 = vpow2.f32 %v9006_v26  ;;  %v10489_v59 = vpop.f32.mrb[74].mxu1 }
 0x284   :  { %v2075_v60 = vadd.f32 1.0, %v11650_v1  ;;  %11663 = vtanh.f32 %v2054_v20  ;;  %v2056_v61 = vadd.f32 %v10489_v59, %v1895_v31  ;;  %v2016_v62 = vpop.f32.mrb[75].mxu1 }
 0x285   :  { %11665 = vrcp.f32 %v2076_v57  ;;  %v2055_v8 = vadd.f32 %v2016_v62, %v1894_v63 }
 0x286   :  { %v11652_v34 = vpop.eup %11651  ;;  %11667 = vrcp.f32 %v2075_v60 }
 0x287   :  { %v11654_v0 = vpop.eup %11653  ;;  %v2098_v35 = vadd.f32 1.0, %v11652_v34  ;;  %11669 = vtanh.f32 %v2053_v58  ;;  %v10492_v2 = vpop.f32.mrb[76].mxu1 }
 0x288   :  { %v2097_v3 = vadd.f32 1.0, %v11654_v0  ;;  %11671 = vtanh.f32 %v2056_v61  ;;  %v2058_v32 = vadd.f32 %v10492_v2, %v1897_v9  ;;  %v2026_v30 = vpop.f32.mrb[77].mxu1 }
 0x289   :  { %11673 = vrcp.f32 %v2098_v35  ;;  %v2057_v7 = vadd.f32 %v2026_v30, %v1896_v4 }
 0x28a   :  { %v11656_v11 = vpop.eup %11655  ;;  %11675 = vrcp.f32 %v2097_v3  ;;  %v9009_v12 = vmul.f32 -1.442695, %v2058_v32 }
 0x28b   :  { %v11658_v36 = vpop.eup %11657  ;;  %v2100_v13 = vadd.f32 1.0, %v11656_v11  ;;  %11677 = vtanh.f32 %v2055_v8  ;;  %v9008_v14 = vmul.f32 -1.442695, %v2057_v7  ;;  %v10495_v16 = vpop.f32.mrb[78].mxu1 }
 0x28c   :  { %v11660_v17 = vpop.eup %11659  ;;  %11679 = vpow2.f32 %v9009_v12  ;;  %v2060_v19 = vadd.f32 %v10495_v16, %v1899_v15  ;;  %v2036_v22 = vpop.f32.mrb[79].mxu1 }
 0x28d   :  { %v11662_v47 = vpop.eup %11661  ;;  %11681 = vrcp.f32 %v2100_v13  ;;  %v2059_v23 = vadd.f32 %v2036_v22, %v1898_v21 }
 0x28e   :  { %v11664_v24 = vpop.eup %11663  ;;  %v2099_v25 = vadd.f32 1.0, %v11662_v47  ;;  %11683 = vpow2.f32 %v9008_v14  ;;  %v9011_v26 = vmul.f32 -1.442695, %v2060_v19 }
 0x28f   :  { %v11666_v18 = vpop.eup %11665  ;;  %v2142_v27 = vmul.f32 %v11664_v24, %v11658_v36  ;;  %v9010_v28 = vmul.f32 -1.442695, %v2059_v23  ;;  %v2163_v24 = vld [vmem:[#allocation2 + $0x108] sm:$0xff] }
 0x290   :  { %v11668_v20 = vpop.eup %11667  ;;  %11685 = vrcp.f32 %v2099_v25 }
 0x291   :  { %v11670_v29 = vpop.eup %11669  ;;  %11687 = vpow2.f32 %v9011_v26 }
 0x292   :  { %v11672_v38 = vpop.eup %11671  ;;  %v2141_v39 = vmul.f32 %v11670_v29, %v11660_v17  ;;  %11689 = vpow2.f32 %v9010_v28 }
 0x293   :  { %v11674_v1 = vpop.eup %11673  ;;  %v2144_v57 = vmul.f32 %v11672_v38, %v11666_v18  ;;  %v2162_v18 = vld [vmem:[#allocation2 + $0x100] sm:$0xff]  ;;  %v2165_v38 = vld [vmem:[#allocation2 + $0x118] sm:$0xff] }
 0x294   :  { %v11676_v58 = vpop.eup %11675  ;;  %v2138_v31 = vmul.f32 %v11674_v1, %v13732_v5 }
 0x295   :  { %v11678_v59 = vpop.eup %11677  ;;  %v2137_v60 = vmul.f32 %v11676_v58, %v13734_v10 }
 0x296   :  { %v11680_v61 = vpop.eup %11679  ;;  %v13862_v62 = vadd.f32 %v2142_v27, %v2138_v31  ;;  %v2143_v34 = vmul.f32 %v11678_v59, %v11668_v20 }
 0x297   :  { %v11682_v63 = vpop.eup %11681  ;;  %v13864_v0 = vadd.f32 %v2141_v39, %v2137_v60  ;;  %v2126_v35 = vadd.f32 1.0, %v11680_v61  ;;  %v2167_v61 = vld [vmem:[#allocation2 + $0x128] sm:$0xff] }
 0x298   :  { %v11684_v8 = vpop.eup %11683  ;;  %v2140_v9 = vmul.f32 %v11682_v63, %v13738_v37  ;;  %11691 = vtanh.f32 %v13862_v62 }
 0x299   :  { %11693 = vtanh.f32 %v13864_v0  ;;  %v2125_v2 = vadd.f32 1.0, %v11684_v8 }
 0x29a   :  { %v11686_v5 = vpop.eup %11685  ;;  %v13869_v3 = vadd.f32 %v2144_v57, %v2140_v9  ;;  %11695 = vrcp.f32 %v2126_v35  ;;  %v2164_v57 = vld [vmem:[#allocation2 + $0x110] sm:$0xff]  ;;  %v2166_v35 = vld [vmem:[#allocation2 + $0x120] sm:$0xff] }
 0x29b   :  { %v11688_v10 = vpop.eup %11687  ;;  %v2139_v32 = vmul.f32 %v11686_v5, %v13741_v46  ;;  %11697 = vrcp.f32 %v2125_v2 }
 0x29c   :  { %v11690_v4 = vpop.eup %11689  ;;  %11699 = vtanh.f32 %v13869_v3  ;;  %v2128_v30 = vadd.f32 1.0, %v11688_v10  ;;  %v2169_v10 = vld [vmem:[#allocation2 + $0x138] sm:$0xff] }
 0x29d   :  { %v13873_v7 = vadd.f32 %v2143_v34, %v2139_v32  ;;  %v2127_v37 = vadd.f32 1.0, %v11690_v4 }
 0x29e   :  { %11701 = vrcp.f32 %v2128_v30  ;;  %v2168_v30 = vld [vmem:[#allocation2 + $0x130] sm:$0xff] }
 0x29f   :  { %11703 = vtanh.f32 %v13873_v7 }
 0x2a0   :  { %11705 = vrcp.f32 %v2127_v37 }
 0x2a2   :  { %v11692_v11 = vpop.eup %11691 }
 0x2a3   :  { %v11694_v12 = vpop.eup %11693 }
 0x2a4   :  { %v11696_v36 = vpop.eup %11695 }
 0x2a5   :  { %v11698_v13 = vpop.eup %11697  ;;  %v2154_v14 = vmul.f32 %v11696_v36, %v11692_v11 }
 0x2a6   :  { %v11700_v15 = vpop.eup %11699  ;;  %v2153_v16 = vmul.f32 %v11698_v13, %v11694_v12 }
 0x2a7   :  { %2158 = vst.msk [vmem:[#allocation4 + $0x8] sm:$0xff] %vm1396_vm3, %v2154_v14 }
 0x2a8   :  { %v11702_v46 = vpop.eup %11701  ;;  %2157 = vst.msk [vmem:[#allocation4] sm:$0xff] %vm1396_vm3, %v2153_v16  ;;  %v11330_v17 = vpack.c.bf16 %v2154_v14, %v2153_v16  ;;  %v2171_v16 = vld [vmem:[#allocation2 + $0x148] sm:$0xff] }
 0x2a9   :  { %v11704_v19 = vpop.eup %11703  ;;  %v2156_v21 = vmul.f32 %v11702_v46, %v11700_v15 }
 0x2aa   :  { %v11706_v22 = vpop.eup %11705  ;;  %11331 = vmatprep.subr.bf16.mxu0 %v11330_v17 }
 0x2ab   :  { %11333 = vmatpush3.bf16.msra.mxu0 %v11330_v17  ;;  %v2155_v47 = vmul.f32 %v11706_v22, %v11704_v19  ;;  %2160 = vst.msk [vmem:[#allocation4 + $0x18] sm:$0xff] %vm1396_vm3, %v2156_v21 }
 0x2ad   :  { %2159 = vst.msk [vmem:[#allocation4 + $0x10] sm:$0xff] %vm1396_vm3, %v2155_v47  ;;  %v11334_v23 = vpack.c.bf16 %v2156_v21, %v2155_v47  ;;  %v2170_v47 = vld [vmem:[#allocation2 + $0x140] sm:$0xff] }
 0x2af   :  { %11335 = vmatprep.subr.bf16.mxu0 %v11334_v23 }
 0x2b0   :  { %11337 = vmatpush3.bf16.msra.mxu0 %v11334_v23 }
 0x2b3   :  { %10505 = vmatmul.mubr.msk.f32.vlgmr.msra.gmra.mrb[80].mxu0 %vm1573_vm2, %v13751_v40 }
 0x2b4   :  { %10507 = vmatprep.mubr.msk.f32.mxu0 %vm1573_vm2, %v13758_v41 }
 0x2b7   :  { %10508 = vmatmul.mubr.msk.f32.gmra.mrb[82].mxu0 %vm1573_vm2, %v13765_v42 }
 0x2b8   :  { %10510 = vmatprep.mubr.msk.f32.mxu0 %vm1573_vm2, %v13772_v6 }
 0x2bb   :  { %10511 = vmatmul.mubr.msk.f32.gmra.mrb[84].mxu0 %vm1573_vm2, %v13779_v43 }
 0x2bc   :  { %10513 = vmatprep.mubr.msk.f32.mxu0 %vm1573_vm2, %v13786_v45 }
 0x2bf   :  { %10514 = vmatmul.mubr.msk.f32.gmra.mrb[86].mxu0 %vm1573_vm2, %v13793_v49 }
 0x2c0   :  { %10516 = vmatprep.mubr.msk.f32.mxu0 %vm1573_vm2, %v13800_v50 }
 0x2c3   :  { %10517 = vmatmul.mubr.msk.f32.gmra.mrb[88].mxu0 %vm1573_vm2, %v13807_v51 }
 0x2c4   :  { %10519 = vmatprep.mubr.msk.f32.mxu0 %vm1573_vm2, %v13814_v44 }
 0x2c7   :  { %10520 = vmatmul.mubr.msk.f32.gmra.mrb[90].mxu0 %vm1573_vm2, %v13821_v53 }
 0x2c8   :  { %10522 = vmatprep.mubr.msk.f32.mxu0 %vm1573_vm2, %v13828_v54 }
 0x2cb   :  { %10523 = vmatmul.mubr.msk.f32.gmra.mrb[92].mxu0 %vm1573_vm2, %v13835_v55 }
 0x2cc   :  { %10525 = vmatprep.mubr.msk.f32.mxu0 %vm1573_vm2, %v13842_v56 }
 0x2cf   :  { %10526 = vmatmul.mubr.msk.f32.gmra.mrb[94].mxu0 %vm1573_vm2, %v13849_v48 }
 0x2d0   :  { %10568 = vmatprep.mubr.msk.f32.mxu0 %vm1573_vm2, %v13856_v33 }
 0x386   :  { %v10506_v25 = vpop.f32.mrb[80].mxu0 }
 0x387   :  { %v2324_v26 = vadd.f32 %v10506_v25, %v2163_v24  ;;  %v2244_v27 = vpop.f32.mrb[81].mxu0 }
 0x388   :  { %v2323_v28 = vadd.f32 %v2244_v27, %v2162_v18 }
 0x389   :  { %v9029_v20 = vmul.f32 -1.442695, %v2324_v26  ;;  %v2173_v26 = vld [vmem:[#allocation2 + $0x158] sm:$0xff] }
 0x38a   :  { %v9028_v29 = vmul.f32 -1.442695, %v2323_v28  ;;  %v10509_v39 = vpop.f32.mrb[82].mxu0 }
 0x38b   :  { %11707 = vpow2.f32 %v9029_v20  ;;  %v2326_v1 = vadd.f32 %v10509_v39, %v2165_v38  ;;  %v2254_v58 = vpop.f32.mrb[83].mxu0  ;;  %v2172_v38 = vld [vmem:[#allocation2 + $0x150] sm:$0xff] }
 0x38c   :  { %11709 = vpow2.f32 %v9028_v29  ;;  %v2325_v31 = vadd.f32 %v2254_v58, %v2164_v57  ;;  %v2175_v58 = vld [vmem:[#allocation2 + $0x168] sm:$0xff] }
 0x38d   :  { %v9031_v59 = vmul.f32 -1.442695, %v2326_v1 }
 0x38e   :  { %v9030_v60 = vmul.f32 -1.442695, %v2325_v31  ;;  %v10512_v34 = vpop.f32.mrb[84].mxu0 }
 0x38f   :  { %11711 = vpow2.f32 %v9031_v59  ;;  %v2328_v63 = vadd.f32 %v10512_v34, %v2167_v61  ;;  %v2264_v8 = vpop.f32.mrb[85].mxu0  ;;  %v2174_v61 = vld [vmem:[#allocation2 + $0x160] sm:$0xff] }
 0x390   :  { %11713 = vpow2.f32 %v9030_v60  ;;  %v2327_v9 = vadd.f32 %v2264_v8, %v2166_v35 }
 0x391   :  { %v9033_v2 = vmul.f32 -1.442695, %v2328_v63 }
 0x392   :  { %v9032_v5 = vmul.f32 -1.442695, %v2327_v9  ;;  %v10515_v32 = vpop.f32.mrb[86].mxu0 }
 0x393   :  { %11715 = vpow2.f32 %v9033_v2  ;;  %v2330_v4 = vadd.f32 %v10515_v32, %v2169_v10  ;;  %v2274_v37 = vpop.f32.mrb[87].mxu0  ;;  %v2177_v10 = vld [vmem:[#allocation2 + $0x178] sm:$0xff] }
 0x394   :  { %11717 = vpow2.f32 %v9032_v5  ;;  %v2329_v11 = vadd.f32 %v2274_v37, %v2168_v30  ;;  %v2176_v37 = vld [vmem:[#allocation2 + $0x170] sm:$0xff] }
 0x395   :  { %v11708_v12 = vpop.eup %11707  ;;  %v9035_v36 = vmul.f32 -1.442695, %v2330_v4 }
 0x396   :  { %v11710_v13 = vpop.eup %11709  ;;  %v2352_v14 = vadd.f32 1.0, %v11708_v12  ;;  %v9034_v15 = vmul.f32 -1.442695, %v2329_v11  ;;  %v10518_v46 = vpop.f32.mrb[88].mxu0 }
 0x397   :  { %v2351_v17 = vadd.f32 1.0, %v11710_v13  ;;  %11719 = vpow2.f32 %v9035_v36  ;;  %v2332_v19 = vadd.f32 %v10518_v46, %v2171_v16  ;;  %v2284_v21 = vpop.f32.mrb[89].mxu0 }
 0x398   :  { %11721 = vrcp.f32 %v2352_v14  ;;  %v2331_v25 = vadd.f32 %v2284_v21, %v2170_v47 }
 0x399   :  { %v11712_v22 = vpop.eup %11711  ;;  %11723 = vrcp.f32 %v2351_v17 }
 0x39a   :  { %v11714_v23 = vpop.eup %11713  ;;  %v2354_v24 = vadd.f32 1.0, %v11712_v22  ;;  %11725 = vpow2.f32 %v9034_v15  ;;  %v10521_v18 = vpop.f32.mrb[90].mxu0 }
 0x39b   :  { %v2353_v27 = vadd.f32 1.0, %v11714_v23  ;;  %11727 = vtanh.f32 %v2332_v19  ;;  %v2334_v28 = vadd.f32 %v10521_v18, %v2173_v26  ;;  %v2294_v20 = vpop.f32.mrb[91].mxu0 }
 0x39c   :  { %11729 = vrcp.f32 %v2354_v24  ;;  %v2333_v57 = vadd.f32 %v2294_v20, %v2172_v38 }
 0x39d   :  { %v11716_v29 = vpop.eup %11715  ;;  %11731 = vrcp.f32 %v2353_v27 }
 0x39e   :  { %v11718_v39 = vpop.eup %11717  ;;  %v2376_v1 = vadd.f32 1.0, %v11716_v29  ;;  %11733 = vtanh.f32 %v2331_v25  ;;  %v10524_v31 = vpop.f32.mrb[92].mxu0 }
 0x39f   :  { %v2375_v59 = vadd.f32 1.0, %v11718_v39  ;;  %11735 = vtanh.f32 %v2334_v28  ;;  %v2336_v60 = vadd.f32 %v10524_v31, %v2175_v58  ;;  %v2304_v34 = vpop.f32.mrb[93].mxu0 }
 0x3a0   :  { %11737 = vrcp.f32 %v2376_v1  ;;  %v2335_v63 = vadd.f32 %v2304_v34, %v2174_v61 }
 0x3a1   :  { %v11720_v35 = vpop.eup %11719  ;;  %11739 = vrcp.f32 %v2375_v59  ;;  %v9037_v8 = vmul.f32 -1.442695, %v2336_v60 }
 0x3a2   :  { %v11722_v9 = vpop.eup %11721  ;;  %v2378_v2 = vadd.f32 1.0, %v11720_v35  ;;  %11741 = vtanh.f32 %v2333_v57  ;;  %v9036_v5 = vmul.f32 -1.442695, %v2335_v63  ;;  %v10527_v32 = vpop.f32.mrb[94].mxu0 }
 0x3a3   :  { %v11724_v4 = vpop.eup %11723  ;;  %11743 = vpow2.f32 %v9037_v8  ;;  %v2338_v30 = vadd.f32 %v10527_v32, %v2177_v10  ;;  %v2314_v11 = vpop.f32.mrb[95].mxu0 }
 0x3a4   :  { %v11726_v12 = vpop.eup %11725  ;;  %11745 = vrcp.f32 %v2378_v2  ;;  %v2337_v36 = vadd.f32 %v2314_v11, %v2176_v37 }
 0x3a5   :  { %v11728_v13 = vpop.eup %11727  ;;  %v2377_v14 = vadd.f32 1.0, %v11726_v12  ;;  %11747 = vpow2.f32 %v9036_v5  ;;  %v9039_v15 = vmul.f32 -1.442695, %v2338_v30 }
 0x3a6   :  { %v11730_v16 = vpop.eup %11729  ;;  %v2420_v46 = vmul.f32 %v11728_v13, %v11722_v9  ;;  %v9038_v17 = vmul.f32 -1.442695, %v2337_v36 }
 0x3a7   :  { %v11732_v19 = vpop.eup %11731  ;;  %11749 = vrcp.f32 %v2377_v14  ;;  %v2446_v14 = vld [vmem:[#allocation2 + $0x1a8] sm:$0xff] }
 0x3a8   :  { %v11734_v21 = vpop.eup %11733  ;;  %11751 = vpow2.f32 %v9039_v15 }
 0x3a9   :  { %v11736_v22 = vpop.eup %11735  ;;  %v2419_v47 = vmul.f32 %v11734_v21, %v11724_v4  ;;  %11753 = vpow2.f32 %v9038_v17 }
 0x3aa   :  { %v11738_v23 = vpop.eup %11737  ;;  %v2422_v24 = vmul.f32 %v11736_v22, %v11730_v16  ;;  %v2445_v16 = vld [vmem:[#allocation2 + $0x1a0] sm:$0xff]  ;;  %v2448_v22 = vld [vmem:[#allocation2 + $0x1b8] sm:$0xff] }
 0x3ab   :  { %v11740_v25 = vpop.eup %11739  ;;  %v2416_v26 = vmul.f32 %v11738_v23, %v13862_v62 }
 0x3ac   :  { %v11742_v18 = vpop.eup %11741  ;;  %v2415_v27 = vmul.f32 %v11740_v25, %v13864_v0 }
 0x3ad   :  { %v11744_v28 = vpop.eup %11743  ;;  %v13914_v20 = vadd.f32 %v2420_v46, %v2416_v26  ;;  %v2421_v29 = vmul.f32 %v11742_v18, %v11732_v19 }
 0x3ae   :  { %v11746_v38 = vpop.eup %11745  ;;  %v13916_v39 = vadd.f32 %v2419_v47, %v2415_v27  ;;  %v2404_v1 = vadd.f32 1.0, %v11744_v28 }
 0x3af   :  { %v11748_v57 = vpop.eup %11747  ;;  %v2418_v58 = vmul.f32 %v11746_v38, %v13869_v3  ;;  %11755 = vtanh.f32 %v13914_v20 }
 0x3b0   :  { %11757 = vtanh.f32 %v13916_v39  ;;  %v2403_v31 = vadd.f32 1.0, %v11748_v57 }
 0x3b1   :  { %v11750_v62 = vpop.eup %11749  ;;  %v13921_v59 = vadd.f32 %v2422_v24, %v2418_v58  ;;  %11759 = vrcp.f32 %v2404_v1  ;;  %v2447_v24 = vld [vmem:[#allocation2 + $0x1b0] sm:$0xff]  ;;  %v2450_v1 = vld [vmem:[#allocation2 + $0x1c8] sm:$0xff] }
 0x3b2   :  { %v11752_v0 = vpop.eup %11751  ;;  %v2417_v60 = vmul.f32 %v11750_v62, %v13873_v7  ;;  %11761 = vrcp.f32 %v2403_v31 }
 0x3b3   :  { %v11754_v61 = vpop.eup %11753  ;;  %11763 = vtanh.f32 %v13921_v59  ;;  %v2406_v34 = vadd.f32 1.0, %v11752_v0 }
 0x3b4   :  { %v13925_v63 = vadd.f32 %v2421_v29, %v2417_v60  ;;  %v2405_v3 = vadd.f32 1.0, %v11754_v61  ;;  %v2449_v60 = vld [vmem:[#allocation2 + $0x1c0] sm:$0xff] }
 0x3b5   :  { %11765 = vrcp.f32 %v2406_v34 }
 0x3b6   :  { %11767 = vtanh.f32 %v13925_v63 }
 0x3b7   :  { %11769 = vrcp.f32 %v2405_v3 }
 0x3b9   :  { %v11756_v35 = vpop.eup %11755 }
 0x3ba   :  { %v11758_v8 = vpop.eup %11757 }
 0x3bb   :  { %v11760_v9 = vpop.eup %11759 }
 0x3bc   :  { %v11762_v2 = vpop.eup %11761  ;;  %v2432_v5 = vmul.f32 %v11760_v9, %v11756_v35  ;;  %v2452_v35 = vld [vmem:[#allocation2 + $0x1d8] sm:$0xff] }
 0x3bd   :  { %v11764_v10 = vpop.eup %11763  ;;  %v2431_v32 = vmul.f32 %v11762_v2, %v11758_v8 }
 0x3be   :  { %2437 = vst.msk [vmem:[#allocation3 + $0x28] sm:$0xff] %vm1396_vm3, %v2432_v5 }
 0x3bf   :  { %v11766_v7 = vpop.eup %11765  ;;  %2436 = vst.msk [vmem:[#allocation3 + $0x20] sm:$0xff] %vm1396_vm3, %v2431_v32  ;;  %v11338_v4 = vpack.c.bf16 %v2432_v5, %v2431_v32  ;;  %v2451_v32 = vld [vmem:[#allocation2 + $0x1d0] sm:$0xff] }
 0x3c0   :  { %v11768_v30 = vpop.eup %11767  ;;  %v2434_v37 = vmul.f32 %v11766_v7, %v11764_v10 }
 0x3c1   :  { %v11770_v11 = vpop.eup %11769  ;;  %11339 = vmatprep.subr.bf16.mxu1 %v11338_v4 }
 0x3c2   :  { %11341 = vmatpush3.bf16.msra.mxu1 %v11338_v4  ;;  %v2433_v12 = vmul.f32 %v11770_v11, %v11768_v30  ;;  %2439 = vst.msk [vmem:[#allocation3 + $0x38] sm:$0xff] %vm1396_vm3, %v2434_v37 }
 0x3c4   :  { %2438 = vst.msk [vmem:[#allocation3 + $0x30] sm:$0xff] %vm1396_vm3, %v2433_v12  ;;  %v11342_v36 = vpack.c.bf16 %v2434_v37, %v2433_v12  ;;  %v2454_v37 = vld [vmem:[#allocation2 + $0x1e8] sm:$0xff] }
 0x3c6   :  { %11343 = vmatprep.subr.bf16.mxu1 %v11342_v36 }
 0x3c7   :  { %11345 = vmatpush3.bf16.msra.mxu1 %v11342_v36 }
 0x3ca   :  { %10537 = vmatmul.mubr.msk.f32.vlgmr.msra.gmra.mrb[80].mxu1 %vm1573_vm2, %v13751_v40  ;;  %v2442_v40 = vld [vmem:[#allocation2 + $0x188] sm:$0xff] }
 0x3cb   :  { %10539 = vmatprep.mubr.msk.f32.mxu1 %vm1573_vm2, %v13758_v41 }
 0x3ce   :  { %10540 = vmatmul.mubr.msk.f32.gmra.mrb[82].mxu1 %vm1573_vm2, %v13765_v42 }
 0x3cf   :  { %10542 = vmatprep.mubr.msk.f32.mxu1 %vm1573_vm2, %v13772_v6  ;;  %v2441_v6 = vld [vmem:[#allocation2 + $0x180] sm:$0xff] }
 0x3d2   :  { %10543 = vmatmul.mubr.msk.f32.gmra.mrb[84].mxu1 %vm1573_vm2, %v13779_v43 }
 0x3d3   :  { %10545 = vmatprep.mubr.msk.f32.mxu1 %vm1573_vm2, %v13786_v45 }
 0x3d6   :  { %10546 = vmatmul.mubr.msk.f32.gmra.mrb[86].mxu1 %vm1573_vm2, %v13793_v49 }
 0x3d7   :  { %10548 = vmatprep.mubr.msk.f32.mxu1 %vm1573_vm2, %v13800_v50 }
 0x3da   :  { %10549 = vmatmul.mubr.msk.f32.gmra.mrb[88].mxu1 %vm1573_vm2, %v13807_v51  ;;  %v2444_v51 = vld [vmem:[#allocation2 + $0x198] sm:$0xff] }
 0x3db   :  { %10551 = vmatprep.mubr.msk.f32.mxu1 %vm1573_vm2, %v13814_v44 }
 0x3de   :  { %10552 = vmatmul.mubr.msk.f32.gmra.mrb[90].mxu1 %vm1573_vm2, %v13821_v53 }
 0x3df   :  { %10554 = vmatprep.mubr.msk.f32.mxu1 %vm1573_vm2, %v13828_v54  ;;  %v2443_v54 = vld [vmem:[#allocation2 + $0x190] sm:$0xff] }
 0x3e2   :  { %10555 = vmatmul.mubr.msk.f32.gmra.mrb[92].mxu1 %vm1573_vm2, %v13835_v55 }
 0x3e3   :  { %10557 = vmatprep.mubr.msk.f32.mxu1 %vm1573_vm2, %v13842_v56 }
 0x3e6   :  { %10558 = vmatmul.mubr.msk.f32.gmra.mrb[94].mxu1 %vm1573_vm2, %v13849_v48 }
 0x3e7   :  { %10600 = vmatprep.mubr.msk.f32.mxu1 %vm1573_vm2, %v13856_v33 }
 0x49d   :  { %v10538_v41 = vpop.f32.mrb[80].mxu1 }
 0x49e   :  { %v2603_v42 = vadd.f32 %v10538_v41, %v2442_v40  ;;  %v2523_v43 = vpop.f32.mrb[81].mxu1  ;;  %v2453_v40 = vld [vmem:[#allocation2 + $0x1e0] sm:$0xff] }
 0x49f   :  { %v2602_v45 = vadd.f32 %v2523_v43, %v2441_v6 }
 0x4a0   :  { %v9057_v49 = vmul.f32 -1.442695, %v2603_v42 }
 0x4a1   :  { %v9056_v50 = vmul.f32 -1.442695, %v2602_v45  ;;  %v10541_v44 = vpop.f32.mrb[82].mxu1 }
 0x4a2   :  { %11771 = vpow2.f32 %v9057_v49  ;;  %v2605_v53 = vadd.f32 %v10541_v44, %v2444_v51  ;;  %v2533_v55 = vpop.f32.mrb[83].mxu1  ;;  %v2456_v51 = vld [vmem:[#allocation2 + $0x1f8] sm:$0xff] }
 0x4a3   :  { %11773 = vpow2.f32 %v9056_v50  ;;  %v2604_v56 = vadd.f32 %v2533_v55, %v2443_v54  ;;  %v2455_v55 = vld [vmem:[#allocation2 + $0x1f0] sm:$0xff] }
 0x4a4   :  { %v9059_v48 = vmul.f32 -1.442695, %v2605_v53 }
 0x4a5   :  { %v9058_v13 = vmul.f32 -1.442695, %v2604_v56  ;;  %v10544_v33 = vpop.f32.mrb[84].mxu1 }
 0x4a6   :  { %11775 = vpow2.f32 %v9059_v48  ;;  %v2607_v15 = vadd.f32 %v10544_v33, %v2446_v14  ;;  %v2543_v46 = vpop.f32.mrb[85].mxu1 }
 0x4a7   :  { %11777 = vpow2.f32 %v9058_v13  ;;  %v2606_v17 = vadd.f32 %v2543_v46, %v2445_v16 }
 0x4a8   :  { %v9061_v19 = vmul.f32 -1.442695, %v2607_v15 }
 0x4a9   :  { %v9060_v21 = vmul.f32 -1.442695, %v2606_v17  ;;  %v10547_v47 = vpop.f32.mrb[86].mxu1 }
 0x4aa   :  { %11779 = vpow2.f32 %v9061_v19  ;;  %v2609_v23 = vadd.f32 %v10547_v47, %v2448_v22  ;;  %v2553_v25 = vpop.f32.mrb[87].mxu1 }
 0x4ab   :  { %11781 = vpow2.f32 %v9060_v21  ;;  %v2608_v26 = vadd.f32 %v2553_v25, %v2447_v24 }
 0x4ac   :  { %v11772_v18 = vpop.eup %11771  ;;  %v9063_v27 = vmul.f32 -1.442695, %v2609_v23 }
 0x4ad   :  { %v11774_v28 = vpop.eup %11773  ;;  %v2631_v29 = vadd.f32 1.0, %v11772_v18  ;;  %v9062_v38 = vmul.f32 -1.442695, %v2608_v26  ;;  %v10550_v57 = vpop.f32.mrb[88].mxu1 }
 0x4ae   :  { %v2630_v58 = vadd.f32 1.0, %v11774_v28  ;;  %11783 = vpow2.f32 %v9063_v27  ;;  %v2611_v31 = vadd.f32 %v10550_v57, %v2450_v1  ;;  %v2563_v62 = vpop.f32.mrb[89].mxu1 }
 0x4af   :  { %11785 = vrcp.f32 %v2631_v29  ;;  %v2610_v3 = vadd.f32 %v2563_v62, %v2449_v60 }
 0x4b0   :  { %v11776_v0 = vpop.eup %11775  ;;  %11787 = vrcp.f32 %v2630_v58 }
 0x4b1   :  { %v11778_v61 = vpop.eup %11777  ;;  %v2633_v34 = vadd.f32 1.0, %v11776_v0  ;;  %11789 = vpow2.f32 %v9062_v38  ;;  %v10553_v8 = vpop.f32.mrb[90].mxu1 }
 0x4b2   :  { %v2632_v9 = vadd.f32 1.0, %v11778_v61  ;;  %11791 = vtanh.f32 %v2611_v31  ;;  %v2613_v2 = vadd.f32 %v10553_v8, %v2452_v35  ;;  %v2573_v5 = vpop.f32.mrb[91].mxu1 }
 0x4b3   :  { %11793 = vrcp.f32 %v2633_v34  ;;  %v2612_v30 = vadd.f32 %v2573_v5, %v2451_v32 }
 0x4b4   :  { %v11780_v10 = vpop.eup %11779  ;;  %11795 = vrcp.f32 %v2632_v9 }
 0x4b5   :  { %v11782_v7 = vpop.eup %11781  ;;  %v2655_v4 = vadd.f32 1.0, %v11780_v10  ;;  %11797 = vtanh.f32 %v2610_v3  ;;  %v10556_v11 = vpop.f32.mrb[92].mxu1 }
 0x4b6   :  { %v2654_v12 = vadd.f32 1.0, %v11782_v7  ;;  %11799 = vtanh.f32 %v2613_v2  ;;  %v2615_v36 = vadd.f32 %v10556_v11, %v2454_v37  ;;  %v2583_v41 = vpop.f32.mrb[93].mxu1 }
 0x4b7   :  { %11801 = vrcp.f32 %v2655_v4  ;;  %v2614_v42 = vadd.f32 %v2583_v41, %v2453_v40  ;;  %v13987_v40 = vld [vmem:[%s15837_s2 + $0x8] sm:$0xff]  ;;  %v13994_v41 = vld [vmem:[%s15837_s2 + $0x10] sm:$0xff] }
 0x4b8   :  { %v11784_v6 = vpop.eup %11783  ;;  %11803 = vrcp.f32 %v2654_v12  ;;  %v9065_v43 = vmul.f32 -1.442695, %v2615_v36 }
 0x4b9   :  { %v11786_v45 = vpop.eup %11785  ;;  %v2657_v49 = vadd.f32 1.0, %v11784_v6  ;;  %11805 = vtanh.f32 %v2612_v30  ;;  %v9064_v50 = vmul.f32 -1.442695, %v2614_v42  ;;  %v10559_v44 = vpop.f32.mrb[94].mxu1  ;;  %v14001_v42 = vld [vmem:[%s15837_s2 + $0x18] sm:$0xff]  ;;  %v14008_v6 = vld [vmem:[%s15837_s2 + $0x20] sm:$0xff] }
 0x4ba   :  { %v11788_v53 = vpop.eup %11787  ;;  %11807 = vpow2.f32 %v9065_v43  ;;  %v2617_v54 = vadd.f32 %v10559_v44, %v2456_v51  ;;  %v2593_v56 = vpop.f32.mrb[95].mxu1  ;;  %v14015_v43 = vld [vmem:[%s15837_s2 + $0x28] sm:$0xff]  ;;  %v14050_v44 = vld [vmem:[%s15837_s2 + $0x50] sm:$0xff] }
 0x4bb   :  { %v11790_v48 = vpop.eup %11789  ;;  %11809 = vrcp.f32 %v2657_v49  ;;  %v2616_v13 = vadd.f32 %v2593_v56, %v2455_v55  ;;  %v14029_v49 = vld [vmem:[%s15837_s2 + $0x38] sm:$0xff]  ;;  %v14043_v51 = vld [vmem:[%s15837_s2 + $0x48] sm:$0xff]  ;;  %v14078_v56 = vld [vmem:[%s15837_s2 + $0x70] sm:$0xff] }
 0x4bc   :  { %v11792_v14 = vpop.eup %11791  ;;  %v2656_v33 = vadd.f32 1.0, %v11790_v48  ;;  %11811 = vpow2.f32 %v9064_v50  ;;  %v9067_v15 = vmul.f32 -1.442695, %v2617_v54  ;;  %v14036_v50 = vld [vmem:[%s15837_s2 + $0x40] sm:$0xff]  ;;  %v14071_v55 = vld [vmem:[%s15837_s2 + $0x68] sm:$0xff]  ;;  %v14085_v48 = vld [vmem:[%s15837_s2 + $0x78] sm:$0xff] }
 0x4bd   :  { %v11794_v16 = vpop.eup %11793  ;;  %v2699_v46 = vmul.f32 %v11792_v14, %v11786_v45  ;;  %v9066_v17 = vmul.f32 -1.442695, %v2616_v13  ;;  %v14022_v45 = vld [vmem:[%s15837_s2 + $0x30] sm:$0xff]  ;;  %v14064_v54 = vld [vmem:[%s15837_s2 + $0x60] sm:$0xff]  ;;  %v2721_v14 = vld [vmem:[#allocation2 + $0x208] sm:$0xff] }
 0x4be   :  { %v11796_v19 = vpop.eup %11795  ;;  %11813 = vrcp.f32 %v2656_v33  ;;  %v14092_v13 = vld [vmem:[%s15837_s2] sm:$0xff] }
 0x4bf   :  { %v11798_v21 = vpop.eup %11797  ;;  %11815 = vpow2.f32 %v9067_v15 }
 0x4c0   :  { %v11800_v22 = vpop.eup %11799  ;;  %v2698_v47 = vmul.f32 %v11798_v21, %v11788_v53  ;;  %11817 = vpow2.f32 %v9066_v17  ;;  %v14057_v53 = vld [vmem:[%s15837_s2 + $0x58] sm:$0xff] }
 0x4c1   :  { %v11802_v23 = vpop.eup %11801  ;;  %v2701_v24 = vmul.f32 %v11800_v22, %v11794_v16  ;;  %v2720_v16 = vld [vmem:[#allocation2 + $0x200] sm:$0xff]  ;;  %v2723_v22 = vld [vmem:[#allocation2 + $0x218] sm:$0xff] }
 0x4c2   :  { %v11804_v25 = vpop.eup %11803  ;;  %v2695_v26 = vmul.f32 %v11802_v23, %v13914_v20 }
 0x4c3   :  { %v11806_v18 = vpop.eup %11805  ;;  %v2694_v27 = vmul.f32 %v11804_v25, %v13916_v39 }
 0x4c4   :  { %v11808_v28 = vpop.eup %11807  ;;  %v13966_v29 = vadd.f32 %v2699_v46, %v2695_v26  ;;  %v2700_v38 = vmul.f32 %v11806_v18, %v11796_v19 }
 0x4c5   :  { %v11810_v1 = vpop.eup %11809  ;;  %v13968_v57 = vadd.f32 %v2698_v47, %v2694_v27  ;;  %v2683_v58 = vadd.f32 1.0, %v11808_v28  ;;  %v2725_v28 = vld [vmem:[#allocation2 + $0x228] sm:$0xff] }
 0x4c6   :  { %v11812_v31 = vpop.eup %11811  ;;  %v2697_v62 = vmul.f32 %v11810_v1, %v13921_v59  ;;  %11819 = vtanh.f32 %v13966_v29 }
 0x4c7   :  { %11821 = vtanh.f32 %v13968_v57  ;;  %v2682_v0 = vadd.f32 1.0, %v11812_v31 }
 0x4c8   :  { %v11814_v20 = vpop.eup %11813  ;;  %v13973_v60 = vadd.f32 %v2701_v24, %v2697_v62  ;;  %11823 = vrcp.f32 %v2683_v58  ;;  %v2722_v24 = vld [vmem:[#allocation2 + $0x210] sm:$0xff]  ;;  %v2724_v58 = vld [vmem:[#allocation2 + $0x220] sm:$0xff] }
 0x4c9   :  { %v11816_v39 = vpop.eup %11815  ;;  %v2696_v61 = vmul.f32 %v11814_v20, %v13925_v63  ;;  %11825 = vrcp.f32 %v2682_v0 }
 0x4ca   :  { %v11818_v34 = vpop.eup %11817  ;;  %11827 = vtanh.f32 %v13973_v60  ;;  %v2685_v3 = vadd.f32 1.0, %v11816_v39  ;;  %v2727_v39 = vld [vmem:[#allocation2 + $0x238] sm:$0xff] }
 0x4cb   :  { %v13977_v35 = vadd.f32 %v2700_v38, %v2696_v61  ;;  %v2684_v59 = vadd.f32 1.0, %v11818_v34 }
 0x4cc   :  { %11829 = vrcp.f32 %v2685_v3  ;;  %v2726_v3 = vld [vmem:[#allocation2 + $0x230] sm:$0xff] }
 0x4cd   :  { %11831 = vtanh.f32 %v13977_v35 }
 0x4ce   :  { %11833 = vrcp.f32 %v2684_v59 }
 0x4d0   :  { %v11820_v8 = vpop.eup %11819 }
 0x4d1   :  { %v11822_v9 = vpop.eup %11821 }
 0x4d2   :  { %v11824_v2 = vpop.eup %11823 }
 0x4d3   :  { %v11826_v5 = vpop.eup %11825  ;;  %v2711_v10 = vmul.f32 %v11824_v2, %v11820_v8 }
 0x4d4   :  { %v11828_v32 = vpop.eup %11827  ;;  %v2710_v7 = vmul.f32 %v11826_v5, %v11822_v9 }
 0x4d5   :  { %2716 = vst.msk [vmem:[#allocation4 + $0x28] sm:$0xff] %vm1396_vm3, %v2711_v10 }
 0x4d6   :  { %v11830_v63 = vpop.eup %11829  ;;  %2715 = vst.msk [vmem:[#allocation4 + $0x20] sm:$0xff] %vm1396_vm3, %v2710_v7  ;;  %v11346_v4 = vpack.c.bf16 %v2711_v10, %v2710_v7  ;;  %v2729_v7 = vld [vmem:[#allocation2 + $0x248] sm:$0xff] }
 0x4d7   :  { %v11832_v30 = vpop.eup %11831  ;;  %v2713_v37 = vmul.f32 %v11830_v63, %v11828_v32 }
 0x4d8   :  { %v11834_v11 = vpop.eup %11833  ;;  %11347 = vmatprep.subr.bf16.mxu0 %v11346_v4 }
 0x4d9   :  { %11349 = vmatpush3.bf16.msra.mxu0 %v11346_v4  ;;  %v2712_v12 = vmul.f32 %v11834_v11, %v11832_v30  ;;  %2718 = vst.msk [vmem:[#allocation4 + $0x38] sm:$0xff] %vm1396_vm3, %v2713_v37 }
 0x4db   :  { %2717 = vst.msk [vmem:[#allocation4 + $0x30] sm:$0xff] %vm1396_vm3, %v2712_v12  ;;  %v11350_v36 = vpack.c.bf16 %v2713_v37, %v2712_v12  ;;  %v2728_v12 = vld [vmem:[#allocation2 + $0x240] sm:$0xff] }
 0x4dd   :  { %11351 = vmatprep.subr.bf16.mxu0 %v11350_v36 }
 0x4de   :  { %11353 = vmatpush3.bf16.msra.mxu0 %v11350_v36 }
 0x4e1   :  { %10569 = vmatmul.mubr.msk.f32.vlgmr.msra.gmra.mrb[96].mxu0 %vm1573_vm2, %v13987_v40 }
 0x4e2   :  { %10571 = vmatprep.mubr.msk.f32.mxu0 %vm1573_vm2, %v13994_v41 }
 0x4e5   :  { %10572 = vmatmul.mubr.msk.f32.gmra.mrb[98].mxu0 %vm1573_vm2, %v14001_v42 }
 0x4e6   :  { %10574 = vmatprep.mubr.msk.f32.mxu0 %vm1573_vm2, %v14008_v6 }
 0x4e9   :  { %10575 = vmatmul.mubr.msk.f32.gmra.mrb[100].mxu0 %vm1573_vm2, %v14015_v43 }
 0x4ea   :  { %10577 = vmatprep.mubr.msk.f32.mxu0 %vm1573_vm2, %v14022_v45 }
 0x4ed   :  { %10578 = vmatmul.mubr.msk.f32.gmra.mrb[102].mxu0 %vm1573_vm2, %v14029_v49 }
 0x4ee   :  { %10580 = vmatprep.mubr.msk.f32.mxu0 %vm1573_vm2, %v14036_v50 }
 0x4f1   :  { %10581 = vmatmul.mubr.msk.f32.gmra.mrb[104].mxu0 %vm1573_vm2, %v14043_v51 }
 0x4f2   :  { %10583 = vmatprep.mubr.msk.f32.mxu0 %vm1573_vm2, %v14050_v44 }
 0x4f5   :  { %10584 = vmatmul.mubr.msk.f32.gmra.mrb[106].mxu0 %vm1573_vm2, %v14057_v53 }
 0x4f6   :  { %10586 = vmatprep.mubr.msk.f32.mxu0 %vm1573_vm2, %v14064_v54 }
 0x4f9   :  { %10587 = vmatmul.mubr.msk.f32.gmra.mrb[108].mxu0 %vm1573_vm2, %v14071_v55 }
 0x4fa   :  { %10589 = vmatprep.mubr.msk.f32.mxu0 %vm1573_vm2, %v14078_v56 }
 0x4fd   :  { %10590 = vmatmul.mubr.msk.f32.gmra.mrb[110].mxu0 %vm1573_vm2, %v14085_v48 }
 0x4fe   :  { %10632 = vmatprep.mubr.msk.f32.mxu0 %vm1573_vm2, %v14092_v13 }
 0x5b4   :  { %v10570_v33 = vpop.f32.mrb[96].mxu0 }
 0x5b5   :  { %v2882_v15 = vadd.f32 %v10570_v33, %v2721_v14  ;;  %v2802_v46 = vpop.f32.mrb[97].mxu0 }
 0x5b6   :  { %v2881_v17 = vadd.f32 %v2802_v46, %v2720_v16 }
 0x5b7   :  { %v9085_v19 = vmul.f32 -1.442695, %v2882_v15  ;;  %v2731_v15 = vld [vmem:[#allocation2 + $0x258] sm:$0xff] }
 0x5b8   :  { %v9084_v21 = vmul.f32 -1.442695, %v2881_v17  ;;  %v10573_v47 = vpop.f32.mrb[98].mxu0 }
 0x5b9   :  { %11835 = vpow2.f32 %v9085_v19  ;;  %v2884_v23 = vadd.f32 %v10573_v47, %v2723_v22  ;;  %v2812_v25 = vpop.f32.mrb[99].mxu0  ;;  %v2730_v22 = vld [vmem:[#allocation2 + $0x250] sm:$0xff] }
 0x5ba   :  { %11837 = vpow2.f32 %v9084_v21  ;;  %v2883_v26 = vadd.f32 %v2812_v25, %v2722_v24  ;;  %v2733_v25 = vld [vmem:[#allocation2 + $0x268] sm:$0xff] }
 0x5bb   :  { %v9087_v18 = vmul.f32 -1.442695, %v2884_v23 }
 0x5bc   :  { %v9086_v27 = vmul.f32 -1.442695, %v2883_v26  ;;  %v10576_v38 = vpop.f32.mrb[100].mxu0 }
 0x5bd   :  { %11839 = vpow2.f32 %v9087_v18  ;;  %v2886_v1 = vadd.f32 %v10576_v38, %v2725_v28  ;;  %v2822_v31 = vpop.f32.mrb[101].mxu0  ;;  %v2732_v28 = vld [vmem:[#allocation2 + $0x260] sm:$0xff] }
 0x5be   :  { %11841 = vpow2.f32 %v9086_v27  ;;  %v2885_v62 = vadd.f32 %v2822_v31, %v2724_v58 }
 0x5bf   :  { %v9089_v0 = vmul.f32 -1.442695, %v2886_v1 }
 0x5c0   :  { %v9088_v20 = vmul.f32 -1.442695, %v2885_v62  ;;  %v10579_v61 = vpop.f32.mrb[102].mxu0 }
 0x5c1   :  { %11843 = vpow2.f32 %v9089_v0  ;;  %v2888_v34 = vadd.f32 %v10579_v61, %v2727_v39  ;;  %v2832_v59 = vpop.f32.mrb[103].mxu0  ;;  %v2735_v39 = vld [vmem:[#allocation2 + $0x278] sm:$0xff] }
 0x5c2   :  { %11845 = vpow2.f32 %v9088_v20  ;;  %v2887_v8 = vadd.f32 %v2832_v59, %v2726_v3  ;;  %v2734_v59 = vld [vmem:[#allocation2 + $0x270] sm:$0xff] }
 0x5c3   :  { %v11836_v9 = vpop.eup %11835  ;;  %v9091_v2 = vmul.f32 -1.442695, %v2888_v34 }
 0x5c4   :  { %v11838_v5 = vpop.eup %11837  ;;  %v2910_v10 = vadd.f32 1.0, %v11836_v9  ;;  %v9090_v32 = vmul.f32 -1.442695, %v2887_v8  ;;  %v10582_v63 = vpop.f32.mrb[104].mxu0 }
 0x5c5   :  { %v2909_v4 = vadd.f32 1.0, %v11838_v5  ;;  %11847 = vpow2.f32 %v9091_v2  ;;  %v2890_v30 = vadd.f32 %v10582_v63, %v2729_v7  ;;  %v2842_v37 = vpop.f32.mrb[105].mxu0 }
 0x5c6   :  { %11849 = vrcp.f32 %v2910_v10  ;;  %v2889_v33 = vadd.f32 %v2842_v37, %v2728_v12 }
 0x5c7   :  { %v11840_v11 = vpop.eup %11839  ;;  %11851 = vrcp.f32 %v2909_v4 }
 0x5c8   :  { %v11842_v36 = vpop.eup %11841  ;;  %v2912_v14 = vadd.f32 1.0, %v11840_v11  ;;  %11853 = vpow2.f32 %v9090_v32  ;;  %v10585_v16 = vpop.f32.mrb[106].mxu0 }
 0x5c9   :  { %v2911_v46 = vadd.f32 1.0, %v11842_v36  ;;  %11855 = vtanh.f32 %v2890_v30  ;;  %v2892_v17 = vadd.f32 %v10585_v16, %v2731_v15  ;;  %v2852_v19 = vpop.f32.mrb[107].mxu0 }
 0x5ca   :  { %11857 = vrcp.f32 %v2912_v14  ;;  %v2891_v24 = vadd.f32 %v2852_v19, %v2730_v22 }
 0x5cb   :  { %v11844_v21 = vpop.eup %11843  ;;  %11859 = vrcp.f32 %v2911_v46 }
 0x5cc   :  { %v11846_v47 = vpop.eup %11845  ;;  %v2934_v23 = vadd.f32 1.0, %v11844_v21  ;;  %11861 = vtanh.f32 %v2889_v33  ;;  %v10588_v26 = vpop.f32.mrb[108].mxu0 }
 0x5cd   :  { %v2933_v18 = vadd.f32 1.0, %v11846_v47  ;;  %11863 = vtanh.f32 %v2892_v17  ;;  %v2894_v27 = vadd.f32 %v10588_v26, %v2733_v25  ;;  %v2862_v38 = vpop.f32.mrb[109].mxu0 }
 0x5ce   :  { %11865 = vrcp.f32 %v2934_v23  ;;  %v2893_v1 = vadd.f32 %v2862_v38, %v2732_v28 }
 0x5cf   :  { %v11848_v58 = vpop.eup %11847  ;;  %11867 = vrcp.f32 %v2933_v18  ;;  %v9093_v31 = vmul.f32 -1.442695, %v2894_v27 }
 0x5d0   :  { %v11850_v62 = vpop.eup %11849  ;;  %v2936_v0 = vadd.f32 1.0, %v11848_v58  ;;  %11869 = vtanh.f32 %v2891_v24  ;;  %v9092_v20 = vmul.f32 -1.442695, %v2893_v1  ;;  %v10591_v61 = vpop.f32.mrb[110].mxu0 }
 0x5d1   :  { %v11852_v34 = vpop.eup %11851  ;;  %11871 = vpow2.f32 %v9093_v31  ;;  %v2896_v3 = vadd.f32 %v10591_v61, %v2735_v39  ;;  %v2872_v8 = vpop.f32.mrb[111].mxu0 }
 0x5d2   :  { %v11854_v9 = vpop.eup %11853  ;;  %11873 = vrcp.f32 %v2936_v0  ;;  %v2895_v2 = vadd.f32 %v2872_v8, %v2734_v59 }
 0x5d3   :  { %v11856_v5 = vpop.eup %11855  ;;  %v2935_v10 = vadd.f32 1.0, %v11854_v9  ;;  %11875 = vpow2.f32 %v9092_v20  ;;  %v9095_v32 = vmul.f32 -1.442695, %v2896_v3 }
 0x5d4   :  { %v11858_v7 = vpop.eup %11857  ;;  %v2978_v63 = vmul.f32 %v11856_v5, %v11850_v62  ;;  %v9094_v4 = vmul.f32 -1.442695, %v2895_v2  ;;  %v3000_v5 = vld [vmem:[#allocation2 + $0x288] sm:$0xff] }
 0x5d5   :  { %v11860_v30 = vpop.eup %11859  ;;  %11877 = vrcp.f32 %v2935_v10 }
 0x5d6   :  { %v11862_v37 = vpop.eup %11861  ;;  %11879 = vpow2.f32 %v9095_v32 }
 0x5d7   :  { %v11864_v11 = vpop.eup %11863  ;;  %v2977_v12 = vmul.f32 %v11862_v37, %v11852_v34  ;;  %11881 = vpow2.f32 %v9094_v4 }
 0x5d8   :  { %v11866_v36 = vpop.eup %11865  ;;  %v2980_v14 = vmul.f32 %v11864_v11, %v11858_v7  ;;  %v2999_v7 = vld [vmem:[#allocation2 + $0x280] sm:$0xff]  ;;  %v3002_v11 = vld [vmem:[#allocation2 + $0x298] sm:$0xff] }
 0x5d9   :  { %v11868_v33 = vpop.eup %11867  ;;  %v2974_v15 = vmul.f32 %v11866_v36, %v13966_v29 }
 0x5da   :  { %v11870_v16 = vpop.eup %11869  ;;  %v2973_v46 = vmul.f32 %v11868_v33, %v13968_v57 }
 0x5db   :  { %v11872_v17 = vpop.eup %11871  ;;  %v14098_v19 = vadd.f32 %v2978_v63, %v2974_v15  ;;  %v2979_v21 = vmul.f32 %v11870_v16, %v11860_v30 }
 0x5dc   :  { %v11874_v22 = vpop.eup %11873  ;;  %v14100_v47 = vadd.f32 %v2977_v12, %v2973_v46  ;;  %v2962_v23 = vadd.f32 1.0, %v11872_v17  ;;  %v3004_v17 = vld [vmem:[#allocation2 + $0x2a8] sm:$0xff] }
 0x5dd   :  { %v11876_v24 = vpop.eup %11875  ;;  %v2976_v25 = vmul.f32 %v11874_v22, %v13973_v60  ;;  %11883 = vtanh.f32 %v14098_v19  ;;  %v3003_v22 = vld [vmem:[#allocation2 + $0x2a0] sm:$0xff] }
 0x5de   :  { %11885 = vtanh.f32 %v14100_v47  ;;  %v2961_v26 = vadd.f32 1.0, %v11876_v24 }
 0x5df   :  { %v11878_v29 = vpop.eup %11877  ;;  %v14105_v18 = vadd.f32 %v2980_v14, %v2976_v25  ;;  %11887 = vrcp.f32 %v2962_v23  ;;  %v3001_v14 = vld [vmem:[#allocation2 + $0x290] sm:$0xff] }
 0x5e0   :  { %v11880_v57 = vpop.eup %11879  ;;  %v2975_v27 = vmul.f32 %v11878_v29, %v13977_v35  ;;  %11889 = vrcp.f32 %v2961_v26  ;;  %v3006_v29 = vld [vmem:[#allocation2 + $0x2b8] sm:$0xff] }
 0x5e1   :  { %v11882_v28 = vpop.eup %11881  ;;  %11891 = vtanh.f32 %v14105_v18  ;;  %v2964_v38 = vadd.f32 1.0, %v11880_v57 }
 0x5e2   :  { %v14109_v1 = vadd.f32 %v2979_v21, %v2975_v27  ;;  %v2963_v60 = vadd.f32 1.0, %v11882_v28  ;;  %v3005_v28 = vld [vmem:[#allocation2 + $0x2b0] sm:$0xff] }
 0x5e3   :  { %11893 = vrcp.f32 %v2964_v38 }
 0x5e4   :  { %11895 = vtanh.f32 %v14109_v1 }
 0x5e5   :  { %11897 = vrcp.f32 %v2963_v60 }
 0x5e7   :  { %v11884_v58 = vpop.eup %11883 }
 0x5e8   :  { %v11886_v31 = vpop.eup %11885 }
 0x5e9   :  { %v11888_v62 = vpop.eup %11887 }
 0x5ea   :  { %v11890_v0 = vpop.eup %11889  ;;  %v2990_v20 = vmul.f32 %v11888_v62, %v11884_v58 }
 0x5eb   :  { %v11892_v39 = vpop.eup %11891  ;;  %v2989_v61 = vmul.f32 %v11890_v0, %v11886_v31 }
 0x5ec   :  { %2995 = vst.msk [vmem:[#allocation3 + $0x48] sm:$0xff] %vm1396_vm3, %v2990_v20 }
 0x5ed   :  { %v11894_v35 = vpop.eup %11893  ;;  %2994 = vst.msk [vmem:[#allocation3 + $0x40] sm:$0xff] %vm1396_vm3, %v2989_v61  ;;  %v11354_v34 = vpack.c.bf16 %v2990_v20, %v2989_v61 }
 0x5ee   :  { %v11896_v3 = vpop.eup %11895  ;;  %v2992_v59 = vmul.f32 %v11894_v35, %v11892_v39  ;;  %v3008_v39 = vld [vmem:[#allocation2 + $0x2c8] sm:$0xff] }
 0x5ef   :  { %v11898_v8 = vpop.eup %11897  ;;  %11355 = vmatprep.subr.bf16.mxu1 %v11354_v34 }
 0x5f0   :  { %11357 = vmatpush3.bf16.msra.mxu1 %v11354_v34  ;;  %v2991_v9 = vmul.f32 %v11898_v8, %v11896_v3  ;;  %2997 = vst.msk [vmem:[#allocation3 + $0x58] sm:$0xff] %vm1396_vm3, %v2992_v59  ;;  %v3007_v8 = vld [vmem:[#allocation2 + $0x2c0] sm:$0xff] }
 0x5f2   :  { %2996 = vst.msk [vmem:[#allocation3 + $0x50] sm:$0xff] %vm1396_vm3, %v2991_v9  ;;  %v11358_v2 = vpack.c.bf16 %v2992_v59, %v2991_v9 }
 0x5f4   :  { %11359 = vmatprep.subr.bf16.mxu1 %v11358_v2 }
 0x5f5   :  { %11361 = vmatpush3.bf16.msra.mxu1 %v11358_v2 }
 0x5f8   :  { %10601 = vmatmul.mubr.msk.f32.vlgmr.msra.gmra.mrb[96].mxu1 %vm1573_vm2, %v13987_v40 }
 0x5f9   :  { %10603 = vmatprep.mubr.msk.f32.mxu1 %vm1573_vm2, %v13994_v41 }
 0x5fc   :  { %10604 = vmatmul.mubr.msk.f32.gmra.mrb[98].mxu1 %vm1573_vm2, %v14001_v42 }
 0x5fd   :  { %10606 = vmatprep.mubr.msk.f32.mxu1 %vm1573_vm2, %v14008_v6 }
 0x600   :  { %10607 = vmatmul.mubr.msk.f32.gmra.mrb[100].mxu1 %vm1573_vm2, %v14015_v43 }
 0x601   :  { %10609 = vmatprep.mubr.msk.f32.mxu1 %vm1573_vm2, %v14022_v45 }
 0x604   :  { %10610 = vmatmul.mubr.msk.f32.gmra.mrb[102].mxu1 %vm1573_vm2, %v14029_v49 }
 0x605   :  { %10612 = vmatprep.mubr.msk.f32.mxu1 %vm1573_vm2, %v14036_v50 }
 0x608   :  { %10613 = vmatmul.mubr.msk.f32.gmra.mrb[104].mxu1 %vm1573_vm2, %v14043_v51 }
 0x609   :  { %10615 = vmatprep.mubr.msk.f32.mxu1 %vm1573_vm2, %v14050_v44 }
 0x60c   :  { %10616 = vmatmul.mubr.msk.f32.gmra.mrb[106].mxu1 %vm1573_vm2, %v14057_v53 }
 0x60d   :  { %10618 = vmatprep.mubr.msk.f32.mxu1 %vm1573_vm2, %v14064_v54 }
 0x610   :  { %10619 = vmatmul.mubr.msk.f32.gmra.mrb[108].mxu1 %vm1573_vm2, %v14071_v55 }
 0x611   :  { %10621 = vmatprep.mubr.msk.f32.mxu1 %vm1573_vm2, %v14078_v56 }
 0x614   :  { %10622 = vmatmul.mubr.msk.f32.gmra.mrb[110].mxu1 %vm1573_vm2, %v14085_v48 }
 0x615   :  { %10664 = vmatprep.mubr.msk.f32.mxu1 %vm1573_vm2, %v14092_v13 }
 0x6cb   :  { %v10602_v10 = vpop.f32.mrb[96].mxu1 }
 0x6cc   :  { %v3161_v32 = vadd.f32 %v10602_v10, %v3000_v5  ;;  %v3081_v63 = vpop.f32.mrb[97].mxu1  ;;  %v3010_v10 = vld [vmem:[#allocation2 + $0x2d8] sm:$0xff] }
 0x6cd   :  { %v3160_v4 = vadd.f32 %v3081_v63, %v2999_v7 }
 0x6ce   :  { %v9113_v30 = vmul.f32 -1.442695, %v3161_v32 }
 0x6cf   :  { %v9112_v37 = vmul.f32 -1.442695, %v3160_v4  ;;  %v10605_v12 = vpop.f32.mrb[98].mxu1 }
 0x6d0   :  { %11899 = vpow2.f32 %v9113_v30  ;;  %v3163_v36 = vadd.f32 %v10605_v12, %v3002_v11  ;;  %v3091_v33 = vpop.f32.mrb[99].mxu1 }
 0x6d1   :  { %11901 = vpow2.f32 %v9112_v37  ;;  %v3162_v15 = vadd.f32 %v3091_v33, %v3001_v14  ;;  %v3009_v37 = vld [vmem:[#allocation2 + $0x2d0] sm:$0xff]  ;;  %v3012_v14 = vld [vmem:[#allocation2 + $0x2e8] sm:$0xff] }
 0x6d2   :  { %v9115_v16 = vmul.f32 -1.442695, %v3163_v36 }
 0x6d3   :  { %v9114_v46 = vmul.f32 -1.442695, %v3162_v15  ;;  %v10608_v13 = vpop.f32.mrb[100].mxu1 }
 0x6d4   :  { %11903 = vpow2.f32 %v9115_v16  ;;  %v3165_v21 = vadd.f32 %v10608_v13, %v3004_v17  ;;  %v3101_v23 = vpop.f32.mrb[101].mxu1 }
 0x6d5   :  { %11905 = vpow2.f32 %v9114_v46  ;;  %v3164_v24 = vadd.f32 %v3101_v23, %v3003_v22  ;;  %v3011_v46 = vld [vmem:[#allocation2 + $0x2e0] sm:$0xff] }
 0x6d6   :  { %v9117_v25 = vmul.f32 -1.442695, %v3165_v21 }
 0x6d7   :  { %v9116_v26 = vmul.f32 -1.442695, %v3164_v24  ;;  %v10611_v57 = vpop.f32.mrb[102].mxu1 }
 0x6d8   :  { %11907 = vpow2.f32 %v9117_v25  ;;  %v3167_v27 = vadd.f32 %v10611_v57, %v3006_v29  ;;  %v3111_v38 = vpop.f32.mrb[103].mxu1 }
 0x6d9   :  { %11909 = vpow2.f32 %v9116_v26  ;;  %v3166_v60 = vadd.f32 %v3111_v38, %v3005_v28  ;;  %v3014_v26 = vld [vmem:[#allocation2 + $0x2f8] sm:$0xff]  ;;  %v3013_v28 = vld [vmem:[#allocation2 + $0x2f0] sm:$0xff] }
 0x6da   :  { %v11900_v58 = vpop.eup %11899  ;;  %v9119_v31 = vmul.f32 -1.442695, %v3167_v27 }
 0x6db   :  { %v11902_v62 = vpop.eup %11901  ;;  %v3189_v0 = vadd.f32 1.0, %v11900_v58  ;;  %v9118_v20 = vmul.f32 -1.442695, %v3166_v60  ;;  %v10614_v61 = vpop.f32.mrb[104].mxu1 }
 0x6dc   :  { %v3188_v35 = vadd.f32 1.0, %v11902_v62  ;;  %11911 = vpow2.f32 %v9119_v31  ;;  %v3169_v34 = vadd.f32 %v10614_v61, %v3008_v39  ;;  %v3121_v3 = vpop.f32.mrb[105].mxu1 }
 0x6dd   :  { %11913 = vrcp.f32 %v3189_v0  ;;  %v3168_v5 = vadd.f32 %v3121_v3, %v3007_v8 }
 0x6de   :  { %v11904_v59 = vpop.eup %11903  ;;  %11915 = vrcp.f32 %v3188_v35 }
 0x6df   :  { %v11906_v9 = vpop.eup %11905  ;;  %v3191_v2 = vadd.f32 1.0, %v11904_v59  ;;  %11917 = vpow2.f32 %v9118_v20  ;;  %v10617_v32 = vpop.f32.mrb[106].mxu1 }
 0x6e0   :  { %v3190_v7 = vadd.f32 1.0, %v11906_v9  ;;  %11919 = vtanh.f32 %v3169_v34  ;;  %v3171_v63 = vadd.f32 %v10617_v32, %v3010_v10  ;;  %v3131_v4 = vpop.f32.mrb[107].mxu1 }
 0x6e1   :  { %11921 = vrcp.f32 %v3191_v2  ;;  %v3170_v36 = vadd.f32 %v3131_v4, %v3009_v37 }
 0x6e2   :  { %v11908_v30 = vpop.eup %11907  ;;  %11923 = vrcp.f32 %v3190_v7 }
 0x6e3   :  { %v11910_v11 = vpop.eup %11909  ;;  %v3213_v12 = vadd.f32 1.0, %v11908_v30  ;;  %11925 = vtanh.f32 %v3168_v5  ;;  %v10620_v33 = vpop.f32.mrb[108].mxu1 }
 0x6e4   :  { %v3212_v15 = vadd.f32 1.0, %v11910_v11  ;;  %11927 = vtanh.f32 %v3171_v63  ;;  %v3173_v16 = vadd.f32 %v10620_v33, %v3012_v14  ;;  %v3141_v17 = vpop.f32.mrb[109].mxu1 }
 0x6e5   :  { %11929 = vrcp.f32 %v3213_v12  ;;  %v3172_v13 = vadd.f32 %v3141_v17, %v3011_v46 }
 0x6e6   :  { %v11912_v21 = vpop.eup %11911  ;;  %11931 = vrcp.f32 %v3212_v15  ;;  %v9121_v22 = vmul.f32 -1.442695, %v3173_v16 }
 0x6e7   :  { %v11914_v23 = vpop.eup %11913  ;;  %v3215_v24 = vadd.f32 1.0, %v11912_v21  ;;  %11933 = vtanh.f32 %v3170_v36  ;;  %v9120_v25 = vmul.f32 -1.442695, %v3172_v13  ;;  %v10623_v29 = vpop.f32.mrb[110].mxu1 }
 0x6e8   :  { %v11916_v57 = vpop.eup %11915  ;;  %11935 = vpow2.f32 %v9121_v22  ;;  %v3175_v27 = vadd.f32 %v10623_v29, %v3014_v26  ;;  %v3151_v38 = vpop.f32.mrb[111].mxu1 }
 0x6e9   :  { %v11918_v60 = vpop.eup %11917  ;;  %11937 = vrcp.f32 %v3215_v24  ;;  %v3174_v58 = vadd.f32 %v3151_v38, %v3013_v28 }
 0x6ea   :  { %v11920_v31 = vpop.eup %11919  ;;  %v3214_v62 = vadd.f32 1.0, %v11918_v60  ;;  %11939 = vpow2.f32 %v9120_v25  ;;  %v9123_v0 = vmul.f32 -1.442695, %v3175_v27  ;;  %v3855_v60 = vld [vmem:[#allocation4] sm:$0xff] }
 0x6eb   :  { %v11922_v20 = vpop.eup %11921  ;;  %v3257_v39 = vmul.f32 %v11920_v31, %v11914_v23  ;;  %v9122_v61 = vmul.f32 -1.442695, %v3174_v58  ;;  %v3856_v58 = vld [vmem:[#allocation4 + $0x8] sm:$0xff] }
 0x6ec   :  { %v11924_v35 = vpop.eup %11923  ;;  %11941 = vrcp.f32 %v3214_v62  ;;  %v11378_v62 = vpack.c.bf16 %v3856_v58, %v3855_v60 }
 0x6ed   :  { %v11926_v34 = vpop.eup %11925  ;;  %11943 = vpow2.f32 %v9123_v0  ;;  %v3857_v0 = vld [vmem:[#allocation4 + $0x10] sm:$0xff] }
 0x6ee   :  { %v11928_v3 = vpop.eup %11927  ;;  %v3256_v59 = vmul.f32 %v11926_v34, %v11916_v57  ;;  %11945 = vpow2.f32 %v9122_v61 }
 0x6ef   :  { %v11930_v8 = vpop.eup %11929  ;;  %v3259_v9 = vmul.f32 %v11928_v3, %v11922_v20  ;;  %v3858_v20 = vld [vmem:[#allocation4 + $0x18] sm:$0xff]  ;;  %v3836_v3 = vld [vmem:[%s15839_s4 + $0x8] sm:$0xff] }
 0x6f0   :  { %v11932_v2 = vpop.eup %11931  ;;  %v3253_v5 = vmul.f32 %v11930_v8, %v14098_v19  ;;  %v3850_v8 = vld [vmem:[#allocation3 + $0x58] sm:$0xff] }
 0x6f1   :  { %v11934_v10 = vpop.eup %11933  ;;  %v3252_v32 = vmul.f32 %v11932_v2, %v14100_v47  ;;  %v14229_v2 = vld [vmem:[%s15842_s7] sm:$0xff] }
 0x6f2   :  { %v11936_v7 = vpop.eup %11935  ;;  %v14150_v63 = vadd.f32 %v3257_v39, %v3253_v5  ;;  %v3258_v4 = vmul.f32 %v11934_v10, %v11924_v35  ;;  %v11382_v39 = vpack.c.bf16 %v3858_v20, %v3857_v0  ;;  %v3279_v5 = vld [vmem:[#allocation2 + $0x308] sm:$0xff] }
 0x6f3   :  { %v11938_v30 = vpop.eup %11937  ;;  %v14152_v37 = vadd.f32 %v3256_v59, %v3252_v32  ;;  %v3241_v11 = vadd.f32 1.0, %v11936_v7  ;;  %v3849_v59 = vld [vmem:[#allocation3 + $0x50] sm:$0xff]  ;;  %v3278_v7 = vld [vmem:[#allocation2 + $0x300] sm:$0xff] }
 0x6f4   :  { %v11940_v12 = vpop.eup %11939  ;;  %v3255_v36 = vmul.f32 %v11938_v30, %v14105_v18  ;;  %11947 = vtanh.f32 %v14150_v63 }
 0x6f5   :  { %11949 = vtanh.f32 %v14152_v37  ;;  %v3240_v14 = vadd.f32 1.0, %v11940_v12 }
 0x6f6   :  { %v11942_v19 = vpop.eup %11941  ;;  %v14157_v33 = vadd.f32 %v3259_v9, %v3255_v36  ;;  %11951 = vrcp.f32 %v3241_v11  ;;  %v11430_v9 = vpack.c.bf16 %v3850_v8, %v3849_v59  ;;  %v3281_v36 = vld [vmem:[#allocation2 + $0x318] sm:$0xff] }
 0x6f7   :  { %v11944_v47 = vpop.eup %11943  ;;  %v3254_v15 = vmul.f32 %v11942_v19, %v14109_v1  ;;  %11953 = vrcp.f32 %v3240_v14 }
 0x6f8   :  { %v11946_v16 = vpop.eup %11945  ;;  %11955 = vtanh.f32 %v14157_v33  ;;  %v3243_v46 = vadd.f32 1.0, %v11944_v47  ;;  %v3280_v47 = vld [vmem:[#allocation2 + $0x310] sm:$0xff] }
 0x6f9   :  { %v14161_v17 = vadd.f32 %v3258_v4, %v3254_v15  ;;  %v3242_v18 = vadd.f32 1.0, %v11946_v16 }
 0x6fa   :  { %11957 = vrcp.f32 %v3243_v46 }
 0x6fb   :  { %11959 = vtanh.f32 %v14161_v17 }
 0x6fc   :  { %11961 = vrcp.f32 %v3242_v18 }
 0x6fe   :  { %v11948_v13 = vpop.eup %11947 }
 0x6ff   :  { %v11950_v21 = vpop.eup %11949 }
 0x700   :  { %v11952_v22 = vpop.eup %11951 }
 0x701   :  { %v11954_v23 = vpop.eup %11953  ;;  %v3269_v24 = vmul.f32 %v11952_v22, %v11948_v13  ;;  %v3283_v13 = vld [vmem:[#allocation2 + $0x328] sm:$0xff] }
 0x702   :  { %v11956_v25 = vpop.eup %11955  ;;  %v3268_v26 = vmul.f32 %v11954_v23, %v11950_v21  ;;  %v3282_v23 = vld [vmem:[#allocation2 + $0x320] sm:$0xff] }
 0x703   :  { %3274 = vst.msk [vmem:[#allocation4 + $0x48] sm:$0xff] %vm1396_vm3, %v3269_v24 }
 0x704   :  { %v11958_v1 = vpop.eup %11957  ;;  %3273 = vst.msk [vmem:[#allocation4 + $0x40] sm:$0xff] %vm1396_vm3, %v3268_v26  ;;  %v11362_v29 = vpack.c.bf16 %v3269_v24, %v3268_v26 }
 0x705   :  { %v11960_v57 = vpop.eup %11959  ;;  %v3271_v27 = vmul.f32 %v11958_v1, %v11956_v25 }
 0x706   :  { %v11962_v28 = vpop.eup %11961  ;;  %11363 = vmatprep.subr.bf16.mxu0 %v11362_v29 }
 0x707   :  { %11365 = vmatpush3.bf16.msra.mxu0 %v11362_v29  ;;  %v3270_v38 = vmul.f32 %v11962_v28, %v11960_v57  ;;  %3276 = vst.msk [vmem:[#allocation4 + $0x58] sm:$0xff] %vm1396_vm3, %v3271_v27  ;;  %v3285_v29 = vld [vmem:[#allocation2 + $0x338] sm:$0xff]  ;;  %v3284_v28 = vld [vmem:[#allocation2 + $0x330] sm:$0xff] }
 0x709   :  { %3275 = vst.msk [vmem:[#allocation4 + $0x50] sm:$0xff] %vm1396_vm3, %v3270_v38  ;;  %v11366_v31 = vpack.c.bf16 %v3271_v27, %v3270_v38 }
 0x70a   :  { %v3864_v35 = vld [vmem:[#allocation4 + $0x48] sm:$0xff] }
 0x70b   :  { %11367 = vmatprep.subr.bf16.mxu0 %v11366_v31  ;;  %v3863_v61 = vld [vmem:[#allocation4 + $0x40] sm:$0xff] }
 0x70c   :  { %11369 = vmatpush3.bf16.msra.mxu0 %v11366_v31  ;;  %v11394_v34 = vpack.c.bf16 %v3864_v35, %v3863_v61 }
 0x70d   :  { %11379 = vmatprep.subr.bf16.mxu0 %v11378_v62 }
 0x70f   :  { %10633 = vmatmul.mubr.msk.f32.vlgmr.msra.gmra.mrb[112].mxu0 %vm1573_vm2, %v13987_v40  ;;  %v14199_v40 = vld [vmem:[%s15840_s5] sm:$0xff] }
 0x710   :  { %11381 = vmatpush3.bf16.msra.mxu0 %v11378_v62  ;;  %10635 = vmatprep.mubr.msk.f32.mxu0 %vm1573_vm2, %v13994_v41  ;;  %v14208_v41 = vld [vmem:[%s15840_s5 + $0x8] sm:$0xff] }
 0x711   :  { %11383 = vmatprep.subr.bf16.mxu0 %v11382_v39 }
 0x713   :  { %10636 = vmatmul.mubr.msk.f32.gmra.mrb[114].mxu0 %vm1573_vm2, %v14001_v42  ;;  %v3865_v42 = vld [vmem:[#allocation4 + $0x50] sm:$0xff] }
 0x714   :  { %11385 = vmatpush3.bf16.msra.mxu0 %v11382_v39  ;;  %10638 = vmatprep.mubr.msk.f32.mxu0 %vm1573_vm2, %v14008_v6  ;;  %v3866_v6 = vld [vmem:[#allocation4 + $0x58] sm:$0xff]  ;;  %v3287_v39 = vld [vmem:[#allocation2 + $0x348] sm:$0xff] }
 0x715   :  { %11395 = vmatprep.subr.bf16.mxu0 %v11394_v34 }
 0x717   :  { %10639 = vmatmul.mubr.msk.f32.gmra.mrb[116].mxu0 %vm1573_vm2, %v14015_v43  ;;  %v11398_v43 = vpack.c.bf16 %v3866_v6, %v3865_v42 }
 0x718   :  { %10641 = vmatprep.mubr.msk.f32.mxu0 %vm1573_vm2, %v14022_v45  ;;  %v3839_v45 = vld [vmem:[#allocation3] sm:$0xff] }
 0x71b   :  { %10642 = vmatmul.mubr.msk.f32.gmra.mrb[118].mxu0 %vm1573_vm2, %v14029_v49  ;;  %v3840_v49 = vld [vmem:[#allocation3 + $0x8] sm:$0xff] }
 0x71c   :  { %10644 = vmatprep.mubr.msk.f32.mxu0 %vm1573_vm2, %v14036_v50  ;;  %v11410_v50 = vpack.c.bf16 %v3840_v49, %v3839_v45 }
 0x71f   :  { %10645 = vmatmul.mubr.msk.f32.gmra.mrb[120].mxu0 %vm1573_vm2, %v14043_v51  ;;  %v3841_v51 = vld [vmem:[#allocation3 + $0x10] sm:$0xff] }
 0x720   :  { %10647 = vmatprep.mubr.msk.f32.mxu0 %vm1573_vm2, %v14050_v44  ;;  %v3842_v44 = vld [vmem:[#allocation3 + $0x18] sm:$0xff] }
 0x723   :  { %10648 = vmatmul.mubr.msk.f32.gmra.mrb[122].mxu0 %vm1573_vm2, %v14057_v53  ;;  %v3835_v53 = vld [vmem:[%s15839_s4] sm:$0xff] }
 0x724   :  { %10650 = vmatprep.mubr.msk.f32.mxu0 %vm1573_vm2, %v14064_v54  ;;  %v11414_v54 = vpack.c.bf16 %v3842_v44, %v3841_v51  ;;  %v3289_v51 = vld [vmem:[#allocation2 + $0x358] sm:$0xff] }
 0x727   :  { %10651 = vmatmul.mubr.msk.f32.gmra.mrb[124].mxu0 %vm1573_vm2, %v14071_v55  ;;  %v3847_v55 = vld [vmem:[#allocation3 + $0x40] sm:$0xff] }
 0x728   :  { %10653 = vmatprep.mubr.msk.f32.mxu0 %vm1573_vm2, %v14078_v56  ;;  %v3848_v56 = vld [vmem:[#allocation3 + $0x48] sm:$0xff] }
 0x72b   :  { %10654 = vmatmul.mubr.msk.f32.gmra.mrb[126].mxu0 %vm1573_vm2, %v14085_v48  ;;  %v11426_v48 = vpack.c.bf16 %v3848_v56, %v3847_v55 }
 0x72c   :  { %10696 = vmatprep.mubr.msk.f32.mxu0 %vm1573_vm2, %v14199_v40 }
 0x72f   :  { %10697 = vmatmul.mubr.msk.f32.vlgmr.msra.gmra.mrb[128].mxu0 %vm1573_vm2, %v14208_v41 }
 0x730   :  { %11397 = vmatpush3.bf16.msra.mxu0 %v11394_v34  ;;  %10718 = vmatprep.mubr.msk.f32.mxu0 %vm1573_vm2, %v14199_v40 }
 0x731   :  { %11399 = vmatprep.subr.bf16.mxu0 %v11398_v43 }
 0x734   :  { %11401 = vmatpush3.bf16.msra.mxu0 %v11398_v43  ;;  %v3286_v43 = vld [vmem:[#allocation2 + $0x340] sm:$0xff] }
 0x735   :  { %11411 = vmatprep.subr.bf16.mxu0 %v11410_v50 }
 0x737   :  { %10719 = vmatmul.mubr.msk.f32.vlgmr.msra.gmra.mrb[130].mxu0 %vm1573_vm2, %v14208_v41 }
 0x738   :  { %11413 = vmatpush3.bf16.msra.mxu0 %v11410_v50  ;;  %10740 = vmatprep.mubr.msk.f32.mxu0 %vm1573_vm2, %v3835_v53 }
 0x739   :  { %11415 = vmatprep.subr.bf16.mxu0 %v11414_v54 }
 0x73c   :  { %11417 = vmatpush3.bf16.msra.mxu0 %v11414_v54 }
 0x73d   :  { %11427 = vmatprep.subr.bf16.mxu0 %v11426_v48 }
 0x73f   :  { %10741 = vmatmul.mubr.msk.f32.vlgmr.msra.gmra.mrb[128].mxu0 %vm1573_vm2, %v3836_v3 }
 0x740   :  { %11429 = vmatpush3.bf16.msra.mxu0 %v11426_v48  ;;  %10762 = vmatprep.mubr.msk.f32.mxu0 %vm1573_vm2, %v3835_v53  ;;  %v3288_v48 = vld [vmem:[#allocation2 + $0x350] sm:$0xff] }
 0x741   :  { %11431 = vmatprep.subr.bf16.mxu0 %v11430_v9 }
 0x744   :  { %11433 = vmatpush3.bf16.msra.mxu0 %v11430_v9  ;;  %v3291_v9 = vld [vmem:[#allocation2 + $0x368] sm:$0xff] }
 0x747   :  { %10763 = vmatmul.mubr.msk.f32.vlgmr.msra.gmra.mrb[130].mxu0 %vm1573_vm2, %v3836_v3 }
 0x748   :  { %10780 = vmatprep.mubr.msk.f32.mxu0 %vm4727_vm4, %v14229_v2 }
 0x7e2   :  { %v10634_v10 = vpop.f32.mrb[112].mxu0 }
 0x7e3   :  { %v3440_v32 = vadd.f32 %v10634_v10, %v3279_v5  ;;  %v3360_v4 = vpop.f32.mrb[113].mxu0 }
 0x7e4   :  { %v3439_v30 = vadd.f32 %v3360_v4, %v3278_v7  ;;  %v3290_v7 = vld [vmem:[#allocation2 + $0x360] sm:$0xff] }
 0x7e5   :  { %v9141_v11 = vmul.f32 -1.442695, %v3440_v32 }
 0x7e6   :  { %v9140_v12 = vmul.f32 -1.442695, %v3439_v30  ;;  %v10637_v14 = vpop.f32.mrb[114].mxu0 }
 0x7e7   :  { %11963 = vpow2.f32 %v9141_v11  ;;  %v3442_v19 = vadd.f32 %v10637_v14, %v3281_v36  ;;  %v3370_v15 = vpop.f32.mrb[115].mxu0 }
 0x7e8   :  { %11965 = vpow2.f32 %v9140_v12  ;;  %v3441_v16 = vadd.f32 %v3370_v15, %v3280_v47  ;;  %v3293_v47 = vld [vmem:[#allocation2 + $0x378] sm:$0xff] }
 0x7e9   :  { %v9143_v46 = vmul.f32 -1.442695, %v3442_v19 }
 0x7ea   :  { %v9142_v18 = vmul.f32 -1.442695, %v3441_v16  ;;  %v10640_v21 = vpop.f32.mrb[116].mxu0 }
 0x7eb   :  { %11967 = vpow2.f32 %v9143_v46  ;;  %v3444_v22 = vadd.f32 %v10640_v21, %v3283_v13  ;;  %v3380_v24 = vpop.f32.mrb[117].mxu0 }
 0x7ec   :  { %11969 = vpow2.f32 %v9142_v18  ;;  %v3443_v25 = vadd.f32 %v3380_v24, %v3282_v23  ;;  %v3292_v18 = vld [vmem:[#allocation2 + $0x370] sm:$0xff] }
 0x7ed   :  { %v9145_v26 = vmul.f32 -1.442695, %v3444_v22 }
 0x7ee   :  { %v9144_v1 = vmul.f32 -1.442695, %v3443_v25  ;;  %v10643_v57 = vpop.f32.mrb[118].mxu0 }
 0x7ef   :  { %11971 = vpow2.f32 %v9145_v26  ;;  %v3446_v27 = vadd.f32 %v10643_v57, %v3285_v29  ;;  %v3390_v38 = vpop.f32.mrb[119].mxu0 }
 0x7f0   :  { %11973 = vpow2.f32 %v9144_v1  ;;  %v3445_v60 = vadd.f32 %v3390_v38, %v3284_v28 }
 0x7f1   :  { %v11964_v58 = vpop.eup %11963  ;;  %v9147_v31 = vmul.f32 -1.442695, %v3446_v27 }
 0x7f2   :  { %v11966_v62 = vpop.eup %11965  ;;  %v3468_v0 = vadd.f32 1.0, %v11964_v58  ;;  %v9146_v20 = vmul.f32 -1.442695, %v3445_v60  ;;  %v10646_v61 = vpop.f32.mrb[120].mxu0 }
 0x7f3   :  { %v3467_v35 = vadd.f32 1.0, %v11966_v62  ;;  %11975 = vpow2.f32 %v9147_v31  ;;  %v3448_v34 = vadd.f32 %v10646_v61, %v3287_v39  ;;  %v3400_v42 = vpop.f32.mrb[121].mxu0 }
 0x7f4   :  { %11977 = vrcp.f32 %v3468_v0  ;;  %v3447_v50 = vadd.f32 %v3400_v42, %v3286_v43 }
 0x7f5   :  { %v11968_v6 = vpop.eup %11967  ;;  %11979 = vrcp.f32 %v3467_v35 }
 0x7f6   :  { %v11970_v45 = vpop.eup %11969  ;;  %v3470_v49 = vadd.f32 1.0, %v11968_v6  ;;  %11981 = vpow2.f32 %v9146_v20  ;;  %v10649_v44 = vpop.f32.mrb[122].mxu0 }
 0x7f7   :  { %v3469_v53 = vadd.f32 1.0, %v11970_v45  ;;  %11983 = vtanh.f32 %v3448_v34  ;;  %v3450_v54 = vadd.f32 %v10649_v44, %v3289_v51  ;;  %v3410_v55 = vpop.f32.mrb[123].mxu0 }
 0x7f8   :  { %11985 = vrcp.f32 %v3470_v49  ;;  %v3449_v8 = vadd.f32 %v3410_v55, %v3288_v48  ;;  %v14248_v55 = vpop.permute.xlu1 %4492  ;;  %v14251_v48 = vpop.permute.xlu0 %4487 }
 0x7f9   :  { %v11972_v56 = vpop.eup %11971  ;;  %11987 = vrcp.f32 %v3469_v53 }
 0x7fa   :  { %v11974_v3 = vpop.eup %11973  ;;  %v3492_v59 = vadd.f32 1.0, %v11972_v56  ;;  %11989 = vtanh.f32 %v3447_v50  ;;  %v10652_v5 = vpop.f32.mrb[124].mxu0 }
 0x7fb   :  { %v3491_v10 = vadd.f32 1.0, %v11974_v3  ;;  %11991 = vtanh.f32 %v3450_v54  ;;  %v3452_v32 = vadd.f32 %v10652_v5, %v3291_v9  ;;  %v3420_v4 = vpop.f32.mrb[125].mxu0 }
 0x7fc   :  { %11993 = vrcp.f32 %v3492_v59  ;;  %v3451_v30 = vadd.f32 %v3420_v4, %v3290_v7 }
 0x7fd   :  { %v11976_v11 = vpop.eup %11975  ;;  %11995 = vrcp.f32 %v3491_v10  ;;  %v9149_v12 = vmul.f32 -1.442695, %v3452_v32 }
 0x7fe   :  { %v11978_v36 = vpop.eup %11977  ;;  %v3494_v14 = vadd.f32 1.0, %v11976_v11  ;;  %11997 = vtanh.f32 %v3449_v8  ;;  %v9148_v19 = vmul.f32 -1.442695, %v3451_v30  ;;  %v10655_v15 = vpop.f32.mrb[126].mxu0  ;;  %v14258_v30 = vld [vmem:[%s15842_s7 + $0x8] sm:$0xff] }
 0x7ff   :  { %v11980_v16 = vpop.eup %11979  ;;  %11999 = vpow2.f32 %v9149_v12  ;;  %v3454_v46 = vadd.f32 %v10655_v15, %v3293_v47  ;;  %v3430_v13 = vpop.f32.mrb[127].mxu0 }
 0x800   :  { %v11982_v21 = vpop.eup %11981  ;;  %12001 = vrcp.f32 %v3494_v14  ;;  %v3453_v22 = vadd.f32 %v3430_v13, %v3292_v18 }
 0x801   :  { %v11984_v23 = vpop.eup %11983  ;;  %v3493_v24 = vadd.f32 1.0, %v11982_v21  ;;  %12003 = vpow2.f32 %v9148_v19  ;;  %v9151_v25 = vmul.f32 -1.442695, %v3454_v46  ;;  %v14276_v21 = vld [vmem:[%s15842_s7 + $0x18] sm:$0xff] }
 0x802   :  { %v11986_v26 = vpop.eup %11985  ;;  %v3536_v1 = vmul.f32 %v11984_v23, %v11978_v36  ;;  %v9150_v29 = vmul.f32 -1.442695, %v3453_v22  ;;  %v14264_v36 = vld [vmem:[%s15842_s7 + $0x10] sm:$0xff] }
 0x803   :  { %v11988_v57 = vpop.eup %11987  ;;  %12005 = vrcp.f32 %v3493_v24  ;;  %v14282_v24 = vld [vmem:[%s15842_s7 + $0x20] sm:$0xff] }
 0x804   :  { %v11990_v27 = vpop.eup %11989  ;;  %12007 = vpow2.f32 %v9151_v25  ;;  %v3859_v25 = vld [vmem:[#allocation4 + $0x20] sm:$0xff] }
 0x805   :  { %v11992_v28 = vpop.eup %11991  ;;  %v3535_v38 = vmul.f32 %v11990_v27, %v11980_v16  ;;  %12009 = vpow2.f32 %v9150_v29  ;;  %v14292_v29 = vld [vmem:[%s15842_s7 + $0x28] sm:$0xff]  ;;  %v14297_v27 = vld [vmem:[%s15842_s7 + $0x30] sm:$0xff] }
 0x806   :  { %v11994_v60 = vpop.eup %11993  ;;  %v3538_v58 = vmul.f32 %v11992_v28, %v11986_v26  ;;  %v3860_v26 = vld [vmem:[#allocation4 + $0x28] sm:$0xff]  ;;  %v3861_v28 = vld [vmem:[#allocation4 + $0x30] sm:$0xff] }
 0x807   :  { %v11996_v31 = vpop.eup %11995  ;;  %v3532_v62 = vmul.f32 %v11994_v60, %v14150_v63  ;;  %v14307_v60 = vld [vmem:[%s15842_s7 + $0x38] sm:$0xff] }
 0x808   :  { %v11998_v0 = vpop.eup %11997  ;;  %v3531_v20 = vmul.f32 %v11996_v31, %v14152_v37 }
 0x809   :  { %v12000_v39 = vpop.eup %11999  ;;  %v14235_v61 = vadd.f32 %v3536_v1, %v3532_v62  ;;  %v3537_v35 = vmul.f32 %v11998_v0, %v11988_v57  ;;  %v11386_v57 = vpack.c.bf16 %v3860_v26, %v3859_v25  ;;  %v14316_v62 = vld [vmem:[%s15842_s7 + $0x40] sm:$0xff]  ;;  %v12636_v0 = vld [vmem:[%s15837_s2 + $0x10] sm:$0xff]  ;;  %v1550_v26 = vld [vmem:[%s15844_s9 + $0x48] sm:$0xff] }
 0x80a   :  { %v12002_v34 = vpop.eup %12001  ;;  %v14237_v42 = vadd.f32 %v3535_v38, %v3531_v20  ;;  %v3520_v6 = vadd.f32 1.0, %v12000_v39  ;;  %v3862_v38 = vld [vmem:[#allocation4 + $0x38] sm:$0xff]  ;;  %v14329_v20 = vld [vmem:[%s15842_s7 + $0x48] sm:$0xff]  ;;  %v1549_v25 = vld [vmem:[%s15844_s9 + $0x40] sm:$0xff] }
 0x80b   :  { %v12004_v43 = vpop.eup %12003  ;;  %v3534_v45 = vmul.f32 %v12002_v34, %v14157_v33  ;;  %12011 = vtanh.f32 %v14235_v61  ;;  %v11390_v31 = vpack.c.bf16 %v3862_v38, %v3861_v28  ;;  %v12637_v39 = vld [vmem:[%s15837_s2 + $0x18] sm:$0xff]  ;;  %v12638_v34 = vld [vmem:[%s15837_s2 + $0x20] sm:$0xff]  ;;  %v1555_v28 = vld [vmem:[%s15844_s9 + $0x70] sm:$0xff] }
 0x80c   :  { %12013 = vtanh.f32 %v14237_v42  ;;  %v3519_v49 = vadd.f32 1.0, %v12004_v43  ;;  %v12639_v43 = vld [vmem:[%s15837_s2 + $0x28] sm:$0xff]  ;;  %v1556_v38 = vld [vmem:[%s15844_s9 + $0x78] sm:$0xff] }
 0x80d   :  { %v12006_v63 = vpop.eup %12005  ;;  %v14242_v50 = vadd.f32 %v3538_v58, %v3534_v45  ;;  %12015 = vrcp.f32 %v3520_v6  ;;  %v12635_v58 = vld [vmem:[%s15837_s2 + $0x8] sm:$0xff]  ;;  %v14351_v6 = vld [vmem:[%s15842_s7 + $0x58] sm:$0xff]  ;;  %v14360_v45 = vld [vmem:[%s15842_s7 + $0x60] sm:$0xff] }
 0x80e   :  { %v12008_v37 = vpop.eup %12007  ;;  %v3533_v51 = vmul.f32 %v12006_v63, %v14161_v17  ;;  %12017 = vrcp.f32 %v3519_v49  ;;  %v12640_v49 = vld [vmem:[%s15837_s2 + $0x30] sm:$0xff]  ;;  %v14373_v63 = vld [vmem:[%s15842_s7 + $0x68] sm:$0xff] }
 0x80f   :  { %v12010_v44 = vpop.eup %12009  ;;  %12019 = vtanh.f32 %v14242_v50  ;;  %v3522_v53 = vadd.f32 1.0, %v12008_v37  ;;  %v12641_v37 = vld [vmem:[%s15837_s2 + $0x38] sm:$0xff] }
 0x810   :  { %v14246_v54 = vadd.f32 %v3537_v35, %v3533_v51  ;;  %v3521_v33 = vadd.f32 1.0, %v12010_v44  ;;  %v14338_v35 = vld [vmem:[%s15842_s7 + $0x50] sm:$0xff]  ;;  %v12642_v44 = vld [vmem:[%s15837_s2 + $0x40] sm:$0xff] }
 0x811   :  { %12021 = vrcp.f32 %v3522_v53  ;;  %v14382_v51 = vld [vmem:[%s15842_s7 + $0x70] sm:$0xff]  ;;  %v14395_v53 = vld [vmem:[%s15842_s7 + $0x78] sm:$0xff] }
 0x812   :  { %12023 = vtanh.f32 %v14246_v54  ;;  %v10742_v56 = vpop.f32.mrb[128].mxu0 }
 0x813   :  { %12025 = vrcp.f32 %v3521_v33  ;;  %v4496_v3 = vadd.f32 %v10742_v56, %v14248_v55  ;;  %v4249_v17 = vpop.f32.mrb[129].mxu0  ;;  %v12643_v33 = vld [vmem:[%s15837_s2 + $0x48] sm:$0xff]  ;;  %v14404_v56 = vld [vmem:[%s15842_s7 + $0x80] sm:$0xff] }
 0x814   :  { %v4495_v59 = vadd.f32 %v14251_v48, %v4249_v17  ;;  %v4520_v17 = vld [vmem:[%s15842_s7 + $0x88] sm:$0xff] }
 0x815   :  { %v12012_v8 = vpop.eup %12011 }
 0x816   :  { %v12014_v9 = vpop.eup %12013  ;;  %v11442_v5 = vpack.c.bf16 %v4496_v3, %v4495_v59  ;;  %v12644_v3 = vld [vmem:[%s15837_s2 + $0x50] sm:$0xff]  ;;  %v12645_v59 = vld [vmem:[%s15837_s2 + $0x58] sm:$0xff] }
 0x817   :  { %v12016_v10 = vpop.eup %12015 }
 0x818   :  { %v12018_v32 = vpop.eup %12017  ;;  %11443 = vmatprep.subr.bf16.mxu0 %v11442_v5  ;;  %v3548_v7 = vmul.f32 %v12016_v10, %v12012_v8  ;;  %v4521_v8 = vld [vmem:[%s15842_s7 + $0x90] sm:$0xff]  ;;  %v12647_v10 = vld [vmem:[%s15837_s2 + $0x68] sm:$0xff] }
 0x819   :  { %v12020_v4 = vpop.eup %12019  ;;  %11445 = vmatpush3.bf16.msra.mxu0 %v11442_v5  ;;  %v3547_v11 = vmul.f32 %v12018_v32, %v12014_v9  ;;  %v12646_v9 = vld [vmem:[%s15837_s2 + $0x60] sm:$0xff]  ;;  %v4522_v5 = vld [vmem:[%s15842_s7 + $0x98] sm:$0xff] }
 0x81a   :  { %v10764_v12 = vpop.f32.mrb[130].mxu0  ;;  %3553 = vst.msk [vmem:[#allocation3 + $0x68] sm:$0xff] %vm1396_vm3, %v3548_v7  ;;  %v4523_v32 = vld [vmem:[%s15842_s7 + $0xa0] sm:$0xff] }
 0x81b   :  { %v12022_v14 = vpop.eup %12021  ;;  %v4500_v19 = vadd.f32 %v10764_v12, %v14248_v55  ;;  %v4399_v47 = vpop.f32.mrb[131].mxu0  ;;  %3552 = vst.msk [vmem:[#allocation3 + $0x60] sm:$0xff] %vm1396_vm3, %v3547_v11  ;;  %v11370_v15 = vpack.c.bf16 %v3548_v7, %v3547_v11  ;;  %v12648_v7 = vld [vmem:[%s15837_s2 + $0x70] sm:$0xff]  ;;  %v12649_v11 = vld [vmem:[%s15837_s2 + $0x78] sm:$0xff] }
 0x81c   :  { %v12024_v16 = vpop.eup %12023  ;;  %v4499_v46 = vadd.f32 %v14251_v48, %v4399_v47  ;;  %10781 = vmatmul.mubr.msk.f32.vlgmr.msra.gmra.mrb[132].mxu0 %vm4727_vm4, %v14258_v30  ;;  %v3550_v18 = vmul.f32 %v12022_v14, %v12020_v4  ;;  %v4524_v4 = vld [vmem:[%s15842_s7 + $0xa8] sm:$0xff]  ;;  %v4525_v12 = vld [vmem:[%s15842_s7 + $0xb0] sm:$0xff]  ;;  %v4526_v14 = vld [vmem:[%s15842_s7 + $0xb8] sm:$0xff] }
 0x81d   :  { %v12026_v13 = vpop.eup %12025  ;;  %11371 = vmatprep.subr.bf16.mxu1 %v11370_v15  ;;  %10783 = vmatprep.mubr.msk.f32.mxu0 %vm4727_vm4, %v14264_v36  ;;  %v4528_v47 = vld [vmem:[%s15842_s7 + $0xc8] sm:$0xff] }
 0x81e   :  { %v11450_v22 = vpack.c.bf16 %v4500_v19, %v4499_v46  ;;  %11373 = vmatpush3.bf16.msra.mxu1 %v11370_v15  ;;  %v3549_v23 = vmul.f32 %v12026_v13, %v12024_v16  ;;  %3555 = vst.msk [vmem:[#allocation3 + $0x78] sm:$0xff] %vm1396_vm3, %v3550_v18  ;;  %v4527_v19 = vld [vmem:[%s15842_s7 + $0xc0] sm:$0xff]  ;;  %v4529_v15 = vld [vmem:[%s15842_s7 + $0xd0] sm:$0xff]  ;;  %v4532_v16 = vld [vmem:[%s15842_s7 + $0xe8] sm:$0xff] }
 0x81f   :  { %v4533_v46 = vld [vmem:[%s15842_s7 + $0xf0] sm:$0xff]  ;;  %v1544_v13 = vld [vmem:[%s15844_s9 + $0x18] sm:$0xff] }
 0x820   :  { %10784 = vmatmul.mubr.msk.f32.gmra.mrb[134].mxu0 %vm4727_vm4, %v14276_v21  ;;  %11451 = vmatprep.subr.bf16.mxu0 %v11450_v22  ;;  %3554 = vst.msk [vmem:[#allocation3 + $0x70] sm:$0xff] %vm1396_vm3, %v3549_v23  ;;  %v11374_v1 = vpack.c.bf16 %v3550_v18, %v3549_v23  ;;  %v4534_v18 = vld [vmem:[%s15842_s7 + $0xf8] sm:$0xff]  ;;  %v1547_v23 = vld [vmem:[%s15844_s9 + $0x30] sm:$0xff] }
 0x821   :  { %11453 = vmatpush3.bf16.msra.mxu0 %v11450_v22  ;;  %10786 = vmatprep.mubr.msk.f32.mxu0 %vm4727_vm4, %v14282_v24  ;;  %v1546_v22 = vld [vmem:[%s15844_s9 + $0x28] sm:$0xff] }
 0x822   :  { %11375 = vmatprep.subr.bf16.mxu1 %v11374_v1  ;;  %10984 = vmatprep.subr.mxu0 %v15848_v52 }
 0x823   :  { %11377 = vmatpush3.bf16.msra.mxu1 %v11374_v1  ;;  %v1551_v1 = vld [vmem:[%s15844_s9 + $0x50] sm:$0xff] }
 0x824   :  { %11387 = vmatprep.subr.bf16.mxu1 %v11386_v57  ;;  %10787 = vmatmul.mubr.msk.f32.gmra.mrb[136].mxu0 %vm4727_vm4, %v14292_v29 }
 0x825   :  { %10789 = vmatprep.mubr.msk.f32.mxu0 %vm4727_vm4, %v14297_v27 }
 0x826   :  { %10665 = vmatmul.mubr.msk.f32.vlgmr.msra.gmra.mrb[112].mxu1 %vm1573_vm2, %v12635_v58  ;;  %v14617_v58 = vpop.permute.xlu0 %4569 }
 0x827   :  { %11389 = vmatpush3.bf16.msra.mxu1 %v11386_v57  ;;  %10667 = vmatprep.mubr.msk.f32.mxu1 %vm1573_vm2, %v12636_v0  ;;  %v1553_v57 = vld [vmem:[%s15844_s9 + $0x60] sm:$0xff] }
 0x828   :  { %11391 = vmatprep.subr.bf16.mxu1 %v11390_v31  ;;  %10790 = vmatmul.mubr.msk.f32.gmra.mrb[138].mxu0 %vm4727_vm4, %v14307_v60 }
 0x829   :  { %10792 = vmatprep.mubr.msk.f32.mxu0 %vm4727_vm4, %v14316_v62 }
 0x82a   :  { %10668 = vmatmul.mubr.msk.f32.gmra.mrb[114].mxu1 %vm1573_vm2, %v12637_v39 }
 0x82b   :  { %11393 = vmatpush3.bf16.msra.mxu1 %v11390_v31  ;;  %10670 = vmatprep.mubr.msk.f32.mxu1 %vm1573_vm2, %v12638_v34 }
 0x82c   :  { %10793 = vmatmul.mubr.msk.f32.gmra.mrb[140].mxu0 %vm4727_vm4, %v14329_v20 }
 0x82d   :  { %10795 = vmatprep.mubr.msk.f32.mxu0 %vm4727_vm4, %v14338_v35 }
 0x82e   :  { %10671 = vmatmul.mubr.msk.f32.gmra.mrb[116].mxu1 %vm1573_vm2, %v12639_v43 }
 0x82f   :  { %10673 = vmatprep.mubr.msk.f32.mxu1 %vm1573_vm2, %v12640_v49 }
 0x830   :  { %10796 = vmatmul.mubr.msk.f32.gmra.mrb[142].mxu0 %vm4727_vm4, %v14351_v6 }
 0x831   :  { %10798 = vmatprep.mubr.msk.f32.mxu0 %vm4727_vm4, %v14360_v45 }
 0x832   :  { %10674 = vmatmul.mubr.msk.f32.gmra.mrb[118].mxu1 %vm1573_vm2, %v12641_v37 }
 0x833   :  { %10676 = vmatprep.mubr.msk.f32.mxu1 %vm1573_vm2, %v12642_v44 }
 0x834   :  { %10799 = vmatmul.mubr.msk.f32.gmra.mrb[144].mxu0 %vm4727_vm4, %v14373_v63 }
 0x835   :  { %10801 = vmatprep.mubr.msk.f32.mxu0 %vm4727_vm4, %v14382_v51 }
 0x836   :  { %10677 = vmatmul.mubr.msk.f32.gmra.mrb[120].mxu1 %vm1573_vm2, %v12643_v33 }
 0x837   :  { %10679 = vmatprep.mubr.msk.f32.mxu1 %vm1573_vm2, %v12644_v3 }
 0x838   :  { %10802 = vmatmul.mubr.msk.f32.gmra.mrb[146].mxu0 %vm4727_vm4, %v14395_v53 }
 0x839   :  { %10804 = vmatprep.mubr.msk.f32.mxu0 %vm4727_vm4, %v14404_v56 }
 0x83a   :  { %10680 = vmatmul.mubr.msk.f32.gmra.mrb[122].mxu1 %vm1573_vm2, %v12645_v59 }
 0x83b   :  { %10682 = vmatprep.mubr.msk.f32.mxu1 %vm1573_vm2, %v12646_v9 }
 0x83c   :  { %10805 = vmatmul.mubr.msk.f32.gmra.mrb[148].mxu0 %vm4727_vm4, %v4520_v17 }
 0x83d   :  { %10807 = vmatprep.mubr.msk.f32.mxu0 %vm4727_vm4, %v4521_v8 }
 0x83e   :  { %10683 = vmatmul.mubr.msk.f32.gmra.mrb[124].mxu1 %vm1573_vm2, %v12647_v10  ;;  %v3558_v10 = vld [vmem:[#allocation2 + $0x388] sm:$0xff] }
 0x83f   :  { %10685 = vmatprep.mubr.msk.f32.mxu1 %vm1573_vm2, %v12648_v7 }
 0x840   :  { %10808 = vmatmul.mubr.msk.f32.gmra.mrb[150].mxu0 %vm4727_vm4, %v4522_v5 }
 0x841   :  { %10810 = vmatprep.mubr.msk.f32.mxu0 %vm4727_vm4, %v4523_v32 }
 0x842   :  { %10686 = vmatmul.mubr.msk.f32.gmra.mrb[126].mxu1 %vm1573_vm2, %v12649_v11 }
 0x843   :  { %10707 = vmatprep.mubr.msk.f32.mxu1 %vm1573_vm2, %v14199_v40 }
 0x844   :  { %10811 = vmatmul.mubr.msk.f32.gmra.mrb[152].mxu0 %vm4727_vm4, %v4524_v4 }
 0x845   :  { %10813 = vmatprep.mubr.msk.f32.mxu0 %vm4727_vm4, %v4525_v12 }
 0x846   :  { %10708 = vmatmul.mubr.msk.f32.vlgmr.msra.gmra.mrb[128].mxu1 %vm1573_vm2, %v14208_v41  ;;  %v4531_v41 = vld [vmem:[%s15842_s7 + $0xe0] sm:$0xff] }
 0x847   :  { %10729 = vmatprep.mubr.msk.f32.mxu1 %vm1573_vm2, %v14199_v40  ;;  %v4530_v40 = vld [vmem:[%s15842_s7 + $0xd8] sm:$0xff] }
 0x848   :  { %10814 = vmatmul.mubr.msk.f32.gmra.mrb[154].mxu0 %vm4727_vm4, %v4526_v14 }
 0x849   :  { %10816 = vmatprep.mubr.msk.f32.mxu0 %vm4727_vm4, %v4527_v19 }
 0x84c   :  { %10817 = vmatmul.mubr.msk.f32.gmra.mrb[156].mxu0 %vm4727_vm4, %v4528_v47 }
 0x84d   :  { %10819 = vmatprep.mubr.msk.f32.mxu0 %vm4727_vm4, %v4529_v15 }
 0x850   :  { %10820 = vmatmul.mubr.msk.f32.gmra.mrb[158].mxu0 %vm4727_vm4, %v4530_v40 }
 0x851   :  { %10822 = vmatprep.mubr.msk.f32.mxu0 %vm4727_vm4, %v4531_v41 }
 0x854   :  { %10823 = vmatmul.mubr.msk.f32.gmra.mrb[160].mxu0 %vm4727_vm4, %v4532_v16 }
 0x855   :  { %10825 = vmatprep.mubr.msk.f32.mxu0 %vm4727_vm4, %v4533_v46 }
 0x858   :  { %10826 = vmatmul.mubr.msk.f32.gmra.mrb[162].mxu0 %vm4727_vm4, %v4534_v18 }
 0x859   :  { %10884 = vmatprep.mubr.msk.f32.mxu0 %vm4727_vm4, %v14229_v2  ;;  %v1541_v2 = vld [vmem:[%s15844_s9] sm:$0xff] }
 0x85c   :  { %10885 = vmatmul.mubr.msk.f32.vlgmr.msra.gmra.mrb[164].mxu0 %vm4727_vm4, %v14258_v30  ;;  %v1542_v30 = vld [vmem:[%s15844_s9 + $0x8] sm:$0xff] }
 0x85d   :  { %10887 = vmatprep.mubr.msk.f32.mxu0 %vm4727_vm4, %v14264_v36  ;;  %10985 = vmatpush3.msra.mxu0 %v15848_v52  ;;  %v1543_v36 = vld [vmem:[%s15844_s9 + $0x10] sm:$0xff]  ;;  %v12678_v52 = vld [vmem:[%s15842_s7 + $0xc8] sm:$0xff] }
 0x860   :  { %10888 = vmatmul.mubr.msk.f32.gmra.mrb[166].mxu0 %vm4727_vm4, %v14276_v21  ;;  %v1545_v21 = vld [vmem:[%s15844_s9 + $0x20] sm:$0xff] }
 0x861   :  { %10890 = vmatprep.mubr.msk.f32.mxu0 %vm4727_vm4, %v14282_v24  ;;  %v1548_v24 = vld [vmem:[%s15844_s9 + $0x38] sm:$0xff] }
 0x864   :  { %10891 = vmatmul.mubr.msk.f32.gmra.mrb[168].mxu0 %vm4727_vm4, %v14292_v29  ;;  %v1552_v29 = vld [vmem:[%s15844_s9 + $0x58] sm:$0xff] }
 0x865   :  { %10893 = vmatprep.mubr.msk.f32.mxu0 %vm4727_vm4, %v14297_v27  ;;  %v1554_v27 = vld [vmem:[%s15844_s9 + $0x68] sm:$0xff] }
 0x868   :  { %10894 = vmatmul.mubr.msk.f32.gmra.mrb[170].mxu0 %vm4727_vm4, %v14307_v60  ;;  %v14615_v60 = vpop.permute.xlu1 %4574 }
 0x869   :  { %10896 = vmatprep.mubr.msk.f32.mxu0 %vm4727_vm4, %v14316_v62  ;;  %v14621_v62 = vpop.permute.xlu0 %4589 }
 0x86c   :  { %10897 = vmatmul.mubr.msk.f32.gmra.mrb[172].mxu0 %vm4727_vm4, %v14329_v20  ;;  %v14619_v31 = vpop.permute.xlu1 %4594 }
 0x86d   :  { %10899 = vmatprep.mubr.msk.f32.mxu0 %vm4727_vm4, %v14338_v35  ;;  %v14625_v20 = vpop.permute.xlu0 %4579 }
 0x870   :  { %10900 = vmatmul.mubr.msk.f32.gmra.mrb[174].mxu0 %vm4727_vm4, %v14351_v6  ;;  %v14623_v0 = vpop.permute.xlu1 %4584 }
 0x871   :  { %10902 = vmatprep.mubr.msk.f32.mxu0 %vm4727_vm4, %v14360_v45  ;;  %v14629_v35 = vpop.permute.xlu0 %4599 }
 0x874   :  { %10903 = vmatmul.mubr.msk.f32.gmra.mrb[176].mxu0 %vm4727_vm4, %v14373_v63  ;;  %v14627_v39 = vpop.permute.xlu1 %4604 }
 0x875   :  { %10905 = vmatprep.mubr.msk.f32.mxu0 %vm4727_vm4, %v14382_v51  ;;  %v14633_v6 = vpop.permute.xlu0 %4609 }
 0x878   :  { %10906 = vmatmul.mubr.msk.f32.gmra.mrb[178].mxu0 %vm4727_vm4, %v14395_v53  ;;  %v14631_v34 = vpop.permute.xlu1 %4614 }
 0x879   :  { %10908 = vmatprep.mubr.msk.f32.mxu0 %vm4727_vm4, %v14404_v56  ;;  %v14637_v45 = vpop.permute.xlu0 %4629 }
 0x87c   :  { %10909 = vmatmul.mubr.msk.f32.gmra.mrb[180].mxu0 %vm4727_vm4, %v4520_v17  ;;  %v14635_v43 = vpop.permute.xlu1 %4634 }
 0x87d   :  { %10911 = vmatprep.mubr.msk.f32.mxu0 %vm4727_vm4, %v4521_v8  ;;  %v14645_v33 = vpop.permute.xlu0 %4619 }
 0x880   :  { %10912 = vmatmul.mubr.msk.f32.gmra.mrb[182].mxu0 %vm4727_vm4, %v4522_v5  ;;  %v14642_v44 = vpop.permute.xlu1 %4624 }
 0x881   :  { %10914 = vmatprep.mubr.msk.f32.mxu0 %vm4727_vm4, %v4523_v32 }
 0x884   :  { %10915 = vmatmul.mubr.msk.f32.gmra.mrb[184].mxu0 %vm4727_vm4, %v4524_v4  ;;  %v14652_v5 = vpop.permute.xlu1 %4644  ;;  %v14655_v4 = vpop.permute.xlu0 %4639 }
 0x885   :  { %10917 = vmatprep.mubr.msk.f32.mxu0 %vm4727_vm4, %v4525_v12  ;;  %v3557_v12 = vld [vmem:[#allocation2 + $0x380] sm:$0xff] }
 0x888   :  { %10918 = vmatmul.mubr.msk.f32.gmra.mrb[186].mxu0 %vm4727_vm4, %v4526_v14 }
 0x889   :  { %10920 = vmatprep.mubr.msk.f32.mxu0 %vm4727_vm4, %v4527_v19 }
 0x88c   :  { %10921 = vmatmul.mubr.msk.f32.gmra.mrb[188].mxu0 %vm4727_vm4, %v4528_v47 }
 0x88d   :  { %10923 = vmatprep.mubr.msk.f32.mxu0 %vm4727_vm4, %v4529_v15 }
 0x890   :  { %10924 = vmatmul.mubr.msk.f32.gmra.mrb[190].mxu0 %vm4727_vm4, %v4530_v40 }
 0x891   :  { %10926 = vmatprep.mubr.msk.f32.mxu0 %vm4727_vm4, %v4531_v41 }
 0x894   :  { %10927 = vmatmul.mubr.msk.f32.gmra.mrb[192].mxu0 %vm4727_vm4, %v4532_v16 }
 0x895   :  { %10929 = vmatprep.mubr.msk.f32.mxu0 %vm4727_vm4, %v4533_v46  ;;  %v3560_v46 = vld [vmem:[#allocation2 + $0x398] sm:$0xff] }
 0x898   :  { %10930 = vmatmul.mubr.msk.f32.gmra.mrb[194].mxu0 %vm4727_vm4, %v4534_v18 }
 0x899   :  { %10986 = vmatprep.mubr.msk.f32.mxu0 %vm1573_vm2, %v1541_v2 }
 0x89c   :  { %10987 = vmatmul.mubr.msk.f32.vlgmr.msra.gmra.mrb[196].mxu0 %vm1573_vm2, %v1542_v30 }
 0x89d   :  { %10989 = vmatprep.mubr.msk.f32.mxu0 %vm1573_vm2, %v1543_v36  ;;  %v3559_v36 = vld [vmem:[#allocation2 + $0x390] sm:$0xff] }
 0x8a0   :  { %10990 = vmatmul.mubr.msk.f32.gmra.mrb[198].mxu0 %vm1573_vm2, %v1544_v13 }
 0x8a1   :  { %10992 = vmatprep.mubr.msk.f32.mxu0 %vm1573_vm2, %v1545_v21  ;;  %v14662_v21 = vpop.permute.xlu1 %4654 }
 0x8a4   :  { %10993 = vmatmul.mubr.msk.f32.gmra.mrb[200].mxu0 %vm1573_vm2, %v1546_v22 }
 0x8a5   :  { %10995 = vmatprep.mubr.msk.f32.mxu0 %vm1573_vm2, %v1547_v23 }
 0x8a8   :  { %10996 = vmatmul.mubr.msk.f32.gmra.mrb[202].mxu0 %vm1573_vm2, %v1548_v24  ;;  %v14665_v24 = vpop.permute.xlu0 %4649 }
 0x8a9   :  { %10998 = vmatprep.mubr.msk.f32.mxu0 %vm1573_vm2, %v1549_v25 }
 0x8ac   :  { %10999 = vmatmul.mubr.msk.f32.gmra.mrb[204].mxu0 %vm1573_vm2, %v1550_v26 }
 0x8ad   :  { %11001 = vmatprep.mubr.msk.f32.mxu0 %vm1573_vm2, %v1551_v1 }
 0x8b0   :  { %11002 = vmatmul.mubr.msk.f32.gmra.mrb[206].mxu0 %vm1573_vm2, %v1552_v29 }
 0x8b1   :  { %11004 = vmatprep.mubr.msk.f32.mxu0 %vm1573_vm2, %v1553_v57  ;;  %v3562_v57 = vld [vmem:[#allocation2 + $0x3a8] sm:$0xff] }
 0x8b4   :  { %11005 = vmatmul.mubr.msk.f32.gmra.mrb[208].mxu0 %vm1573_vm2, %v1554_v27 }
 0x8b5   :  { %11007 = vmatprep.mubr.msk.f32.mxu0 %vm1573_vm2, %v1555_v28 }
 0x8b8   :  { %11008 = vmatmul.mubr.msk.f32.gmra.mrb[210].mxu0 %vm1573_vm2, %v1556_v38 }
 0x8b9   :  { %11050 = vmatprep.mubr.msk.f32.mxu0 %vm1573_vm2, %v1541_v2 }
 0x8ef   :  { %v10782_v49 = vpop.f32.mrb[132].mxu0 }
 0x8f0   :  { %v4896_v63 = vadd.f32 %v10782_v49, %v14615_v60  ;;  %v4890_v37 = vpop.f32.mrb[133].mxu0  ;;  %v3561_v49 = vld [vmem:[#allocation2 + $0x3a0] sm:$0xff] }
 0x8f1   :  { %v4891_v51 = vadd.f32 %v4890_v37, %v14617_v58 }
 0x8f2   :  { %5725 = vst.msk [vmem:[#allocation2 + $0x8] sm:$0xff] %vm1396_vm3, %v4896_v63 }
 0x8f3   :  { %5724 = vst.msk [vmem:[#allocation2] sm:$0xff] %vm1396_vm3, %v4891_v51  ;;  %v10785_v53 = vpop.f32.mrb[134].mxu0 }
 0x8f4   :  { %v4906_v56 = vadd.f32 %v10785_v53, %v14623_v0  ;;  %v4900_v3 = vpop.f32.mrb[135].mxu0 }
 0x8f5   :  { %v4901_v17 = vadd.f32 %v4900_v3, %v14625_v20 }
 0x8f6   :  { %5727 = vst.msk [vmem:[#allocation2 + $0x18] sm:$0xff] %vm1396_vm3, %v4906_v56 }
 0x8f7   :  { %5726 = vst.msk [vmem:[#allocation2 + $0x10] sm:$0xff] %vm1396_vm3, %v4901_v17  ;;  %v10788_v59 = vpop.f32.mrb[136].mxu0  ;;  %v14672_v17 = vpop.permute.xlu1 %4674 }
 0x8f8   :  { %v4916_v8 = vadd.f32 %v10788_v59, %v14619_v31  ;;  %v4910_v9 = vpop.f32.mrb[137].mxu0 }
 0x8f9   :  { %v10666_v32 = vpop.f32.mrb[112].mxu1  ;;  %v4911_v7 = vadd.f32 %v4910_v9, %v14621_v62 }
 0x8fa   :  { %5729 = vst.msk [vmem:[#allocation2 + $0x28] sm:$0xff] %vm1396_vm3, %v4916_v8  ;;  %v3719_v11 = vadd.f32 %v10666_v32, %v3558_v10  ;;  %v3639_v14 = vpop.f32.mrb[113].mxu1  ;;  %v3564_v8 = vld [vmem:[#allocation2 + $0x3b8] sm:$0xff]  ;;  %v14675_v32 = vpop.permute.xlu0 %4669 }
 0x8fb   :  { %5728 = vst.msk [vmem:[#allocation2 + $0x20] sm:$0xff] %vm1396_vm3, %v4911_v7  ;;  %v3718_v19 = vadd.f32 %v3639_v14, %v3557_v12  ;;  %v10791_v47 = vpop.f32.mrb[138].mxu0 }
 0x8fc   :  { %v9169_v15 = vmul.f32 -1.442695, %v3719_v11  ;;  %v4926_v40 = vadd.f32 %v10791_v47, %v14627_v39  ;;  %v4920_v41 = vpop.f32.mrb[139].mxu0  ;;  %v3563_v11 = vld [vmem:[#allocation2 + $0x3b0] sm:$0xff] }
 0x8fd   :  { %v9168_v16 = vmul.f32 -1.442695, %v3718_v19  ;;  %v10669_v18 = vpop.f32.mrb[114].mxu1  ;;  %v4921_v2 = vadd.f32 %v4920_v41, %v14629_v35 }
 0x8fe   :  { %12027 = vpow2.f32 %v9169_v15  ;;  %5731 = vst.msk [vmem:[#allocation2 + $0x38] sm:$0xff] %vm1396_vm3, %v4926_v40  ;;  %v3721_v30 = vadd.f32 %v10669_v18, %v3560_v46  ;;  %v3649_v13 = vpop.f32.mrb[115].mxu1 }
 0x8ff   :  { %12029 = vpow2.f32 %v9168_v16  ;;  %5730 = vst.msk [vmem:[#allocation2 + $0x30] sm:$0xff] %vm1396_vm3, %v4921_v2  ;;  %v3720_v22 = vadd.f32 %v3649_v13, %v3559_v36  ;;  %v10794_v23 = vpop.f32.mrb[140].mxu0  ;;  %v3566_v2 = vld [vmem:[#allocation2 + $0x3c8] sm:$0xff] }
 0x900   :  { %v9171_v25 = vmul.f32 -1.442695, %v3721_v30  ;;  %v4936_v26 = vadd.f32 %v10794_v23, %v14631_v34  ;;  %v4930_v1 = vpop.f32.mrb[141].mxu0 }
 0x901   :  { %v9170_v29 = vmul.f32 -1.442695, %v3720_v22  ;;  %v10672_v27 = vpop.f32.mrb[116].mxu1  ;;  %v4931_v28 = vadd.f32 %v4930_v1, %v14633_v6 }
 0x902   :  { %12031 = vpow2.f32 %v9171_v25  ;;  %5733 = vst.msk [vmem:[#allocation2 + $0x48] sm:$0xff] %vm1396_vm3, %v4936_v26  ;;  %v3723_v38 = vadd.f32 %v10672_v27, %v3562_v57  ;;  %v3659_v63 = vpop.f32.mrb[117].mxu1  ;;  %v14682_v25 = vpop.permute.xlu1 %4664  ;;  %v3565_v57 = vld [vmem:[#allocation2 + $0x3c0] sm:$0xff] }
 0x903   :  { %12033 = vpow2.f32 %v9170_v29  ;;  %5732 = vst.msk [vmem:[#allocation2 + $0x40] sm:$0xff] %vm1396_vm3, %v4931_v28  ;;  %v3722_v37 = vadd.f32 %v3659_v63, %v3561_v49  ;;  %v10797_v51 = vpop.f32.mrb[142].mxu0  ;;  %v14685_v29 = vpop.permute.xlu0 %4659 }
 0x904   :  { %v9173_v53 = vmul.f32 -1.442695, %v3723_v38  ;;  %v4946_v56 = vadd.f32 %v10797_v51, %v14642_v44  ;;  %v4940_v3 = vpop.f32.mrb[143].mxu0 }
 0x905   :  { %v9172_v59 = vmul.f32 -1.442695, %v3722_v37  ;;  %v10675_v9 = vpop.f32.mrb[118].mxu1  ;;  %v4941_v10 = vadd.f32 %v4940_v3, %v14645_v33  ;;  %v3568_v37 = vld [vmem:[#allocation2 + $0x3d8] sm:$0xff] }
 0x906   :  { %12035 = vpow2.f32 %v9173_v53  ;;  %5735 = vst.msk [vmem:[#allocation2 + $0x58] sm:$0xff] %vm1396_vm3, %v4946_v56  ;;  %v3725_v7 = vadd.f32 %v10675_v9, %v3564_v8  ;;  %v3669_v12 = vpop.f32.mrb[119].mxu1 }
 0x907   :  { %12037 = vpow2.f32 %v9172_v59  ;;  %5734 = vst.msk [vmem:[#allocation2 + $0x50] sm:$0xff] %vm1396_vm3, %v4941_v10  ;;  %v3724_v14 = vadd.f32 %v3669_v12, %v3563_v11  ;;  %v10800_v19 = vpop.f32.mrb[144].mxu0  ;;  %v3567_v10 = vld [vmem:[#allocation2 + $0x3d0] sm:$0xff] }
 0x908   :  { %v12028_v47 = vpop.eup %12027  ;;  %v9175_v15 = vmul.f32 -1.442695, %v3725_v7  ;;  %v4956_v40 = vadd.f32 %v10800_v19, %v14635_v43  ;;  %v4950_v41 = vpop.f32.mrb[145].mxu0 }
 0x909   :  { %v12030_v16 = vpop.eup %12029  ;;  %v3747_v46 = vadd.f32 1.0, %v12028_v47  ;;  %v9174_v18 = vmul.f32 -1.442695, %v3724_v14  ;;  %v10678_v30 = vpop.f32.mrb[120].mxu1  ;;  %v4951_v36 = vadd.f32 %v4950_v41, %v14637_v45 }
 0x90a   :  { %v3746_v13 = vadd.f32 1.0, %v12030_v16  ;;  %12039 = vpow2.f32 %v9175_v15  ;;  %5737 = vst.msk [vmem:[#allocation2 + $0x68] sm:$0xff] %vm1396_vm3, %v4956_v40  ;;  %v3727_v22 = vadd.f32 %v10678_v30, %v3566_v2  ;;  %v3679_v23 = vpop.f32.mrb[121].mxu1  ;;  %v14692_v14 = vpop.permute.xlu1 %4684  ;;  %v3570_v15 = vld [vmem:[#allocation2 + $0x3e8] sm:$0xff]  ;;  %v3569_v2 = vld [vmem:[#allocation2 + $0x3e0] sm:$0xff] }
 0x90b   :  { %12041 = vrcp.f32 %v3747_v46  ;;  %5736 = vst.msk [vmem:[#allocation2 + $0x60] sm:$0xff] %vm1396_vm3, %v4951_v36  ;;  %v10803_v26 = vpop.f32.mrb[146].mxu0  ;;  %v3726_v63 = vadd.f32 %v3679_v23, %v3565_v57  ;;  %v14695_v16 = vpop.permute.xlu0 %4679 }
 0x90c   :  { %v12032_v1 = vpop.eup %12031  ;;  %12043 = vrcp.f32 %v3746_v13  ;;  %v4966_v27 = vadd.f32 %v10803_v26, %v14652_v5  ;;  %v4960_v28 = vpop.f32.mrb[147].mxu0 }
 0x90d   :  { %v12034_v38 = vpop.eup %12033  ;;  %v3749_v49 = vadd.f32 1.0, %v12032_v1  ;;  %12045 = vpow2.f32 %v9174_v18  ;;  %v10681_v51 = vpop.f32.mrb[122].mxu1  ;;  %v4961_v53 = vadd.f32 %v4960_v28, %v14655_v4 }
 0x90e   :  { %v3748_v56 = vadd.f32 1.0, %v12034_v38  ;;  %12047 = vtanh.f32 %v3727_v22  ;;  %5739 = vst.msk [vmem:[#allocation2 + $0x78] sm:$0xff] %vm1396_vm3, %v4966_v27  ;;  %v3729_v3 = vadd.f32 %v10681_v51, %v3568_v37  ;;  %v3689_v59 = vpop.f32.mrb[123].mxu1  ;;  %v3572_v38 = vld [vmem:[#allocation2 + $0x3f8] sm:$0xff] }
 0x90f   :  { %12049 = vrcp.f32 %v3749_v49  ;;  %5738 = vst.msk [vmem:[#allocation2 + $0x70] sm:$0xff] %vm1396_vm3, %v4961_v53  ;;  %v10806_v8 = vpop.f32.mrb[148].mxu0  ;;  %v3728_v47 = vadd.f32 %v3689_v59, %v3567_v10  ;;  %v3571_v53 = vld [vmem:[#allocation2 + $0x3f0] sm:$0xff]  ;;  %v14702_v59 = vpop.permute.xlu1 %4694 }
 0x910   :  { %v12036_v9 = vpop.eup %12035  ;;  %12051 = vrcp.f32 %v3748_v56  ;;  %v4976_v7 = vadd.f32 %v10806_v8, %v14662_v21  ;;  %v4970_v11 = vpop.f32.mrb[149].mxu0 }
 0x911   :  { %v12038_v12 = vpop.eup %12037  ;;  %v3771_v19 = vadd.f32 1.0, %v12036_v9  ;;  %12053 = vtanh.f32 %v3726_v63  ;;  %v10684_v40 = vpop.f32.mrb[124].mxu1  ;;  %v4971_v41 = vadd.f32 %v4970_v11, %v14665_v24 }
 0x912   :  { %v3770_v46 = vadd.f32 1.0, %v12038_v12  ;;  %12055 = vtanh.f32 %v3729_v3  ;;  %5789 = vst.msk [vmem:[#allocation2 + $0x208] sm:$0xff] %vm1396_vm3, %v4976_v7  ;;  %v3731_v18 = vadd.f32 %v10684_v40, %v3570_v15  ;;  %v3699_v30 = vpop.f32.mrb[125].mxu1  ;;  %v14705_v7 = vpop.permute.xlu0 %4689 }
 0x913   :  { %12057 = vrcp.f32 %v3771_v19  ;;  %5788 = vst.msk [vmem:[#allocation2 + $0x200] sm:$0xff] %vm1396_vm3, %v4971_v41  ;;  %v3730_v36 = vadd.f32 %v3699_v30, %v3569_v2  ;;  %v10809_v13 = vpop.f32.mrb[150].mxu0 }
 0x914   :  { %v12040_v22 = vpop.eup %12039  ;;  %12059 = vrcp.f32 %v3770_v46  ;;  %v9177_v23 = vmul.f32 -1.442695, %v3731_v18  ;;  %v4986_v26 = vadd.f32 %v10809_v13, %v14682_v25  ;;  %v4980_v1 = vpop.f32.mrb[151].mxu0 }
 0x915   :  { %v12042_v57 = vpop.eup %12041  ;;  %v3773_v27 = vadd.f32 1.0, %v12040_v22  ;;  %12061 = vtanh.f32 %v3728_v47  ;;  %v9176_v28 = vmul.f32 -1.442695, %v3730_v36  ;;  %v10687_v49 = vpop.f32.mrb[126].mxu1  ;;  %v4981_v63 = vadd.f32 %v4980_v1, %v14685_v29 }
 0x916   :  { %v12044_v37 = vpop.eup %12043  ;;  %12063 = vpow2.f32 %v9177_v23  ;;  %5791 = vst.msk [vmem:[#allocation2 + $0x218] sm:$0xff] %vm1396_vm3, %v4986_v26  ;;  %v3733_v51 = vadd.f32 %v10687_v49, %v3572_v38  ;;  %v3709_v56 = vpop.f32.mrb[127].mxu1 }
 0x917   :  { %v12046_v3 = vpop.eup %12045  ;;  %12065 = vrcp.f32 %v3773_v27  ;;  %5790 = vst.msk [vmem:[#allocation2 + $0x210] sm:$0xff] %vm1396_vm3, %v4981_v63  ;;  %v3732_v8 = vadd.f32 %v3709_v56, %v3571_v53  ;;  %v10812_v9 = vpop.f32.mrb[152].mxu0 }
 0x918   :  { %v12048_v10 = vpop.eup %12047  ;;  %v3772_v11 = vadd.f32 1.0, %v12046_v3  ;;  %12067 = vpow2.f32 %v9176_v28  ;;  %v9179_v12 = vmul.f32 -1.442695, %v3733_v51  ;;  %v4996_v19 = vadd.f32 %v10812_v9, %v14672_v17  ;;  %v4990_v47 = vpop.f32.mrb[153].mxu0 }
 0x919   :  { %v12050_v15 = vpop.eup %12049  ;;  %v3815_v40 = vmul.f32 %v12048_v10, %v12042_v57  ;;  %v9178_v41 = vmul.f32 -1.442695, %v3732_v8  ;;  %v4991_v46 = vadd.f32 %v4990_v47, %v14675_v32  ;;  %v14712_v1 = vpop.permute.xlu1 %4714 }
 0x91a   :  { %v12052_v18 = vpop.eup %12051  ;;  %12069 = vrcp.f32 %v3772_v11  ;;  %5793 = vst.msk [vmem:[#allocation2 + $0x228] sm:$0xff] %vm1396_vm3, %v4996_v19  ;;  %v14715_v38 = vpop.permute.xlu0 %4709 }
 0x91b   :  { %v12054_v2 = vpop.eup %12053  ;;  %12071 = vpow2.f32 %v9179_v12  ;;  %5792 = vst.msk [vmem:[#allocation2 + $0x220] sm:$0xff] %vm1396_vm3, %v4991_v46  ;;  %v10815_v30 = vpop.f32.mrb[154].mxu0 }
 0x91c   :  { %v12056_v36 = vpop.eup %12055  ;;  %v3814_v13 = vmul.f32 %v12054_v2, %v12044_v37  ;;  %12073 = vpow2.f32 %v9178_v41  ;;  %v5006_v22 = vadd.f32 %v10815_v30, %v14692_v14  ;;  %v5000_v23 = vpop.f32.mrb[155].mxu0 }
 0x91d   :  { %v12058_v26 = vpop.eup %12057  ;;  %v3817_v57 = vmul.f32 %v12056_v36, %v12050_v15  ;;  %v5001_v27 = vadd.f32 %v5000_v23, %v14695_v16 }
 0x91e   :  { %v12060_v28 = vpop.eup %12059  ;;  %v3811_v49 = vmul.f32 %v12058_v26, %v14235_v61  ;;  %5795 = vst.msk [vmem:[#allocation2 + $0x238] sm:$0xff] %vm1396_vm3, %v5006_v22  ;;  %v14728_v46 = vpop.permute.xlu0 %4699 }
 0x91f   :  { %v12062_v63 = vpop.eup %12061  ;;  %v3810_v37 = vmul.f32 %v12060_v28, %v14237_v42  ;;  %5794 = vst.msk [vmem:[#allocation2 + $0x230] sm:$0xff] %vm1396_vm3, %v5001_v27  ;;  %v10818_v51 = vpop.f32.mrb[156].mxu0 }
 0x920   :  { %v12064_v53 = vpop.eup %12063  ;;  %v3819_v56 = vadd.f32 %v3815_v40, %v3811_v49  ;;  %v3816_v3 = vmul.f32 %v12062_v63, %v12052_v18  ;;  %v5016_v8 = vadd.f32 %v10818_v51, %v14702_v59  ;;  %v5010_v9 = vpop.f32.mrb[157].mxu0 }
 0x921   :  { %v12066_v10 = vpop.eup %12065  ;;  %v3818_v11 = vadd.f32 %v3814_v13, %v3810_v37  ;;  %v3799_v12 = vadd.f32 1.0, %v12064_v53  ;;  %v5011_v19 = vadd.f32 %v5010_v9, %v14705_v7  ;;  %v14725_v42 = vpop.permute.xlu1 %4704 }
 0x922   :  { %v12068_v61 = vpop.eup %12067  ;;  %v3813_v47 = vmul.f32 %v12066_v10, %v14242_v50  ;;  %12075 = vtanh.f32 %v3819_v56  ;;  %5797 = vst.msk [vmem:[#allocation2 + $0x248] sm:$0xff] %vm1396_vm3, %v5016_v8  ;;  %v14741_v53 = vpop.permute.xlu0 %4719 }
 0x923   :  { %12077 = vtanh.f32 %v3818_v11  ;;  %v3798_v15 = vadd.f32 1.0, %v12068_v61  ;;  %5796 = vst.msk [vmem:[#allocation2 + $0x240] sm:$0xff] %vm1396_vm3, %v5011_v19  ;;  %v10821_v40 = vpop.f32.mrb[158].mxu0  ;;  %15859 = vst [vmem:[#allocation11_spill] sm:$0xff] %v14741_v53 }
 0x924   :  { %v12070_v41 = vpop.eup %12069  ;;  %v3821_v18 = vadd.f32 %v3817_v57, %v3813_v47  ;;  %12079 = vrcp.f32 %v3799_v12  ;;  %v5026_v2 = vadd.f32 %v10821_v40, %v14725_v42  ;;  %v5020_v30 = vpop.f32.mrb[159].mxu0 }
 0x925   :  { %v12072_v36 = vpop.eup %12071  ;;  %v3812_v50 = vmul.f32 %v12070_v41, %v14246_v54  ;;  %12081 = vrcp.f32 %v3798_v15  ;;  %v5021_v13 = vadd.f32 %v5020_v30, %v14728_v46  ;;  %v14738_v63 = vpop.permute.xlu1 %4724 }
 0x926   :  { %v12074_v22 = vpop.eup %12073  ;;  %12083 = vtanh.f32 %v3821_v18  ;;  %v3801_v23 = vadd.f32 1.0, %v12072_v36  ;;  %5799 = vst.msk [vmem:[#allocation2 + $0x258] sm:$0xff] %vm1396_vm3, %v5026_v2  ;;  %15858 = vst [vmem:[#allocation10_spill] sm:$0xff] %v14738_v63 }
 0x927   :  { %v3820_v26 = vadd.f32 %v3816_v3, %v3812_v50  ;;  %v3800_v27 = vadd.f32 1.0, %v12074_v22  ;;  %5798 = vst.msk [vmem:[#allocation2 + $0x250] sm:$0xff] %vm1396_vm3, %v5021_v13  ;;  %v10824_v57 = vpop.f32.mrb[160].mxu0 }
 0x928   :  { %12085 = vrcp.f32 %v3801_v23  ;;  %v5036_v28 = vadd.f32 %v10824_v57, %v14712_v1  ;;  %v5030_v49 = vpop.f32.mrb[161].mxu0 }
 0x929   :  { %12087 = vtanh.f32 %v3820_v26  ;;  %v5031_v54 = vadd.f32 %v5030_v49, %v14715_v38 }
 0x92a   :  { %12089 = vrcp.f32 %v3800_v27  ;;  %5801 = vst.msk [vmem:[#allocation2 + $0x268] sm:$0xff] %vm1396_vm3, %v5036_v28 }
 0x92b   :  { %5800 = vst.msk [vmem:[#allocation2 + $0x260] sm:$0xff] %vm1396_vm3, %v5031_v54  ;;  %v10827_v37 = vpop.f32.mrb[162].mxu0 }
 0x92c   :  { %v12076_v51 = vpop.eup %12075  ;;  %v5046_v56 = vadd.f32 %v10827_v37, %v14738_v63  ;;  %v5040_v3 = vpop.f32.mrb[163].mxu0 }
 0x92d   :  { %v12078_v8 = vpop.eup %12077  ;;  %v5041_v9 = vadd.f32 %v5040_v3, %v14741_v53 }
 0x92e   :  { %v12080_v10 = vpop.eup %12079  ;;  %5803 = vst.msk [vmem:[#allocation2 + $0x278] sm:$0xff] %vm1396_vm3, %v5046_v56 }
 0x92f   :  { %v12082_v11 = vpop.eup %12081  ;;  %v3827_v12 = vmul.f32 %v12080_v10, %v12076_v51  ;;  %5802 = vst.msk [vmem:[#allocation2 + $0x270] sm:$0xff] %vm1396_vm3, %v5041_v9  ;;  %v10886_v19 = vpop.f32.mrb[164].mxu0 }
 0x930   :  { %v12084_v61 = vpop.eup %12083  ;;  %v3826_v47 = vmul.f32 %v12082_v11, %v12078_v8  ;;  %v5346_v15 = vadd.f32 %v10886_v19, %v14615_v60  ;;  %v5340_v40 = vpop.f32.mrb[165].mxu0  ;;  %v3844_v19 = vld [vmem:[#allocation3 + $0x28] sm:$0xff] }
 0x931   :  { %3832 = vst.msk [vmem:[#allocation4 + $0x68] sm:$0xff] %vm1396_vm3, %v3827_v12  ;;  %v5341_v41 = vadd.f32 %v5340_v40, %v14617_v58  ;;  %v3843_v12 = vld [vmem:[#allocation3 + $0x20] sm:$0xff] }
 0x932   :  { %v12086_v18 = vpop.eup %12085  ;;  %3831 = vst.msk [vmem:[#allocation4 + $0x60] sm:$0xff] %vm1396_vm3, %v3826_v47  ;;  %5757 = vst.msk [vmem:[#allocation2 + $0x108] sm:$0xff] %vm1396_vm3, %v5346_v15 }
 0x933   :  { %v12088_v2 = vpop.eup %12087  ;;  %v3829_v30 = vmul.f32 %v12086_v18, %v12084_v61  ;;  %5756 = vst.msk [vmem:[#allocation2 + $0x100] sm:$0xff] %vm1396_vm3, %v5341_v41  ;;  %v10889_v36 = vpop.f32.mrb[166].mxu0  ;;  %v11418_v41 = vpack.c.bf16 %v3844_v19, %v3843_v12  ;;  %v12652_v12 = vld [vmem:[%s15839_s4 + $0x8] sm:$0xff] }
 0x934   :  { %v12090_v50 = vpop.eup %12089  ;;  %v5356_v13 = vadd.f32 %v10889_v36, %v14623_v0  ;;  %v5350_v22 = vpop.f32.mrb[167].mxu0 }
 0x935   :  { %3834 = vst.msk [vmem:[#allocation4 + $0x78] sm:$0xff] %vm1396_vm3, %v3829_v30  ;;  %v3828_v23 = vmul.f32 %v12090_v50, %v12088_v2  ;;  %v5351_v26 = vadd.f32 %v5350_v22, %v14625_v20  ;;  %v3845_v2 = vld [vmem:[#allocation3 + $0x30] sm:$0xff]  ;;  %v3846_v30 = vld [vmem:[#allocation3 + $0x38] sm:$0xff]  ;;  %v12650_v22 = vld [vmem:[%s15840_s5 + $0x8] sm:$0xff] }
 0x936   :  { %5759 = vst.msk [vmem:[#allocation2 + $0x118] sm:$0xff] %vm1396_vm3, %v5356_v13 }
 0x937   :  { %3833 = vst.msk [vmem:[#allocation4 + $0x70] sm:$0xff] %vm1396_vm3, %v3828_v23  ;;  %5758 = vst.msk [vmem:[#allocation2 + $0x110] sm:$0xff] %vm1396_vm3, %v5351_v26  ;;  %v10892_v27 = vpop.f32.mrb[168].mxu0  ;;  %v11422_v23 = vpack.c.bf16 %v3846_v30, %v3845_v2 }
 0x938   :  { %v5366_v57 = vadd.f32 %v10892_v27, %v14619_v31  ;;  %v5360_v28 = vpop.f32.mrb[169].mxu0  ;;  %v3868_v49 = vld [vmem:[#allocation4 + $0x68] sm:$0xff]  ;;  %v3851_v27 = vld [vmem:[#allocation3 + $0x60] sm:$0xff] }
 0x939   :  { %v5361_v54 = vadd.f32 %v5360_v28, %v14621_v62  ;;  %v3867_v37 = vld [vmem:[#allocation4 + $0x60] sm:$0xff] }
 0x93a   :  { %5761 = vst.msk [vmem:[#allocation2 + $0x128] sm:$0xff] %vm1396_vm3, %v5366_v57  ;;  %v11402_v51 = vpack.c.bf16 %v3868_v49, %v3867_v37  ;;  %v3852_v57 = vld [vmem:[#allocation3 + $0x68] sm:$0xff]  ;;  %v12651_v28 = vld [vmem:[%s15839_s4] sm:$0xff] }
 0x93b   :  { %5760 = vst.msk [vmem:[#allocation2 + $0x120] sm:$0xff] %vm1396_vm3, %v5361_v54  ;;  %v10895_v56 = vpop.f32.mrb[170].mxu0 }
 0x93c   :  { %11403 = vmatprep.subr.bf16.mxu1 %v11402_v51  ;;  %v5376_v3 = vadd.f32 %v10895_v56, %v14627_v39  ;;  %v5370_v8 = vpop.f32.mrb[171].mxu0  ;;  %v3870_v9 = vld [vmem:[#allocation4 + $0x78] sm:$0xff] }
 0x93d   :  { %11405 = vmatpush3.bf16.msra.mxu1 %v11402_v51  ;;  %v5371_v10 = vadd.f32 %v5370_v8, %v14629_v35  ;;  %v11434_v51 = vpack.c.bf16 %v3852_v57, %v3851_v27  ;;  %v3854_v8 = vld [vmem:[#allocation3 + $0x78] sm:$0xff] }
 0x93e   :  { %5763 = vst.msk [vmem:[#allocation2 + $0x138] sm:$0xff] %vm1396_vm3, %v5376_v3  ;;  %v3869_v11 = vld [vmem:[#allocation4 + $0x70] sm:$0xff] }
 0x93f   :  { %5762 = vst.msk [vmem:[#allocation2 + $0x130] sm:$0xff] %vm1396_vm3, %v5371_v10  ;;  %v11406_v61 = vpack.c.bf16 %v3870_v9, %v3869_v11  ;;  %v10898_v47 = vpop.f32.mrb[172].mxu0  ;;  %v3853_v3 = vld [vmem:[#allocation3 + $0x70] sm:$0xff] }
 0x940   :  { %v5386_v15 = vadd.f32 %v10898_v47, %v14631_v34  ;;  %v5380_v40 = vpop.f32.mrb[173].mxu0  ;;  %v11438_v19 = vpack.c.bf16 %v3854_v8, %v3853_v3 }
 0x941   :  { %11407 = vmatprep.subr.bf16.mxu1 %v11406_v61  ;;  %v5381_v18 = vadd.f32 %v5380_v40, %v14633_v6 }
 0x942   :  { %11409 = vmatpush3.bf16.msra.mxu1 %v11406_v61  ;;  %5765 = vst.msk [vmem:[#allocation2 + $0x148] sm:$0xff] %vm1396_vm3, %v5386_v15 }
 0x943   :  { %11419 = vmatprep.subr.bf16.mxu1 %v11418_v41  ;;  %5764 = vst.msk [vmem:[#allocation2 + $0x140] sm:$0xff] %vm1396_vm3, %v5381_v18  ;;  %v10901_v36 = vpop.f32.mrb[174].mxu0 }
 0x944   :  { %v5396_v50 = vadd.f32 %v10901_v36, %v14642_v44  ;;  %v5390_v13 = vpop.f32.mrb[175].mxu0 }
 0x945   :  { %10730 = vmatmul.mubr.msk.f32.vlgmr.msra.gmra.mrb[130].mxu1 %vm1573_vm2, %v12650_v22  ;;  %v5391_v26 = vadd.f32 %v5390_v13, %v14645_v33 }
 0x946   :  { %11421 = vmatpush3.bf16.msra.mxu1 %v11418_v41  ;;  %5767 = vst.msk [vmem:[#allocation2 + $0x158] sm:$0xff] %vm1396_vm3, %v5396_v50  ;;  %10751 = vmatprep.mubr.msk.f32.mxu1 %vm1573_vm2, %v12651_v28  ;;  %v14807_v50 = vld [vmem:[%s15842_s7] sm:$0xff] }
 0x947   :  { %11423 = vmatprep.subr.bf16.mxu1 %v11422_v23  ;;  %5766 = vst.msk [vmem:[#allocation2 + $0x150] sm:$0xff] %vm1396_vm3, %v5391_v26  ;;  %v10904_v49 = vpop.f32.mrb[176].mxu0 }
 0x948   :  { %v5406_v54 = vadd.f32 %v10904_v49, %v14635_v43  ;;  %v5400_v37 = vpop.f32.mrb[177].mxu0 }
 0x949   :  { %v5401_v56 = vadd.f32 %v5400_v37, %v14637_v45 }
 0x94a   :  { %11425 = vmatpush3.bf16.msra.mxu1 %v11422_v23  ;;  %5769 = vst.msk [vmem:[#allocation2 + $0x168] sm:$0xff] %vm1396_vm3, %v5406_v54 }
 0x94b   :  { %11435 = vmatprep.subr.bf16.mxu1 %v11434_v51  ;;  %5768 = vst.msk [vmem:[#allocation2 + $0x160] sm:$0xff] %vm1396_vm3, %v5401_v56  ;;  %v10907_v9 = vpop.f32.mrb[178].mxu0 }
 0x94c   :  { %v5416_v10 = vadd.f32 %v10907_v9, %v14652_v5  ;;  %v5410_v11 = vpop.f32.mrb[179].mxu0 }
 0x94d   :  { %10752 = vmatmul.mubr.msk.f32.vlgmr.msra.gmra.mrb[128].mxu1 %vm1573_vm2, %v12652_v12  ;;  %v5411_v61 = vadd.f32 %v5410_v11, %v14655_v4 }
 0x94e   :  { %11437 = vmatpush3.bf16.msra.mxu1 %v11434_v51  ;;  %5771 = vst.msk [vmem:[#allocation2 + $0x178] sm:$0xff] %vm1396_vm3, %v5416_v10  ;;  %10773 = vmatprep.mubr.msk.f32.mxu1 %vm1573_vm2, %v12651_v28 }
 0x94f   :  { %11439 = vmatprep.subr.bf16.mxu1 %v11438_v19  ;;  %5770 = vst.msk [vmem:[#allocation2 + $0x170] sm:$0xff] %vm1396_vm3, %v5411_v61  ;;  %v10910_v47 = vpop.f32.mrb[180].mxu0 }
 0x950   :  { %v5426_v15 = vadd.f32 %v10910_v47, %v14662_v21  ;;  %v5420_v40 = vpop.f32.mrb[181].mxu0 }
 0x951   :  { %v5421_v41 = vadd.f32 %v5420_v40, %v14665_v24 }
 0x952   :  { %11441 = vmatpush3.bf16.msra.mxu1 %v11438_v19  ;;  %5821 = vst.msk [vmem:[#allocation2 + $0x308] sm:$0xff] %vm1396_vm3, %v5426_v15 }
 0x953   :  { %5820 = vst.msk [vmem:[#allocation2 + $0x300] sm:$0xff] %vm1396_vm3, %v5421_v41  ;;  %v10913_v18 = vpop.f32.mrb[182].mxu0 }
 0x954   :  { %v5436_v2 = vadd.f32 %v10913_v18, %v14682_v25  ;;  %v5430_v30 = vpop.f32.mrb[183].mxu0  ;;  %v5853_v18 = vld [vmem:[#allocation2 + $0x8] sm:$0xff] }
 0x955   :  { %10774 = vmatmul.mubr.msk.f32.vlgmr.msra.gmra.mrb[130].mxu1 %vm1573_vm2, %v12652_v12  ;;  %v5431_v36 = vadd.f32 %v5430_v30, %v14685_v29 }
 0x956   :  { %5823 = vst.msk [vmem:[#allocation2 + $0x318] sm:$0xff] %vm1396_vm3, %v5436_v2  ;;  %10832 = vmatprep.mubr.msk.f32.mxu1 %vm4727_vm4, %v14807_v50 }
 0x957   :  { %5822 = vst.msk [vmem:[#allocation2 + $0x310] sm:$0xff] %vm1396_vm3, %v5431_v36  ;;  %v10916_v13 = vpop.f32.mrb[184].mxu0  ;;  %v5852_v36 = vld [vmem:[#allocation2] sm:$0xff] }
 0x958   :  { %v5446_v22 = vadd.f32 %v10916_v13, %v14672_v17  ;;  %v5440_v23 = vpop.f32.mrb[185].mxu0 }
 0x959   :  { %v5441_v26 = vadd.f32 %v5440_v23, %v14675_v32 }
 0x95a   :  { %5825 = vst.msk [vmem:[#allocation2 + $0x328] sm:$0xff] %vm1396_vm3, %v5446_v22 }
 0x95b   :  { %5824 = vst.msk [vmem:[#allocation2 + $0x320] sm:$0xff] %vm1396_vm3, %v5441_v26  ;;  %v10919_v27 = vpop.f32.mrb[186].mxu0 }
 0x95c   :  { %v5456_v57 = vadd.f32 %v10919_v27, %v14692_v14  ;;  %v5450_v28 = vpop.f32.mrb[187].mxu0  ;;  %v5855_v27 = vld [vmem:[#allocation2 + $0x18] sm:$0xff] }
 0x95d   :  { %v5451_v49 = vadd.f32 %v5450_v28, %v14695_v16 }
 0x95e   :  { %5827 = vst.msk [vmem:[#allocation2 + $0x338] sm:$0xff] %vm1396_vm3, %v5456_v57 }
 0x95f   :  { %5826 = vst.msk [vmem:[#allocation2 + $0x330] sm:$0xff] %vm1396_vm3, %v5451_v49  ;;  %v10922_v54 = vpop.f32.mrb[188].mxu0  ;;  %v5854_v49 = vld [vmem:[#allocation2 + $0x10] sm:$0xff] }
 0x960   :  { %v5466_v37 = vadd.f32 %v10922_v54, %v14702_v59  ;;  %v5460_v51 = vpop.f32.mrb[189].mxu0 }
 0x961   :  { %v5461_v56 = vadd.f32 %v5460_v51, %v14705_v7 }
 0x962   :  { %5829 = vst.msk [vmem:[#allocation2 + $0x348] sm:$0xff] %vm1396_vm3, %v5466_v37 }
 0x963   :  { %5828 = vst.msk [vmem:[#allocation2 + $0x340] sm:$0xff] %vm1396_vm3, %v5461_v56  ;;  %v10925_v3 = vpop.f32.mrb[190].mxu0 }
 0x964   :  { %v5476_v8 = vadd.f32 %v10925_v3, %v14725_v42  ;;  %v5470_v9 = vpop.f32.mrb[191].mxu0  ;;  %v5857_v3 = vld [vmem:[#allocation2 + $0x28] sm:$0xff] }
 0x965   :  { %v5471_v10 = vadd.f32 %v5470_v9, %v14728_v46 }
 0x966   :  { %5831 = vst.msk [vmem:[#allocation2 + $0x358] sm:$0xff] %vm1396_vm3, %v5476_v8 }
 0x967   :  { %5830 = vst.msk [vmem:[#allocation2 + $0x350] sm:$0xff] %vm1396_vm3, %v5471_v10  ;;  %v10928_v11 = vpop.f32.mrb[192].mxu0  ;;  %v5856_v10 = vld [vmem:[#allocation2 + $0x20] sm:$0xff] }
 0x968   :  { %v5486_v12 = vadd.f32 %v10928_v11, %v14712_v1  ;;  %v5480_v19 = vpop.f32.mrb[193].mxu0 }
 0x969   :  { %v5481_v61 = vadd.f32 %v5480_v19, %v14715_v38 }
 0x96a   :  { %5833 = vst.msk [vmem:[#allocation2 + $0x368] sm:$0xff] %vm1396_vm3, %v5486_v12 }
 0x96b   :  { %5832 = vst.msk [vmem:[#allocation2 + $0x360] sm:$0xff] %vm1396_vm3, %v5481_v61  ;;  %v10931_v47 = vpop.f32.mrb[194].mxu0 }
 0x96c   :  { %v5496_v15 = vadd.f32 %v10931_v47, %v14738_v63  ;;  %v5490_v40 = vpop.f32.mrb[195].mxu0  ;;  %v5859_v47 = vld [vmem:[#allocation2 + $0x38] sm:$0xff] }
 0x96d   :  { %v5491_v41 = vadd.f32 %v5490_v40, %v14741_v53  ;;  %v12683_v53 = vld [vmem:[%s15842_s7 + $0xf0] sm:$0xff]  ;;  %v12684_v63 = vld [vmem:[%s15842_s7 + $0xf8] sm:$0xff] }
 0x96e   :  { %5835 = vst.msk [vmem:[#allocation2 + $0x378] sm:$0xff] %vm1396_vm3, %v5496_v15 }
 0x96f   :  { %5834 = vst.msk [vmem:[#allocation2 + $0x370] sm:$0xff] %vm1396_vm3, %v5491_v41  ;;  %v10988_v2 = vpop.f32.mrb[196].mxu0  ;;  %v5858_v41 = vld [vmem:[#allocation2 + $0x30] sm:$0xff] }
 0x970   :  { %v6062_v30 = vadd.f32 %v10988_v2, %v5853_v18  ;;  %v5982_v13 = vpop.f32.mrb[197].mxu0 }
 0x971   :  { %v6061_v22 = vadd.f32 %v5982_v13, %v5852_v36 }
 0x972   :  { %v9341_v23 = vmul.f32 -1.442695, %v6062_v30 }
 0x973   :  { %v9340_v26 = vmul.f32 -1.442695, %v6061_v22  ;;  %v10991_v57 = vpop.f32.mrb[198].mxu0 }
 0x974   :  { %12091 = vpow2.f32 %v9341_v23  ;;  %v6064_v28 = vadd.f32 %v10991_v57, %v5855_v27  ;;  %v5992_v54 = vpop.f32.mrb[199].mxu0 }
 0x975   :  { %12093 = vpow2.f32 %v9340_v26  ;;  %v6063_v37 = vadd.f32 %v5992_v54, %v5854_v49  ;;  %v5861_v26 = vld [vmem:[#allocation2 + $0x48] sm:$0xff] }
 0x976   :  { %v9343_v51 = vmul.f32 -1.442695, %v6064_v28 }
 0x977   :  { %v9342_v56 = vmul.f32 -1.442695, %v6063_v37  ;;  %v10994_v8 = vpop.f32.mrb[200].mxu0  ;;  %v5860_v37 = vld [vmem:[#allocation2 + $0x40] sm:$0xff] }
 0x978   :  { %12095 = vpow2.f32 %v9343_v51  ;;  %v6066_v9 = vadd.f32 %v10994_v8, %v5857_v3  ;;  %v6002_v11 = vpop.f32.mrb[201].mxu0  ;;  %v5863_v8 = vld [vmem:[#allocation2 + $0x58] sm:$0xff] }
 0x979   :  { %12097 = vpow2.f32 %v9342_v56  ;;  %v6065_v12 = vadd.f32 %v6002_v11, %v5856_v10 }
 0x97a   :  { %v9345_v19 = vmul.f32 -1.442695, %v6066_v9 }
 0x97b   :  { %v9344_v61 = vmul.f32 -1.442695, %v6065_v12  ;;  %v10997_v15 = vpop.f32.mrb[202].mxu0 }
 0x97c   :  { %12099 = vpow2.f32 %v9345_v19  ;;  %v6068_v40 = vadd.f32 %v10997_v15, %v5859_v47  ;;  %v6012_v18 = vpop.f32.mrb[203].mxu0 }
 0x97d   :  { %12101 = vpow2.f32 %v9344_v61  ;;  %v6067_v2 = vadd.f32 %v6012_v18, %v5858_v41  ;;  %v5862_v61 = vld [vmem:[#allocation2 + $0x50] sm:$0xff]  ;;  %v5865_v41 = vld [vmem:[#allocation2 + $0x68] sm:$0xff] }
 0x97e   :  { %v12092_v30 = vpop.eup %12091  ;;  %v9347_v36 = vmul.f32 -1.442695, %v6068_v40 }
 0x97f   :  { %v12094_v13 = vpop.eup %12093  ;;  %v6090_v22 = vadd.f32 1.0, %v12092_v30  ;;  %v9346_v23 = vmul.f32 -1.442695, %v6067_v2  ;;  %v11000_v27 = vpop.f32.mrb[204].mxu0 }
 0x980   :  { %v6089_v57 = vadd.f32 1.0, %v12094_v13  ;;  %12103 = vpow2.f32 %v9347_v36  ;;  %v6070_v28 = vadd.f32 %v11000_v27, %v5861_v26  ;;  %v6022_v49 = vpop.f32.mrb[205].mxu0  ;;  %v5864_v36 = vld [vmem:[#allocation2 + $0x60] sm:$0xff] }
 0x981   :  { %12105 = vrcp.f32 %v6090_v22  ;;  %v6069_v3 = vadd.f32 %v6022_v49, %v5860_v37  ;;  %v5867_v49 = vld [vmem:[#allocation2 + $0x78] sm:$0xff] }
 0x982   :  { %v12096_v54 = vpop.eup %12095  ;;  %12107 = vrcp.f32 %v6089_v57 }
 0x983   :  { %v12098_v51 = vpop.eup %12097  ;;  %v6092_v56 = vadd.f32 1.0, %v12096_v54  ;;  %12109 = vpow2.f32 %v9346_v23  ;;  %v11003_v9 = vpop.f32.mrb[206].mxu0 }
 0x984   :  { %v6091_v10 = vadd.f32 1.0, %v12098_v51  ;;  %12111 = vtanh.f32 %v6070_v28  ;;  %v6072_v11 = vadd.f32 %v11003_v9, %v5863_v8  ;;  %v6032_v12 = vpop.f32.mrb[207].mxu0 }
 0x985   :  { %12113 = vrcp.f32 %v6092_v56  ;;  %v6071_v40 = vadd.f32 %v6032_v12, %v5862_v61  ;;  %v5866_v56 = vld [vmem:[#allocation2 + $0x70] sm:$0xff] }
 0x986   :  { %v12100_v19 = vpop.eup %12099  ;;  %12115 = vrcp.f32 %v6091_v10 }
 0x987   :  { %v12102_v47 = vpop.eup %12101  ;;  %v6114_v15 = vadd.f32 1.0, %v12100_v19  ;;  %12117 = vtanh.f32 %v6069_v3  ;;  %v11006_v18 = vpop.f32.mrb[208].mxu0 }
 0x988   :  { %v6113_v2 = vadd.f32 1.0, %v12102_v47  ;;  %12119 = vtanh.f32 %v6072_v11  ;;  %v6074_v30 = vadd.f32 %v11006_v18, %v5865_v41  ;;  %v6042_v13 = vpop.f32.mrb[209].mxu0 }
 0x989   :  { %12121 = vrcp.f32 %v6114_v15  ;;  %v6073_v22 = vadd.f32 %v6042_v13, %v5864_v36 }
 0x98a   :  { %v12104_v23 = vpop.eup %12103  ;;  %12123 = vrcp.f32 %v6113_v2  ;;  %v9349_v26 = vmul.f32 -1.442695, %v6074_v30 }
 0x98b   :  { %v12106_v27 = vpop.eup %12105  ;;  %v6116_v57 = vadd.f32 1.0, %v12104_v23  ;;  %12125 = vtanh.f32 %v6071_v40  ;;  %v9348_v28 = vmul.f32 -1.442695, %v6073_v22  ;;  %v11009_v54 = vpop.f32.mrb[210].mxu0 }
 0x98c   :  { %v12108_v37 = vpop.eup %12107  ;;  %12127 = vpow2.f32 %v9349_v26  ;;  %v6076_v51 = vadd.f32 %v11009_v54, %v5867_v49  ;;  %v6052_v3 = vpop.f32.mrb[211].mxu0 }
 0x98d   :  { %v12110_v8 = vpop.eup %12109  ;;  %12129 = vrcp.f32 %v6116_v57  ;;  %v6075_v9 = vadd.f32 %v6052_v3, %v5866_v56 }
 0x98e   :  { %v12112_v10 = vpop.eup %12111  ;;  %v6115_v11 = vadd.f32 1.0, %v12110_v8  ;;  %12131 = vpow2.f32 %v9348_v28  ;;  %v9351_v12 = vmul.f32 -1.442695, %v6076_v51 }
 0x98f   :  { %v12114_v19 = vpop.eup %12113  ;;  %v6158_v61 = vmul.f32 %v12112_v10, %v12106_v27  ;;  %v9350_v47 = vmul.f32 -1.442695, %v6075_v9 }
 0x990   :  { %v12116_v15 = vpop.eup %12115  ;;  %12133 = vrcp.f32 %v6115_v11 }
 0x991   :  { %v12118_v40 = vpop.eup %12117  ;;  %12135 = vpow2.f32 %v9351_v12 }
 0x992   :  { %v12120_v41 = vpop.eup %12119  ;;  %v6157_v18 = vmul.f32 %v12118_v40, %v12108_v37  ;;  %12137 = vpow2.f32 %v9350_v47 }
 0x993   :  { %v12122_v2 = vpop.eup %12121  ;;  %v6160_v30 = vmul.f32 %v12120_v41, %v12114_v19 }
 0x994   :  { %v12124_v36 = vpop.eup %12123  ;;  %v6154_v13 = vmul.f32 0.0, %v12122_v2 }
 0x995   :  { %v12126_v22 = vpop.eup %12125  ;;  %v6153_v23 = vmul.f32 0.0, %v12124_v36 }
 0x996   :  { %v12128_v26 = vpop.eup %12127  ;;  %v14836_v57 = vadd.f32 %v6158_v61, %v6154_v13  ;;  %v6159_v28 = vmul.f32 %v12126_v22, %v12116_v15 }
 0x997   :  { %v12130_v49 = vpop.eup %12129  ;;  %v14838_v27 = vadd.f32 %v6157_v18, %v6153_v23  ;;  %v6142_v54 = vadd.f32 1.0, %v12128_v26 }
 0x998   :  { %15860 = vst [vmem:[#allocation12_spill] sm:$0xff] %v14836_v57  ;;  %v12132_v51 = vpop.eup %12131  ;;  %v6156_v56 = vmul.f32 0.0, %v12130_v49  ;;  %12139 = vtanh.f32 %v14836_v57  ;;  %v12682_v57 = vld [vmem:[%s15842_s7 + $0xe8] sm:$0xff] }
 0x999   :  { %15861 = vst [vmem:[#allocation13_spill] sm:$0xff] %v14838_v27  ;;  %12141 = vtanh.f32 %v14838_v27  ;;  %v6141_v37 = vadd.f32 1.0, %v12132_v51  ;;  %v12681_v27 = vld [vmem:[%s15842_s7 + $0xe0] sm:$0xff] }
 0x99a   :  { %v12134_v3 = vpop.eup %12133  ;;  %v14842_v8 = vadd.f32 %v6160_v30, %v6156_v56  ;;  %12143 = vrcp.f32 %v6142_v54 }
 0x99b   :  { %v12136_v9 = vpop.eup %12135  ;;  %v6155_v10 = vmul.f32 0.0, %v12134_v3  ;;  %12145 = vrcp.f32 %v6141_v37 }
 0x99c   :  { %15862 = vst [vmem:[#allocation14_spill] sm:$0xff] %v14842_v8  ;;  %v12138_v11 = vpop.eup %12137  ;;  %12147 = vtanh.f32 %v14842_v8  ;;  %v6144_v12 = vadd.f32 1.0, %v12136_v9  ;;  %v12680_v8 = vld [vmem:[%s15842_s7 + $0xd8] sm:$0xff] }
 0x99d   :  { %v14845_v19 = vadd.f32 %v6159_v28, %v6155_v10  ;;  %v6143_v61 = vadd.f32 1.0, %v12138_v11 }
 0x99e   :  { %12149 = vrcp.f32 %v6144_v12 }
 0x99f   :  { %15863 = vst [vmem:[#allocation15_spill] sm:$0xff] %v14845_v19  ;;  %12151 = vtanh.f32 %v14845_v19  ;;  %v12679_v19 = vld [vmem:[%s15842_s7 + $0xd0] sm:$0xff] }
 0x9a0   :  { %12153 = vrcp.f32 %v6143_v61  ;;  %v14863_v61 = vld [vmem:[%s15842_s7 + $0x8] sm:$0xff] }
 0x9a2   :  { %v12140_v47 = vpop.eup %12139 }
 0x9a3   :  { %v12142_v15 = vpop.eup %12141 }
 0x9a4   :  { %v12144_v40 = vpop.eup %12143 }
 0x9a5   :  { %v12146_v41 = vpop.eup %12145  ;;  %v6170_v18 = vmul.f32 %v12144_v40, %v12140_v47  ;;  %v14870_v47 = vld [vmem:[%s15842_s7 + $0x10] sm:$0xff]  ;;  %v12658_v40 = vld [vmem:[%s15842_s7 + $0x28] sm:$0xff] }
 0x9a6   :  { %v12148_v2 = vpop.eup %12147  ;;  %v6169_v30 = vmul.f32 %v12146_v41, %v12142_v15  ;;  %v14884_v15 = vld [vmem:[%s15842_s7 + $0x20] sm:$0xff]  ;;  %v12659_v41 = vld [vmem:[%s15842_s7 + $0x30] sm:$0xff] }
 0x9a7   :  { %6174 = vst.msk [vmem:[#allocation5 + $0x8] sm:$0xff] %vm1396_vm3, %v6170_v18 }
 0x9a8   :  { %v12150_v36 = vpop.eup %12149  ;;  %6173 = vst.msk [vmem:[#allocation5] sm:$0xff] %vm1396_vm3, %v6169_v30  ;;  %v14850_v13 = vpack.c.bf16 %v6170_v18, %v6169_v30  ;;  %v12660_v18 = vld [vmem:[%s15842_s7 + $0x38] sm:$0xff]  ;;  %v12662_v30 = vld [vmem:[%s15842_s7 + $0x48] sm:$0xff] }
 0x9a9   :  { %v12152_v22 = vpop.eup %12151  ;;  %v6172_v23 = vmul.f32 %v12150_v36, %v12148_v2  ;;  %v12661_v2 = vld [vmem:[%s15842_s7 + $0x40] sm:$0xff]  ;;  %v12663_v36 = vld [vmem:[%s15842_s7 + $0x50] sm:$0xff] }
 0x9aa   :  { %v12154_v26 = vpop.eup %12153 }
 0x9ab   :  { %v6171_v28 = vmul.f32 %v12154_v26, %v12152_v22  ;;  %6176 = vst.msk [vmem:[#allocation5 + $0x18] sm:$0xff] %vm1396_vm3, %v6172_v23  ;;  %v12664_v22 = vld [vmem:[%s15842_s7 + $0x58] sm:$0xff]  ;;  %v12666_v26 = vld [vmem:[%s15842_s7 + $0x68] sm:$0xff] }
 0x9ad   :  { %6175 = vst.msk [vmem:[#allocation5 + $0x10] sm:$0xff] %vm1396_vm3, %v6171_v28  ;;  %v14854_v49 = vpack.c.bf16 %v6172_v23, %v6171_v28  ;;  %v12665_v23 = vld [vmem:[%s15842_s7 + $0x60] sm:$0xff]  ;;  %v12667_v28 = vld [vmem:[%s15842_s7 + $0x70] sm:$0xff] }
 0xa20   :  { %v10753_v54 = vpop.f32.mrb[128].mxu1 }
 0xa21   :  { %v4498_v51 = vadd.f32 %v10753_v54, %v14248_v55  ;;  %v4324_v56 = vpop.f32.mrb[129].mxu1  ;;  %v12668_v54 = vld [vmem:[%s15842_s7 + $0x78] sm:$0xff] }
 0xa22   :  { %v4497_v37 = vadd.f32 %v14251_v48, %v4324_v56  ;;  %v12670_v56 = vld [vmem:[%s15842_s7 + $0x88] sm:$0xff] }
 0xa24   :  { %v11446_v3 = vpack.c.bf16 %v4498_v51, %v4497_v37  ;;  %v12669_v51 = vld [vmem:[%s15842_s7 + $0x80] sm:$0xff]  ;;  %v12671_v37 = vld [vmem:[%s15842_s7 + $0x90] sm:$0xff] }
 0xa26   :  { %11447 = vmatprep.subr.bf16.mxu1 %v11446_v3 }
 0xa27   :  { %11449 = vmatpush3.bf16.msra.mxu1 %v11446_v3  ;;  %v12672_v3 = vld [vmem:[%s15842_s7 + $0x98] sm:$0xff] }
 0xa28   :  { %v10775_v9 = vpop.f32.mrb[130].mxu1 }
 0xa29   :  { %v4502_v10 = vadd.f32 %v10775_v9, %v14248_v55  ;;  %v4474_v11 = vpop.f32.mrb[131].mxu1  ;;  %v12673_v9 = vld [vmem:[%s15842_s7 + $0xa0] sm:$0xff] }
 0xa2a   :  { %v4501_v12 = vadd.f32 %v14251_v48, %v4474_v11  ;;  %10833 = vmatmul.mubr.msk.f32.vlgmr.msra.gmra.mrb[132].mxu1 %vm4727_vm4, %v14863_v61  ;;  %v14877_v48 = vld [vmem:[%s15842_s7 + $0x18] sm:$0xff]  ;;  %v12675_v11 = vld [vmem:[%s15842_s7 + $0xb0] sm:$0xff] }
 0xa2b   :  { %10835 = vmatprep.mubr.msk.f32.mxu1 %vm4727_vm4, %v14870_v47 }
 0xa2c   :  { %v11454_v55 = vpack.c.bf16 %v4502_v10, %v4501_v12  ;;  %v12674_v10 = vld [vmem:[%s15842_s7 + $0xa8] sm:$0xff]  ;;  %v12676_v12 = vld [vmem:[%s15842_s7 + $0xb8] sm:$0xff] }
 0xa2e   :  { %10836 = vmatmul.mubr.msk.f32.gmra.mrb[134].mxu1 %vm4727_vm4, %v14877_v48  ;;  %11455 = vmatprep.subr.bf16.mxu1 %v11454_v55 }
 0xa2f   :  { %11457 = vmatpush3.bf16.msra.mxu1 %v11454_v55  ;;  %10838 = vmatprep.mubr.msk.f32.mxu1 %vm4727_vm4, %v14884_v15  ;;  %v12677_v55 = vld [vmem:[%s15842_s7 + $0xc0] sm:$0xff] }
 0xa30   :  { %11459 = vmatprep.subr.bf16.mxu1 %v14850_v13 }
 0xa32   :  { %10839 = vmatmul.mubr.msk.f32.gmra.mrb[136].mxu1 %vm4727_vm4, %v12658_v40 }
 0xa33   :  { %10841 = vmatprep.mubr.msk.f32.mxu1 %vm4727_vm4, %v12659_v41 }
 0xa36   :  { %10842 = vmatmul.mubr.msk.f32.gmra.mrb[138].mxu1 %vm4727_vm4, %v12660_v18 }
 0xa37   :  { %10844 = vmatprep.mubr.msk.f32.mxu1 %vm4727_vm4, %v12661_v2 }
 0xa3a   :  { %10845 = vmatmul.mubr.msk.f32.gmra.mrb[140].mxu1 %vm4727_vm4, %v12662_v30 }
 0xa3b   :  { %10847 = vmatprep.mubr.msk.f32.mxu1 %vm4727_vm4, %v12663_v36 }
 0xa3e   :  { %10848 = vmatmul.mubr.msk.f32.gmra.mrb[142].mxu1 %vm4727_vm4, %v12664_v22 }
 0xa3f   :  { %10850 = vmatprep.mubr.msk.f32.mxu1 %vm4727_vm4, %v12665_v23 }
 0xa42   :  { %10851 = vmatmul.mubr.msk.f32.gmra.mrb[144].mxu1 %vm4727_vm4, %v12666_v26 }
 0xa43   :  { %10853 = vmatprep.mubr.msk.f32.mxu1 %vm4727_vm4, %v12667_v28 }
 0xa46   :  { %10854 = vmatmul.mubr.msk.f32.gmra.mrb[146].mxu1 %vm4727_vm4, %v12668_v54 }
 0xa47   :  { %10856 = vmatprep.mubr.msk.f32.mxu1 %vm4727_vm4, %v12669_v51 }
 0xa4a   :  { %10857 = vmatmul.mubr.msk.f32.gmra.mrb[148].mxu1 %vm4727_vm4, %v12670_v56 }
 0xa4b   :  { %10859 = vmatprep.mubr.msk.f32.mxu1 %vm4727_vm4, %v12671_v37 }
 0xa4e   :  { %10860 = vmatmul.mubr.msk.f32.gmra.mrb[150].mxu1 %vm4727_vm4, %v12672_v3 }
 0xa4f   :  { %10862 = vmatprep.mubr.msk.f32.mxu1 %vm4727_vm4, %v12673_v9 }
 0xa52   :  { %10863 = vmatmul.mubr.msk.f32.gmra.mrb[152].mxu1 %vm4727_vm4, %v12674_v10 }
 0xa53   :  { %10865 = vmatprep.mubr.msk.f32.mxu1 %vm4727_vm4, %v12675_v11 }
 0xa56   :  { %10866 = vmatmul.mubr.msk.f32.gmra.mrb[154].mxu1 %vm4727_vm4, %v12676_v12 }
 0xa57   :  { %10868 = vmatprep.mubr.msk.f32.mxu1 %vm4727_vm4, %v12677_v55 }
 0xa5a   :  { %10869 = vmatmul.mubr.msk.f32.gmra.mrb[156].mxu1 %vm4727_vm4, %v12678_v52 }
 0xa5b   :  { %10871 = vmatprep.mubr.msk.f32.mxu1 %vm4727_vm4, %v12679_v19 }
 0xa5e   :  { %10872 = vmatmul.mubr.msk.f32.gmra.mrb[158].mxu1 %vm4727_vm4, %v12680_v8 }
 0xa5f   :  { %10874 = vmatprep.mubr.msk.f32.mxu1 %vm4727_vm4, %v12681_v27 }
 0xa62   :  { %10875 = vmatmul.mubr.msk.f32.gmra.mrb[160].mxu1 %vm4727_vm4, %v12682_v57 }
 0xa63   :  { %10877 = vmatprep.mubr.msk.f32.mxu1 %vm4727_vm4, %v12683_v53 }
 0xa66   :  { %10878 = vmatmul.mubr.msk.f32.gmra.mrb[162].mxu1 %vm4727_vm4, %v12684_v63 }
 0xa67   :  { %10936 = vmatprep.mubr.msk.f32.mxu1 %vm4727_vm4, %v14807_v50  ;;  %v15040_v50 = vld [vmem:[%s15844_s9] sm:$0xff] }
 0xa6a   :  { %10937 = vmatmul.mubr.msk.f32.vlgmr.msra.gmra.mrb[164].mxu1 %vm4727_vm4, %v14863_v61  ;;  %v15110_v61 = vld [vmem:[%s15844_s9 + $0x50] sm:$0xff] }
 0xa6b   :  { %11461 = vmatpush3.bf16.msra.mxu1 %v14850_v13  ;;  %10939 = vmatprep.mubr.msk.f32.mxu1 %vm4727_vm4, %v14870_v47  ;;  %v15096_v13 = vld [vmem:[%s15844_s9 + $0x40] sm:$0xff]  ;;  %v15117_v47 = vld [vmem:[%s15844_s9 + $0x58] sm:$0xff] }
 0xa6c   :  { %11463 = vmatprep.subr.bf16.mxu1 %v14854_v49 }
 0xa6e   :  { %10940 = vmatmul.mubr.msk.f32.gmra.mrb[166].mxu1 %vm4727_vm4, %v14877_v48  ;;  %v15124_v48 = vld [vmem:[%s15844_s9 + $0x60] sm:$0xff] }
 0xa6f   :  { %11465 = vmatpush3.bf16.msra.mxu1 %v14854_v49  ;;  %10942 = vmatprep.mubr.msk.f32.mxu1 %vm4727_vm4, %v14884_v15  ;;  %v15103_v49 = vld [vmem:[%s15844_s9 + $0x48] sm:$0xff] }
 0xa70   :  { %v15131_v15 = vld [vmem:[%s15844_s9 + $0x68] sm:$0xff] }
 0xa72   :  { %10943 = vmatmul.mubr.msk.f32.gmra.mrb[168].mxu1 %vm4727_vm4, %v12658_v40  ;;  %v15138_v40 = vld [vmem:[%s15844_s9 + $0x70] sm:$0xff] }
 0xa73   :  { %10945 = vmatprep.mubr.msk.f32.mxu1 %vm4727_vm4, %v12659_v41  ;;  %v15145_v41 = vld [vmem:[%s15844_s9 + $0x78] sm:$0xff] }
 0xa76   :  { %10946 = vmatmul.mubr.msk.f32.gmra.mrb[170].mxu1 %vm4727_vm4, %v12660_v18 }
 0xa77   :  { %10948 = vmatprep.mubr.msk.f32.mxu1 %vm4727_vm4, %v12661_v2 }
 0xa7a   :  { %10949 = vmatmul.mubr.msk.f32.gmra.mrb[172].mxu1 %vm4727_vm4, %v12662_v30 }
 0xa7b   :  { %10951 = vmatprep.mubr.msk.f32.mxu1 %vm4727_vm4, %v12663_v36 }
 0xa7e   :  { %10952 = vmatmul.mubr.msk.f32.gmra.mrb[174].mxu1 %vm4727_vm4, %v12664_v22 }
 0xa7f   :  { %10954 = vmatprep.mubr.msk.f32.mxu1 %vm4727_vm4, %v12665_v23 }
 0xa82   :  { %10955 = vmatmul.mubr.msk.f32.gmra.mrb[176].mxu1 %vm4727_vm4, %v12666_v26 }
 0xa83   :  { %10957 = vmatprep.mubr.msk.f32.mxu1 %vm4727_vm4, %v12667_v28 }
 0xa86   :  { %10958 = vmatmul.mubr.msk.f32.gmra.mrb[178].mxu1 %vm4727_vm4, %v12668_v54 }
 0xa87   :  { %10960 = vmatprep.mubr.msk.f32.mxu1 %vm4727_vm4, %v12669_v51 }
 0xa8a   :  { %10961 = vmatmul.mubr.msk.f32.gmra.mrb[180].mxu1 %vm4727_vm4, %v12670_v56 }
 0xa8b   :  { %10963 = vmatprep.mubr.msk.f32.mxu1 %vm4727_vm4, %v12671_v37 }
 0xa8e   :  { %10964 = vmatmul.mubr.msk.f32.gmra.mrb[182].mxu1 %vm4727_vm4, %v12672_v3 }
 0xa8f   :  { %10966 = vmatprep.mubr.msk.f32.mxu1 %vm4727_vm4, %v12673_v9 }
 0xa92   :  { %10967 = vmatmul.mubr.msk.f32.gmra.mrb[184].mxu1 %vm4727_vm4, %v12674_v10 }
 0xa93   :  { %10969 = vmatprep.mubr.msk.f32.mxu1 %vm4727_vm4, %v12675_v11 }
 0xa96   :  { %10970 = vmatmul.mubr.msk.f32.gmra.mrb[186].mxu1 %vm4727_vm4, %v12676_v12 }
 0xa97   :  { %10972 = vmatprep.mubr.msk.f32.mxu1 %vm4727_vm4, %v12677_v55 }
 0xa9a   :  { %10973 = vmatmul.mubr.msk.f32.gmra.mrb[188].mxu1 %vm4727_vm4, %v12678_v52  ;;  %v15047_v52 = vld [vmem:[%s15844_s9 + $0x8] sm:$0xff] }
 0xa9b   :  { %10975 = vmatprep.mubr.msk.f32.mxu1 %vm4727_vm4, %v12679_v19  ;;  %v15089_v19 = vld [vmem:[%s15844_s9 + $0x38] sm:$0xff] }
 0xa9e   :  { %10976 = vmatmul.mubr.msk.f32.gmra.mrb[190].mxu1 %vm4727_vm4, %v12680_v8  ;;  %v15082_v8 = vld [vmem:[%s15844_s9 + $0x30] sm:$0xff] }
 0xa9f   :  { %10978 = vmatprep.mubr.msk.f32.mxu1 %vm4727_vm4, %v12681_v27  ;;  %v15075_v27 = vld [vmem:[%s15844_s9 + $0x28] sm:$0xff] }
 0xaa2   :  { %10979 = vmatmul.mubr.msk.f32.gmra.mrb[192].mxu1 %vm4727_vm4, %v12682_v57  ;;  %v15068_v57 = vld [vmem:[%s15844_s9 + $0x20] sm:$0xff] }
 0xaa3   :  { %10981 = vmatprep.mubr.msk.f32.mxu1 %vm4727_vm4, %v12683_v53  ;;  %v15061_v53 = vld [vmem:[%s15844_s9 + $0x18] sm:$0xff] }
 0xaa6   :  { %10982 = vmatmul.mubr.msk.f32.gmra.mrb[194].mxu1 %vm4727_vm4, %v12684_v63  ;;  %v15054_v63 = vld [vmem:[%s15844_s9 + $0x10] sm:$0xff] }
 0xaa7   :  { %11018 = vmatprep.mubr.msk.f32.mxu1 %vm1573_vm2, %v15040_v50 }
 0xaaa   :  { %11019 = vmatmul.mubr.msk.f32.vlgmr.msra.gmra.mrb[196].mxu1 %vm1573_vm2, %v15047_v52 }
 0xaab   :  { %11021 = vmatprep.mubr.msk.f32.mxu1 %vm1573_vm2, %v15054_v63 }
 0xaae   :  { %11022 = vmatmul.mubr.msk.f32.gmra.mrb[198].mxu1 %vm1573_vm2, %v15061_v53 }
 0xaaf   :  { %11024 = vmatprep.mubr.msk.f32.mxu1 %vm1573_vm2, %v15068_v57 }
 0xab2   :  { %11025 = vmatmul.mubr.msk.f32.gmra.mrb[200].mxu1 %vm1573_vm2, %v15075_v27 }
 0xab3   :  { %11027 = vmatprep.mubr.msk.f32.mxu1 %vm1573_vm2, %v15082_v8 }
 0xab6   :  { %11028 = vmatmul.mubr.msk.f32.gmra.mrb[202].mxu1 %vm1573_vm2, %v15089_v19 }
 0xab7   :  { %11030 = vmatprep.mubr.msk.f32.mxu1 %vm1573_vm2, %v15096_v13 }
 0xaba   :  { %11031 = vmatmul.mubr.msk.f32.gmra.mrb[204].mxu1 %vm1573_vm2, %v15103_v49 }
 0xabb   :  { %11033 = vmatprep.mubr.msk.f32.mxu1 %vm1573_vm2, %v15110_v61 }
 0xabe   :  { %11034 = vmatmul.mubr.msk.f32.gmra.mrb[206].mxu1 %vm1573_vm2, %v15117_v47 }
 0xabf   :  { %11036 = vmatprep.mubr.msk.f32.mxu1 %vm1573_vm2, %v15124_v48 }
 0xac2   :  { %11037 = vmatmul.mubr.msk.f32.gmra.mrb[208].mxu1 %vm1573_vm2, %v15131_v15 }
 0xac3   :  { %11039 = vmatprep.mubr.msk.f32.mxu1 %vm1573_vm2, %v15138_v40 }
 0xac6   :  { %11040 = vmatmul.mubr.msk.f32.gmra.mrb[210].mxu1 %vm1573_vm2, %v15145_v41 }
 0xac7   :  { %11082 = vmatprep.mubr.msk.f32.mxu1 %vm1573_vm2, %v15040_v50 }
 0xafd   :  { %v10834_v18 = vpop.f32.mrb[132].mxu1 }
 0xafe   :  { %v5121_v2 = vadd.f32 %v10834_v18, %v14615_v60  ;;  %v5115_v30 = vpop.f32.mrb[133].mxu1 }
 0xaff   :  { %v5116_v36 = vadd.f32 %v5115_v30, %v14617_v58 }
 0xb00   :  { %5741 = vst.msk [vmem:[#allocation2 + $0x88] sm:$0xff] %vm1396_vm3, %v5121_v2 }
 0xb01   :  { %5740 = vst.msk [vmem:[#allocation2 + $0x80] sm:$0xff] %vm1396_vm3, %v5116_v36  ;;  %v10837_v22 = vpop.f32.mrb[134].mxu1 }
 0xb02   :  { %v5131_v23 = vadd.f32 %v10837_v22, %v14623_v0  ;;  %v5125_v26 = vpop.f32.mrb[135].mxu1 }
 0xb03   :  { %v5126_v28 = vadd.f32 %v5125_v26, %v14625_v20 }
 0xb04   :  { %5743 = vst.msk [vmem:[#allocation2 + $0x98] sm:$0xff] %vm1396_vm3, %v5131_v23 }
 0xb05   :  { %5742 = vst.msk [vmem:[#allocation2 + $0x90] sm:$0xff] %vm1396_vm3, %v5126_v28  ;;  %v10840_v54 = vpop.f32.mrb[136].mxu1 }
 0xb06   :  { %v5141_v51 = vadd.f32 %v10840_v54, %v14619_v31  ;;  %v5135_v56 = vpop.f32.mrb[137].mxu1 }
 0xb07   :  { %v5136_v37 = vadd.f32 %v5135_v56, %v14621_v62 }
 0xb08   :  { %5745 = vst.msk [vmem:[#allocation2 + $0xa8] sm:$0xff] %vm1396_vm3, %v5141_v51 }
 0xb09   :  { %5744 = vst.msk [vmem:[#allocation2 + $0xa0] sm:$0xff] %vm1396_vm3, %v5136_v37  ;;  %v10843_v3 = vpop.f32.mrb[138].mxu1 }
 0xb0a   :  { %v5151_v9 = vadd.f32 %v10843_v3, %v14627_v39  ;;  %v5145_v10 = vpop.f32.mrb[139].mxu1 }
 0xb0b   :  { %v5146_v11 = vadd.f32 %v5145_v10, %v14629_v35 }
 0xb0c   :  { %5747 = vst.msk [vmem:[#allocation2 + $0xb8] sm:$0xff] %vm1396_vm3, %v5151_v9 }
 0xb0d   :  { %5746 = vst.msk [vmem:[#allocation2 + $0xb0] sm:$0xff] %vm1396_vm3, %v5146_v11  ;;  %v10846_v12 = vpop.f32.mrb[140].mxu1 }
 0xb0e   :  { %v5161_v55 = vadd.f32 %v10846_v12, %v14631_v34  ;;  %v5155_v18 = vpop.f32.mrb[141].mxu1 }
 0xb0f   :  { %v5156_v2 = vadd.f32 %v5155_v18, %v14633_v6 }
 0xb10   :  { %5749 = vst.msk [vmem:[#allocation2 + $0xc8] sm:$0xff] %vm1396_vm3, %v5161_v55 }
 0xb11   :  { %5748 = vst.msk [vmem:[#allocation2 + $0xc0] sm:$0xff] %vm1396_vm3, %v5156_v2  ;;  %v10849_v30 = vpop.f32.mrb[142].mxu1 }
 0xb12   :  { %v5171_v36 = vadd.f32 %v10849_v30, %v14642_v44  ;;  %v5165_v22 = vpop.f32.mrb[143].mxu1 }
 0xb13   :  { %v5166_v23 = vadd.f32 %v5165_v22, %v14645_v33 }
 0xb14   :  { %5751 = vst.msk [vmem:[#allocation2 + $0xd8] sm:$0xff] %vm1396_vm3, %v5171_v36 }
 0xb15   :  { %5750 = vst.msk [vmem:[#allocation2 + $0xd0] sm:$0xff] %vm1396_vm3, %v5166_v23  ;;  %v10852_v26 = vpop.f32.mrb[144].mxu1 }
 0xb16   :  { %v5181_v28 = vadd.f32 %v10852_v26, %v14635_v43  ;;  %v5175_v54 = vpop.f32.mrb[145].mxu1 }
 0xb17   :  { %v5176_v51 = vadd.f32 %v5175_v54, %v14637_v45 }
 0xb18   :  { %5753 = vst.msk [vmem:[#allocation2 + $0xe8] sm:$0xff] %vm1396_vm3, %v5181_v28 }
 0xb19   :  { %5752 = vst.msk [vmem:[#allocation2 + $0xe0] sm:$0xff] %vm1396_vm3, %v5176_v51  ;;  %v10855_v56 = vpop.f32.mrb[146].mxu1 }
 0xb1a   :  { %v5191_v37 = vadd.f32 %v10855_v56, %v14652_v5  ;;  %v5185_v3 = vpop.f32.mrb[147].mxu1 }
 0xb1b   :  { %v5186_v9 = vadd.f32 %v5185_v3, %v14655_v4 }
 0xb1c   :  { %5755 = vst.msk [vmem:[#allocation2 + $0xf8] sm:$0xff] %vm1396_vm3, %v5191_v37 }
 0xb1d   :  { %5754 = vst.msk [vmem:[#allocation2 + $0xf0] sm:$0xff] %vm1396_vm3, %v5186_v9  ;;  %v10858_v10 = vpop.f32.mrb[148].mxu1 }
 0xb1e   :  { %v5201_v11 = vadd.f32 %v10858_v10, %v14662_v21  ;;  %v5195_v12 = vpop.f32.mrb[149].mxu1 }
 0xb1f   :  { %v5196_v55 = vadd.f32 %v5195_v12, %v14665_v24 }
 0xb20   :  { %5805 = vst.msk [vmem:[#allocation2 + $0x288] sm:$0xff] %vm1396_vm3, %v5201_v11 }
 0xb21   :  { %5804 = vst.msk [vmem:[#allocation2 + $0x280] sm:$0xff] %vm1396_vm3, %v5196_v55  ;;  %v10861_v18 = vpop.f32.mrb[150].mxu1 }
 0xb22   :  { %v5211_v2 = vadd.f32 %v10861_v18, %v14682_v25  ;;  %v5205_v30 = vpop.f32.mrb[151].mxu1 }
 0xb23   :  { %v5206_v36 = vadd.f32 %v5205_v30, %v14685_v29 }
 0xb24   :  { %5807 = vst.msk [vmem:[#allocation2 + $0x298] sm:$0xff] %vm1396_vm3, %v5211_v2 }
 0xb25   :  { %5806 = vst.msk [vmem:[#allocation2 + $0x290] sm:$0xff] %vm1396_vm3, %v5206_v36  ;;  %v10864_v22 = vpop.f32.mrb[152].mxu1 }
 0xb26   :  { %v5221_v23 = vadd.f32 %v10864_v22, %v14672_v17  ;;  %v5215_v26 = vpop.f32.mrb[153].mxu1 }
 0xb27   :  { %v5216_v28 = vadd.f32 %v5215_v26, %v14675_v32 }
 0xb28   :  { %5809 = vst.msk [vmem:[#allocation2 + $0x2a8] sm:$0xff] %vm1396_vm3, %v5221_v23 }
 0xb29   :  { %5808 = vst.msk [vmem:[#allocation2 + $0x2a0] sm:$0xff] %vm1396_vm3, %v5216_v28  ;;  %v10867_v54 = vpop.f32.mrb[154].mxu1  ;;  %v15864_v28 = vld [vmem:[#allocation10_spill] sm:$0xff] }
 0xb2a   :  { %v5231_v51 = vadd.f32 %v10867_v54, %v14692_v14  ;;  %v5225_v56 = vpop.f32.mrb[155].mxu1 }
 0xb2b   :  { %v5226_v37 = vadd.f32 %v5225_v56, %v14695_v16  ;;  %v15865_v56 = vld [vmem:[#allocation11_spill] sm:$0xff] }
 0xb2c   :  { %5811 = vst.msk [vmem:[#allocation2 + $0x2b8] sm:$0xff] %vm1396_vm3, %v5231_v51 }
 0xb2d   :  { %5810 = vst.msk [vmem:[#allocation2 + $0x2b0] sm:$0xff] %vm1396_vm3, %v5226_v37  ;;  %v10870_v3 = vpop.f32.mrb[156].mxu1 }
 0xb2e   :  { %v5241_v9 = vadd.f32 %v10870_v3, %v14702_v59  ;;  %v5235_v10 = vpop.f32.mrb[157].mxu1 }
 0xb2f   :  { %v5236_v11 = vadd.f32 %v5235_v10, %v14705_v7 }
 0xb30   :  { %5813 = vst.msk [vmem:[#allocation2 + $0x2c8] sm:$0xff] %vm1396_vm3, %v5241_v9 }
 0xb31   :  { %5812 = vst.msk [vmem:[#allocation2 + $0x2c0] sm:$0xff] %vm1396_vm3, %v5236_v11  ;;  %v10873_v12 = vpop.f32.mrb[158].mxu1 }
 0xb32   :  { %v5251_v55 = vadd.f32 %v10873_v12, %v14725_v42  ;;  %v5245_v18 = vpop.f32.mrb[159].mxu1 }
 0xb33   :  { %v5246_v2 = vadd.f32 %v5245_v18, %v14728_v46 }
 0xb34   :  { %5815 = vst.msk [vmem:[#allocation2 + $0x2d8] sm:$0xff] %vm1396_vm3, %v5251_v55 }
 0xb35   :  { %5814 = vst.msk [vmem:[#allocation2 + $0x2d0] sm:$0xff] %vm1396_vm3, %v5246_v2  ;;  %v10876_v30 = vpop.f32.mrb[160].mxu1 }
 0xb36   :  { %v5261_v36 = vadd.f32 %v10876_v30, %v14712_v1  ;;  %v5255_v22 = vpop.f32.mrb[161].mxu1 }
 0xb37   :  { %v5256_v23 = vadd.f32 %v5255_v22, %v14715_v38 }
 0xb38   :  { %5817 = vst.msk [vmem:[#allocation2 + $0x2e8] sm:$0xff] %vm1396_vm3, %v5261_v36 }
 0xb39   :  { %5816 = vst.msk [vmem:[#allocation2 + $0x2e0] sm:$0xff] %vm1396_vm3, %v5256_v23  ;;  %v10879_v26 = vpop.f32.mrb[162].mxu1 }
 0xb3a   :  { %v5271_v54 = vadd.f32 %v10879_v26, %v15864_v28  ;;  %v5265_v51 = vpop.f32.mrb[163].mxu1 }
 0xb3b   :  { %v5266_v37 = vadd.f32 %v5265_v51, %v15865_v56 }
 0xb3c   :  { %5819 = vst.msk [vmem:[#allocation2 + $0x2f8] sm:$0xff] %vm1396_vm3, %v5271_v54 }
 0xb3d   :  { %5818 = vst.msk [vmem:[#allocation2 + $0x2f0] sm:$0xff] %vm1396_vm3, %v5266_v37  ;;  %v10938_v3 = vpop.f32.mrb[164].mxu1 }
 0xb3e   :  { %v5571_v9 = vadd.f32 %v10938_v3, %v14615_v60  ;;  %v5565_v10 = vpop.f32.mrb[165].mxu1 }
 0xb3f   :  { %v5566_v11 = vadd.f32 %v5565_v10, %v14617_v58 }
 0xb40   :  { %5773 = vst.msk [vmem:[#allocation2 + $0x188] sm:$0xff] %vm1396_vm3, %v5571_v9 }
 0xb41   :  { %5772 = vst.msk [vmem:[#allocation2 + $0x180] sm:$0xff] %vm1396_vm3, %v5566_v11  ;;  %v10941_v12 = vpop.f32.mrb[166].mxu1 }
 0xb42   :  { %v5581_v55 = vadd.f32 %v10941_v12, %v14623_v0  ;;  %v5575_v18 = vpop.f32.mrb[167].mxu1 }
 0xb43   :  { %v5576_v2 = vadd.f32 %v5575_v18, %v14625_v20 }
 0xb44   :  { %5775 = vst.msk [vmem:[#allocation2 + $0x198] sm:$0xff] %vm1396_vm3, %v5581_v55 }
 0xb45   :  { %5774 = vst.msk [vmem:[#allocation2 + $0x190] sm:$0xff] %vm1396_vm3, %v5576_v2  ;;  %v10944_v30 = vpop.f32.mrb[168].mxu1 }
 0xb46   :  { %v5591_v60 = vadd.f32 %v10944_v30, %v14619_v31  ;;  %v5585_v36 = vpop.f32.mrb[169].mxu1 }
 0xb47   :  { %v5586_v58 = vadd.f32 %v5585_v36, %v14621_v62 }
 0xb48   :  { %5777 = vst.msk [vmem:[#allocation2 + $0x1a8] sm:$0xff] %vm1396_vm3, %v5591_v60 }
 0xb49   :  { %5776 = vst.msk [vmem:[#allocation2 + $0x1a0] sm:$0xff] %vm1396_vm3, %v5586_v58  ;;  %v10947_v22 = vpop.f32.mrb[170].mxu1 }
 0xb4a   :  { %v5601_v0 = vadd.f32 %v10947_v22, %v14627_v39  ;;  %v5595_v23 = vpop.f32.mrb[171].mxu1 }
 0xb4b   :  { %v5596_v20 = vadd.f32 %v5595_v23, %v14629_v35 }
 0xb4c   :  { %5779 = vst.msk [vmem:[#allocation2 + $0x1b8] sm:$0xff] %vm1396_vm3, %v5601_v0 }
 0xb4d   :  { %5778 = vst.msk [vmem:[#allocation2 + $0x1b0] sm:$0xff] %vm1396_vm3, %v5596_v20  ;;  %v10950_v26 = vpop.f32.mrb[172].mxu1 }
 0xb4e   :  { %v5611_v31 = vadd.f32 %v10950_v26, %v14631_v34  ;;  %v5605_v54 = vpop.f32.mrb[173].mxu1 }
 0xb4f   :  { %v5606_v62 = vadd.f32 %v5605_v54, %v14633_v6 }
 0xb50   :  { %5781 = vst.msk [vmem:[#allocation2 + $0x1c8] sm:$0xff] %vm1396_vm3, %v5611_v31 }
 0xb51   :  { %5780 = vst.msk [vmem:[#allocation2 + $0x1c0] sm:$0xff] %vm1396_vm3, %v5606_v62  ;;  %v10953_v51 = vpop.f32.mrb[174].mxu1 }
 0xb52   :  { %v5621_v39 = vadd.f32 %v10953_v51, %v14642_v44  ;;  %v5615_v37 = vpop.f32.mrb[175].mxu1  ;;  %v6178_v51 = vld [vmem:[#allocation2 + $0x208] sm:$0xff] }
 0xb53   :  { %v5616_v35 = vadd.f32 %v5615_v37, %v14645_v33  ;;  %v6177_v37 = vld [vmem:[#allocation2 + $0x200] sm:$0xff] }
 0xb54   :  { %5783 = vst.msk [vmem:[#allocation2 + $0x1d8] sm:$0xff] %vm1396_vm3, %v5621_v39 }
 0xb55   :  { %5782 = vst.msk [vmem:[#allocation2 + $0x1d0] sm:$0xff] %vm1396_vm3, %v5616_v35  ;;  %v10956_v3 = vpop.f32.mrb[176].mxu1 }
 0xb56   :  { %v5631_v34 = vadd.f32 %v10956_v3, %v14635_v43  ;;  %v5625_v9 = vpop.f32.mrb[177].mxu1 }
 0xb57   :  { %v5626_v6 = vadd.f32 %v5625_v9, %v14637_v45  ;;  %v6180_v9 = vld [vmem:[#allocation2 + $0x218] sm:$0xff] }
 0xb58   :  { %5785 = vst.msk [vmem:[#allocation2 + $0x1e8] sm:$0xff] %vm1396_vm3, %v5631_v34 }
 0xb59   :  { %5784 = vst.msk [vmem:[#allocation2 + $0x1e0] sm:$0xff] %vm1396_vm3, %v5626_v6  ;;  %v10959_v10 = vpop.f32.mrb[178].mxu1 }
 0xb5a   :  { %v5641_v44 = vadd.f32 %v10959_v10, %v14652_v5  ;;  %v5635_v11 = vpop.f32.mrb[179].mxu1 }
 0xb5b   :  { %v5636_v33 = vadd.f32 %v5635_v11, %v14655_v4 }
 0xb5c   :  { %5787 = vst.msk [vmem:[#allocation2 + $0x1f8] sm:$0xff] %vm1396_vm3, %v5641_v44 }
 0xb5d   :  { %5786 = vst.msk [vmem:[#allocation2 + $0x1f0] sm:$0xff] %vm1396_vm3, %v5636_v33  ;;  %v10962_v12 = vpop.f32.mrb[180].mxu1 }
 0xb5e   :  { %v5651_v43 = vadd.f32 %v10962_v12, %v14662_v21  ;;  %v5645_v55 = vpop.f32.mrb[181].mxu1  ;;  %v6182_v12 = vld [vmem:[#allocation2 + $0x228] sm:$0xff] }
 0xb5f   :  { %v5646_v45 = vadd.f32 %v5645_v55, %v14665_v24 }
 0xb60   :  { %5837 = vst.msk [vmem:[#allocation2 + $0x388] sm:$0xff] %vm1396_vm3, %v5651_v43 }
 0xb61   :  { %5836 = vst.msk [vmem:[#allocation2 + $0x380] sm:$0xff] %vm1396_vm3, %v5646_v45  ;;  %v10965_v18 = vpop.f32.mrb[182].mxu1  ;;  %v6181_v45 = vld [vmem:[#allocation2 + $0x220] sm:$0xff] }
 0xb62   :  { %v5661_v5 = vadd.f32 %v10965_v18, %v14682_v25  ;;  %v5655_v2 = vpop.f32.mrb[183].mxu1 }
 0xb63   :  { %v5656_v4 = vadd.f32 %v5655_v2, %v14685_v29 }
 0xb64   :  { %5839 = vst.msk [vmem:[#allocation2 + $0x398] sm:$0xff] %vm1396_vm3, %v5661_v5 }
 0xb65   :  { %5838 = vst.msk [vmem:[#allocation2 + $0x390] sm:$0xff] %vm1396_vm3, %v5656_v4  ;;  %v10968_v30 = vpop.f32.mrb[184].mxu1 }
 0xb66   :  { %v5671_v21 = vadd.f32 %v10968_v30, %v14672_v17  ;;  %v5665_v60 = vpop.f32.mrb[185].mxu1  ;;  %v6184_v30 = vld [vmem:[#allocation2 + $0x238] sm:$0xff] }
 0xb67   :  { %v5666_v24 = vadd.f32 %v5665_v60, %v14675_v32 }
 0xb68   :  { %5841 = vst.msk [vmem:[#allocation2 + $0x3a8] sm:$0xff] %vm1396_vm3, %v5671_v21 }
 0xb69   :  { %5840 = vst.msk [vmem:[#allocation2 + $0x3a0] sm:$0xff] %vm1396_vm3, %v5666_v24  ;;  %v10971_v36 = vpop.f32.mrb[186].mxu1  ;;  %v6183_v24 = vld [vmem:[#allocation2 + $0x230] sm:$0xff] }
 0xb6a   :  { %v5681_v25 = vadd.f32 %v10971_v36, %v14692_v14  ;;  %v5675_v58 = vpop.f32.mrb[187].mxu1 }
 0xb6b   :  { %v5676_v29 = vadd.f32 %v5675_v58, %v14695_v16 }
 0xb6c   :  { %5843 = vst.msk [vmem:[#allocation2 + $0x3b8] sm:$0xff] %vm1396_vm3, %v5681_v25 }
 0xb6d   :  { %5842 = vst.msk [vmem:[#allocation2 + $0x3b0] sm:$0xff] %vm1396_vm3, %v5676_v29  ;;  %v10974_v22 = vpop.f32.mrb[188].mxu1 }
 0xb6e   :  { %v5691_v17 = vadd.f32 %v10974_v22, %v14702_v59  ;;  %v5685_v0 = vpop.f32.mrb[189].mxu1 }
 0xb6f   :  { %v5686_v32 = vadd.f32 %v5685_v0, %v14705_v7 }
 0xb70   :  { %5845 = vst.msk [vmem:[#allocation2 + $0x3c8] sm:$0xff] %vm1396_vm3, %v5691_v17 }
 0xb71   :  { %5844 = vst.msk [vmem:[#allocation2 + $0x3c0] sm:$0xff] %vm1396_vm3, %v5686_v32  ;;  %v10977_v23 = vpop.f32.mrb[190].mxu1  ;;  %v6186_v32 = vld [vmem:[#allocation2 + $0x248] sm:$0xff] }
 0xb72   :  { %v5701_v14 = vadd.f32 %v10977_v23, %v14725_v42  ;;  %v5695_v20 = vpop.f32.mrb[191].mxu1 }
 0xb73   :  { %v5696_v16 = vadd.f32 %v5695_v20, %v14728_v46 }
 0xb74   :  { %5847 = vst.msk [vmem:[#allocation2 + $0x3d8] sm:$0xff] %vm1396_vm3, %v5701_v14 }
 0xb75   :  { %5846 = vst.msk [vmem:[#allocation2 + $0x3d0] sm:$0xff] %vm1396_vm3, %v5696_v16  ;;  %v10980_v26 = vpop.f32.mrb[192].mxu1 }
 0xb76   :  { %v5711_v59 = vadd.f32 %v10980_v26, %v14712_v1  ;;  %v5705_v31 = vpop.f32.mrb[193].mxu1 }
 0xb77   :  { %v5706_v7 = vadd.f32 %v5705_v31, %v14715_v38 }
 0xb78   :  { %5849 = vst.msk [vmem:[#allocation2 + $0x3e8] sm:$0xff] %vm1396_vm3, %v5711_v59  ;;  %v6185_v59 = vld [vmem:[#allocation2 + $0x240] sm:$0xff] }
 0xb79   :  { %5848 = vst.msk [vmem:[#allocation2 + $0x3e0] sm:$0xff] %vm1396_vm3, %v5706_v7  ;;  %v10983_v54 = vpop.f32.mrb[194].mxu1 }
 0xb7a   :  { %v5721_v42 = vadd.f32 %v10983_v54, %v15864_v28  ;;  %v5715_v62 = vpop.f32.mrb[195].mxu1  ;;  %v6179_v28 = vld [vmem:[#allocation2 + $0x210] sm:$0xff] }
 0xb7b   :  { %v5716_v46 = vadd.f32 %v5715_v62, %v15865_v56 }
 0xb7c   :  { %5851 = vst.msk [vmem:[#allocation2 + $0x3f8] sm:$0xff] %vm1396_vm3, %v5721_v42  ;;  %v6188_v42 = vld [vmem:[#allocation2 + $0x258] sm:$0xff] }
 0xb7d   :  { %5850 = vst.msk [vmem:[#allocation2 + $0x3f0] sm:$0xff] %vm1396_vm3, %v5716_v46  ;;  %v11020_v39 = vpop.f32.mrb[196].mxu1 }
 0xb7e   :  { %v6339_v1 = vadd.f32 %v11020_v39, %v6178_v51  ;;  %v6259_v35 = vpop.f32.mrb[197].mxu1 }
 0xb7f   :  { %v6338_v38 = vadd.f32 %v6259_v35, %v6177_v37  ;;  %v6187_v37 = vld [vmem:[#allocation2 + $0x250] sm:$0xff] }
 0xb80   :  { %v9369_v3 = vmul.f32 -1.442695, %v6339_v1 }
 0xb81   :  { %v9368_v34 = vmul.f32 -1.442695, %v6338_v38  ;;  %v11023_v6 = vpop.f32.mrb[198].mxu1 }
 0xb82   :  { %12155 = vpow2.f32 %v9369_v3  ;;  %v6341_v10 = vadd.f32 %v11023_v6, %v6180_v9  ;;  %v6269_v44 = vpop.f32.mrb[199].mxu1 }
 0xb83   :  { %12157 = vpow2.f32 %v9368_v34  ;;  %v6340_v56 = vadd.f32 %v6269_v44, %v6179_v28  ;;  %v6190_v34 = vld [vmem:[#allocation2 + $0x268] sm:$0xff]  ;;  %v6189_v28 = vld [vmem:[#allocation2 + $0x260] sm:$0xff] }
 0xb84   :  { %v9371_v11 = vmul.f32 -1.442695, %v6341_v10 }
 0xb85   :  { %v9370_v33 = vmul.f32 -1.442695, %v6340_v56  ;;  %v11026_v43 = vpop.f32.mrb[200].mxu1 }
 0xb86   :  { %12159 = vpow2.f32 %v9371_v11  ;;  %v6343_v55 = vadd.f32 %v11026_v43, %v6182_v12  ;;  %v6279_v18 = vpop.f32.mrb[201].mxu1 }
 0xb87   :  { %12161 = vpow2.f32 %v9370_v33  ;;  %v6342_v5 = vadd.f32 %v6279_v18, %v6181_v45  ;;  %v6192_v45 = vld [vmem:[#allocation2 + $0x278] sm:$0xff] }
 0xb88   :  { %v9373_v2 = vmul.f32 -1.442695, %v6343_v55 }
 0xb89   :  { %v9372_v4 = vmul.f32 -1.442695, %v6342_v5  ;;  %v11029_v21 = vpop.f32.mrb[202].mxu1 }
 0xb8a   :  { %12163 = vpow2.f32 %v9373_v2  ;;  %v6345_v60 = vadd.f32 %v11029_v21, %v6184_v30  ;;  %v6289_v36 = vpop.f32.mrb[203].mxu1 }
 0xb8b   :  { %12165 = vpow2.f32 %v9372_v4  ;;  %v6344_v25 = vadd.f32 %v6289_v36, %v6183_v24  ;;  %v6191_v4 = vld [vmem:[#allocation2 + $0x270] sm:$0xff] }
 0xb8c   :  { %v12156_v58 = vpop.eup %12155  ;;  %v9375_v29 = vmul.f32 -1.442695, %v6345_v60 }
 0xb8d   :  { %v12158_v22 = vpop.eup %12157  ;;  %v6367_v17 = vadd.f32 1.0, %v12156_v58  ;;  %v9374_v0 = vmul.f32 -1.442695, %v6344_v25  ;;  %v11032_v23 = vpop.f32.mrb[204].mxu1 }
 0xb8e   :  { %v6366_v14 = vadd.f32 1.0, %v12158_v22  ;;  %12167 = vpow2.f32 %v9375_v29  ;;  %v6347_v20 = vadd.f32 %v11032_v23, %v6186_v32  ;;  %v6299_v16 = vpop.f32.mrb[205].mxu1 }
 0xb8f   :  { %12169 = vrcp.f32 %v6367_v17  ;;  %v6346_v54 = vadd.f32 %v6299_v16, %v6185_v59 }
 0xb90   :  { %v12160_v26 = vpop.eup %12159  ;;  %12171 = vrcp.f32 %v6366_v14 }
 0xb91   :  { %v12162_v31 = vpop.eup %12161  ;;  %v6369_v7 = vadd.f32 1.0, %v12160_v26  ;;  %12173 = vpow2.f32 %v9374_v0  ;;  %v11035_v62 = vpop.f32.mrb[206].mxu1  ;;  %v15866_v26 = vld [vmem:[#allocation12_spill] sm:$0xff] }
 0xb92   :  { %v6368_v46 = vadd.f32 1.0, %v12162_v31  ;;  %12175 = vtanh.f32 %v6347_v20  ;;  %v6349_v51 = vadd.f32 %v11035_v62, %v6188_v42  ;;  %v6309_v39 = vpop.f32.mrb[207].mxu1 }
 0xb93   :  { %12177 = vrcp.f32 %v6369_v7  ;;  %v6348_v3 = vadd.f32 %v6309_v39, %v6187_v37  ;;  %v15867_v7 = vld [vmem:[#allocation13_spill] sm:$0xff] }
 0xb94   :  { %v12164_v1 = vpop.eup %12163  ;;  %12179 = vrcp.f32 %v6368_v46 }
 0xb95   :  { %v12166_v35 = vpop.eup %12165  ;;  %v6391_v38 = vadd.f32 1.0, %v12164_v1  ;;  %12181 = vtanh.f32 %v6346_v54  ;;  %v11038_v9 = vpop.f32.mrb[208].mxu1 }
 0xb96   :  { %v6390_v6 = vadd.f32 1.0, %v12166_v35  ;;  %12183 = vtanh.f32 %v6349_v51  ;;  %v6351_v10 = vadd.f32 %v11038_v9, %v6190_v34  ;;  %v6319_v44 = vpop.f32.mrb[209].mxu1  ;;  %v15868_v35 = vld [vmem:[#allocation14_spill] sm:$0xff] }
 0xb97   :  { %12185 = vrcp.f32 %v6391_v38  ;;  %v6350_v56 = vadd.f32 %v6319_v44, %v6189_v28 }
 0xb98   :  { %v12168_v11 = vpop.eup %12167  ;;  %12187 = vrcp.f32 %v6390_v6  ;;  %v9377_v33 = vmul.f32 -1.442695, %v6351_v10  ;;  %v15869_v10 = vld [vmem:[#allocation15_spill] sm:$0xff] }
 0xb99   :  { %v12170_v12 = vpop.eup %12169  ;;  %v6393_v43 = vadd.f32 1.0, %v12168_v11  ;;  %12189 = vtanh.f32 %v6348_v3  ;;  %v9376_v55 = vmul.f32 -1.442695, %v6350_v56  ;;  %v11041_v18 = vpop.f32.mrb[210].mxu1 }
 0xb9a   :  { %v12172_v5 = vpop.eup %12171  ;;  %12191 = vpow2.f32 %v9377_v33  ;;  %v6353_v2 = vadd.f32 %v11041_v18, %v6192_v45  ;;  %v6329_v30 = vpop.f32.mrb[211].mxu1 }
 0xb9b   :  { %v12174_v21 = vpop.eup %12173  ;;  %12193 = vrcp.f32 %v6393_v43  ;;  %v6352_v60 = vadd.f32 %v6329_v30, %v6191_v4 }
 0xb9c   :  { %v12176_v24 = vpop.eup %12175  ;;  %v6392_v36 = vadd.f32 1.0, %v12174_v21  ;;  %12195 = vpow2.f32 %v9376_v55  ;;  %v9379_v25 = vmul.f32 -1.442695, %v6353_v2 }
 0xb9d   :  { %v12178_v58 = vpop.eup %12177  ;;  %v6435_v29 = vmul.f32 %v12176_v24, %v12170_v12  ;;  %v9378_v22 = vmul.f32 -1.442695, %v6352_v60 }
 0xb9e   :  { %v12180_v17 = vpop.eup %12179  ;;  %12197 = vrcp.f32 %v6392_v36 }
 0xb9f   :  { %v12182_v0 = vpop.eup %12181  ;;  %12199 = vpow2.f32 %v9379_v25 }
 0xba0   :  { %v12184_v32 = vpop.eup %12183  ;;  %v6434_v23 = vmul.f32 %v12182_v0, %v12172_v5  ;;  %12201 = vpow2.f32 %v9378_v22 }
 0xba1   :  { %v12186_v14 = vpop.eup %12185  ;;  %v6437_v20 = vmul.f32 %v12184_v32, %v12178_v58 }
 0xba2   :  { %v12188_v16 = vpop.eup %12187  ;;  %v6431_v59 = vmul.f32 %v12186_v14, %v15866_v26 }
 0xba3   :  { %v12190_v31 = vpop.eup %12189  ;;  %v6430_v54 = vmul.f32 %v12188_v16, %v15867_v7 }
 0xba4   :  { %v12192_v42 = vpop.eup %12191  ;;  %v15281_v62 = vadd.f32 %v6435_v29, %v6431_v59  ;;  %v6436_v46 = vmul.f32 %v12190_v31, %v12180_v17  ;;  %v6459_v29 = vld [vmem:[#allocation2 + $0xa8] sm:$0xff]  ;;  %v6458_v17 = vld [vmem:[#allocation2 + $0xa0] sm:$0xff]  ;;  %v6460_v59 = vld [vmem:[#allocation2 + $0xb0] sm:$0xff] }
 0xba5   :  { %v12194_v51 = vpop.eup %12193  ;;  %v15283_v39 = vadd.f32 %v6434_v23, %v6430_v54  ;;  %v6419_v1 = vadd.f32 1.0, %v12192_v42 }
 0xba6   :  { %v12196_v37 = vpop.eup %12195  ;;  %v6433_v38 = vmul.f32 %v12194_v51, %v15868_v35  ;;  %12203 = vtanh.f32 %v15281_v62 }
 0xba7   :  { %12205 = vtanh.f32 %v15283_v39  ;;  %v6418_v3 = vadd.f32 1.0, %v12196_v37  ;;  %v6463_v37 = vld [vmem:[#allocation2 + $0xc8] sm:$0xff] }
 0xba8   :  { %v12198_v34 = vpop.eup %12197  ;;  %v15288_v9 = vadd.f32 %v6437_v20, %v6433_v38  ;;  %12207 = vrcp.f32 %v6419_v1  ;;  %v6461_v20 = vld [vmem:[#allocation2 + $0xb8] sm:$0xff] }
 0xba9   :  { %v12200_v6 = vpop.eup %12199  ;;  %v6432_v28 = vmul.f32 %v12198_v34, %v15869_v10  ;;  %12209 = vrcp.f32 %v6418_v3  ;;  %v6462_v10 = vld [vmem:[#allocation2 + $0xc0] sm:$0xff] }
 0xbaa   :  { %v12202_v44 = vpop.eup %12201  ;;  %12211 = vtanh.f32 %v15288_v9  ;;  %v6421_v56 = vadd.f32 1.0, %v12200_v6 }
 0xbab   :  { %v15292_v11 = vadd.f32 %v6436_v46, %v6432_v28  ;;  %v6420_v33 = vadd.f32 1.0, %v12202_v44 }
 0xbac   :  { %12213 = vrcp.f32 %v6421_v56 }
 0xbad   :  { %12215 = vtanh.f32 %v15292_v11 }
 0xbae   :  { %12217 = vrcp.f32 %v6420_v33  ;;  %v6465_v33 = vld [vmem:[#allocation2 + $0xd8] sm:$0xff] }
 0xbb0   :  { %v12204_v12 = vpop.eup %12203 }
 0xbb1   :  { %v12206_v43 = vpop.eup %12205 }
 0xbb2   :  { %v12208_v55 = vpop.eup %12207 }
 0xbb3   :  { %v12210_v45 = vpop.eup %12209  ;;  %v6447_v18 = vmul.f32 %v12208_v55, %v12204_v12 }
 0xbb4   :  { %v12212_v5 = vpop.eup %12211  ;;  %v6446_v2 = vmul.f32 %v12210_v45, %v12206_v43 }
 0xbb5   :  { %6451 = vst.msk [vmem:[#allocation6 + $0x8] sm:$0xff] %vm1396_vm3, %v6447_v18 }
 0xbb6   :  { %v12214_v4 = vpop.eup %12213  ;;  %6450 = vst.msk [vmem:[#allocation6] sm:$0xff] %vm1396_vm3, %v6446_v2  ;;  %v11466_v30 = vpack.c.bf16 %v6447_v18, %v6446_v2 }
 0xbb7   :  { %v12216_v21 = vpop.eup %12215  ;;  %v6449_v60 = vmul.f32 %v12214_v4, %v12212_v5  ;;  %v6464_v5 = vld [vmem:[#allocation2 + $0xd0] sm:$0xff] }
 0xbb8   :  { %v12218_v24 = vpop.eup %12217  ;;  %11467 = vmatprep.subr.bf16.mxu0 %v11466_v30 }
 0xbb9   :  { %11469 = vmatpush3.bf16.msra.mxu0 %v11466_v30  ;;  %v6448_v36 = vmul.f32 %v12218_v24, %v12216_v21  ;;  %6453 = vst.msk [vmem:[#allocation6 + $0x18] sm:$0xff] %vm1396_vm3, %v6449_v60  ;;  %v6467_v21 = vld [vmem:[#allocation2 + $0xe8] sm:$0xff] }
 0xbbb   :  { %6452 = vst.msk [vmem:[#allocation6 + $0x10] sm:$0xff] %vm1396_vm3, %v6448_v36  ;;  %v11470_v25 = vpack.c.bf16 %v6449_v60, %v6448_v36 }
 0xbbd   :  { %11471 = vmatprep.subr.bf16.mxu0 %v11470_v25 }
 0xbbe   :  { %11473 = vmatpush3.bf16.msra.mxu0 %v11470_v25  ;;  %v6466_v25 = vld [vmem:[#allocation2 + $0xe0] sm:$0xff] }
 0xbc1   :  { %11051 = vmatmul.mubr.msk.f32.vlgmr.msra.gmra.mrb[212].mxu0 %vm1573_vm2, %v15047_v52  ;;  %v6455_v52 = vld [vmem:[#allocation2 + $0x88] sm:$0xff] }
 0xbc2   :  { %11053 = vmatprep.mubr.msk.f32.mxu0 %vm1573_vm2, %v15054_v63 }
 0xbc5   :  { %11054 = vmatmul.mubr.msk.f32.gmra.mrb[214].mxu0 %vm1573_vm2, %v15061_v53 }
 0xbc6   :  { %11056 = vmatprep.mubr.msk.f32.mxu0 %vm1573_vm2, %v15068_v57  ;;  %v6454_v57 = vld [vmem:[#allocation2 + $0x80] sm:$0xff] }
 0xbc9   :  { %11057 = vmatmul.mubr.msk.f32.gmra.mrb[216].mxu0 %vm1573_vm2, %v15075_v27 }
 0xbca   :  { %11059 = vmatprep.mubr.msk.f32.mxu0 %vm1573_vm2, %v15082_v8 }
 0xbcd   :  { %11060 = vmatmul.mubr.msk.f32.gmra.mrb[218].mxu0 %vm1573_vm2, %v15089_v19 }
 0xbce   :  { %11062 = vmatprep.mubr.msk.f32.mxu0 %vm1573_vm2, %v15096_v13 }
 0xbd1   :  { %11063 = vmatmul.mubr.msk.f32.gmra.mrb[220].mxu0 %vm1573_vm2, %v15103_v49  ;;  %v6457_v49 = vld [vmem:[#allocation2 + $0x98] sm:$0xff] }
 0xbd2   :  { %11065 = vmatprep.mubr.msk.f32.mxu0 %vm1573_vm2, %v15110_v61 }
 0xbd5   :  { %11066 = vmatmul.mubr.msk.f32.gmra.mrb[222].mxu0 %vm1573_vm2, %v15117_v47 }
 0xbd6   :  { %11068 = vmatprep.mubr.msk.f32.mxu0 %vm1573_vm2, %v15124_v48  ;;  %v6456_v48 = vld [vmem:[#allocation2 + $0x90] sm:$0xff] }
 0xbd9   :  { %11069 = vmatmul.mubr.msk.f32.gmra.mrb[224].mxu0 %vm1573_vm2, %v15131_v15 }
 0xbda   :  { %11071 = vmatprep.mubr.msk.f32.mxu0 %vm1573_vm2, %v15138_v40 }
 0xbdd   :  { %11072 = vmatmul.mubr.msk.f32.gmra.mrb[226].mxu0 %vm1573_vm2, %v15145_v41 }
 0xbde   :  { %11114 = vmatprep.mubr.msk.f32.mxu0 %vm1573_vm2, %v15040_v50 }
 0xc94   :  { %v11052_v63 = vpop.f32.mrb[212].mxu0 }
 0xc95   :  { %v6616_v53 = vadd.f32 %v11052_v63, %v6455_v52  ;;  %v6536_v27 = vpop.f32.mrb[213].mxu0 }
 0xc96   :  { %v6615_v8 = vadd.f32 %v6536_v27, %v6454_v57 }
 0xc97   :  { %v9397_v19 = vmul.f32 -1.442695, %v6616_v53 }
 0xc98   :  { %v9396_v13 = vmul.f32 -1.442695, %v6615_v8  ;;  %v11055_v61 = vpop.f32.mrb[214].mxu0 }
 0xc99   :  { %12219 = vpow2.f32 %v9397_v19  ;;  %v6618_v47 = vadd.f32 %v11055_v61, %v6457_v49  ;;  %v6546_v15 = vpop.f32.mrb[215].mxu0 }
 0xc9a   :  { %12221 = vpow2.f32 %v9396_v13  ;;  %v6617_v40 = vadd.f32 %v6546_v15, %v6456_v48  ;;  %v6469_v13 = vld [vmem:[#allocation2 + $0xf8] sm:$0xff]  ;;  %v6468_v48 = vld [vmem:[#allocation2 + $0xf0] sm:$0xff] }
 0xc9b   :  { %v9399_v41 = vmul.f32 -1.442695, %v6618_v47 }
 0xc9c   :  { %v9398_v58 = vmul.f32 -1.442695, %v6617_v40  ;;  %v11058_v50 = vpop.f32.mrb[216].mxu0 }
 0xc9d   :  { %12223 = vpow2.f32 %v9399_v41  ;;  %v6620_v22 = vadd.f32 %v11058_v50, %v6459_v29  ;;  %v6556_v0 = vpop.f32.mrb[217].mxu0 }
 0xc9e   :  { %12225 = vpow2.f32 %v9398_v58  ;;  %v6619_v32 = vadd.f32 %v6556_v0, %v6458_v17 }
 0xc9f   :  { %v9401_v23 = vmul.f32 -1.442695, %v6620_v22 }
 0xca0   :  { %v9400_v14 = vmul.f32 -1.442695, %v6619_v32  ;;  %v11061_v16 = vpop.f32.mrb[218].mxu0 }
 0xca1   :  { %12227 = vpow2.f32 %v9401_v23  ;;  %v6622_v26 = vadd.f32 %v11061_v16, %v6461_v20  ;;  %v6566_v31 = vpop.f32.mrb[219].mxu0 }
 0xca2   :  { %12229 = vpow2.f32 %v9400_v14  ;;  %v6621_v7 = vadd.f32 %v6566_v31, %v6460_v59 }
 0xca3   :  { %v12220_v54 = vpop.eup %12219  ;;  %v9403_v42 = vmul.f32 -1.442695, %v6622_v26 }
 0xca4   :  { %v12222_v46 = vpop.eup %12221  ;;  %v6644_v51 = vadd.f32 1.0, %v12220_v54  ;;  %v9402_v1 = vmul.f32 -1.442695, %v6621_v7  ;;  %v11064_v35 = vpop.f32.mrb[220].mxu0 }
 0xca5   :  { %v6643_v38 = vadd.f32 1.0, %v12222_v46  ;;  %12231 = vpow2.f32 %v9403_v42  ;;  %v6624_v3 = vadd.f32 %v11064_v35, %v6463_v37  ;;  %v6576_v34 = vpop.f32.mrb[221].mxu0 }
 0xca6   :  { %12233 = vrcp.f32 %v6644_v51  ;;  %v6623_v56 = vadd.f32 %v6576_v34, %v6462_v10 }
 0xca7   :  { %v12224_v6 = vpop.eup %12223  ;;  %12235 = vrcp.f32 %v6643_v38 }
 0xca8   :  { %v12226_v28 = vpop.eup %12225  ;;  %v6646_v44 = vadd.f32 1.0, %v12224_v6  ;;  %12237 = vpow2.f32 %v9402_v1  ;;  %v11067_v12 = vpop.f32.mrb[222].mxu0 }
 0xca9   :  { %v6645_v43 = vadd.f32 1.0, %v12226_v28  ;;  %12239 = vtanh.f32 %v6624_v3  ;;  %v6626_v55 = vadd.f32 %v11067_v12, %v6465_v33  ;;  %v6586_v45 = vpop.f32.mrb[223].mxu0 }
 0xcaa   :  { %12241 = vrcp.f32 %v6646_v44  ;;  %v6625_v30 = vadd.f32 %v6586_v45, %v6464_v5 }
 0xcab   :  { %v12228_v18 = vpop.eup %12227  ;;  %12243 = vrcp.f32 %v6645_v43 }
 0xcac   :  { %v12230_v2 = vpop.eup %12229  ;;  %v6668_v4 = vadd.f32 1.0, %v12228_v18  ;;  %12245 = vtanh.f32 %v6623_v56  ;;  %v11070_v60 = vpop.f32.mrb[224].mxu0 }
 0xcad   :  { %v6667_v24 = vadd.f32 1.0, %v12230_v2  ;;  %12247 = vtanh.f32 %v6626_v55  ;;  %v6628_v36 = vadd.f32 %v11070_v60, %v6467_v21  ;;  %v6596_v52 = vpop.f32.mrb[225].mxu0 }
 0xcae   :  { %12249 = vrcp.f32 %v6668_v4  ;;  %v6627_v63 = vadd.f32 %v6596_v52, %v6466_v25  ;;  %v15361_v25 = vld [vmem:[%s15844_s9 + $0x10] sm:$0xff]  ;;  %v15368_v52 = vld [vmem:[%s15844_s9 + $0x18] sm:$0xff] }
 0xcaf   :  { %v12232_v53 = vpop.eup %12231  ;;  %12251 = vrcp.f32 %v6667_v24  ;;  %v9405_v57 = vmul.f32 -1.442695, %v6628_v36  ;;  %v15354_v36 = vld [vmem:[%s15844_s9 + $0x8] sm:$0xff] }
 0xcb0   :  { %v12234_v27 = vpop.eup %12233  ;;  %v6670_v8 = vadd.f32 1.0, %v12232_v53  ;;  %12253 = vtanh.f32 %v6625_v30  ;;  %v9404_v19 = vmul.f32 -1.442695, %v6627_v63  ;;  %v11073_v49 = vpop.f32.mrb[226].mxu0  ;;  %v15375_v63 = vld [vmem:[%s15844_s9 + $0x20] sm:$0xff]  ;;  %v15382_v53 = vld [vmem:[%s15844_s9 + $0x28] sm:$0xff] }
 0xcb1   :  { %v12236_v61 = vpop.eup %12235  ;;  %12255 = vpow2.f32 %v9405_v57  ;;  %v6630_v47 = vadd.f32 %v11073_v49, %v6469_v13  ;;  %v6606_v15 = vpop.f32.mrb[227].mxu0  ;;  %v15389_v57 = vld [vmem:[%s15844_s9 + $0x30] sm:$0xff]  ;;  %v15424_v49 = vld [vmem:[%s15844_s9 + $0x58] sm:$0xff] }
 0xcb2   :  { %v12238_v40 = vpop.eup %12237  ;;  %12257 = vrcp.f32 %v6670_v8  ;;  %v6629_v41 = vadd.f32 %v6606_v15, %v6468_v48  ;;  %v15403_v8 = vld [vmem:[%s15844_s9 + $0x40] sm:$0xff]  ;;  %v15417_v13 = vld [vmem:[%s15844_s9 + $0x50] sm:$0xff]  ;;  %v15452_v15 = vld [vmem:[%s15844_s9 + $0x78] sm:$0xff] }
 0xcb3   :  { %v12240_v58 = vpop.eup %12239  ;;  %v6669_v29 = vadd.f32 1.0, %v12238_v40  ;;  %12259 = vpow2.f32 %v9404_v19  ;;  %v9407_v50 = vmul.f32 -1.442695, %v6630_v47  ;;  %v15410_v19 = vld [vmem:[%s15844_s9 + $0x48] sm:$0xff]  ;;  %v15445_v48 = vld [vmem:[%s15844_s9 + $0x70] sm:$0xff]  ;;  %v15459_v40 = vld [vmem:[%s15844_s9] sm:$0xff] }
 0xcb4   :  { %v12242_v22 = vpop.eup %12241  ;;  %v6712_v17 = vmul.f32 %v12240_v58, %v12234_v27  ;;  %v9406_v0 = vmul.f32 -1.442695, %v6629_v41  ;;  %v15396_v27 = vld [vmem:[%s15844_s9 + $0x38] sm:$0xff]  ;;  %v15438_v47 = vld [vmem:[%s15844_s9 + $0x68] sm:$0xff] }
 0xcb5   :  { %v12244_v32 = vpop.eup %12243  ;;  %12261 = vrcp.f32 %v6669_v29  ;;  %v6733_v41 = vld [vmem:[#allocation2 + $0x288] sm:$0xff] }
 0xcb6   :  { %v12246_v23 = vpop.eup %12245  ;;  %12263 = vpow2.f32 %v9407_v50  ;;  %v6732_v50 = vld [vmem:[#allocation2 + $0x280] sm:$0xff] }
 0xcb7   :  { %v12248_v14 = vpop.eup %12247  ;;  %v6711_v20 = vmul.f32 %v12246_v23, %v12236_v61  ;;  %12265 = vpow2.f32 %v9406_v0  ;;  %v15431_v61 = vld [vmem:[%s15844_s9 + $0x60] sm:$0xff]  ;;  %v6735_v23 = vld [vmem:[#allocation2 + $0x298] sm:$0xff] }
 0xcb8   :  { %v12250_v16 = vpop.eup %12249  ;;  %v6714_v26 = vmul.f32 %v12248_v14, %v12242_v22 }
 0xcb9   :  { %v12252_v59 = vpop.eup %12251  ;;  %v6708_v31 = vmul.f32 %v12250_v16, %v15281_v62  ;;  %v6734_v16 = vld [vmem:[#allocation2 + $0x290] sm:$0xff] }
 0xcba   :  { %v12254_v7 = vpop.eup %12253  ;;  %v6707_v54 = vmul.f32 %v12252_v59, %v15283_v39 }
 0xcbb   :  { %v12256_v42 = vpop.eup %12255  ;;  %v15333_v46 = vadd.f32 %v6712_v17, %v6708_v31  ;;  %v6713_v51 = vmul.f32 %v12254_v7, %v12244_v32 }
 0xcbc   :  { %v12258_v1 = vpop.eup %12257  ;;  %v15335_v37 = vadd.f32 %v6711_v20, %v6707_v54  ;;  %v6696_v35 = vadd.f32 1.0, %v12256_v42  ;;  %v6737_v54 = vld [vmem:[#allocation2 + $0x2a8] sm:$0xff] }
 0xcbd   :  { %v12260_v38 = vpop.eup %12259  ;;  %v6710_v3 = vmul.f32 %v12258_v1, %v15288_v9  ;;  %12267 = vtanh.f32 %v15333_v46  ;;  %v6736_v1 = vld [vmem:[#allocation2 + $0x2a0] sm:$0xff] }
 0xcbe   :  { %12269 = vtanh.f32 %v15335_v37  ;;  %v6695_v34 = vadd.f32 1.0, %v12260_v38 }
 0xcbf   :  { %v12262_v62 = vpop.eup %12261  ;;  %v15340_v6 = vadd.f32 %v6714_v26, %v6710_v3  ;;  %12271 = vrcp.f32 %v6696_v35 }
 0xcc0   :  { %v12264_v39 = vpop.eup %12263  ;;  %v6709_v10 = vmul.f32 %v12262_v62, %v15292_v11  ;;  %12273 = vrcp.f32 %v6695_v34  ;;  %v6739_v62 = vld [vmem:[#allocation2 + $0x2b8] sm:$0xff] }
 0xcc1   :  { %v12266_v28 = vpop.eup %12265  ;;  %12275 = vtanh.f32 %v15340_v6  ;;  %v6698_v44 = vadd.f32 1.0, %v12264_v39 }
 0xcc2   :  { %v15344_v56 = vadd.f32 %v6713_v51, %v6709_v10  ;;  %v6697_v9 = vadd.f32 1.0, %v12266_v28  ;;  %v6738_v28 = vld [vmem:[#allocation2 + $0x2b0] sm:$0xff] }
 0xcc3   :  { %12277 = vrcp.f32 %v6698_v44 }
 0xcc4   :  { %12279 = vtanh.f32 %v15344_v56 }
 0xcc5   :  { %12281 = vrcp.f32 %v6697_v9 }
 0xcc7   :  { %v12268_v33 = vpop.eup %12267 }
 0xcc8   :  { %v12270_v12 = vpop.eup %12269 }
 0xcc9   :  { %v12272_v43 = vpop.eup %12271 }
 0xcca   :  { %v12274_v55 = vpop.eup %12273  ;;  %v6724_v45 = vmul.f32 %v12272_v43, %v12268_v33 }
 0xccb   :  { %v12276_v18 = vpop.eup %12275  ;;  %v6723_v5 = vmul.f32 %v12274_v55, %v12270_v12 }
 0xccc   :  { %6729 = vst.msk [vmem:[#allocation5 + $0x28] sm:$0xff] %vm1396_vm3, %v6724_v45 }
 0xccd   :  { %v12278_v11 = vpop.eup %12277  ;;  %6728 = vst.msk [vmem:[#allocation5 + $0x20] sm:$0xff] %vm1396_vm3, %v6723_v5  ;;  %v11474_v2 = vpack.c.bf16 %v6724_v45, %v6723_v5 }
 0xcce   :  { %v12280_v4 = vpop.eup %12279  ;;  %v6726_v30 = vmul.f32 %v12278_v11, %v12276_v18  ;;  %v6741_v18 = vld [vmem:[#allocation2 + $0x2c8] sm:$0xff] }
 0xccf   :  { %v12282_v21 = vpop.eup %12281  ;;  %11475 = vmatprep.subr.bf16.mxu1 %v11474_v2 }
 0xcd0   :  { %11477 = vmatpush3.bf16.msra.mxu1 %v11474_v2  ;;  %v6725_v60 = vmul.f32 %v12282_v21, %v12280_v4  ;;  %6731 = vst.msk [vmem:[#allocation5 + $0x38] sm:$0xff] %vm1396_vm3, %v6726_v30  ;;  %v6740_v21 = vld [vmem:[#allocation2 + $0x2c0] sm:$0xff] }
 0xcd2   :  { %6730 = vst.msk [vmem:[#allocation5 + $0x30] sm:$0xff] %vm1396_vm3, %v6725_v60  ;;  %v11478_v24 = vpack.c.bf16 %v6726_v30, %v6725_v60 }
 0xcd4   :  { %11479 = vmatprep.subr.bf16.mxu1 %v11478_v24 }
 0xcd5   :  { %11481 = vmatpush3.bf16.msra.mxu1 %v11478_v24 }
 0xcd8   :  { %11083 = vmatmul.mubr.msk.f32.vlgmr.msra.gmra.mrb[212].mxu1 %vm1573_vm2, %v15354_v36 }
 0xcd9   :  { %11085 = vmatprep.mubr.msk.f32.mxu1 %vm1573_vm2, %v15361_v25 }
 0xcdc   :  { %11086 = vmatmul.mubr.msk.f32.gmra.mrb[214].mxu1 %vm1573_vm2, %v15368_v52 }
 0xcdd   :  { %11088 = vmatprep.mubr.msk.f32.mxu1 %vm1573_vm2, %v15375_v63 }
 0xce0   :  { %11089 = vmatmul.mubr.msk.f32.gmra.mrb[216].mxu1 %vm1573_vm2, %v15382_v53 }
 0xce1   :  { %11091 = vmatprep.mubr.msk.f32.mxu1 %vm1573_vm2, %v15389_v57 }
 0xce4   :  { %11092 = vmatmul.mubr.msk.f32.gmra.mrb[218].mxu1 %vm1573_vm2, %v15396_v27 }
 0xce5   :  { %11094 = vmatprep.mubr.msk.f32.mxu1 %vm1573_vm2, %v15403_v8 }
 0xce8   :  { %11095 = vmatmul.mubr.msk.f32.gmra.mrb[220].mxu1 %vm1573_vm2, %v15410_v19 }
 0xce9   :  { %11097 = vmatprep.mubr.msk.f32.mxu1 %vm1573_vm2, %v15417_v13 }
 0xcec   :  { %11098 = vmatmul.mubr.msk.f32.gmra.mrb[222].mxu1 %vm1573_vm2, %v15424_v49 }
 0xced   :  { %11100 = vmatprep.mubr.msk.f32.mxu1 %vm1573_vm2, %v15431_v61 }
 0xcf0   :  { %11101 = vmatmul.mubr.msk.f32.gmra.mrb[224].mxu1 %vm1573_vm2, %v15438_v47 }
 0xcf1   :  { %11103 = vmatprep.mubr.msk.f32.mxu1 %vm1573_vm2, %v15445_v48 }
 0xcf4   :  { %11104 = vmatmul.mubr.msk.f32.gmra.mrb[226].mxu1 %vm1573_vm2, %v15452_v15 }
 0xcf5   :  { %11146 = vmatprep.mubr.msk.f32.mxu1 %vm1573_vm2, %v15459_v40 }
 0xdab   :  { %v11084_v58 = vpop.f32.mrb[212].mxu1 }
 0xdac   :  { %v6894_v29 = vadd.f32 %v11084_v58, %v6733_v41  ;;  %v6814_v22 = vpop.f32.mrb[213].mxu1  ;;  %v6743_v58 = vld [vmem:[#allocation2 + $0x2d8] sm:$0xff] }
 0xdad   :  { %v6893_v17 = vadd.f32 %v6814_v22, %v6732_v50 }
 0xdae   :  { %v9425_v0 = vmul.f32 -1.442695, %v6894_v29 }
 0xdaf   :  { %v9424_v32 = vmul.f32 -1.442695, %v6893_v17  ;;  %v11087_v14 = vpop.f32.mrb[214].mxu1 }
 0xdb0   :  { %12283 = vpow2.f32 %v9425_v0  ;;  %v6896_v20 = vadd.f32 %v11087_v14, %v6735_v23  ;;  %v6824_v26 = vpop.f32.mrb[215].mxu1 }
 0xdb1   :  { %12285 = vpow2.f32 %v9424_v32  ;;  %v6895_v59 = vadd.f32 %v6824_v26, %v6734_v16  ;;  %v6742_v32 = vld [vmem:[#allocation2 + $0x2d0] sm:$0xff]  ;;  %v6745_v16 = vld [vmem:[#allocation2 + $0x2e8] sm:$0xff] }
 0xdb2   :  { %v9427_v31 = vmul.f32 -1.442695, %v6896_v20 }
 0xdb3   :  { %v9426_v7 = vmul.f32 -1.442695, %v6895_v59  ;;  %v11090_v42 = vpop.f32.mrb[216].mxu1 }
 0xdb4   :  { %12287 = vpow2.f32 %v9427_v31  ;;  %v6898_v51 = vadd.f32 %v11090_v42, %v6737_v54  ;;  %v6834_v35 = vpop.f32.mrb[217].mxu1 }
 0xdb5   :  { %12289 = vpow2.f32 %v9426_v7  ;;  %v6897_v38 = vadd.f32 %v6834_v35, %v6736_v1  ;;  %v6744_v7 = vld [vmem:[#allocation2 + $0x2e0] sm:$0xff] }
 0xdb6   :  { %v9429_v3 = vmul.f32 -1.442695, %v6898_v51 }
 0xdb7   :  { %v9428_v34 = vmul.f32 -1.442695, %v6897_v38  ;;  %v11093_v39 = vpop.f32.mrb[218].mxu1 }
 0xdb8   :  { %12291 = vpow2.f32 %v9429_v3  ;;  %v6900_v10 = vadd.f32 %v11093_v39, %v6739_v62  ;;  %v6844_v44 = vpop.f32.mrb[219].mxu1 }
 0xdb9   :  { %12293 = vpow2.f32 %v9428_v34  ;;  %v6899_v9 = vadd.f32 %v6844_v44, %v6738_v28  ;;  %v6747_v34 = vld [vmem:[#allocation2 + $0x2f8] sm:$0xff]  ;;  %v6746_v28 = vld [vmem:[#allocation2 + $0x2f0] sm:$0xff] }
 0xdba   :  { %v12284_v33 = vpop.eup %12283  ;;  %v9431_v12 = vmul.f32 -1.442695, %v6900_v10 }
 0xdbb   :  { %v12286_v43 = vpop.eup %12285  ;;  %v6922_v55 = vadd.f32 1.0, %v12284_v33  ;;  %v9430_v45 = vmul.f32 -1.442695, %v6899_v9  ;;  %v11096_v5 = vpop.f32.mrb[220].mxu1 }
 0xdbc   :  { %v6921_v11 = vadd.f32 1.0, %v12286_v43  ;;  %12295 = vpow2.f32 %v9431_v12  ;;  %v6902_v2 = vadd.f32 %v11096_v5, %v6741_v18  ;;  %v6854_v4 = vpop.f32.mrb[221].mxu1 }
 0xdbd   :  { %12297 = vrcp.f32 %v6922_v55  ;;  %v6901_v41 = vadd.f32 %v6854_v4, %v6740_v21 }
 0xdbe   :  { %v12288_v30 = vpop.eup %12287  ;;  %12299 = vrcp.f32 %v6921_v11 }
 0xdbf   :  { %v12290_v60 = vpop.eup %12289  ;;  %v6924_v24 = vadd.f32 1.0, %v12288_v30  ;;  %12301 = vpow2.f32 %v9430_v45  ;;  %v11099_v29 = vpop.f32.mrb[222].mxu1 }
 0xdc0   :  { %v6923_v50 = vadd.f32 1.0, %v12290_v60  ;;  %12303 = vtanh.f32 %v6902_v2  ;;  %v6904_v22 = vadd.f32 %v11099_v29, %v6743_v58  ;;  %v6864_v17 = vpop.f32.mrb[223].mxu1 }
 0xdc1   :  { %12305 = vrcp.f32 %v6924_v24  ;;  %v6903_v20 = vadd.f32 %v6864_v17, %v6742_v32 }
 0xdc2   :  { %v12292_v0 = vpop.eup %12291  ;;  %12307 = vrcp.f32 %v6923_v50 }
 0xdc3   :  { %v12294_v23 = vpop.eup %12293  ;;  %v6946_v14 = vadd.f32 1.0, %v12292_v0  ;;  %12309 = vtanh.f32 %v6901_v41  ;;  %v11102_v26 = vpop.f32.mrb[224].mxu1 }
 0xdc4   :  { %v6945_v59 = vadd.f32 1.0, %v12294_v23  ;;  %12311 = vtanh.f32 %v6904_v22  ;;  %v6906_v31 = vadd.f32 %v11102_v26, %v6745_v16  ;;  %v6874_v54 = vpop.f32.mrb[225].mxu1 }
 0xdc5   :  { %12313 = vrcp.f32 %v6946_v14  ;;  %v6905_v42 = vadd.f32 %v6874_v54, %v6744_v7 }
 0xdc6   :  { %v12296_v51 = vpop.eup %12295  ;;  %12315 = vrcp.f32 %v6945_v59  ;;  %v9433_v1 = vmul.f32 -1.442695, %v6906_v31 }
 0xdc7   :  { %v12298_v35 = vpop.eup %12297  ;;  %v6948_v38 = vadd.f32 1.0, %v12296_v51  ;;  %12317 = vtanh.f32 %v6903_v20  ;;  %v9432_v3 = vmul.f32 -1.442695, %v6905_v42  ;;  %v11105_v62 = vpop.f32.mrb[226].mxu1 }
 0xdc8   :  { %v12300_v39 = vpop.eup %12299  ;;  %12319 = vpow2.f32 %v9433_v1  ;;  %v6908_v10 = vadd.f32 %v11105_v62, %v6747_v34  ;;  %v6884_v44 = vpop.f32.mrb[227].mxu1 }
 0xdc9   :  { %v12302_v9 = vpop.eup %12301  ;;  %12321 = vrcp.f32 %v6948_v38  ;;  %v6907_v33 = vadd.f32 %v6884_v44, %v6746_v28 }
 0xdca   :  { %v12304_v12 = vpop.eup %12303  ;;  %v6947_v43 = vadd.f32 1.0, %v12302_v9  ;;  %12323 = vpow2.f32 %v9432_v3  ;;  %v9435_v55 = vmul.f32 -1.442695, %v6908_v10 }
 0xdcb   :  { %v12306_v45 = vpop.eup %12305  ;;  %v6990_v18 = vmul.f32 %v12304_v12, %v12298_v35  ;;  %v9434_v5 = vmul.f32 -1.442695, %v6907_v33  ;;  %v7011_v33 = vld [vmem:[#allocation2 + $0x108] sm:$0xff] }
 0xdcc   :  { %v12308_v11 = vpop.eup %12307  ;;  %12325 = vrcp.f32 %v6947_v43 }
 0xdcd   :  { %v12310_v2 = vpop.eup %12309  ;;  %12327 = vpow2.f32 %v9435_v55  ;;  %v7010_v55 = vld [vmem:[#allocation2 + $0x100] sm:$0xff] }
 0xdce   :  { %v12312_v4 = vpop.eup %12311  ;;  %v6989_v30 = vmul.f32 %v12310_v2, %v12300_v39  ;;  %12329 = vpow2.f32 %v9434_v5  ;;  %v7013_v2 = vld [vmem:[#allocation2 + $0x118] sm:$0xff] }
 0xdcf   :  { %v12314_v21 = vpop.eup %12313  ;;  %v6992_v60 = vmul.f32 %v12312_v4, %v12306_v45 }
 0xdd0   :  { %v12316_v24 = vpop.eup %12315  ;;  %v6986_v41 = vmul.f32 %v12314_v21, %v15333_v46  ;;  %v7012_v21 = vld [vmem:[#allocation2 + $0x110] sm:$0xff] }
 0xdd1   :  { %v12318_v58 = vpop.eup %12317  ;;  %v6985_v29 = vmul.f32 %v12316_v24, %v15335_v37 }
 0xdd2   :  { %v12320_v50 = vpop.eup %12319  ;;  %v15465_v22 = vadd.f32 %v6990_v18, %v6986_v41  ;;  %v6991_v17 = vmul.f32 %v12318_v58, %v12308_v11 }
 0xdd3   :  { %v12322_v0 = vpop.eup %12321  ;;  %v15467_v32 = vadd.f32 %v6989_v30, %v6985_v29  ;;  %v6974_v23 = vadd.f32 1.0, %v12320_v50  ;;  %v7015_v29 = vld [vmem:[#allocation2 + $0x128] sm:$0xff] }
 0xdd4   :  { %v12324_v14 = vpop.eup %12323  ;;  %v6988_v20 = vmul.f32 %v12322_v0, %v15340_v6  ;;  %12331 = vtanh.f32 %v15465_v22  ;;  %v7014_v0 = vld [vmem:[#allocation2 + $0x120] sm:$0xff] }
 0xdd5   :  { %12333 = vtanh.f32 %v15467_v32  ;;  %v6973_v16 = vadd.f32 1.0, %v12324_v14 }
 0xdd6   :  { %v12326_v46 = vpop.eup %12325  ;;  %v15472_v26 = vadd.f32 %v6992_v60, %v6988_v20  ;;  %12335 = vrcp.f32 %v6974_v23 }
 0xdd7   :  { %v12328_v37 = vpop.eup %12327  ;;  %v6987_v59 = vmul.f32 %v12326_v46, %v15344_v56  ;;  %12337 = vrcp.f32 %v6973_v16  ;;  %v7017_v46 = vld [vmem:[#allocation2 + $0x138] sm:$0xff] }
 0xdd8   :  { %v12330_v31 = vpop.eup %12329  ;;  %12339 = vtanh.f32 %v15472_v26  ;;  %v6976_v7 = vadd.f32 1.0, %v12328_v37 }
 0xdd9   :  { %v15476_v54 = vadd.f32 %v6991_v17, %v6987_v59  ;;  %v6975_v6 = vadd.f32 1.0, %v12330_v31  ;;  %v7016_v31 = vld [vmem:[#allocation2 + $0x130] sm:$0xff] }
 0xdda   :  { %12341 = vrcp.f32 %v6976_v7 }
 0xddb   :  { %12343 = vtanh.f32 %v15476_v54 }
 0xddc   :  { %12345 = vrcp.f32 %v6975_v6 }
 0xdde   :  { %v12332_v42 = vpop.eup %12331 }
 0xddf   :  { %v12334_v51 = vpop.eup %12333 }
 0xde0   :  { %v12336_v1 = vpop.eup %12335 }
 0xde1   :  { %v12338_v35 = vpop.eup %12337  ;;  %v7002_v38 = vmul.f32 %v12336_v1, %v12332_v42 }
 0xde2   :  { %v12340_v3 = vpop.eup %12339  ;;  %v7001_v34 = vmul.f32 %v12338_v35, %v12334_v51 }
 0xde3   :  { %7007 = vst.msk [vmem:[#allocation6 + $0x28] sm:$0xff] %vm1396_vm3, %v7002_v38 }
 0xde4   :  { %v12342_v56 = vpop.eup %12341  ;;  %7006 = vst.msk [vmem:[#allocation6 + $0x20] sm:$0xff] %vm1396_vm3, %v7001_v34  ;;  %v11482_v62 = vpack.c.bf16 %v7002_v38, %v7001_v34 }
 0xde5   :  { %v12344_v39 = vpop.eup %12343  ;;  %v7004_v10 = vmul.f32 %v12342_v56, %v12340_v3  ;;  %v7019_v3 = vld [vmem:[#allocation2 + $0x148] sm:$0xff] }
 0xde6   :  { %v12346_v28 = vpop.eup %12345  ;;  %11483 = vmatprep.subr.bf16.mxu0 %v11482_v62 }
 0xde7   :  { %11485 = vmatpush3.bf16.msra.mxu0 %v11482_v62  ;;  %v7003_v44 = vmul.f32 %v12346_v28, %v12344_v39  ;;  %7009 = vst.msk [vmem:[#allocation6 + $0x38] sm:$0xff] %vm1396_vm3, %v7004_v10  ;;  %v7018_v28 = vld [vmem:[#allocation2 + $0x140] sm:$0xff] }
 0xde9   :  { %7008 = vst.msk [vmem:[#allocation6 + $0x30] sm:$0xff] %vm1396_vm3, %v7003_v44  ;;  %v11486_v9 = vpack.c.bf16 %v7004_v10, %v7003_v44 }
 0xdeb   :  { %11487 = vmatprep.subr.bf16.mxu0 %v11486_v9 }
 0xdec   :  { %11489 = vmatpush3.bf16.msra.mxu0 %v11486_v9 }
 0xdef   :  { %11115 = vmatmul.mubr.msk.f32.vlgmr.msra.gmra.mrb[228].mxu0 %vm1573_vm2, %v15354_v36 }
 0xdf0   :  { %11117 = vmatprep.mubr.msk.f32.mxu0 %vm1573_vm2, %v15361_v25 }
 0xdf3   :  { %11118 = vmatmul.mubr.msk.f32.gmra.mrb[230].mxu0 %vm1573_vm2, %v15368_v52 }
 0xdf4   :  { %11120 = vmatprep.mubr.msk.f32.mxu0 %vm1573_vm2, %v15375_v63 }
 0xdf7   :  { %11121 = vmatmul.mubr.msk.f32.gmra.mrb[232].mxu0 %vm1573_vm2, %v15382_v53 }
 0xdf8   :  { %11123 = vmatprep.mubr.msk.f32.mxu0 %vm1573_vm2, %v15389_v57 }
 0xdfb   :  { %11124 = vmatmul.mubr.msk.f32.gmra.mrb[234].mxu0 %vm1573_vm2, %v15396_v27 }
 0xdfc   :  { %11126 = vmatprep.mubr.msk.f32.mxu0 %vm1573_vm2, %v15403_v8 }
 0xdff   :  { %11127 = vmatmul.mubr.msk.f32.gmra.mrb[236].mxu0 %vm1573_vm2, %v15410_v19 }
 0xe00   :  { %11129 = vmatprep.mubr.msk.f32.mxu0 %vm1573_vm2, %v15417_v13 }
 0xe03   :  { %11130 = vmatmul.mubr.msk.f32.gmra.mrb[238].mxu0 %vm1573_vm2, %v15424_v49 }
 0xe04   :  { %11132 = vmatprep.mubr.msk.f32.mxu0 %vm1573_vm2, %v15431_v61 }
 0xe07   :  { %11133 = vmatmul.mubr.msk.f32.gmra.mrb[240].mxu0 %vm1573_vm2, %v15438_v47 }
 0xe08   :  { %11135 = vmatprep.mubr.msk.f32.mxu0 %vm1573_vm2, %v15445_v48 }
 0xe0b   :  { %11136 = vmatmul.mubr.msk.f32.gmra.mrb[242].mxu0 %vm1573_vm2, %v15452_v15 }
 0xe0c   :  { %11178 = vmatprep.mubr.msk.f32.mxu0 %vm1573_vm2, %v15459_v40 }
 0xec2   :  { %v11116_v12 = vpop.f32.mrb[228].mxu0 }
 0xec3   :  { %v7172_v43 = vadd.f32 %v11116_v12, %v7011_v33  ;;  %v7092_v45 = vpop.f32.mrb[229].mxu0  ;;  %v7021_v12 = vld [vmem:[#allocation2 + $0x158] sm:$0xff] }
 0xec4   :  { %v7171_v18 = vadd.f32 %v7092_v45, %v7010_v55 }
 0xec5   :  { %v9453_v5 = vmul.f32 -1.442695, %v7172_v43 }
 0xec6   :  { %v9452_v11 = vmul.f32 -1.442695, %v7171_v18  ;;  %v11119_v4 = vpop.f32.mrb[230].mxu0 }
 0xec7   :  { %12347 = vpow2.f32 %v9453_v5  ;;  %v7174_v30 = vadd.f32 %v11119_v4, %v7013_v2  ;;  %v7102_v60 = vpop.f32.mrb[231].mxu0 }
 0xec8   :  { %12349 = vpow2.f32 %v9452_v11  ;;  %v7173_v24 = vadd.f32 %v7102_v60, %v7012_v21  ;;  %v7020_v11 = vld [vmem:[#allocation2 + $0x150] sm:$0xff]  ;;  %v7023_v21 = vld [vmem:[#allocation2 + $0x168] sm:$0xff] }
 0xec9   :  { %v9455_v41 = vmul.f32 -1.442695, %v7174_v30 }
 0xeca   :  { %v9454_v58 = vmul.f32 -1.442695, %v7173_v24  ;;  %v11122_v50 = vpop.f32.mrb[232].mxu0 }
 0xecb   :  { %12351 = vpow2.f32 %v9455_v41  ;;  %v7176_v17 = vadd.f32 %v11122_v50, %v7015_v29  ;;  %v7112_v23 = vpop.f32.mrb[233].mxu0 }
 0xecc   :  { %12353 = vpow2.f32 %v9454_v58  ;;  %v7175_v14 = vadd.f32 %v7112_v23, %v7014_v0  ;;  %v7022_v58 = vld [vmem:[#allocation2 + $0x160] sm:$0xff] }
 0xecd   :  { %v9457_v20 = vmul.f32 -1.442695, %v7176_v17 }
 0xece   :  { %v9456_v16 = vmul.f32 -1.442695, %v7175_v14  ;;  %v11125_v37 = vpop.f32.mrb[234].mxu0 }
 0xecf   :  { %12355 = vpow2.f32 %v9457_v20  ;;  %v7178_v59 = vadd.f32 %v11125_v37, %v7017_v46  ;;  %v7122_v7 = vpop.f32.mrb[235].mxu0 }
 0xed0   :  { %12357 = vpow2.f32 %v9456_v16  ;;  %v7177_v6 = vadd.f32 %v7122_v7, %v7016_v31  ;;  %v7025_v16 = vld [vmem:[#allocation2 + $0x178] sm:$0xff]  ;;  %v7024_v31 = vld [vmem:[#allocation2 + $0x170] sm:$0xff] }
 0xed1   :  { %v12348_v42 = vpop.eup %12347  ;;  %v9459_v51 = vmul.f32 -1.442695, %v7178_v59 }
 0xed2   :  { %v12350_v1 = vpop.eup %12349  ;;  %v7200_v35 = vadd.f32 1.0, %v12348_v42  ;;  %v9458_v38 = vmul.f32 -1.442695, %v7177_v6  ;;  %v11128_v34 = vpop.f32.mrb[236].mxu0 }
 0xed3   :  { %v7199_v56 = vadd.f32 1.0, %v12350_v1  ;;  %12359 = vpow2.f32 %v9459_v51  ;;  %v7180_v62 = vadd.f32 %v11128_v34, %v7019_v3  ;;  %v7132_v39 = vpop.f32.mrb[237].mxu0 }
 0xed4   :  { %12361 = vrcp.f32 %v7200_v35  ;;  %v7179_v33 = vadd.f32 %v7132_v39, %v7018_v28 }
 0xed5   :  { %v12352_v10 = vpop.eup %12351  ;;  %12363 = vrcp.f32 %v7199_v56 }
 0xed6   :  { %v12354_v44 = vpop.eup %12353  ;;  %v7202_v9 = vadd.f32 1.0, %v12352_v10  ;;  %12365 = vpow2.f32 %v9458_v38  ;;  %v11131_v43 = vpop.f32.mrb[238].mxu0 }
 0xed7   :  { %v7201_v55 = vadd.f32 1.0, %v12354_v44  ;;  %12367 = vtanh.f32 %v7180_v62  ;;  %v7182_v45 = vadd.f32 %v11131_v43, %v7021_v12  ;;  %v7142_v18 = vpop.f32.mrb[239].mxu0 }
 0xed8   :  { %12369 = vrcp.f32 %v7202_v9  ;;  %v7181_v30 = vadd.f32 %v7142_v18, %v7020_v11 }
 0xed9   :  { %v12356_v5 = vpop.eup %12355  ;;  %12371 = vrcp.f32 %v7201_v55 }
 0xeda   :  { %v12358_v2 = vpop.eup %12357  ;;  %v7224_v4 = vadd.f32 1.0, %v12356_v5  ;;  %12373 = vtanh.f32 %v7179_v33  ;;  %v11134_v60 = vpop.f32.mrb[240].mxu0 }
 0xedb   :  { %v7223_v24 = vadd.f32 1.0, %v12358_v2  ;;  %12375 = vtanh.f32 %v7182_v45  ;;  %v7184_v41 = vadd.f32 %v11134_v60, %v7023_v21  ;;  %v7152_v29 = vpop.f32.mrb[241].mxu0 }
 0xedc   :  { %12377 = vrcp.f32 %v7224_v4  ;;  %v7183_v50 = vadd.f32 %v7152_v29, %v7022_v58 }
 0xedd   :  { %v12360_v17 = vpop.eup %12359  ;;  %12379 = vrcp.f32 %v7223_v24  ;;  %v9461_v0 = vmul.f32 -1.442695, %v7184_v41 }
 0xede   :  { %v12362_v23 = vpop.eup %12361  ;;  %v7226_v14 = vadd.f32 1.0, %v12360_v17  ;;  %12381 = vtanh.f32 %v7181_v30  ;;  %v9460_v20 = vmul.f32 -1.442695, %v7183_v50  ;;  %v11137_v46 = vpop.f32.mrb[242].mxu0 }
 0xedf   :  { %v12364_v37 = vpop.eup %12363  ;;  %12383 = vpow2.f32 %v9461_v0  ;;  %v7186_v59 = vadd.f32 %v11137_v46, %v7025_v16  ;;  %v7162_v7 = vpop.f32.mrb[243].mxu0 }
 0xee0   :  { %v12366_v6 = vpop.eup %12365  ;;  %12385 = vrcp.f32 %v7226_v14  ;;  %v7185_v42 = vadd.f32 %v7162_v7, %v7024_v31 }
 0xee1   :  { %v12368_v51 = vpop.eup %12367  ;;  %v7225_v1 = vadd.f32 1.0, %v12366_v6  ;;  %12387 = vpow2.f32 %v9460_v20  ;;  %v9463_v35 = vmul.f32 -1.442695, %v7186_v59 }
 0xee2   :  { %v12370_v38 = vpop.eup %12369  ;;  %v7268_v3 = vmul.f32 %v12368_v51, %v12362_v23  ;;  %v9462_v34 = vmul.f32 -1.442695, %v7185_v42  ;;  %v7293_v51 = vld [vmem:[#allocation2 + $0x328] sm:$0xff] }
 0xee3   :  { %v12372_v56 = vpop.eup %12371  ;;  %12389 = vrcp.f32 %v7225_v1 }
 0xee4   :  { %v12374_v62 = vpop.eup %12373  ;;  %12391 = vpow2.f32 %v9463_v35  ;;  %v7292_v35 = vld [vmem:[#allocation2 + $0x320] sm:$0xff] }
 0xee5   :  { %v12376_v39 = vpop.eup %12375  ;;  %v7267_v10 = vmul.f32 %v12374_v62, %v12364_v37  ;;  %12393 = vpow2.f32 %v9462_v34  ;;  %v7295_v62 = vld [vmem:[#allocation2 + $0x338] sm:$0xff] }
 0xee6   :  { %v12378_v28 = vpop.eup %12377  ;;  %v7270_v44 = vmul.f32 %v12376_v39, %v12370_v38 }
 0xee7   :  { %v12380_v9 = vpop.eup %12379  ;;  %v7264_v33 = vmul.f32 %v12378_v28, %v15465_v22  ;;  %v7294_v28 = vld [vmem:[#allocation2 + $0x330] sm:$0xff] }
 0xee8   :  { %v12382_v12 = vpop.eup %12381  ;;  %v7263_v43 = vmul.f32 %v12380_v9, %v15467_v32 }
 0xee9   :  { %v12384_v55 = vpop.eup %12383  ;;  %v15517_v45 = vadd.f32 %v7268_v3, %v7264_v33  ;;  %v7269_v18 = vmul.f32 %v12382_v12, %v12372_v56 }
 0xeea   :  { %v12386_v5 = vpop.eup %12385  ;;  %v15519_v11 = vadd.f32 %v7267_v10, %v7263_v43  ;;  %v7252_v2 = vadd.f32 1.0, %v12384_v55 }
 0xeeb   :  { %v12388_v4 = vpop.eup %12387  ;;  %v7266_v30 = vmul.f32 %v12386_v5, %v15472_v26  ;;  %12395 = vtanh.f32 %v15517_v45  ;;  %v7297_v5 = vld [vmem:[#allocation2 + $0x348] sm:$0xff] }
 0xeec   :  { %12397 = vtanh.f32 %v15519_v11  ;;  %v7251_v21 = vadd.f32 1.0, %v12388_v4 }
 0xeed   :  { %v12390_v22 = vpop.eup %12389  ;;  %v15524_v60 = vadd.f32 %v7270_v44, %v7266_v30  ;;  %12399 = vrcp.f32 %v7252_v2 }
 0xeee   :  { %v12392_v32 = vpop.eup %12391  ;;  %v7265_v24 = vmul.f32 %v12390_v22, %v15476_v54  ;;  %12401 = vrcp.f32 %v7251_v21 }
 0xeef   :  { %v12394_v41 = vpop.eup %12393  ;;  %12403 = vtanh.f32 %v15524_v60  ;;  %v7254_v58 = vadd.f32 1.0, %v12392_v32  ;;  %v7296_v32 = vld [vmem:[#allocation2 + $0x340] sm:$0xff] }
 0xef0   :  { %v15528_v29 = vadd.f32 %v7269_v18, %v7265_v24  ;;  %v7253_v26 = vadd.f32 1.0, %v12394_v41 }
 0xef1   :  { %12405 = vrcp.f32 %v7254_v58 }
 0xef2   :  { %12407 = vtanh.f32 %v15528_v29 }
 0xef3   :  { %12409 = vrcp.f32 %v7253_v26  ;;  %v7299_v26 = vld [vmem:[#allocation2 + $0x358] sm:$0xff] }
 0xef5   :  { %v12396_v50 = vpop.eup %12395 }
 0xef6   :  { %v12398_v17 = vpop.eup %12397 }
 0xef7   :  { %v12400_v0 = vpop.eup %12399 }
 0xef8   :  { %v12402_v23 = vpop.eup %12401  ;;  %v7280_v14 = vmul.f32 %v12400_v0, %v12396_v50 }
 0xef9   :  { %v12404_v20 = vpop.eup %12403  ;;  %v7279_v16 = vmul.f32 %v12402_v23, %v12398_v17 }
 0xefa   :  { %7285 = vst.msk [vmem:[#allocation5 + $0x48] sm:$0xff] %vm1396_vm3, %v7280_v14 }
 0xefb   :  { %v12406_v54 = vpop.eup %12405  ;;  %7284 = vst.msk [vmem:[#allocation5 + $0x40] sm:$0xff] %vm1396_vm3, %v7279_v16  ;;  %v11490_v46 = vpack.c.bf16 %v7280_v14, %v7279_v16 }
 0xefc   :  { %v12408_v37 = vpop.eup %12407  ;;  %v7282_v59 = vmul.f32 %v12406_v54, %v12404_v20  ;;  %v7298_v20 = vld [vmem:[#allocation2 + $0x350] sm:$0xff] }
 0xefd   :  { %v12410_v31 = vpop.eup %12409  ;;  %11491 = vmatprep.subr.bf16.mxu1 %v11490_v46 }
 0xefe   :  { %11493 = vmatpush3.bf16.msra.mxu1 %v11490_v46  ;;  %v7281_v7 = vmul.f32 %v12410_v31, %v12408_v37  ;;  %7287 = vst.msk [vmem:[#allocation5 + $0x58] sm:$0xff] %vm1396_vm3, %v7282_v59  ;;  %v7301_v37 = vld [vmem:[#allocation2 + $0x368] sm:$0xff] }
 0xf00   :  { %7286 = vst.msk [vmem:[#allocation5 + $0x50] sm:$0xff] %vm1396_vm3, %v7281_v7  ;;  %v11494_v6 = vpack.c.bf16 %v7282_v59, %v7281_v7 }
 0xf02   :  { %11495 = vmatprep.subr.bf16.mxu1 %v11494_v6 }
 0xf03   :  { %11497 = vmatpush3.bf16.msra.mxu1 %v11494_v6  ;;  %v7300_v6 = vld [vmem:[#allocation2 + $0x360] sm:$0xff] }
 0xf06   :  { %11147 = vmatmul.mubr.msk.f32.vlgmr.msra.gmra.mrb[228].mxu1 %vm1573_vm2, %v15354_v36  ;;  %v7289_v36 = vld [vmem:[#allocation2 + $0x308] sm:$0xff] }
 0xf07   :  { %11149 = vmatprep.mubr.msk.f32.mxu1 %vm1573_vm2, %v15361_v25 }
 0xf0a   :  { %11150 = vmatmul.mubr.msk.f32.gmra.mrb[230].mxu1 %vm1573_vm2, %v15368_v52 }
 0xf0b   :  { %11152 = vmatprep.mubr.msk.f32.mxu1 %vm1573_vm2, %v15375_v63  ;;  %v7288_v63 = vld [vmem:[#allocation2 + $0x300] sm:$0xff] }
 0xf0e   :  { %11153 = vmatmul.mubr.msk.f32.gmra.mrb[232].mxu1 %vm1573_vm2, %v15382_v53 }
 0xf0f   :  { %11155 = vmatprep.mubr.msk.f32.mxu1 %vm1573_vm2, %v15389_v57 }
 0xf12   :  { %11156 = vmatmul.mubr.msk.f32.gmra.mrb[234].mxu1 %vm1573_vm2, %v15396_v27 }
 0xf13   :  { %11158 = vmatprep.mubr.msk.f32.mxu1 %vm1573_vm2, %v15403_v8 }
 0xf16   :  { %11159 = vmatmul.mubr.msk.f32.gmra.mrb[236].mxu1 %vm1573_vm2, %v15410_v19  ;;  %v7291_v19 = vld [vmem:[#allocation2 + $0x318] sm:$0xff] }
 0xf17   :  { %11161 = vmatprep.mubr.msk.f32.mxu1 %vm1573_vm2, %v15417_v13 }
 0xf1a   :  { %11162 = vmatmul.mubr.msk.f32.gmra.mrb[238].mxu1 %vm1573_vm2, %v15424_v49 }
 0xf1b   :  { %11164 = vmatprep.mubr.msk.f32.mxu1 %vm1573_vm2, %v15431_v61  ;;  %v7290_v61 = vld [vmem:[#allocation2 + $0x310] sm:$0xff] }
 0xf1e   :  { %11165 = vmatmul.mubr.msk.f32.gmra.mrb[240].mxu1 %vm1573_vm2, %v15438_v47 }
 0xf1f   :  { %11167 = vmatprep.mubr.msk.f32.mxu1 %vm1573_vm2, %v15445_v48 }
 0xf22   :  { %11168 = vmatmul.mubr.msk.f32.gmra.mrb[242].mxu1 %vm1573_vm2, %v15452_v15 }
 0xf23   :  { %11210 = vmatprep.mubr.msk.f32.mxu1 %vm1573_vm2, %v15459_v40 }
 0xfd9   :  { %v11148_v25 = vpop.f32.mrb[228].mxu1 }
 0xfda   :  { %v7450_v52 = vadd.f32 %v11148_v25, %v7289_v36  ;;  %v7370_v53 = vpop.f32.mrb[229].mxu1 }
 0xfdb   :  { %v7449_v57 = vadd.f32 %v7370_v53, %v7288_v63 }
 0xfdc   :  { %v9481_v27 = vmul.f32 -1.442695, %v7450_v52 }
 0xfdd   :  { %v9480_v8 = vmul.f32 -1.442695, %v7449_v57  ;;  %v11151_v13 = vpop.f32.mrb[230].mxu1 }
 0xfde   :  { %12411 = vpow2.f32 %v9481_v27  ;;  %v7452_v49 = vadd.f32 %v11151_v13, %v7291_v19  ;;  %v7380_v47 = vpop.f32.mrb[231].mxu1 }
 0xfdf   :  { %12413 = vpow2.f32 %v9480_v8  ;;  %v7451_v48 = vadd.f32 %v7380_v47, %v7290_v61  ;;  %v7303_v8 = vld [vmem:[#allocation2 + $0x378] sm:$0xff]  ;;  %v7302_v61 = vld [vmem:[#allocation2 + $0x370] sm:$0xff] }
 0xfe0   :  { %v9483_v15 = vmul.f32 -1.442695, %v7452_v49 }
 0xfe1   :  { %v9482_v42 = vmul.f32 -1.442695, %v7451_v48  ;;  %v11154_v40 = vpop.f32.mrb[232].mxu1 }
 0xfe2   :  { %12415 = vpow2.f32 %v9483_v15  ;;  %v7454_v1 = vadd.f32 %v11154_v40, %v7293_v51  ;;  %v7390_v38 = vpop.f32.mrb[233].mxu1 }
 0xfe3   :  { %12417 = vpow2.f32 %v9482_v42  ;;  %v7453_v3 = vadd.f32 %v7390_v38, %v7292_v35 }
 0xfe4   :  { %v9485_v34 = vmul.f32 -1.442695, %v7454_v1 }
 0xfe5   :  { %v9484_v56 = vmul.f32 -1.442695, %v7453_v3  ;;  %v11157_v39 = vpop.f32.mrb[234].mxu1 }
 0xfe6   :  { %12419 = vpow2.f32 %v9485_v34  ;;  %v7456_v10 = vadd.f32 %v11157_v39, %v7295_v62  ;;  %v7400_v44 = vpop.f32.mrb[235].mxu1 }
 0xfe7   :  { %12421 = vpow2.f32 %v9484_v56  ;;  %v7455_v9 = vadd.f32 %v7400_v44, %v7294_v28 }
 0xfe8   :  { %v12412_v33 = vpop.eup %12411  ;;  %v9487_v12 = vmul.f32 -1.442695, %v7456_v10 }
 0xfe9   :  { %v12414_v43 = vpop.eup %12413  ;;  %v7478_v55 = vadd.f32 1.0, %v12412_v33  ;;  %v9486_v18 = vmul.f32 -1.442695, %v7455_v9  ;;  %v11160_v2 = vpop.f32.mrb[236].mxu1 }
 0xfea   :  { %v7477_v4 = vadd.f32 1.0, %v12414_v43  ;;  %12423 = vpow2.f32 %v9487_v12  ;;  %v7458_v30 = vadd.f32 %v11160_v2, %v7297_v5  ;;  %v7410_v21 = vpop.f32.mrb[237].mxu1 }
 0xfeb   :  { %12425 = vrcp.f32 %v7478_v55  ;;  %v7457_v58 = vadd.f32 %v7410_v21, %v7296_v32 }
 0xfec   :  { %v12416_v22 = vpop.eup %12415  ;;  %12427 = vrcp.f32 %v7477_v4 }
 0xfed   :  { %v12418_v24 = vpop.eup %12417  ;;  %v7480_v41 = vadd.f32 1.0, %v12416_v22  ;;  %12429 = vpow2.f32 %v9486_v18  ;;  %v11163_v50 = vpop.f32.mrb[238].mxu1 }
 0xfee   :  { %v7479_v17 = vadd.f32 1.0, %v12418_v24  ;;  %12431 = vtanh.f32 %v7458_v30  ;;  %v7460_v0 = vadd.f32 %v11163_v50, %v7299_v26  ;;  %v7420_v23 = vpop.f32.mrb[239].mxu1 }
 0xfef   :  { %12433 = vrcp.f32 %v7480_v41  ;;  %v7459_v46 = vadd.f32 %v7420_v23, %v7298_v20 }
 0xff0   :  { %v12420_v14 = vpop.eup %12419  ;;  %12435 = vrcp.f32 %v7479_v17 }
 0xff1   :  { %v12422_v16 = vpop.eup %12421  ;;  %v7502_v54 = vadd.f32 1.0, %v12420_v14  ;;  %12437 = vtanh.f32 %v7457_v58  ;;  %v11166_v59 = vpop.f32.mrb[240].mxu1 }
 0xff2   :  { %v7501_v31 = vadd.f32 1.0, %v12422_v16  ;;  %12439 = vtanh.f32 %v7460_v0  ;;  %v7462_v7 = vadd.f32 %v11166_v59, %v7301_v37  ;;  %v7430_v36 = vpop.f32.mrb[241].mxu1 }
 0xff3   :  { %12441 = vrcp.f32 %v7502_v54  ;;  %v7461_v25 = vadd.f32 %v7430_v36, %v7300_v6  ;;  %v8123_v36 = vld [vmem:[#allocation3] sm:$0xff] }
 0xff4   :  { %v12424_v52 = vpop.eup %12423  ;;  %12443 = vrcp.f32 %v7501_v31  ;;  %v9489_v63 = vmul.f32 -1.442695, %v7462_v7  ;;  %v8139_v31 = vld [vmem:[#allocation5] sm:$0xff]  ;;  %v8140_v7 = vld [vmem:[#allocation5 + $0x8] sm:$0xff] }
 0xff5   :  { %v12426_v53 = vpop.eup %12425  ;;  %v7504_v57 = vadd.f32 1.0, %v12424_v52  ;;  %12445 = vtanh.f32 %v7459_v46  ;;  %v9488_v27 = vmul.f32 -1.442695, %v7461_v25  ;;  %v11169_v19 = vpop.f32.mrb[242].mxu1  ;;  %v8124_v25 = vld [vmem:[#allocation3 + $0x8] sm:$0xff]  ;;  %v8155_v52 = vadd.f32 %v8139_v31, %v8123_v36 }
 0xff6   :  { %v12428_v13 = vpop.eup %12427  ;;  %12447 = vpow2.f32 %v9489_v63  ;;  %v7464_v49 = vadd.f32 %v11169_v19, %v7303_v8  ;;  %v7440_v47 = vpop.f32.mrb[243].mxu1  ;;  %v8156_v63 = vadd.f32 %v8140_v7, %v8124_v25  ;;  %v8125_v8 = vld [vmem:[#allocation3 + $0x10] sm:$0xff]  ;;  %v8126_v19 = vld [vmem:[#allocation3 + $0x18] sm:$0xff]  ;;  %v8180_v36 = vld [vmem:[#allocation4 + $0x48] sm:$0xff] }
 0xff7   :  { %v12430_v48 = vpop.eup %12429  ;;  %12449 = vrcp.f32 %v7504_v57  ;;  %v7463_v15 = vadd.f32 %v7440_v47, %v7302_v61  ;;  %v8142_v57 = vld [vmem:[#allocation5 + $0x18] sm:$0xff]  ;;  %v15591_v47 = vld [vmem:[%s15844_s9 + $0x8] sm:$0xff] }
 0xff8   :  { %v12432_v42 = vpop.eup %12431  ;;  %v7503_v51 = vadd.f32 1.0, %v12430_v48  ;;  %12451 = vpow2.f32 %v9488_v27  ;;  %v9491_v40 = vmul.f32 -1.442695, %v7464_v49  ;;  %v12758_v27 = vmov 0.0|0.0   ;;  %v15598_v48 = vld [vmem:[%s15844_s9 + $0x10] sm:$0xff] }
 0xff9   :  { %v12434_v1 = vpop.eup %12433  ;;  %v7546_v35 = vmul.f32 %v12432_v42, %v12426_v53  ;;  %v9490_v38 = vmul.f32 -1.442695, %v7463_v15  ;;  %v8141_v53 = vld [vmem:[#allocation5 + $0x10] sm:$0xff]  ;;  %v8158_v61 = vadd.f32 %v8142_v57, %v8126_v19  ;;  %v15606_v42 = vld [vmem:[%s15844_s9 + $0x18] sm:$0xff] }
 0xffa   :  { %v12436_v3 = vpop.eup %12435  ;;  %12453 = vrcp.f32 %v7503_v51  ;;  %v8157_v49 = vadd.f32 %v8141_v53, %v8125_v8  ;;  %v15613_v51 = vld [vmem:[%s15844_s9 + $0x20] sm:$0xff]  ;;  %v8181_v8 = vld [vmem:[#allocation4 + $0x50] sm:$0xff]  ;;  %v8182_v19 = vld [vmem:[#allocation4 + $0x58] sm:$0xff] }
 0xffb   :  { %v12438_v34 = vpop.eup %12437  ;;  %12455 = vpow2.f32 %v9491_v40  ;;  %v15621_v40 = vld [vmem:[%s15844_s9 + $0x28] sm:$0xff] }
 0xffc   :  { %v12440_v56 = vpop.eup %12439  ;;  %v7545_v62 = vmul.f32 %v12438_v34, %v12428_v13  ;;  %12457 = vpow2.f32 %v9490_v38  ;;  %v11515_v13 = vpack.c.bf16 %v8156_v63, %v8155_v52  ;;  %v11518_v15 = vpack.c.bf16 %v8158_v61, %v8157_v49  ;;  %v15642_v38 = vld [vmem:[%s15844_s9 + $0x40] sm:$0xff]  ;;  %v15656_v34 = vld [vmem:[%s15844_s9 + $0x50] sm:$0xff] }
 0xffd   :  { %v12442_v39 = vpop.eup %12441  ;;  %v7548_v10 = vmul.f32 %v12440_v56, %v12434_v1  ;;  %v15628_v1 = vld [vmem:[%s15844_s9 + $0x30] sm:$0xff]  ;;  %v15663_v56 = vld [vmem:[%s15844_s9 + $0x58] sm:$0xff] }
 0xffe   :  { %v12444_v28 = vpop.eup %12443  ;;  %v7542_v44 = vmul.f32 %v12442_v39, %v15517_v45  ;;  %v15677_v39 = vld [vmem:[%s15844_s9 + $0x68] sm:$0xff] }
 0xfff   :  { %v12446_v9 = vpop.eup %12445  ;;  %v7541_v33 = vmul.f32 %v12444_v28, %v15519_v11  ;;  %v8148_v28 = vld [vmem:[#allocation5 + $0x48] sm:$0xff] }
0x1000   :  { %v12448_v12 = vpop.eup %12447  ;;  %v15569_v43 = vadd.f32 %v7546_v35, %v7542_v44  ;;  %v7547_v55 = vmul.f32 %v12446_v9, %v12436_v3  ;;  %v15635_v35 = vld [vmem:[%s15844_s9 + $0x38] sm:$0xff]  ;;  %v15649_v3 = vld [vmem:[%s15844_s9 + $0x48] sm:$0xff]  ;;  %v15684_v44 = vld [vmem:[%s15844_s9 + $0x70] sm:$0xff] }
0x1001   :  { %v12450_v18 = vpop.eup %12449  ;;  %v15571_v5 = vadd.f32 %v7545_v62, %v7541_v33  ;;  %v7530_v2 = vadd.f32 1.0, %v12448_v12  ;;  %v15670_v62 = vld [vmem:[%s15844_s9 + $0x60] sm:$0xff]  ;;  %v8132_v33 = vld [vmem:[#allocation3 + $0x48] sm:$0xff] }
0x1002   :  { %v12452_v4 = vpop.eup %12451  ;;  %v7544_v30 = vmul.f32 %v12450_v18, %v15524_v60  ;;  %12459 = vtanh.f32 %v15569_v43  ;;  %v8131_v9 = vld [vmem:[#allocation3 + $0x40] sm:$0xff]  ;;  %v15691_v18 = vld [vmem:[%s15844_s9 + $0x78] sm:$0xff]  ;;  %s12760_s9 = smov [#allocation7]  }
0x1003   :  { %12461 = vtanh.f32 %v15571_v5  ;;  %v7529_v21 = vadd.f32 1.0, %v12452_v4  ;;  %v8150_v4 = vld [vmem:[#allocation5 + $0x58] sm:$0xff] }
0x1004   :  { %v12454_v45 = vpop.eup %12453  ;;  %v15576_v22 = vadd.f32 %v7548_v10, %v7544_v30  ;;  %12463 = vrcp.f32 %v7530_v2  ;;  %v8147_v10 = vld [vmem:[#allocation5 + $0x40] sm:$0xff]  ;;  %v8149_v2 = vld [vmem:[#allocation5 + $0x50] sm:$0xff]  ;;  %v15870_v30 = vmov 0.0  }
0x1005   :  { %v12456_v11 = vpop.eup %12455  ;;  %v7543_v32 = vmul.f32 %v12454_v45, %v15528_v29  ;;  %12465 = vrcp.f32 %v7529_v21  ;;  %v8163_v12 = vadd.f32 %v8147_v10, %v8131_v9  ;;  %v15700_v21 = vld [vmem:[%s15845_s10] sm:$0xf]  ;;  %v8133_v45 = vld [vmem:[#allocation3 + $0x50] sm:$0xff]  ;;  %v7567_v10 = vld [vmem:[#allocation2 + $0x188] sm:$0xff]  ;;  %s8809_s10 = sshll.u32 %s12760_s9, 4  ;;  %s8810_s10 = int_to_ptr.vmem [resolvable:$true] %s8809_s10 }
0x1006   :  { %v12458_v24 = vpop.eup %12457  ;;  %12467 = vtanh.f32 %v15576_v22  ;;  %v7532_v41 = vadd.f32 1.0, %v12456_v11  ;;  %v8134_v11 = vld [vmem:[#allocation3 + $0x58] sm:$0xff]  ;;  %s12732_s21 = scalar_lea.vmem %s8810_s10, 512  ;;  %p12737_p1 = scmp.lt.s32.totalorder %s8810_s10, %s8810_s10 }
0x1007   :  { %v15580_v58 = vadd.f32 %v7547_v55, %v7543_v32  ;;  %v7531_v60 = vadd.f32 1.0, %v12458_v24  ;;  %v8164_v55 = vadd.f32 %v8148_v28, %v8132_v33  ;;  %v8165_v24 = vadd.f32 %v8149_v2, %v8133_v45  ;;  %v7566_v33 = vld [vmem:[#allocation2 + $0x180] sm:$0xff]  ;;  %v7569_v45 = vld [vmem:[#allocation2 + $0x198] sm:$0xff]  ;;  %p12733_p0 = scmp.ne.s32.totalorder %s8810_s10, %s12732_s21  ;;  %p12738_p2 = scmp.lt.s32.totalorder %s12732_s21, %s12732_s21 }
0x1008   :  { %12469 = vrcp.f32 %v7532_v41  ;;  %v8166_v41 = vadd.f32 %v8150_v4, %v8134_v11 }
0x1009   :  { %12471 = vtanh.f32 %v15580_v58  ;;  %v11527_v32 = vpack.c.bf16 %v8164_v55, %v8163_v12  ;;  %p12739_p3 = por %p12738_p2, %p12737_p1 }
0x100a   :  { %12473 = vrcp.f32 %v7531_v60  ;;  %v8187_v60 = vld [vmem:[#allocation6] sm:$0xff] }
0x100b   :  { %p12740_p4 = pnand %p12739_p3, %p12733_p0 }
0x100c   :  { %v12460_v26 = vpop.eup %12459 }
0x100d   :  { %v12462_v50 = vpop.eup %12461 }
0x100e   :  { %v12464_v17 = vpop.eup %12463 }
0x100f   :  { %v12466_v0 = vpop.eup %12465  ;;  %v7558_v23 = vmul.f32 %v12464_v17, %v12460_v26  ;;  %v8188_v26 = vld [vmem:[#allocation6 + $0x8] sm:$0xff] }
0x1010   :  { %v12468_v14 = vpop.eup %12467  ;;  %v7557_v20 = vmul.f32 %v12466_v0, %v12462_v50  ;;  %v8171_v50 = vld [vmem:[#allocation4] sm:$0xff]  ;;  %v8172_v17 = vld [vmem:[#allocation4 + $0x8] sm:$0xff]  ;;  %v11530_v0 = vpack.c.bf16 %v8166_v41, %v8165_v24  ;;  %v7568_v24 = vld [vmem:[#allocation2 + $0x190] sm:$0xff] }
0x1011   :  { %7563 = vst.msk [vmem:[#allocation6 + $0x48] sm:$0xff] %vm1396_vm3, %v7558_v23 }
0x1012   :  { %v12470_v29 = vpop.eup %12469  ;;  %7562 = vst.msk [vmem:[#allocation6 + $0x40] sm:$0xff] %vm1396_vm3, %v7557_v20  ;;  %v11498_v16 = vpack.c.bf16 %v7558_v23, %v7557_v20  ;;  %v8203_v23 = vadd.f32 %v8187_v60, %v8171_v50  ;;  %v8189_v20 = vld [vmem:[#allocation6 + $0x10] sm:$0xff] }
0x1013   :  { %v12472_v54 = vpop.eup %12471  ;;  %v7560_v46 = vmul.f32 %v12470_v29, %v12468_v14  ;;  %v8204_v14 = vadd.f32 %v8188_v26, %v8172_v17  ;;  %v8190_v29 = vld [vmem:[#allocation6 + $0x18] sm:$0xff]  ;;  %v7571_v17 = vld [vmem:[#allocation2 + $0x1a8] sm:$0xff] }
0x1014   :  { %v12474_v37 = vpop.eup %12473  ;;  %11499 = vmatprep.subr.bf16.mxu0 %v11498_v16 }
0x1015   :  { %11501 = vmatpush3.bf16.msra.mxu0 %v11498_v16  ;;  %v7559_v59 = vmul.f32 %v12474_v37, %v12472_v54  ;;  %7565 = vst.msk [vmem:[#allocation6 + $0x58] sm:$0xff] %vm1396_vm3, %v7560_v46  ;;  %v8173_v16 = vld [vmem:[#allocation4 + $0x10] sm:$0xff]  ;;  %v8174_v54 = vld [vmem:[#allocation4 + $0x18] sm:$0xff] }
0x1016   :  { %v8205_v37 = vadd.f32 %v8189_v20, %v8173_v16 }
0x1017   :  { %7564 = vst.msk [vmem:[#allocation6 + $0x50] sm:$0xff] %vm1396_vm3, %v7559_v59  ;;  %v11502_v6 = vpack.c.bf16 %v7560_v46, %v7559_v59  ;;  %v11539_v46 = vpack.c.bf16 %v8204_v14, %v8203_v23  ;;  %v8206_v59 = vadd.f32 %v8190_v29, %v8174_v54  ;;  %v7570_v14 = vld [vmem:[#allocation2 + $0x1a0] sm:$0xff] }
0x1018   :  { %v8196_v7 = vld [vmem:[#allocation6 + $0x48] sm:$0xff] }
0x1019   :  { %11503 = vmatprep.subr.bf16.mxu0 %v11502_v6  ;;  %v8195_v31 = vld [vmem:[#allocation6 + $0x40] sm:$0xff]  ;;  %v11542_v25 = vpack.c.bf16 %v8206_v59, %v8205_v37  ;;  %v8212_v63 = vadd.f32 %v8196_v7, %v8180_v36 }
0x101a   :  { %11505 = vmatpush3.bf16.msra.mxu0 %v11502_v6  ;;  %v8179_v6 = vld [vmem:[#allocation4 + $0x40] sm:$0xff] }
0x101b   :  { %11514 = vmatprep.subr.bf16.mxu0 %v12758_v27  ;;  %v8211_v52 = vadd.f32 %v8195_v31, %v8179_v6  ;;  %v7572_v31 = vld [vmem:[#allocation2 + $0x1b0] sm:$0xff] }
0x101c   :  { %v8198_v57 = vld [vmem:[#allocation6 + $0x58] sm:$0xff] }
0x101d   :  { %11179 = vmatmul.mubr.msk.f32.vlgmr.msra.gmra.mrb[244].mxu0 %vm1573_vm2, %v15591_v47  ;;  %v8214_v61 = vadd.f32 %v8198_v57, %v8182_v19  ;;  %v7575_v57 = vld [vmem:[#allocation2 + $0x1c8] sm:$0xff] }
0x101e   :  { %11516 = vmatpush3.bf16.msra.mxu0 %v11515_v13  ;;  %11181 = vmatprep.mubr.msk.f32.mxu0 %vm1573_vm2, %v15598_v48  ;;  %v8197_v53 = vld [vmem:[#allocation6 + $0x50] sm:$0xff]  ;;  %v11551_v13 = vpack.c.bf16 %v8212_v63, %v8211_v52 }
0x101f   :  { %11517 = vmatprep.subr.bf16.mxu0 %v12758_v27  ;;  %v8213_v49 = vadd.f32 %v8197_v53, %v8181_v8 }
0x1021   :  { %11182 = vmatmul.mubr.msk.f32.gmra.mrb[246].mxu0 %vm1573_vm2, %v15606_v42 }
0x1022   :  { %11519 = vmatpush3.bf16.msra.mxu0 %v11518_v15  ;;  %11184 = vmatprep.mubr.msk.f32.mxu0 %vm1573_vm2, %v15613_v51  ;;  %v11554_v15 = vpack.c.bf16 %v8214_v61, %v8213_v49 }
0x1023   :  { %11526 = vmatprep.subr.bf16.mxu0 %v12758_v27 }
0x1025   :  { %11185 = vmatmul.mubr.msk.f32.gmra.mrb[248].mxu0 %vm1573_vm2, %v15621_v40 }
0x1026   :  { %11187 = vmatprep.mubr.msk.f32.mxu0 %vm1573_vm2, %v15628_v1 }
0x1029   :  { %11188 = vmatmul.mubr.msk.f32.gmra.mrb[250].mxu0 %vm1573_vm2, %v15635_v35 }
0x102a   :  { %11190 = vmatprep.mubr.msk.f32.mxu0 %vm1573_vm2, %v15642_v38 }
0x102d   :  { %11191 = vmatmul.mubr.msk.f32.gmra.mrb[252].mxu0 %vm1573_vm2, %v15649_v3 }
0x102e   :  { %11193 = vmatprep.mubr.msk.f32.mxu0 %vm1573_vm2, %v15656_v34 }
0x1031   :  { %11194 = vmatmul.mubr.msk.f32.gmra.mrb[254].mxu0 %vm1573_vm2, %v15663_v56 }
0x1032   :  { %11196 = vmatprep.mubr.msk.f32.mxu0 %vm1573_vm2, %v15670_v62 }
0x1035   :  { %11197 = vmatmul.mubr.msk.f32.gmra.mrb[0].mxu0 %vm1573_vm2, %v15677_v39 }
0x1036   :  { %11199 = vmatprep.mubr.msk.f32.mxu0 %vm1573_vm2, %v15684_v44 }
0x1039   :  { %11200 = vmatmul.mubr.msk.f32.gmra.mrb[2].mxu0 %vm1573_vm2, %v15691_v18 }
0x103a   :  { %11242 = vmatprep.mubr.msk.f32.mxu0 %vm12759_vm5, %v15870_v30 }
0x103d   :  { %11243 = vmatmul.mubr.msk.f32.vlgmr.msra.gmra.mrb[4].mxu0 %vm1573_vm2, %v15700_v21 }
0x103e   :  { %11528 = vmatpush3.bf16.msra.mxu0 %v11527_v32  ;;  %11264 = vmatprep.mubr.msk.f32.mxu0 %vm12759_vm5, %v15870_v30 }
0x103f   :  { %11529 = vmatprep.subr.bf16.mxu0 %v12758_v27 }
0x1042   :  { %11531 = vmatpush3.bf16.msra.mxu0 %v11530_v0 }
0x1043   :  { %11538 = vmatprep.subr.bf16.mxu0 %v12758_v27 }
0x1045   :  { %11265 = vmatmul.mubr.msk.f32.vlgmr.msra.gmra.mrb[6].mxu0 %vm1573_vm2, %v15700_v21 }
0x1046   :  { %11540 = vmatpush3.bf16.msra.mxu0 %v11539_v46  ;;  %11286 = vmatprep.mubr.msk.f32.mxu0 %vm12759_vm5, %v15870_v30  ;;  %v7573_v46 = vld [vmem:[#allocation2 + $0x1b8] sm:$0xff] }
0x1047   :  { %11541 = vmatprep.subr.bf16.mxu0 %v12758_v27 }
0x104a   :  { %11543 = vmatpush3.bf16.msra.mxu0 %v11542_v25 }
0x104b   :  { %11550 = vmatprep.subr.bf16.mxu0 %v12758_v27 }
0x104d   :  { %11287 = vmatmul.mubr.msk.f32.vlgmr.msra.gmra.mrb[8].mxu0 %vm1573_vm2, %v15700_v21 }
0x104e   :  { %11552 = vmatpush3.bf16.msra.mxu0 %v11551_v13  ;;  %11308 = vmatprep.mubr.msk.f32.mxu0 %vm12759_vm5, %v15870_v30 }
0x104f   :  { %11553 = vmatprep.subr.bf16.mxu0 %v12758_v27 }
0x1052   :  { %11555 = vmatpush3.bf16.msra.mxu0 %v11554_v15  ;;  %v7574_v15 = vld [vmem:[#allocation2 + $0x1c0] sm:$0xff] }
0x1055   :  { %11309 = vmatmul.mubr.msk.f32.vlgmr.msra.gmra.mrb[10].mxu0 %vm1573_vm2, %v15700_v21 }
0x10f0   :  { %v11180_v28 = vpop.f32.mrb[244].mxu0 }
0x10f1   :  { %v7728_v9 = vadd.f32 %v11180_v28, %v7567_v10  ;;  %v7648_v12 = vpop.f32.mrb[245].mxu0 }
0x10f2   :  { %v7727_v55 = vadd.f32 %v7648_v12, %v7566_v33  ;;  %v7577_v33 = vld [vmem:[#allocation2 + $0x1d8] sm:$0xff] }
0x10f3   :  { %v9509_v2 = vmul.f32 -1.442695, %v7728_v9 }
0x10f4   :  { %v9508_v4 = vmul.f32 -1.442695, %v7727_v55  ;;  %v11183_v11 = vpop.f32.mrb[246].mxu0 }
0x10f5   :  { %12475 = vpow2.f32 %v9509_v2  ;;  %v7730_v32 = vadd.f32 %v11183_v11, %v7569_v45  ;;  %v7658_v41 = vpop.f32.mrb[247].mxu0  ;;  %v7576_v11 = vld [vmem:[#allocation2 + $0x1d0] sm:$0xff] }
0x10f6   :  { %12477 = vpow2.f32 %v9508_v4  ;;  %v7729_v60 = vadd.f32 %v7658_v41, %v7568_v24 }
0x10f7   :  { %v9511_v26 = vmul.f32 -1.442695, %v7730_v32 }
0x10f8   :  { %v9510_v50 = vmul.f32 -1.442695, %v7729_v60  ;;  %v11186_v0 = vpop.f32.mrb[248].mxu0  ;;  %v7579_v60 = vld [vmem:[#allocation2 + $0x1e8] sm:$0xff] }
0x10f9   :  { %12479 = vpow2.f32 %v9511_v26  ;;  %v7732_v23 = vadd.f32 %v11186_v0, %v7571_v17  ;;  %v7668_v20 = vpop.f32.mrb[249].mxu0  ;;  %v7578_v0 = vld [vmem:[#allocation2 + $0x1e0] sm:$0xff] }
0x10fa   :  { %12481 = vpow2.f32 %v9510_v50  ;;  %v7731_v29 = vadd.f32 %v7668_v20, %v7570_v14 }
0x10fb   :  { %v9513_v16 = vmul.f32 -1.442695, %v7732_v23 }
0x10fc   :  { %v9512_v54 = vmul.f32 -1.442695, %v7731_v29  ;;  %v11189_v37 = vpop.f32.mrb[250].mxu0 }
0x10fd   :  { %12483 = vpow2.f32 %v9513_v16  ;;  %v7734_v59 = vadd.f32 %v11189_v37, %v7573_v46  ;;  %v7678_v7 = vpop.f32.mrb[251].mxu0  ;;  %v7581_v37 = vld [vmem:[#allocation2 + $0x1f8] sm:$0xff] }
0x10fe   :  { %12485 = vpow2.f32 %v9512_v54  ;;  %v7733_v6 = vadd.f32 %v7678_v7, %v7572_v31 }
0x10ff   :  { %v12476_v36 = vpop.eup %12475  ;;  %v9515_v25 = vmul.f32 -1.442695, %v7734_v59 }
0x1100   :  { %v12478_v52 = vpop.eup %12477  ;;  %v7756_v63 = vadd.f32 1.0, %v12476_v36  ;;  %v9514_v53 = vmul.f32 -1.442695, %v7733_v6  ;;  %v11192_v8 = vpop.f32.mrb[252].mxu0  ;;  %v7580_v6 = vld [vmem:[#allocation2 + $0x1f0] sm:$0xff] }
0x1101   :  { %v7755_v19 = vadd.f32 1.0, %v12478_v52  ;;  %12487 = vpow2.f32 %v9515_v25  ;;  %v7736_v13 = vadd.f32 %v11192_v8, %v7575_v57  ;;  %v7688_v49 = vpop.f32.mrb[253].mxu0 }
0x1102   :  { %12489 = vrcp.f32 %v7756_v63  ;;  %v7735_v9 = vadd.f32 %v7688_v49, %v7574_v15 }
0x1103   :  { %v12480_v61 = vpop.eup %12479  ;;  %12491 = vrcp.f32 %v7755_v19  ;;  %v15721_v19 = vpop.permute.xlu0 %8222 }
0x1104   :  { %v12482_v10 = vpop.eup %12481  ;;  %v7758_v28 = vadd.f32 1.0, %v12480_v61  ;;  %12493 = vpow2.f32 %v9514_v53  ;;  %v11195_v12 = vpop.f32.mrb[254].mxu0 }
0x1105   :  { %v7757_v55 = vadd.f32 1.0, %v12482_v10  ;;  %12495 = vtanh.f32 %v7736_v13  ;;  %v7738_v2 = vadd.f32 %v11195_v12, %v7577_v33  ;;  %v7698_v4 = vpop.f32.mrb[255].mxu0 }
0x1106   :  { %12497 = vrcp.f32 %v7758_v28  ;;  %v7737_v41 = vadd.f32 %v7698_v4, %v7576_v11 }
0x1107   :  { %v12484_v45 = vpop.eup %12483  ;;  %12499 = vrcp.f32 %v7757_v55 }
0x1108   :  { %v12486_v32 = vpop.eup %12485  ;;  %v7780_v24 = vadd.f32 1.0, %v12484_v45  ;;  %12501 = vtanh.f32 %v7735_v9  ;;  %v11198_v26 = vpop.f32.mrb[0].mxu0 }
0x1109   :  { %v7779_v50 = vadd.f32 1.0, %v12486_v32  ;;  %12503 = vtanh.f32 %v7738_v2  ;;  %v7740_v17 = vadd.f32 %v11198_v26, %v7579_v60  ;;  %v7708_v23 = vpop.f32.mrb[1].mxu0 }
0x110a   :  { %12505 = vrcp.f32 %v7780_v24  ;;  %v7739_v14 = vadd.f32 %v7708_v23, %v7578_v0 }
0x110b   :  { %v12488_v20 = vpop.eup %12487  ;;  %12507 = vrcp.f32 %v7779_v50  ;;  %v9517_v29 = vmul.f32 -1.442695, %v7740_v17 }
0x110c   :  { %v12490_v16 = vpop.eup %12489  ;;  %v7782_v54 = vadd.f32 1.0, %v12488_v20  ;;  %12509 = vtanh.f32 %v7737_v41  ;;  %v9516_v46 = vmul.f32 -1.442695, %v7739_v14  ;;  %v11201_v59 = vpop.f32.mrb[2].mxu0 }
0x110d   :  { %v12492_v31 = vpop.eup %12491  ;;  %12511 = vpow2.f32 %v9517_v29  ;;  %v7742_v7 = vadd.f32 %v11201_v59, %v7581_v37  ;;  %v7718_v36 = vpop.f32.mrb[3].mxu0 }
0x110e   :  { %v12494_v25 = vpop.eup %12493  ;;  %12513 = vrcp.f32 %v7782_v54  ;;  %v7741_v52 = vadd.f32 %v7718_v36, %v7580_v6 }
0x110f   :  { %v12496_v63 = vpop.eup %12495  ;;  %v7781_v53 = vadd.f32 1.0, %v12494_v25  ;;  %12515 = vpow2.f32 %v9516_v46  ;;  %v9519_v57 = vmul.f32 -1.442695, %v7742_v7  ;;  %v15742_v7 = vpop.permute.xlu1 %8516 }
0x1110   :  { %v12498_v8 = vpop.eup %12497  ;;  %v7824_v13 = vmul.f32 %v12496_v63, %v12490_v16  ;;  %v9518_v49 = vmul.f32 -1.442695, %v7741_v52  ;;  %v8294_v61 = vpop.f32.mrb[4].mxu0 }
0x1111   :  { %v12500_v15 = vpop.eup %12499  ;;  %12517 = vrcp.f32 %v7781_v53  ;;  %v8295_v10 = vadd.f32 %v8294_v61, %v15721_v19  ;;  %v11244_v28 = vpop.f32.mrb[5].mxu0 }
0x1112   :  { %v12502_v9 = vpop.eup %12501  ;;  %12519 = vpow2.f32 %v9519_v57 }
0x1113   :  { %v12504_v33 = vpop.eup %12503  ;;  %v7823_v12 = vmul.f32 %v12502_v9, %v12492_v31  ;;  %12521 = vpow2.f32 %v9518_v49  ;;  %8509 = vst.msk [vmem:[#allocation7] sm:$0xf] %vm8508_vm6, %v8295_v10 }
0x1114   :  { %v12506_v55 = vpop.eup %12505  ;;  %v7826_v2 = vmul.f32 %v12504_v33, %v12498_v8 }
0x1115   :  { %v12508_v4 = vpop.eup %12507  ;;  %v7820_v45 = vmul.f32 %v12506_v55, %v15569_v43 }
0x1116   :  { %v12510_v11 = vpop.eup %12509  ;;  %v7819_v32 = vmul.f32 %v12508_v4, %v15571_v5  ;;  %v8144_v4 = vld [vmem:[#allocation5 + $0x28] sm:$0xff] }
0x1117   :  { %v12512_v24 = vpop.eup %12511  ;;  %v15727_v41 = vadd.f32 %v7824_v13, %v7820_v45  ;;  %v7825_v60 = vmul.f32 %v12510_v11, %v12500_v15  ;;  %v8127_v11 = vld [vmem:[#allocation3 + $0x20] sm:$0xff] }
0x1118   :  { %v12514_v26 = vpop.eup %12513  ;;  %v15729_v50 = vadd.f32 %v7823_v12, %v7819_v32  ;;  %v7808_v17 = vadd.f32 1.0, %v12512_v24  ;;  %v8434_v0 = vpop.f32.mrb[6].mxu0  ;;  %v8128_v32 = vld [vmem:[#allocation3 + $0x28] sm:$0xff] }
0x1119   :  { %v12516_v23 = vpop.eup %12515  ;;  %v7822_v14 = vmul.f32 %v12514_v26, %v15576_v22  ;;  %12523 = vtanh.f32 %v15727_v41  ;;  %v8435_v20 = vadd.f32 %v8434_v0, %v15721_v19  ;;  %v11266_v43 = vpop.f32.mrb[7].mxu0  ;;  %v8145_v26 = vld [vmem:[#allocation5 + $0x30] sm:$0xff] }
0x111a   :  { %12525 = vtanh.f32 %v15729_v50  ;;  %v7807_v5 = vadd.f32 1.0, %v12516_v23  ;;  %v8129_v0 = vld [vmem:[#allocation3 + $0x30] sm:$0xff]  ;;  %v8130_v23 = vld [vmem:[#allocation3 + $0x38] sm:$0xff] }
0x111b   :  { %v12518_v29 = vpop.eup %12517  ;;  %v15735_v16 = vadd.f32 %v7826_v2, %v7822_v14  ;;  %12527 = vrcp.f32 %v7808_v17  ;;  %8511 = vst.msk [vmem:[#allocation7 + $0x8] sm:$0xf] %vm8508_vm6, %v8435_v20  ;;  %v8143_v2 = vld [vmem:[#allocation5 + $0x20] sm:$0xff]  ;;  %v8146_v17 = vld [vmem:[#allocation5 + $0x38] sm:$0xff]  ;;  %v8161_v20 = vadd.f32 %v8145_v26, %v8129_v0 }
0x111c   :  { %v12520_v54 = vpop.eup %12519  ;;  %v7821_v46 = vmul.f32 %v12518_v29, %v15580_v58  ;;  %12529 = vrcp.f32 %v7807_v5  ;;  %v8159_v24 = vadd.f32 %v8143_v2, %v8127_v11  ;;  %v8162_v43 = vadd.f32 %v8146_v17, %v8130_v23  ;;  %v8192_v29 = vld [vmem:[#allocation6 + $0x28] sm:$0xff] }
0x111d   :  { %v12522_v37 = vpop.eup %12521  ;;  %12531 = vtanh.f32 %v15735_v16  ;;  %v7810_v22 = vadd.f32 1.0, %v12520_v54  ;;  %v8176_v54 = vld [vmem:[#allocation4 + $0x28] sm:$0xff] }
0x111e   :  { %v15740_v59 = vadd.f32 %v7825_v60, %v7821_v46  ;;  %v7809_v31 = vadd.f32 1.0, %v12522_v37  ;;  %v8160_v60 = vadd.f32 %v8144_v4, %v8128_v32  ;;  %v11524_v5 = vpack.c.bf16 %v8162_v43, %v8161_v20  ;;  %v7849_v32 = vld [vmem:[#allocation2 + $0x3a8] sm:$0xff] }
0x111f   :  { %12533 = vrcp.f32 %v7810_v22  ;;  %v8208_v22 = vadd.f32 %v8192_v29, %v8176_v54 }
0x1120   :  { %12535 = vtanh.f32 %v15740_v59  ;;  %v8585_v6 = vpop.f32.mrb[8].mxu0  ;;  %v11521_v14 = vpack.c.bf16 %v8160_v60, %v8159_v24  ;;  %v7848_v60 = vld [vmem:[#allocation2 + $0x3a0] sm:$0xff] }
0x1121   :  { %12537 = vrcp.f32 %v7809_v31  ;;  %v8586_v36 = vadd.f32 %v8585_v6, %v15742_v7  ;;  %v11288_v25 = vpop.f32.mrb[9].mxu0  ;;  %v8193_v31 = vld [vmem:[#allocation6 + $0x30] sm:$0xff]  ;;  %v8194_v6 = vld [vmem:[#allocation6 + $0x38] sm:$0xff] }
0x1122   :  { %v8178_v25 = vld [vmem:[#allocation4 + $0x38] sm:$0xff] }
0x1123   :  { %v12524_v52 = vpop.eup %12523  ;;  %8800 = vst.msk [vmem:[#allocation7 + $0x10] sm:$0xf] %vm8508_vm6, %v8586_v36  ;;  %v8177_v36 = vld [vmem:[#allocation4 + $0x30] sm:$0xff] }
0x1124   :  { %v12526_v58 = vpop.eup %12525 }
0x1125   :  { %v12528_v63 = vpop.eup %12527 }
0x1126   :  { %v12530_v53 = vpop.eup %12529  ;;  %v7836_v57 = vmul.f32 %v12528_v63, %v12524_v52  ;;  %v8210_v63 = vadd.f32 %v8194_v6, %v8178_v25  ;;  %v7854_v25 = vld [vmem:[#allocation2 + $0x3d0] sm:$0xff] }
0x1127   :  { %v12532_v8 = vpop.eup %12531  ;;  %v7835_v13 = vmul.f32 %v12530_v53, %v12526_v58  ;;  %v8209_v58 = vadd.f32 %v8193_v31, %v8177_v36 }
0x1128   :  { %v8725_v49 = vpop.f32.mrb[10].mxu0  ;;  %7841 = vst.msk [vmem:[#allocation5 + $0x68] sm:$0xff] %vm1396_vm3, %v7836_v57 }
0x1129   :  { %v12534_v61 = vpop.eup %12533  ;;  %v8726_v15 = vadd.f32 %v8725_v49, %v15742_v7  ;;  %7840 = vst.msk [vmem:[#allocation5 + $0x60] sm:$0xff] %vm1396_vm3, %v7835_v13  ;;  %v11506_v10 = vpack.c.bf16 %v7836_v57, %v7835_v13  ;;  %v11310_v28 = vpop.f32.mrb[11].mxu0  ;;  %v11548_v53 = vpack.c.bf16 %v8210_v63, %v8209_v58  ;;  %v7845_v57 = vld [vmem:[#allocation2 + $0x388] sm:$0xff]  ;;  %v7844_v49 = vld [vmem:[#allocation2 + $0x380] sm:$0xff] }
0x112a   :  { %v12536_v9 = vpop.eup %12535  ;;  %v7838_v33 = vmul.f32 %v12534_v61, %v12532_v8 }
0x112b   :  { %v12538_v12 = vpop.eup %12537  ;;  %8802 = vst.msk [vmem:[#allocation7 + $0x18] sm:$0xf] %vm8508_vm6, %v8726_v15  ;;  %11507 = vmatprep.subr.bf16.mxu1 %v11506_v10 }
0x112c   :  { %11509 = vmatpush3.bf16.msra.mxu1 %v11506_v10  ;;  %v7837_v55 = vmul.f32 %v12538_v12, %v12536_v9  ;;  %7843 = vst.msk [vmem:[#allocation5 + $0x78] sm:$0xff] %vm1396_vm3, %v7838_v33  ;;  %v7847_v9 = vld [vmem:[#allocation2 + $0x398] sm:$0xff] }
0x112e   :  { %7842 = vst.msk [vmem:[#allocation5 + $0x70] sm:$0xff] %vm1396_vm3, %v7837_v55  ;;  %v11510_v45 = vpack.c.bf16 %v7838_v33, %v7837_v55  ;;  %v7846_v55 = vld [vmem:[#allocation2 + $0x390] sm:$0xff] }
0x1130   :  { %11511 = vmatprep.subr.bf16.mxu1 %v11510_v45 }
0x1131   :  { %11513 = vmatpush3.bf16.msra.mxu1 %v11510_v45 }
0x1132   :  { %11520 = vmatprep.subr.bf16.mxu1 %v12758_v27 }
0x1134   :  { %11211 = vmatmul.mubr.msk.f32.vlgmr.msra.gmra.mrb[244].mxu1 %vm1573_vm2, %v15591_v47  ;;  %v8151_v47 = vld [vmem:[#allocation5 + $0x60] sm:$0xff] }
0x1135   :  { %11522 = vmatpush3.bf16.msra.mxu1 %v11521_v14  ;;  %11213 = vmatprep.mubr.msk.f32.mxu1 %vm1573_vm2, %v15598_v48  ;;  %v8152_v48 = vld [vmem:[#allocation5 + $0x68] sm:$0xff]  ;;  %v7851_v14 = vld [vmem:[#allocation2 + $0x3b8] sm:$0xff] }
0x1136   :  { %11523 = vmatprep.subr.bf16.mxu1 %v12758_v27 }
0x1138   :  { %11214 = vmatmul.mubr.msk.f32.gmra.mrb[246].mxu1 %vm1573_vm2, %v15606_v42  ;;  %v8135_v42 = vld [vmem:[#allocation3 + $0x60] sm:$0xff] }
0x1139   :  { %11525 = vmatpush3.bf16.msra.mxu1 %v11524_v5  ;;  %11216 = vmatprep.mubr.msk.f32.mxu1 %vm1573_vm2, %v15613_v51  ;;  %v8136_v51 = vld [vmem:[#allocation3 + $0x68] sm:$0xff]  ;;  %v7850_v5 = vld [vmem:[#allocation2 + $0x3b0] sm:$0xff] }
0x113a   :  { %11532 = vmatprep.subr.bf16.mxu1 %v12758_v27 }
0x113c   :  { %11217 = vmatmul.mubr.msk.f32.gmra.mrb[248].mxu1 %vm1573_vm2, %v15621_v40  ;;  %v8167_v40 = vadd.f32 %v8151_v47, %v8135_v42 }
0x113d   :  { %11219 = vmatprep.mubr.msk.f32.mxu1 %vm1573_vm2, %v15628_v1  ;;  %v8168_v1 = vadd.f32 %v8152_v48, %v8136_v51 }
0x1140   :  { %11220 = vmatmul.mubr.msk.f32.gmra.mrb[250].mxu1 %vm1573_vm2, %v15635_v35  ;;  %v8153_v35 = vld [vmem:[#allocation5 + $0x70] sm:$0xff] }
0x1141   :  { %11222 = vmatprep.mubr.msk.f32.mxu1 %vm1573_vm2, %v15642_v38  ;;  %v8154_v38 = vld [vmem:[#allocation5 + $0x78] sm:$0xff] }
0x1144   :  { %11223 = vmatmul.mubr.msk.f32.gmra.mrb[252].mxu1 %vm1573_vm2, %v15649_v3  ;;  %v8137_v3 = vld [vmem:[#allocation3 + $0x70] sm:$0xff] }
0x1145   :  { %11225 = vmatprep.mubr.msk.f32.mxu1 %vm1573_vm2, %v15656_v34  ;;  %v8138_v34 = vld [vmem:[#allocation3 + $0x78] sm:$0xff] }
0x1148   :  { %11226 = vmatmul.mubr.msk.f32.gmra.mrb[254].mxu1 %vm1573_vm2, %v15663_v56  ;;  %v11533_v56 = vpack.c.bf16 %v8168_v1, %v8167_v40 }
0x1149   :  { %11228 = vmatprep.mubr.msk.f32.mxu1 %vm1573_vm2, %v15670_v62  ;;  %v8169_v62 = vadd.f32 %v8153_v35, %v8137_v3 }
0x114c   :  { %11229 = vmatmul.mubr.msk.f32.gmra.mrb[0].mxu1 %vm1573_vm2, %v15677_v39  ;;  %v8170_v39 = vadd.f32 %v8154_v38, %v8138_v34  ;;  %v7853_v38 = vld [vmem:[#allocation2 + $0x3c8] sm:$0xff] }
0x114d   :  { %11231 = vmatprep.mubr.msk.f32.mxu1 %vm1573_vm2, %v15684_v44  ;;  %v8191_v44 = vld [vmem:[#allocation6 + $0x20] sm:$0xff] }
0x114e   :  { %v11536_v46 = vpack.c.bf16 %v8170_v39, %v8169_v62 }
0x1150   :  { %11232 = vmatmul.mubr.msk.f32.gmra.mrb[2].mxu1 %vm1573_vm2, %v15691_v18  ;;  %v8175_v18 = vld [vmem:[#allocation4 + $0x20] sm:$0xff] }
0x1151   :  { %11253 = vmatprep.mubr.msk.f32.mxu1 %vm12759_vm5, %v15870_v30  ;;  %v8207_v37 = vadd.f32 %v8191_v44, %v8175_v18  ;;  %v7852_v44 = vld [vmem:[#allocation2 + $0x3c0] sm:$0xff] }
0x1153   :  { %v11545_v52 = vpack.c.bf16 %v8208_v22, %v8207_v37 }
0x1154   :  { %11254 = vmatmul.mubr.msk.f32.vlgmr.msra.gmra.mrb[4].mxu1 %vm1573_vm2, %v15700_v21 }
0x1155   :  { %11534 = vmatpush3.bf16.msra.mxu1 %v11533_v56  ;;  %11275 = vmatprep.mubr.msk.f32.mxu1 %vm12759_vm5, %v15870_v30 }
0x1156   :  { %11535 = vmatprep.subr.bf16.mxu1 %v12758_v27 }
0x1159   :  { %11537 = vmatpush3.bf16.msra.mxu1 %v11536_v46  ;;  %v7855_v46 = vld [vmem:[#allocation2 + $0x3d8] sm:$0xff] }
0x115a   :  { %11544 = vmatprep.subr.bf16.mxu1 %v12758_v27 }
0x115c   :  { %11276 = vmatmul.mubr.msk.f32.vlgmr.msra.gmra.mrb[6].mxu1 %vm1573_vm2, %v15700_v21 }
0x115d   :  { %11546 = vmatpush3.bf16.msra.mxu1 %v11545_v52  ;;  %11297 = vmatprep.mubr.msk.f32.mxu1 %vm12759_vm5, %v15870_v30 }
0x115e   :  { %11547 = vmatprep.subr.bf16.mxu1 %v12758_v27 }
0x1161   :  { %11549 = vmatpush3.bf16.msra.mxu1 %v11548_v53  ;;  %v7857_v53 = vld [vmem:[#allocation2 + $0x3e8] sm:$0xff] }
0x1162   :  { %11556 = vmatprep.subr.bf16.mxu1 %v12758_v27 }
0x1164   :  { %11298 = vmatmul.mubr.msk.f32.vlgmr.msra.gmra.mrb[8].mxu1 %vm1573_vm2, %v15700_v21 }
0x1165   :  { %11319 = vmatprep.mubr.msk.f32.mxu1 %vm12759_vm5, %v15870_v30 }
0x1207   :  { %v11212_v8 = vpop.f32.mrb[244].mxu1 }
0x1208   :  { %v8006_v13 = vadd.f32 %v11212_v8, %v7845_v57  ;;  %v7926_v61 = vpop.f32.mrb[245].mxu1 }
0x1209   :  { %v8005_v15 = vadd.f32 %v7926_v61, %v7844_v49  ;;  %v7856_v49 = vld [vmem:[#allocation2 + $0x3e0] sm:$0xff] }
0x120a   :  { %v9537_v10 = vmul.f32 -1.442695, %v8006_v13 }
0x120b   :  { %v9536_v28 = vmul.f32 -1.442695, %v8005_v15  ;;  %v11215_v33 = vpop.f32.mrb[246].mxu1 }
0x120c   :  { %12539 = vpow2.f32 %v9537_v10  ;;  %v8008_v12 = vadd.f32 %v11215_v33, %v7847_v9  ;;  %v7936_v2 = vpop.f32.mrb[247].mxu1 }
0x120d   :  { %12541 = vpow2.f32 %v9536_v28  ;;  %v8007_v4 = vadd.f32 %v7936_v2, %v7846_v55  ;;  %v7859_v55 = vld [vmem:[#allocation2 + $0x3f8] sm:$0xff] }
0x120e   :  { %v9539_v45 = vmul.f32 -1.442695, %v8008_v12 }
0x120f   :  { %v9538_v11 = vmul.f32 -1.442695, %v8007_v4  ;;  %v11218_v30 = vpop.f32.mrb[248].mxu1 }
0x1210   :  { %12543 = vpow2.f32 %v9539_v45  ;;  %v8010_v24 = vadd.f32 %v11218_v30, %v7849_v32  ;;  %v7946_v26 = vpop.f32.mrb[249].mxu1 }
0x1211   :  { %12545 = vpow2.f32 %v9538_v11  ;;  %v8009_v17 = vadd.f32 %v7946_v26, %v7848_v60  ;;  %v7858_v11 = vld [vmem:[#allocation2 + $0x3f0] sm:$0xff] }
0x1212   :  { %v9541_v0 = vmul.f32 -1.442695, %v8010_v24 }
0x1213   :  { %v9540_v23 = vmul.f32 -1.442695, %v8009_v17  ;;  %v11221_v20 = vpop.f32.mrb[250].mxu1 }
0x1214   :  { %12547 = vpow2.f32 %v9541_v0  ;;  %v8012_v43 = vadd.f32 %v11221_v20, %v7851_v14  ;;  %v7956_v47 = vpop.f32.mrb[251].mxu1 }
0x1215   :  { %12549 = vpow2.f32 %v9540_v23  ;;  %v8011_v48 = vadd.f32 %v7956_v47, %v7850_v5 }
0x1216   :  { %v12540_v42 = vpop.eup %12539  ;;  %v9543_v51 = vmul.f32 -1.442695, %v8012_v43 }
0x1217   :  { %v12542_v40 = vpop.eup %12541  ;;  %v8034_v1 = vadd.f32 1.0, %v12540_v42  ;;  %v9542_v35 = vmul.f32 -1.442695, %v8011_v48  ;;  %v11224_v3 = vpop.f32.mrb[252].mxu1 }
0x1218   :  { %v8033_v34 = vadd.f32 1.0, %v12542_v40  ;;  %12551 = vpow2.f32 %v9543_v51  ;;  %v8014_v56 = vadd.f32 %v11224_v3, %v7853_v38  ;;  %v7966_v62 = vpop.f32.mrb[253].mxu1 }
0x1219   :  { %12553 = vrcp.f32 %v8034_v1  ;;  %v8013_v54 = vadd.f32 %v7966_v62, %v7852_v44 }
0x121a   :  { %v12544_v39 = vpop.eup %12543  ;;  %12555 = vrcp.f32 %v8033_v34 }
0x121b   :  { %v12546_v29 = vpop.eup %12545  ;;  %v8036_v18 = vadd.f32 1.0, %v12544_v39  ;;  %12557 = vpow2.f32 %v9542_v35  ;;  %v11227_v37 = vpop.f32.mrb[254].mxu1 }
0x121c   :  { %v8035_v22 = vadd.f32 1.0, %v12546_v29  ;;  %12559 = vtanh.f32 %v8014_v56  ;;  %v8016_v31 = vadd.f32 %v11227_v37, %v7855_v46  ;;  %v7976_v6 = vpop.f32.mrb[255].mxu1 }
0x121d   :  { %12561 = vrcp.f32 %v8036_v18  ;;  %v8015_v63 = vadd.f32 %v7976_v6, %v7854_v25 }
0x121e   :  { %v12548_v36 = vpop.eup %12547  ;;  %12563 = vrcp.f32 %v8035_v22 }
0x121f   :  { %v12550_v52 = vpop.eup %12549  ;;  %v8058_v58 = vadd.f32 1.0, %v12548_v36  ;;  %12565 = vtanh.f32 %v8013_v54  ;;  %v11230_v57 = vpop.f32.mrb[0].mxu1 }
0x1220   :  { %v8057_v8 = vadd.f32 1.0, %v12550_v52  ;;  %12567 = vtanh.f32 %v8016_v31  ;;  %v8018_v13 = vadd.f32 %v11230_v57, %v7857_v53  ;;  %v7986_v61 = vpop.f32.mrb[1].mxu1 }
0x1221   :  { %12569 = vrcp.f32 %v8058_v58  ;;  %v8017_v15 = vadd.f32 %v7986_v61, %v7856_v49 }
0x1222   :  { %v12552_v10 = vpop.eup %12551  ;;  %12571 = vrcp.f32 %v8057_v8  ;;  %v9545_v28 = vmul.f32 -1.442695, %v8018_v13 }
0x1223   :  { %v12554_v9 = vpop.eup %12553  ;;  %v8060_v33 = vadd.f32 1.0, %v12552_v10  ;;  %12573 = vtanh.f32 %v8015_v63  ;;  %v9544_v12 = vmul.f32 -1.442695, %v8017_v15  ;;  %v11233_v2 = vpop.f32.mrb[2].mxu1 }
0x1224   :  { %v12556_v4 = vpop.eup %12555  ;;  %12575 = vpow2.f32 %v9545_v28  ;;  %v8020_v45 = vadd.f32 %v11233_v2, %v7859_v55  ;;  %v7996_v32 = vpop.f32.mrb[3].mxu1  ;;  %v8184_v2 = vld [vmem:[#allocation4 + $0x68] sm:$0xff] }
0x1225   :  { %v12558_v30 = vpop.eup %12557  ;;  %12577 = vrcp.f32 %v8060_v33  ;;  %v8019_v24 = vadd.f32 %v7996_v32, %v7858_v11 }
0x1226   :  { %v12560_v60 = vpop.eup %12559  ;;  %v8059_v26 = vadd.f32 1.0, %v12558_v30  ;;  %12579 = vpow2.f32 %v9544_v12  ;;  %v9547_v17 = vmul.f32 -1.442695, %v8020_v45  ;;  %v8183_v45 = vld [vmem:[#allocation4 + $0x60] sm:$0xff] }
0x1227   :  { %v12562_v0 = vpop.eup %12561  ;;  %v8102_v23 = vmul.f32 %v12560_v60, %v12554_v9  ;;  %v9546_v14 = vmul.f32 -1.442695, %v8019_v24  ;;  %v8364_v20 = vpop.f32.mrb[4].mxu1  ;;  %v8186_v60 = vld [vmem:[#allocation4 + $0x78] sm:$0xff] }
0x1228   :  { %v12564_v43 = vpop.eup %12563  ;;  %12581 = vrcp.f32 %v8059_v26  ;;  %v8365_v5 = vadd.f32 %v8364_v20, %v15721_v19  ;;  %v11255_v47 = vpop.f32.mrb[5].mxu1 }
0x1229   :  { %v12566_v48 = vpop.eup %12565  ;;  %12583 = vpow2.f32 %v9547_v17 }
0x122a   :  { %v12568_v42 = vpop.eup %12567  ;;  %v8101_v51 = vmul.f32 %v12566_v48, %v12556_v4  ;;  %12585 = vpow2.f32 %v9546_v14  ;;  %8510 = vst.msk [vmem:[#allocation7 + $0x4] sm:$0xf] %vm8508_vm6, %v8365_v5 }
0x122b   :  { %v12570_v40 = vpop.eup %12569  ;;  %v8104_v1 = vmul.f32 %v12568_v42, %v12562_v0  ;;  %v8185_v0 = vld [vmem:[#allocation4 + $0x70] sm:$0xff] }
0x122c   :  { %v12572_v35 = vpop.eup %12571  ;;  %v8098_v38 = vmul.f32 %v12570_v40, %v15727_v41 }
0x122d   :  { %v12574_v3 = vpop.eup %12573  ;;  %v8097_v34 = vmul.f32 %v12572_v35, %v15729_v50 }
0x122e   :  { %v12576_v56 = vpop.eup %12575  ;;  %v8106_v62 = vadd.f32 %v8102_v23, %v8098_v38  ;;  %v8103_v39 = vmul.f32 %v12574_v3, %v12564_v43 }
0x122f   :  { %v12578_v44 = vpop.eup %12577  ;;  %v8105_v29 = vadd.f32 %v8101_v51, %v8097_v34  ;;  %v8086_v18 = vadd.f32 1.0, %v12576_v56  ;;  %v8504_v54 = vpop.f32.mrb[6].mxu1 }
0x1230   :  { %v12580_v46 = vpop.eup %12579  ;;  %v8100_v37 = vmul.f32 %v12578_v44, %v15735_v16  ;;  %12587 = vtanh.f32 %v8106_v62  ;;  %v8505_v22 = vadd.f32 %v8504_v54, %v15721_v19  ;;  %v11277_v31 = vpop.f32.mrb[7].mxu1 }
0x1231   :  { %12589 = vtanh.f32 %v8105_v29  ;;  %v8085_v6 = vadd.f32 1.0, %v12580_v46 }
0x1232   :  { %v12582_v41 = vpop.eup %12581  ;;  %v8108_v36 = vadd.f32 %v8104_v1, %v8100_v37  ;;  %12591 = vrcp.f32 %v8086_v18  ;;  %8512 = vst.msk [vmem:[#allocation7 + $0xc] sm:$0xf] %vm8508_vm6, %v8505_v22 }
0x1233   :  { %v12584_v50 = vpop.eup %12583  ;;  %v8099_v25 = vmul.f32 %v12582_v41, %v15740_v59  ;;  %12593 = vrcp.f32 %v8085_v6 }
0x1234   :  { %v12586_v52 = vpop.eup %12585  ;;  %12595 = vtanh.f32 %v8108_v36  ;;  %v8088_v58 = vadd.f32 1.0, %v12584_v50 }
0x1235   :  { %v8107_v63 = vadd.f32 %v8103_v39, %v8099_v25  ;;  %v8087_v16 = vadd.f32 1.0, %v12586_v52 }
0x1236   :  { %12597 = vrcp.f32 %v8088_v58 }
0x1237   :  { %12599 = vtanh.f32 %v8107_v63  ;;  %v8655_v19 = vpop.f32.mrb[8].mxu1 }
0x1238   :  { %12601 = vrcp.f32 %v8087_v16  ;;  %v8656_v53 = vadd.f32 %v8655_v19, %v15742_v7  ;;  %v11299_v57 = vpop.f32.mrb[9].mxu1 }
0x123a   :  { %v12588_v8 = vpop.eup %12587  ;;  %8801 = vst.msk [vmem:[#allocation7 + $0x14] sm:$0xf] %vm8508_vm6, %v8656_v53 }
0x123b   :  { %v12590_v13 = vpop.eup %12589 }
0x123c   :  { %v12592_v49 = vpop.eup %12591 }
0x123d   :  { %v12594_v61 = vpop.eup %12593  ;;  %v8114_v59 = vmul.f32 %v12592_v49, %v12588_v8 }
0x123e   :  { %v12596_v15 = vpop.eup %12595  ;;  %v8113_v10 = vmul.f32 %v12594_v61, %v12590_v13 }
0x123f   :  { %8119 = vst.msk [vmem:[#allocation6 + $0x68] sm:$0xff] %vm1396_vm3, %v8114_v59 }
0x1240   :  { %v12598_v28 = vpop.eup %12597  ;;  %8118 = vst.msk [vmem:[#allocation6 + $0x60] sm:$0xff] %vm1396_vm3, %v8113_v10 }
0x1241   :  { %v12600_v9 = vpop.eup %12599  ;;  %v8116_v33 = vmul.f32 %v12598_v28, %v12596_v15 }
0x1242   :  { %v12602_v12 = vpop.eup %12601 }
0x1243   :  { %8121 = vst.msk [vmem:[#allocation6 + $0x78] sm:$0xff] %vm1396_vm3, %v8116_v33  ;;  %v8115_v55 = vmul.f32 %v12602_v12, %v12600_v9 }
0x1245   :  { %8120 = vst.msk [vmem:[#allocation6 + $0x70] sm:$0xff] %vm1396_vm3, %v8115_v55 }
0x1246   :  { %v8200_v4 = vld [vmem:[#allocation6 + $0x68] sm:$0xff] }
0x1247   :  { %v8199_v11 = vld [vmem:[#allocation6 + $0x60] sm:$0xff]  ;;  %v8216_v32 = vadd.f32 %v8200_v4, %v8184_v2 }
0x1248   :  { %v8215_v30 = vadd.f32 %v8199_v11, %v8183_v45 }
0x124a   :  { %v11557_v24 = vpack.c.bf16 %v8216_v32, %v8215_v30  ;;  %v8202_v26 = vld [vmem:[#allocation6 + $0x78] sm:$0xff] }
0x124b   :  { %v8218_v17 = vadd.f32 %v8202_v26, %v8186_v60 }
0x124c   :  { %11558 = vmatpush3.bf16.msra.mxu1 %v11557_v24  ;;  %v8201_v23 = vld [vmem:[#allocation6 + $0x70] sm:$0xff] }
0x124d   :  { %11559 = vmatprep.subr.bf16.mxu1 %v12758_v27  ;;  %v8217_v14 = vadd.f32 %v8201_v23, %v8185_v0 }
0x124f   :  { %v11560_v20 = vpack.c.bf16 %v8218_v17, %v8217_v14 }
0x1251   :  { %11561 = vmatpush3.bf16.msra.mxu1 %v11560_v20 }
0x1254   :  { %11320 = vmatmul.mubr.msk.f32.vlgmr.msra.gmra.mrb[10].mxu1 %vm1573_vm2, %v15700_v21 }
0x1327   :  { %v8795_v43 = vpop.f32.mrb[10].mxu1 }
0x1328   :  { %v8796_v5 = vadd.f32 %v8795_v43, %v15742_v7  ;;  %v11321_v47 = vpop.f32.mrb[11].mxu1 }
0x132a   :  { %8803 = vst.msk [vmem:[#allocation7 + $0x1c] sm:$0xf] %vm8508_vm6, %v8796_v5 }
0x132b   :  { %12743 = shalt.err (!%p12740_p4)
}
0x132c   :  { %s12744_s24 = scalar_lea.hbm %s15847_s12, 512 }
0x132d   :  { %p12745_p5 = scmp.ne.s32.totalorder %s15847_s12, %s12744_s24  ;;  %p12748_p6 = scmp.lt.u32.totalorder %s12744_s24, %s15847_s12 }
0x132f   :  { %p12750_p7 = pnand %p12748_p6, %p12745_p5 }
0x1331   :  { %12753 = shalt.err (!%p12750_p7)
}
0x1332   :  { %s12761_s26 = smov 64   ;;  %s12762_s27 = smov 4  }
0x1333   :  { %8815 = dma.vmem_to_hbm [thread:$0]  %s8810_s10, 512, %s15847_s12, [#allocation8], %s12761_s26, %s12761_s26, %s12762_s27  }
0x1334   :  { %12754 = dma.done.wait [#allocation8], 512  }
0x1335   :  { %12755 = vsyncadd [#allocation8], 4294966784 }
0x1336   :  { %8819 = vsyncpa [#allocation8], 1 }

</bundles_post_ra>
